<compile_context>
chip_gen: v7x
topology: tpu7x:2x2x1
jax: 0.10.0
libtpu: 0.0.40
codegen_flags: <defaults>
</compile_context>

<pallas_src>
import numpy as np
import jax
import jax.numpy as jnp
from jax.experimental import pallas as pl
from jax.experimental.pallas import tpu as pltpu

_VMEM = pl.BlockSpec(memory_space=pltpu.MemorySpace.VMEM)
_MIB = 1024 * 1024


def _round_up(x, m):
    return ((x + m - 1) // m) * m


def _device_config():
    """-> (target_block, vmem_limit_bytes, min_grid_blocks) based on VMEM size."""
    vmem_cap = None
    try:
        vmem_cap = getattr(pltpu.get_tpu_info(), "vmem_capacity_bytes", None)
    except Exception:
        vmem_cap = None
    if not vmem_cap:
        try:
            kind = jax.devices()[0].device_kind.lower()
            vmem_cap = 64 * _MIB if "v7" in kind else 128 * _MIB
        except Exception:
            vmem_cap = 128 * _MIB
    if vmem_cap <= 64 * _MIB:
        # v7x-class: 64 MiB VMEM, 2 TensorCores/chip -> smaller block, grid >= 2.
        return 64, 48 * _MIB, 2
    # v5e / v6e: 128 MiB VMEM, 1 TensorCore -> fill the MXU M rows.
    return 128, 96 * _MIB, 1


def _pick_block(n, target, min_blocks, bytes_fn, budget, align=16):
    """Largest batch block (multiple of `align`) that fits the VMEM budget and,
    on multi-core parts, leaves at least `min_blocks` grid steps when possible."""
    n_aligned = _round_up(max(n, 1), align)
    blk = max(align, (min(target, n_aligned) // align) * align)
    if min_blocks > 1 and n_aligned >= min_blocks * align:
        cap = (n_aligned // min_blocks // align) * align
        blk = min(blk, max(align, cap))
    while blk > align and bytes_fn(blk) > budget:
        blk = max(align, ((blk // 2) // align) * align)
    return blk


def _lstm_cell(gates, c_prev, H):
    """PyTorch gate order i, f, g, o.  gates: (N, 4H) f32, 128-lane-aligned slices."""
    i = jax.nn.sigmoid(gates[:, 0 * H:1 * H])
    f = jax.nn.sigmoid(gates[:, 1 * H:2 * H])
    g = jnp.tanh(gates[:, 2 * H:3 * H])
    o = jax.nn.sigmoid(gates[:, 3 * H:4 * H])
    c = f * c_prev + i * g
    h = o * jnp.tanh(c)
    return h, c


# -----------------------------------------------------------------------------
# Kernel 1: fused embedder = 2 x bi-LSTM(H=128) + mean over time + Linear(256->128)
# -----------------------------------------------------------------------------
def _embedder_kernel(x_ref, w_ih1_ref, w_hh1_ref, b1_ref,
                     w_ih2_ref, w_hh2_ref, b2_ref,
                     w_lin_ref, b_lin_ref, out_ref,
                     gx_sc, seq_sc, h_sc, c_sc, sum_sc):
    T, N, E = x_ref.shape
    H = h_sc.shape[1] // 2          # per-direction hidden (128)
    H4 = 4 * H

    def bilstm_pass(w_hh_ref, store_fn):
        # Fused fwd/bwd recurrence: one block-diagonal h @ W_hh push per step.
        # TODO(synk): on v5e (128-wide MXU) two per-direction matmuls would halve
        # the serial-chain tile pushes; fused K=256 is optimal on v6e/v7x.
        h_sc[...] = jnp.zeros_like(h_sc)
        c_sc[...] = jnp.zeros_like(c_sc)

        @pl.loop(0, T)
        def _(s):
            rev = T - 1 - s
            g_h = jnp.dot(h_sc[...].astype(jnp.bfloat16), w_hh_ref[...],
                          preferred_element_type=jnp.float32)        # (N, 8H) f32
            g_f = gx_sc[s][:, :H4].astype(jnp.float32) + g_h[:, :H4]
            g_b = gx_sc[rev][:, H4:].astype(jnp.float32) + g_h[:, H4:]
            c_prev = c_sc[...]
            hf, cf = _lstm_cell(g_f, c_prev[:, :H], H)
            hb, cb = _lstm_cell(g_b, c_prev[:, H:], H)
            h_new = jnp.concatenate([hf, hb], axis=-1)
            h_sc[...] = h_new
            c_sc[...] = jnp.concatenate([cf, cb], axis=-1)
            store_fn(s, rev, hf, hb, h_new)

    # ---- layer 1: hoisted (T*N, E) @ (E, 8H) input matmul, bias folded, bf16 cache
    x2d = x_ref[...].reshape(T * N, E)                               # already bf16
    gx1 = jnp.dot(x2d, w_ih1_ref[...], preferred_element_type=jnp.float32)
    gx_sc[...] = (gx1 + b1_ref[...]).reshape(T, N, 2 * H4).astype(jnp.bfloat16)

    def store1(s, rev, hf, hb, h_new):
        # lane-packed layer-1 output: fwd in lanes [:H] at s, bwd in [H:] at rev
        seq_sc[s, :, :H] = hf.astype(jnp.bfloat16)
        seq_sc[rev, :, H:] = hb.astype(jnp.bfloat16)

    bilstm_pass(w_hh1_ref, store1)

    # ---- layer 2: hoisted input matmul over layer-1 output (plain reshape, no concat)
    x2 = seq_sc[...].reshape(T * N, 2 * H)                           # bf16
    gx2 = jnp.dot(x2, w_ih2_ref[...], preferred_element_type=jnp.float32)
    gx_sc[...] = (gx2 + b2_ref[...]).reshape(T, N, 2 * H4).astype(jnp.bfloat16)

    sum_sc[...] = jnp.zeros_like(sum_sc)

    def store2(s, rev, hf, hb, h_new):
        sum_sc[...] += h_new          # sum over time of [h_fwd_t | h_bwd_t]

    bilstm_pass(w_hh2_ref, store2)

    # ---- mean over time + embedder Linear (2H -> H), lane-dense bf16 output ----
    mean = (sum_sc[...] * (1.0 / T)).astype(jnp.bfloat16)
    out_ref[...] = (jnp.dot(mean, w_lin_ref[...],
                            preferred_element_type=jnp.float32)
                    + b_lin_ref[...]).astype(out_ref.dtype)


# -----------------------------------------------------------------------------
# Kernel 2: fused document LSTM (64 padded to 128 lanes) + final fc (padded to 128)
# -----------------------------------------------------------------------------
def _doc_lstm_fc_kernel(x_ref, w_ih_ref, w_hh_ref, b_ref, w_fc_ref, b_fc_ref,
                        out_ref, gx_sc, hseq_sc, h_sc, c_sc):
    T, B, D = x_ref.shape
    Hp = h_sc.shape[1]             # padded hidden (128)
    CP = out_ref.shape[2]          # padded class lanes (128)

    # hoisted input matmul: (T*B, D) @ (D, 4*Hp), bias folded, bf16 gate cache
    # TODO(synk): for very long maxlen, chunk T here with an inner double-buffered
    # pipeline so the gate cache does not scale with the whole document length.
    x2d = x_ref[...].reshape(T * B, D)                               # bf16
    gx = jnp.dot(x2d, w_ih_ref[...], preferred_element_type=jnp.float32)
    gx_sc[...] = (gx + b_ref[...]).reshape(T, B, 4 * Hp).astype(jnp.bfloat16)

    h_sc[...] = jnp.zeros_like(h_sc)
    c_sc[...] = jnp.zeros_like(c_sc)

    @pl.loop(0, T)
    def _(t):
        g = gx_sc[t].astype(jnp.float32) + jnp.dot(
            h_sc[...].astype(jnp.bfloat16), w_hh_ref[...],
            preferred_element_type=jnp.float32)
        h, c = _lstm_cell(g, c_sc[...], Hp)
        h_sc[...] = h
        c_sc[...] = c
        hseq_sc[t] = h.astype(jnp.bfloat16)

    # fused fc over all (T*B) hidden states in ONE matmul, outside the serial chain
    hs = hseq_sc[...].reshape(T * B, Hp)
    logits = (jnp.dot(hs, w_fc_ref[...], preferred_element_type=jnp.float32)
              + b_fc_ref[...])
    out_ref[...] = logits.reshape(T, B, CP).astype(out_ref.dtype)


# -----------------------------------------------------------------------------
# pallas_call wrappers
# -----------------------------------------------------------------------------
def embedder_forward(params, sent_tokens, *, sentence_block=None):
    """tokens (num_sents, T_tok) int32 -> sentence vectors (num_sents, 128) bf16."""
    # TODO(synk): AlbertTokenizer text->ids has no Pallas equivalent; pre-tokenized
    # ids are taken as input.  The embedding-row gather stays in XLA (bf16, time-major).
    N, T = sent_tokens.shape
    E = params["embed"].shape[1]
    H = params["emb_linear_w"].shape[1]                       # 128
    H4 = 4 * H

    target_blk, vmem_limit, min_blocks = _device_config()
    if sentence_block is not None:
        target_blk = sentence_block

    def vmem_bytes(blk):
        return (2 * T * blk * E * 2                 # double-buffered bf16 input block
                + T * blk * 2 * H4 * 2              # bf16 hoisted-gate cache
                + T * blk * 2 * H * 2               # bf16 layer-1 output sequence
                + 3 * blk * 2 * H * 4               # f32 h, c, time-sum
                + 2 * blk * H * 2                   # double-buffered bf16 output block
                + (E + 6 * H) * 2 * H4 * 2 + 2 * H * H * 2   # bf16 weights
                + 2 * _MIB)                         # headroom (biases, compiler temps)

    blk = _pick_block(N, target_blk, min_blocks, vmem_bytes, int(vmem_limit * 0.9))
    Np = _round_up(max(N, blk), blk)

    # bf16 table, gathered directly in time-major order (no f32 gather + transpose pass)
    x_tm = jnp.take(params["embed"], sent_tokens.T, axis=0)          # (T, N, E) bf16
    if Np != N:
        x_tm = jnp.pad(x_tm, ((0, 0), (0, Np - N), (0, 0)))

    (w_ih1, w_hh1, b1), (w_ih2, w_hh2, b2) = params["bilstm"]

    cost = pl.CostEstimate(
        flops=int(2 * T * Np * (E + 6 * H) * 2 * H4 + 2 * Np * 2 * H * H),
        transcendentals=int(2 * T * Np * 2 * H * 5),
        bytes_accessed=int(T * Np * E * 2 + Np * H * 2
                           + (E + 6 * H) * 2 * H4 * 2 + 2 * H * H * 2))

    word_vecs = pl.pallas_call(
        _embedder_kernel,
        out_shape=jax.ShapeDtypeStruct((Np, H), jnp.bfloat16),
        grid=(Np // blk,),
        in_specs=[pl.BlockSpec((T, blk, E), lambda n: (0, n, 0)),
                  _VMEM, _VMEM, _VMEM,             # layer-1 packed weights
                  _VMEM, _VMEM, _VMEM,             # layer-2 packed weights
                  _VMEM, _VMEM],                   # embedder Linear
        out_specs=pl.BlockSpec((blk, H), lambda n: (n, 0)),
        scratch_shapes=[pltpu.VMEM((T, blk, 2 * H4), jnp.bfloat16),  # gx (both layers)
                        pltpu.VMEM((T, blk, 2 * H), jnp.bfloat16),   # layer-1 [fwd|bwd]
                        pltpu.VMEM((blk, 2 * H), jnp.float32),       # h  [fwd | bwd]
                        pltpu.VMEM((blk, 2 * H), jnp.float32),       # c  [fwd | bwd]
                        pltpu.VMEM((blk, 2 * H), jnp.float32)],      # sum over time
        compiler_params=pltpu.CompilerParams(
            dimension_semantics=("parallel",),
            vmem_limit_bytes=vmem_limit),
        cost_estimate=cost,
    )(x_tm, w_ih1, w_hh1, b1, w_ih2, w_hh2, b2,
      params["emb_linear_w"], params["emb_linear_b"])
    return word_vecs[:N]


def doc_lstm_fc(params, features, num_classes, *, doc_block=None):
    """features (B, maxlen, 128) -> logits (B, maxlen, num_classes) f32."""
    B, T, D = features.shape
    w_ih, w_hh, b = params["lstm2"]
    w_fc, b_fc = params["fc"]
    Hp = w_hh.shape[0]             # padded hidden (128)
    CP = w_fc.shape[1]             # padded class lanes (128)

    target_blk, vmem_limit, min_blocks = _device_config()
    if doc_block is not None:
        target_blk = doc_block

    def vmem_bytes(blk):
        return (2 * T * blk * D * 2                 # double-buffered bf16 input
                + 2 * T * blk * CP * 2              # double-buffered bf16 output
                + T * blk * 4 * Hp * 2              # bf16 hoisted x-gates
                + T * blk * Hp * 2                  # bf16 hidden sequence
                + 2 * blk * Hp * 4                  # f32 h, c
                + (D * 4 * Hp + Hp * 4 * Hp + Hp * CP) * 2
                + 2 * _MIB)

    blk = _pick_block(B, target_blk, min_blocks, vmem_bytes, int(vmem_limit * 0.9))
    Bp = _round_up(max(B, blk), blk)

    feats = features.astype(jnp.bfloat16)
    if Bp != B:
        feats = jnp.pad(feats, ((0, Bp - B), (0, 0), (0, 0)))
    x_tm = jnp.transpose(feats, (1, 0, 2))                           # (T, Bp, D) bf16

    cost = pl.CostEstimate(
        flops=int(2 * T * Bp * (D + Hp) * 4 * Hp + 2 * T * Bp * Hp * CP),
        transcendentals=int(5 * T * Bp * Hp),
        bytes_accessed=int(T * Bp * D * 2 + T * Bp * CP * 2
                           + (D * 4 * Hp + Hp * 4 * Hp + Hp * CP) * 2))

    out = pl.pallas_call(
        _doc_lstm_fc_kernel,
        out_shape=jax.ShapeDtypeStruct((T, Bp, CP), jnp.bfloat16),
        grid=(Bp // blk,),
        in_specs=[pl.BlockSpec((T, blk, D), lambda d: (0, d, 0)),
                  _VMEM, _VMEM, _VMEM, _VMEM, _VMEM],
        out_specs=pl.BlockSpec((T, blk, CP), lambda d: (0, d, 0)),
        scratch_shapes=[pltpu.VMEM((T, blk, 4 * Hp), jnp.bfloat16),  # hoisted x-gates
                        pltpu.VMEM((T, blk, Hp), jnp.bfloat16),      # hidden sequence
                        pltpu.VMEM((blk, Hp), jnp.float32),          # h
                        pltpu.VMEM((blk, Hp), jnp.float32)],         # c
        compiler_params=pltpu.CompilerParams(
            dimension_semantics=("parallel",),
            vmem_limit_bytes=vmem_limit),
        cost_estimate=cost,
    )(x_tm, w_ih, w_hh, b, w_fc, b_fc)
    return jnp.transpose(out[:, :B, :num_classes], (1, 0, 2)).astype(jnp.float32)


def get_sentence_features(word_vecs, offsets):
    """Reproduces NaiveSummarizer.get_sentence_embedding:
    doc d -> word_vecs[offsets[d] : offsets[d] + offsets[d+1]], left-zero-padded
    to maxlen = max(offsets).  offsets is a host Python list (as in the reference),
    so the gather indices/mask are built statically at trace time.
    # TODO(synk): for dynamic (traced) offsets this should become scalar-prefetched
    # indices feeding the doc-LSTM kernel's index_map instead of an XLA gather."""
    num_rows, feat_dim = word_vecs.shape
    n_docs = len(offsets) - 1
    maxlen = max(offsets)
    idx = np.zeros((n_docs, maxlen), np.int32)
    mask = np.zeros((n_docs, maxlen, 1), np.float32)
    for d in range(n_docs):
        start = min(max(offsets[d], 0), num_rows)
        stop = min(offsets[d] + offsets[d + 1], num_rows)
        rows = np.arange(start, stop, dtype=np.int32)
        L = rows.shape[0]
        if L > 0:
            idx[d, maxlen - L:] = rows
            mask[d, maxlen - L:, 0] = 1.0
    gathered = jnp.take(word_vecs, jnp.asarray(idx).reshape(-1), axis=0)
    gathered = gathered.reshape(n_docs, maxlen, feat_dim)
    return gathered * jnp.asarray(mask).astype(gathered.dtype)


def naive_summarizer_forward(params, sent_tokens, offsets, num_classes=1):
    word_vecs = embedder_forward(params, sent_tokens)          # (num_sents, 128) bf16
    features = get_sentence_features(word_vecs, offsets)       # (B, maxlen, 128) bf16
    return doc_lstm_fc(params, features, num_classes)          # (B, maxlen, C) f32


# -----------------------------------------------------------------------------
# Parameter construction: PyTorch-layout weights generated deterministically,
# then pre-transposed / pre-packed / pre-cast ONCE into kernel-ready form.
# -----------------------------------------------------------------------------
def _pack_bidir_layer(fwd, bwd):
    """-> w_ih (D_in, 8H)=[Wih_f^T | Wih_b^T] bf16,
         w_hh (2H, 8H) block-diag(Whh_f^T, Whh_b^T) bf16,
         b (1, 8H)=[b_ih_f+b_hh_f | b_ih_b+b_hh_b] f32."""
    H = fwd["w_hh"].shape[1]
    w_ih = jnp.concatenate([fwd["w_ih"].T, bwd["w_ih"].T], axis=1)
    z = jnp.zeros((H, 4 * H), jnp.float32)
    w_hh = jnp.concatenate(
        [jnp.concatenate([fwd["w_hh"].T, z], axis=1),
         jnp.concatenate([z, bwd["w_hh"].T], axis=1)], axis=0)
    b = jnp.concatenate([fwd["b_ih"] + fwd["b_hh"], bwd["b_ih"] + bwd["b_hh"]])
    return (w_ih.astype(jnp.bfloat16), w_hh.astype(jnp.bfloat16),
            b.reshape(1, -1).astype(jnp.float32))


def _pack_padded_lstm(p, Hp):
    """Unidirectional LSTM padded from H to Hp lanes per gate.  Zero padding keeps
    the recurrence exact: padded gates are 0 -> padded h, c stay identically 0."""
    H = p["w_hh"].shape[1]
    Din = p["w_ih"].shape[1]
    wi = jnp.zeros((Din, 4 * Hp), jnp.float32)
    wh = jnp.zeros((Hp, 4 * Hp), jnp.float32)
    bp = jnp.zeros((4 * Hp,), jnp.float32)
    wiT, whT, bb = p["w_ih"].T, p["w_hh"].T, p["b_ih"] + p["b_hh"]
    for k in range(4):
        wi = wi.at[:, k * Hp:k * Hp + H].set(wiT[:, k * H:(k + 1) * H])
        wh = wh.at[:H, k * Hp:k * Hp + H].set(whT[:, k * H:(k + 1) * H])
        bp = bp.at[k * Hp:k * Hp + H].set(bb[k * H:(k + 1) * H])
    return (wi.astype(jnp.bfloat16), wh.astype(jnp.bfloat16),
            bp.reshape(1, -1).astype(jnp.float32))


def _pack_padded_fc(w, b, Hp, CP):
    """torch Linear (C, H) -> lane-dense padded (Hp, CP) right operand + (1, CP) bias."""
    C, H = w.shape
    wp = jnp.zeros((Hp, CP), jnp.float32).at[:H, :C].set(w.T)
    bp = jnp.zeros((CP,), jnp.float32).at[:C].set(b)
    return wp.astype(jnp.bfloat16), bp.reshape(1, -1).astype(jnp.float32)


def init_params(key, vocab_size=100, embed_dim=256, hid1=128, num_layers=2,
                hid2=64, num_classes=1, pad_hid2=128, pad_classes=128):
    keys = iter(jax.random.split(key, 64))

    def u(shape, scale):
        return jax.random.uniform(next(keys), shape, jnp.float32, -scale, scale)

    params = {}
    # bf16 table: kernel consumes bf16 anyway; halves gather output + HBM footprint
    params["embed"] = (0.1 * jax.random.normal(next(keys), (vocab_size, embed_dim),
                                               jnp.float32)).astype(jnp.bfloat16)

    # embedder.bilstm: 2 layers x 2 directions, hidden 128 -> packed per layer
    s1 = 1.0 / np.sqrt(hid1)
    packed_layers = []
    for layer in range(num_layers):
        d_in = embed_dim if layer == 0 else 2 * hid1
        dirs = []
        for _ in range(2):                                    # fwd, bwd
            dirs.append(dict(w_ih=u((4 * hid1, d_in), s1),
                             w_hh=u((4 * hid1, hid1), s1),
                             b_ih=u((4 * hid1,), s1),
                             b_hh=u((4 * hid1,), s1)))
        packed_layers.append(_pack_bidir_layer(dirs[0], dirs[1]))
    assert len(packed_layers) == 2, "fused embedder kernel expects exactly 2 layers"
    params["bilstm"] = packed_layers

    # embedder.linear: (2*128) -> 128, pre-transposed / bf16
    s = 1.0 / np.sqrt(2 * hid1)
    params["emb_linear_w"] = u((hid1, 2 * hid1), s).T.astype(jnp.bfloat16)
    params["emb_linear_b"] = u((hid1,), s).reshape(1, -1).astype(jnp.float32)

    # NaiveSummarizer.lstm: 128 -> 64 unidirectional, padded to 128-lane gates
    s2 = 1.0 / np.sqrt(hid2)
    lstm2 = dict(w_ih=u((4 * hid2, hid1), s2), w_hh=u((4 * hid2, hid2), s2),
                 b_ih=u((4 * hid2,), s2), b_hh=u((4 * hid2,), s2))
    params["lstm2"] = _pack_padded_lstm(lstm2, pad_hid2)

    # NaiveSummarizer.fc: 64 -> num_classes, output lanes padded to 128
    params["fc"] = _pack_padded_fc(u((num_classes, hid2), s2),
                                   u((num_classes,), s2), pad_hid2, pad_classes)
    return params


# -----------------------------------------------------------------------------
if __name__ == "__main__":
    key = jax.random.PRNGKey(0)
    pkey, tkey = jax.random.split(key)

    vocab_size = 100      # synthetic small vocab (real: albert-base-v2 ~30k)
    tok_len = 8           # tokens per sentence (torch uses max_length=64; small here)
    num_sents = 8         # total sentences across all docs
    num_classes = 1

    params = init_params(pkey, vocab_size=vocab_size, num_classes=num_classes)
    sent_tokens = jax.random.randint(tkey, (num_sents, tok_len), 0, vocab_size,
                                     dtype=jnp.int32)
    # offsets follow the module's slicing convention: doc0 = rows [0:4), doc1 = rows [4:8)
    offsets = [0, 4, 4]

    fwd = jax.jit(lambda p, toks: naive_summarizer_forward(
        p, toks, offsets, num_classes=num_classes))
    out = jax.block_until_ready(fwd(params, sent_tokens))
    assert out.shape == (2, 4, 1), out.shape
    assert out.dtype == jnp.float32
    print("KERNEL_OK")
</pallas_src>

<mosaic_0001>
module attributes {stable_mosaic.version = 11 : i64} {
  func.func @_embedder_kernel(%arg0: i32, %arg1: memref<8x16x256xbf16, #tpu.memory_space<vmem>>, %arg2: memref<256x1024xbf16, #tpu.memory_space<vmem>>, %arg3: memref<256x1024xbf16, #tpu.memory_space<vmem>>, %arg4: memref<1x1024xf32, #tpu.memory_space<vmem>>, %arg5: memref<256x1024xbf16, #tpu.memory_space<vmem>>, %arg6: memref<256x1024xbf16, #tpu.memory_space<vmem>>, %arg7: memref<1x1024xf32, #tpu.memory_space<vmem>>, %arg8: memref<256x128xbf16, #tpu.memory_space<vmem>>, %arg9: memref<1x128xf32, #tpu.memory_space<vmem>>, %arg10: memref<16x128xbf16, #tpu.memory_space<vmem>>, %arg11: memref<8x16x1024xbf16, #tpu.memory_space<vmem>>, %arg12: memref<8x16x256xbf16, #tpu.memory_space<vmem>>, %arg13: memref<16x256xf32, #tpu.memory_space<vmem>>, %arg14: memref<16x256xf32, #tpu.memory_space<vmem>>, %arg15: memref<16x256xf32, #tpu.memory_space<vmem>>) attributes {dimension_semantics = [#tpu.dimension_semantics<parallel>], iteration_bounds = array<i64: 1>, scalar_prefetch = 0 : i64, scratch_operands = 5 : i64, tpu.core_type = #tpu.core_type<tc>, window_params = [{transform_indices = @transform_0, window_bounds = array<i64: 8, 16, 256>}, {pipeline_mode = #tpu.pipeline_mode<synchronous>, transform_indices = @transform_1, window_bounds = array<i64: 256, 1024>}, {pipeline_mode = #tpu.pipeline_mode<synchronous>, transform_indices = @transform_2, window_bounds = array<i64: 256, 1024>}, {pipeline_mode = #tpu.pipeline_mode<synchronous>, transform_indices = @transform_3, window_bounds = array<i64: 1, 1024>}, {pipeline_mode = #tpu.pipeline_mode<synchronous>, transform_indices = @transform_4, window_bounds = array<i64: 256, 1024>}, {pipeline_mode = #tpu.pipeline_mode<synchronous>, transform_indices = @transform_5, window_bounds = array<i64: 256, 1024>}, {pipeline_mode = #tpu.pipeline_mode<synchronous>, transform_indices = @transform_6, window_bounds = array<i64: 1, 1024>}, {pipeline_mode = #tpu.pipeline_mode<synchronous>, transform_indices = @transform_7, window_bounds = array<i64: 256, 128>}, {pipeline_mode = #tpu.pipeline_mode<synchronous>, transform_indices = @transform_8, window_bounds = array<i64: 1, 128>}, {transform_indices = @transform_9, window_bounds = array<i64: 16, 128>}]} {
    %c0 = arith.constant 0 : index
    %c0_0 = arith.constant 0 : index
    %c0_1 = arith.constant 0 : index
    %0 = vector.load %arg1[%c0, %c0_0, %c0_1] : memref<8x16x256xbf16, #tpu.memory_space<vmem>>, vector<8x16x256xbf16>
    %1 = vector.shape_cast %0 : vector<8x16x256xbf16> to vector<128x256xbf16>
    %c0_2 = arith.constant 0 : index
    %c0_3 = arith.constant 0 : index
    %2 = vector.load %arg2[%c0_2, %c0_3] : memref<256x1024xbf16, #tpu.memory_space<vmem>>, vector<256x1024xbf16>
    %cst = arith.constant dense<0.000000e+00> : vector<128x1024xf32>
    %3 = tpu.matmul %1, %2, %cst {dimension_numbers = #tpu.dot_dimension_numbers<[1], [0], [0], [1], [0, 0, 1, 1], [], []>} : vector<128x256xbf16>, vector<256x1024xbf16>, vector<128x1024xf32> -> vector<128x1024xf32>
    %c0_4 = arith.constant 0 : index
    %c0_5 = arith.constant 0 : index
    %4 = vector.load %arg4[%c0_4, %c0_5] : memref<1x1024xf32, #tpu.memory_space<vmem>>, vector<1x1024xf32>
    %5 = vector.broadcast %4 : vector<1x1024xf32> to vector<128x1024xf32>
    %6 = arith.addf %3, %5 : vector<128x1024xf32>
    %7 = vector.shape_cast %6 : vector<128x1024xf32> to vector<8x16x1024xf32>
    %8 = arith.truncf %7 : vector<8x16x1024xf32> to vector<8x16x1024xbf16>
    %c0_6 = arith.constant 0 : index
    %c0_7 = arith.constant 0 : index
    %c0_8 = arith.constant 0 : index
    %9 = vector.load %arg11[%c0_6, %c0_7, %c0_8] : memref<8x16x1024xbf16, #tpu.memory_space<vmem>>, vector<8x16x1024xbf16>
    tpu.vector_store %arg11[%c0_6, %c0_7, %c0_8], %8 {strides = array<i32>} : memref<8x16x1024xbf16, #tpu.memory_space<vmem>>, vector<8x16x1024xbf16>,
    %cst_9 = arith.constant 0.000000e+00 : f32
    %10 = vector.broadcast %cst_9 : f32 to vector<16x256xf32>
    %c0_10 = arith.constant 0 : index
    %c0_11 = arith.constant 0 : index
    %11 = vector.load %arg13[%c0_10, %c0_11] : memref<16x256xf32, #tpu.memory_space<vmem>>, vector<16x256xf32>
    tpu.vector_store %arg13[%c0_10, %c0_11], %10 {strides = array<i32>} : memref<16x256xf32, #tpu.memory_space<vmem>>, vector<16x256xf32>,
    %cst_12 = arith.constant 0.000000e+00 : f32
    %12 = vector.broadcast %cst_12 : f32 to vector<16x256xf32>
    %c0_13 = arith.constant 0 : index
    %c0_14 = arith.constant 0 : index
    %13 = vector.load %arg14[%c0_13, %c0_14] : memref<16x256xf32, #tpu.memory_space<vmem>>, vector<16x256xf32>
    tpu.vector_store %arg14[%c0_13, %c0_14], %12 {strides = array<i32>} : memref<16x256xf32, #tpu.memory_space<vmem>>, vector<16x256xf32>,
    %c0_i32 = arith.constant 0 : i32
    %c8_i32 = arith.constant 8 : i32
    %14 = arith.addi %c0_i32, %c8_i32 : i32
    %c1_i32 = arith.constant 1 : i32
    scf.for %arg16 = %c0_i32 to %14 step %c1_i32  : i32 {
      %c1_i32_50 = arith.constant 1 : i32
      %43 = arith.muli %arg16, %c1_i32_50 : i32
      %c0_i32_51 = arith.constant 0 : i32
      %44 = arith.addi %c0_i32_51, %43 : i32
      %c7_i32 = arith.constant 7 : i32
      %45 = arith.subi %c7_i32, %44 : i32
      %c0_52 = arith.constant 0 : index
      %c0_53 = arith.constant 0 : index
      %46 = vector.load %arg13[%c0_52, %c0_53] : memref<16x256xf32, #tpu.memory_space<vmem>>, vector<16x256xf32>
      %47 = arith.truncf %46 : vector<16x256xf32> to vector<16x256xbf16>
      %c0_54 = arith.constant 0 : index
      %c0_55 = arith.constant 0 : index
      %48 = vector.load %arg3[%c0_54, %c0_55] : memref<256x1024xbf16, #tpu.memory_space<vmem>>, vector<256x1024xbf16>
      %cst_56 = arith.constant dense<0.000000e+00> : vector<16x1024xf32>
      %49 = tpu.matmul %47, %48, %cst_56 {dimension_numbers = #tpu.dot_dimension_numbers<[1], [0], [0], [1], [0, 0, 1, 1], [], []>} : vector<16x256xbf16>, vector<256x1024xbf16>, vector<16x1024xf32> -> vector<16x1024xf32>
      %50 = arith.index_cast %44 : i32 to index
      %c0_57 = arith.constant 0 : index
      %c0_58 = arith.constant 0 : index
      %51 = vector.load %arg11[%50, %c0_57, %c0_58] : memref<8x16x1024xbf16, #tpu.memory_space<vmem>>, vector<1x16x1024xbf16>
      %52 = vector.shape_cast %51 : vector<1x16x1024xbf16> to vector<16x1024xbf16>
      %53 = vector.extract_strided_slice %52 {offsets = [0, 0], sizes = [16, 512], strides = [1, 1]} : vector<16x1024xbf16> to vector<16x512xbf16>
      %54 = arith.extf %53 : vector<16x512xbf16> to vector<16x512xf32>
      %55 = vector.extract_strided_slice %49 {offsets = [0, 0], sizes = [16, 512], strides = [1, 1]} : vector<16x1024xf32> to vector<16x512xf32>
      %56 = arith.addf %54, %55 : vector<16x512xf32>
      %57 = arith.index_cast %45 : i32 to index
      %c0_59 = arith.constant 0 : index
      %c0_60 = arith.constant 0 : index
      %58 = vector.load %arg11[%57, %c0_59, %c0_60] : memref<8x16x1024xbf16, #tpu.memory_space<vmem>>, vector<1x16x1024xbf16>
      %59 = vector.shape_cast %58 : vector<1x16x1024xbf16> to vector<16x1024xbf16>
      %60 = vector.extract_strided_slice %59 {offsets = [0, 512], sizes = [16, 512], strides = [1, 1]} : vector<16x1024xbf16> to vector<16x512xbf16>
      %61 = arith.extf %60 : vector<16x512xbf16> to vector<16x512xf32>
      %62 = vector.extract_strided_slice %49 {offsets = [0, 512], sizes = [16, 512], strides = [1, 1]} : vector<16x1024xf32> to vector<16x512xf32>
      %63 = arith.addf %61, %62 : vector<16x512xf32>
      %c0_61 = arith.constant 0 : index
      %c0_62 = arith.constant 0 : index
      %64 = vector.load %arg14[%c0_61, %c0_62] : memref<16x256xf32, #tpu.memory_space<vmem>>, vector<16x256xf32>
      %65 = vector.extract_strided_slice %64 {offsets = [0, 0], sizes = [16, 128], strides = [1, 1]} : vector<16x256xf32> to vector<16x128xf32>
      %66 = vector.extract_strided_slice %56 {offsets = [0, 0], sizes = [16, 128], strides = [1, 1]} : vector<16x512xf32> to vector<16x128xf32>
      %67 = arith.negf %66 : vector<16x128xf32>
      %68 = math.exp %67 : vector<16x128xf32>
      %cst_63 = arith.constant 1.000000e+00 : f32
      %69 = vector.broadcast %cst_63 : f32 to vector<16x128xf32>
      %70 = arith.addf %69, %68 : vector<16x128xf32>
      %71 = arith.divf %69, %70 : vector<16x128xf32>
      %72 = vector.extract_strided_slice %56 {offsets = [0, 128], sizes = [16, 128], strides = [1, 1]} : vector<16x512xf32> to vector<16x128xf32>
      %73 = arith.negf %72 : vector<16x128xf32>
      %74 = math.exp %73 : vector<16x128xf32>
      %cst_64 = arith.constant 1.000000e+00 : f32
      %75 = vector.broadcast %cst_64 : f32 to vector<16x128xf32>
      %76 = arith.addf %75, %74 : vector<16x128xf32>
      %77 = arith.divf %75, %76 : vector<16x128xf32>
      %78 = vector.extract_strided_slice %56 {offsets = [0, 256], sizes = [16, 128], strides = [1, 1]} : vector<16x512xf32> to vector<16x128xf32>
      %79 = math.tanh %78 : vector<16x128xf32>
      %80 = vector.extract_strided_slice %56 {offsets = [0, 384], sizes = [16, 128], strides = [1, 1]} : vector<16x512xf32> to vector<16x128xf32>
      %81 = arith.negf %80 : vector<16x128xf32>
      %82 = math.exp %81 : vector<16x128xf32>
      %cst_65 = arith.constant 1.000000e+00 : f32
      %83 = vector.broadcast %cst_65 : f32 to vector<16x128xf32>
      %84 = arith.addf %83, %82 : vector<16x128xf32>
      %85 = arith.divf %83, %84 : vector<16x128xf32>
      %86 = arith.mulf %77, %65 : vector<16x128xf32>
      %87 = arith.mulf %71, %79 : vector<16x128xf32>
      %88 = arith.addf %86, %87 : vector<16x128xf32>
      %89 = math.tanh %88 : vector<16x128xf32>
      %90 = arith.mulf %85, %89 : vector<16x128xf32>
      %91 = vector.extract_strided_slice %64 {offsets = [0, 128], sizes = [16, 128], strides = [1, 1]} : vector<16x256xf32> to vector<16x128xf32>
      %92 = vector.extract_strided_slice %63 {offsets = [0, 0], sizes = [16, 128], strides = [1, 1]} : vector<16x512xf32> to vector<16x128xf32>
      %93 = arith.negf %92 : vector<16x128xf32>
      %94 = math.exp %93 : vector<16x128xf32>
      %cst_66 = arith.constant 1.000000e+00 : f32
      %95 = vector.broadcast %cst_66 : f32 to vector<16x128xf32>
      %96 = arith.addf %95, %94 : vector<16x128xf32>
      %97 = arith.divf %95, %96 : vector<16x128xf32>
      %98 = vector.extract_strided_slice %63 {offsets = [0, 128], sizes = [16, 128], strides = [1, 1]} : vector<16x512xf32> to vector<16x128xf32>
      %99 = arith.negf %98 : vector<16x128xf32>
      %100 = math.exp %99 : vector<16x128xf32>
      %cst_67 = arith.constant 1.000000e+00 : f32
      %101 = vector.broadcast %cst_67 : f32 to vector<16x128xf32>
      %102 = arith.addf %101, %100 : vector<16x128xf32>
      %103 = arith.divf %101, %102 : vector<16x128xf32>
      %104 = vector.extract_strided_slice %63 {offsets = [0, 256], sizes = [16, 128], strides = [1, 1]} : vector<16x512xf32> to vector<16x128xf32>
      %105 = math.tanh %104 : vector<16x128xf32>
      %106 = vector.extract_strided_slice %63 {offsets = [0, 384], sizes = [16, 128], strides = [1, 1]} : vector<16x512xf32> to vector<16x128xf32>
      %107 = arith.negf %106 : vector<16x128xf32>
      %108 = math.exp %107 : vector<16x128xf32>
      %cst_68 = arith.constant 1.000000e+00 : f32
      %109 = vector.broadcast %cst_68 : f32 to vector<16x128xf32>
      %110 = arith.addf %109, %108 : vector<16x128xf32>
      %111 = arith.divf %109, %110 : vector<16x128xf32>
      %112 = arith.mulf %103, %91 : vector<16x128xf32>
      %113 = arith.mulf %97, %105 : vector<16x128xf32>
      %114 = arith.addf %112, %113 : vector<16x128xf32>
      %115 = math.tanh %114 : vector<16x128xf32>
      %116 = arith.mulf %111, %115 : vector<16x128xf32>
      %117 = tpu.concatenate %90, %116 in 1 : vector<16x128xf32>, vector<16x128xf32> -> vector<16x256xf32>
      %c0_69 = arith.constant 0 : index
      %c0_70 = arith.constant 0 : index
      %118 = vector.load %arg13[%c0_69, %c0_70] : memref<16x256xf32, #tpu.memory_space<vmem>>, vector<16x256xf32>
      tpu.vector_store %arg13[%c0_69, %c0_70], %117 {strides = array<i32>} : memref<16x256xf32, #tpu.memory_space<vmem>>, vector<16x256xf32>,
      %119 = tpu.concatenate %88, %114 in 1 : vector<16x128xf32>, vector<16x128xf32> -> vector<16x256xf32>
      %c0_71 = arith.constant 0 : index
      %c0_72 = arith.constant 0 : index
      %120 = vector.load %arg14[%c0_71, %c0_72] : memref<16x256xf32, #tpu.memory_space<vmem>>, vector<16x256xf32>
      tpu.vector_store %arg14[%c0_71, %c0_72], %119 {strides = array<i32>} : memref<16x256xf32, #tpu.memory_space<vmem>>, vector<16x256xf32>,
      %121 = arith.truncf %90 : vector<16x128xf32> to vector<16x128xbf16>
      %122 = arith.index_cast %44 : i32 to index
      %c0_73 = arith.constant 0 : index
      %c0_74 = arith.constant 0 : index
      %123 = vector.load %arg12[%122, %c0_73, %c0_74] : memref<8x16x256xbf16, #tpu.memory_space<vmem>>, vector<1x16x128xbf16>
      %124 = vector.shape_cast %123 : vector<1x16x128xbf16> to vector<16x128xbf16>
      %125 = vector.shape_cast %121 : vector<16x128xbf16> to vector<1x16x128xbf16>
      tpu.vector_store %arg12[%122, %c0_73, %c0_74], %125 {strides = array<i32>} : memref<8x16x256xbf16, #tpu.memory_space<vmem>>, vector<1x16x128xbf16>,
      %126 = arith.truncf %116 : vector<16x128xf32> to vector<16x128xbf16>
      %127 = arith.index_cast %45 : i32 to index
      %c0_75 = arith.constant 0 : index
      %c128 = arith.constant 128 : index
      %128 = vector.load %arg12[%127, %c0_75, %c128] : memref<8x16x256xbf16, #tpu.memory_space<vmem>>, vector<1x16x128xbf16>
      %129 = vector.shape_cast %128 : vector<1x16x128xbf16> to vector<16x128xbf16>
      %130 = vector.shape_cast %126 : vector<16x128xbf16> to vector<1x16x128xbf16>
      tpu.vector_store %arg12[%127, %c0_75, %c128], %130 {strides = array<i32>} : memref<8x16x256xbf16, #tpu.memory_space<vmem>>, vector<1x16x128xbf16>,
    }
    %c8_i32_15 = arith.constant 8 : i32
    %c0_16 = arith.constant 0 : index
    %c0_17 = arith.constant 0 : index
    %c0_18 = arith.constant 0 : index
    %15 = vector.load %arg12[%c0_16, %c0_17, %c0_18] : memref<8x16x256xbf16, #tpu.memory_space<vmem>>, vector<8x16x256xbf16>
    %16 = vector.shape_cast %15 : vector<8x16x256xbf16> to vector<128x256xbf16>
    %c0_19 = arith.constant 0 : index
    %c0_20 = arith.constant 0 : index
    %17 = vector.load %arg5[%c0_19, %c0_20] : memref<256x1024xbf16, #tpu.memory_space<vmem>>, vector<256x1024xbf16>
    %cst_21 = arith.constant dense<0.000000e+00> : vector<128x1024xf32>
    %18 = tpu.matmul %16, %17, %cst_21 {dimension_numbers = #tpu.dot_dimension_numbers<[1], [0], [0], [1], [0, 0, 1, 1], [], []>} : vector<128x256xbf16>, vector<256x1024xbf16>, vector<128x1024xf32> -> vector<128x1024xf32>
    %c0_22 = arith.constant 0 : index
    %c0_23 = arith.constant 0 : index
    %19 = vector.load %arg7[%c0_22, %c0_23] : memref<1x1024xf32, #tpu.memory_space<vmem>>, vector<1x1024xf32>
    %20 = vector.broadcast %19 : vector<1x1024xf32> to vector<128x1024xf32>
    %21 = arith.addf %18, %20 : vector<128x1024xf32>
    %22 = vector.shape_cast %21 : vector<128x1024xf32> to vector<8x16x1024xf32>
    %23 = arith.truncf %22 : vector<8x16x1024xf32> to vector<8x16x1024xbf16>
    %c0_24 = arith.constant 0 : index
    %c0_25 = arith.constant 0 : index
    %c0_26 = arith.constant 0 : index
    %24 = vector.load %arg11[%c0_24, %c0_25, %c0_26] : memref<8x16x1024xbf16, #tpu.memory_space<vmem>>, vector<8x16x1024xbf16>
    tpu.vector_store %arg11[%c0_24, %c0_25, %c0_26], %23 {strides = array<i32>} : memref<8x16x1024xbf16, #tpu.memory_space<vmem>>, vector<8x16x1024xbf16>,
    %cst_27 = arith.constant 0.000000e+00 : f32
    %25 = vector.broadcast %cst_27 : f32 to vector<16x256xf32>
    %c0_28 = arith.constant 0 : index
    %c0_29 = arith.constant 0 : index
    %26 = vector.load %arg15[%c0_28, %c0_29] : memref<16x256xf32, #tpu.memory_space<vmem>>, vector<16x256xf32>
    tpu.vector_store %arg15[%c0_28, %c0_29], %25 {strides = array<i32>} : memref<16x256xf32, #tpu.memory_space<vmem>>, vector<16x256xf32>,
    %cst_30 = arith.constant 0.000000e+00 : f32
    %27 = vector.broadcast %cst_30 : f32 to vector<16x256xf32>
    %c0_31 = arith.constant 0 : index
    %c0_32 = arith.constant 0 : index
    %28 = vector.load %arg13[%c0_31, %c0_32] : memref<16x256xf32, #tpu.memory_space<vmem>>, vector<16x256xf32>
    tpu.vector_store %arg13[%c0_31, %c0_32], %27 {strides = array<i32>} : memref<16x256xf32, #tpu.memory_space<vmem>>, vector<16x256xf32>,
    %cst_33 = arith.constant 0.000000e+00 : f32
    %29 = vector.broadcast %cst_33 : f32 to vector<16x256xf32>
    %c0_34 = arith.constant 0 : index
    %c0_35 = arith.constant 0 : index
    %30 = vector.load %arg14[%c0_34, %c0_35] : memref<16x256xf32, #tpu.memory_space<vmem>>, vector<16x256xf32>
    tpu.vector_store %arg14[%c0_34, %c0_35], %29 {strides = array<i32>} : memref<16x256xf32, #tpu.memory_space<vmem>>, vector<16x256xf32>,
    %c0_i32_36 = arith.constant 0 : i32
    %c8_i32_37 = arith.constant 8 : i32
    %31 = arith.addi %c0_i32_36, %c8_i32_37 : i32
    %c1_i32_38 = arith.constant 1 : i32
    scf.for %arg16 = %c0_i32_36 to %31 step %c1_i32_38  : i32 {
      %c1_i32_50 = arith.constant 1 : i32
      %43 = arith.muli %arg16, %c1_i32_50 : i32
      %c0_i32_51 = arith.constant 0 : i32
      %44 = arith.addi %c0_i32_51, %43 : i32
      %c7_i32 = arith.constant 7 : i32
      %45 = arith.subi %c7_i32, %44 : i32
      %c0_52 = arith.constant 0 : index
      %c0_53 = arith.constant 0 : index
      %46 = vector.load %arg13[%c0_52, %c0_53] : memref<16x256xf32, #tpu.memory_space<vmem>>, vector<16x256xf32>
      %47 = arith.truncf %46 : vector<16x256xf32> to vector<16x256xbf16>
      %c0_54 = arith.constant 0 : index
      %c0_55 = arith.constant 0 : index
      %48 = vector.load %arg6[%c0_54, %c0_55] : memref<256x1024xbf16, #tpu.memory_space<vmem>>, vector<256x1024xbf16>
      %cst_56 = arith.constant dense<0.000000e+00> : vector<16x1024xf32>
      %49 = tpu.matmul %47, %48, %cst_56 {dimension_numbers = #tpu.dot_dimension_numbers<[1], [0], [0], [1], [0, 0, 1, 1], [], []>} : vector<16x256xbf16>, vector<256x1024xbf16>, vector<16x1024xf32> -> vector<16x1024xf32>
      %50 = arith.index_cast %44 : i32 to index
      %c0_57 = arith.constant 0 : index
      %c0_58 = arith.constant 0 : index
      %51 = vector.load %arg11[%50, %c0_57, %c0_58] : memref<8x16x1024xbf16, #tpu.memory_space<vmem>>, vector<1x16x1024xbf16>
      %52 = vector.shape_cast %51 : vector<1x16x1024xbf16> to vector<16x1024xbf16>
      %53 = vector.extract_strided_slice %52 {offsets = [0, 0], sizes = [16, 512], strides = [1, 1]} : vector<16x1024xbf16> to vector<16x512xbf16>
      %54 = arith.extf %53 : vector<16x512xbf16> to vector<16x512xf32>
      %55 = vector.extract_strided_slice %49 {offsets = [0, 0], sizes = [16, 512], strides = [1, 1]} : vector<16x1024xf32> to vector<16x512xf32>
      %56 = arith.addf %54, %55 : vector<16x512xf32>
      %57 = arith.index_cast %45 : i32 to index
      %c0_59 = arith.constant 0 : index
      %c0_60 = arith.constant 0 : index
      %58 = vector.load %arg11[%57, %c0_59, %c0_60] : memref<8x16x1024xbf16, #tpu.memory_space<vmem>>, vector<1x16x1024xbf16>
      %59 = vector.shape_cast %58 : vector<1x16x1024xbf16> to vector<16x1024xbf16>
      %60 = vector.extract_strided_slice %59 {offsets = [0, 512], sizes = [16, 512], strides = [1, 1]} : vector<16x1024xbf16> to vector<16x512xbf16>
      %61 = arith.extf %60 : vector<16x512xbf16> to vector<16x512xf32>
      %62 = vector.extract_strided_slice %49 {offsets = [0, 512], sizes = [16, 512], strides = [1, 1]} : vector<16x1024xf32> to vector<16x512xf32>
      %63 = arith.addf %61, %62 : vector<16x512xf32>
      %c0_61 = arith.constant 0 : index
      %c0_62 = arith.constant 0 : index
      %64 = vector.load %arg14[%c0_61, %c0_62] : memref<16x256xf32, #tpu.memory_space<vmem>>, vector<16x256xf32>
      %65 = vector.extract_strided_slice %64 {offsets = [0, 0], sizes = [16, 128], strides = [1, 1]} : vector<16x256xf32> to vector<16x128xf32>
      %66 = vector.extract_strided_slice %56 {offsets = [0, 0], sizes = [16, 128], strides = [1, 1]} : vector<16x512xf32> to vector<16x128xf32>
      %67 = arith.negf %66 : vector<16x128xf32>
      %68 = math.exp %67 : vector<16x128xf32>
      %cst_63 = arith.constant 1.000000e+00 : f32
      %69 = vector.broadcast %cst_63 : f32 to vector<16x128xf32>
      %70 = arith.addf %69, %68 : vector<16x128xf32>
      %71 = arith.divf %69, %70 : vector<16x128xf32>
      %72 = vector.extract_strided_slice %56 {offsets = [0, 128], sizes = [16, 128], strides = [1, 1]} : vector<16x512xf32> to vector<16x128xf32>
      %73 = arith.negf %72 : vector<16x128xf32>
      %74 = math.exp %73 : vector<16x128xf32>
      %cst_64 = arith.constant 1.000000e+00 : f32
      %75 = vector.broadcast %cst_64 : f32 to vector<16x128xf32>
      %76 = arith.addf %75, %74 : vector<16x128xf32>
      %77 = arith.divf %75, %76 : vector<16x128xf32>
      %78 = vector.extract_strided_slice %56 {offsets = [0, 256], sizes = [16, 128], strides = [1, 1]} : vector<16x512xf32> to vector<16x128xf32>
      %79 = math.tanh %78 : vector<16x128xf32>
      %80 = vector.extract_strided_slice %56 {offsets = [0, 384], sizes = [16, 128], strides = [1, 1]} : vector<16x512xf32> to vector<16x128xf32>
      %81 = arith.negf %80 : vector<16x128xf32>
      %82 = math.exp %81 : vector<16x128xf32>
      %cst_65 = arith.constant 1.000000e+00 : f32
      %83 = vector.broadcast %cst_65 : f32 to vector<16x128xf32>
      %84 = arith.addf %83, %82 : vector<16x128xf32>
      %85 = arith.divf %83, %84 : vector<16x128xf32>
      %86 = arith.mulf %77, %65 : vector<16x128xf32>
      %87 = arith.mulf %71, %79 : vector<16x128xf32>
      %88 = arith.addf %86, %87 : vector<16x128xf32>
      %89 = math.tanh %88 : vector<16x128xf32>
      %90 = arith.mulf %85, %89 : vector<16x128xf32>
      %91 = vector.extract_strided_slice %64 {offsets = [0, 128], sizes = [16, 128], strides = [1, 1]} : vector<16x256xf32> to vector<16x128xf32>
      %92 = vector.extract_strided_slice %63 {offsets = [0, 0], sizes = [16, 128], strides = [1, 1]} : vector<16x512xf32> to vector<16x128xf32>
      %93 = arith.negf %92 : vector<16x128xf32>
      %94 = math.exp %93 : vector<16x128xf32>
      %cst_66 = arith.constant 1.000000e+00 : f32
      %95 = vector.broadcast %cst_66 : f32 to vector<16x128xf32>
      %96 = arith.addf %95, %94 : vector<16x128xf32>
      %97 = arith.divf %95, %96 : vector<16x128xf32>
      %98 = vector.extract_strided_slice %63 {offsets = [0, 128], sizes = [16, 128], strides = [1, 1]} : vector<16x512xf32> to vector<16x128xf32>
      %99 = arith.negf %98 : vector<16x128xf32>
      %100 = math.exp %99 : vector<16x128xf32>
      %cst_67 = arith.constant 1.000000e+00 : f32
      %101 = vector.broadcast %cst_67 : f32 to vector<16x128xf32>
      %102 = arith.addf %101, %100 : vector<16x128xf32>
      %103 = arith.divf %101, %102 : vector<16x128xf32>
      %104 = vector.extract_strided_slice %63 {offsets = [0, 256], sizes = [16, 128], strides = [1, 1]} : vector<16x512xf32> to vector<16x128xf32>
      %105 = math.tanh %104 : vector<16x128xf32>
      %106 = vector.extract_strided_slice %63 {offsets = [0, 384], sizes = [16, 128], strides = [1, 1]} : vector<16x512xf32> to vector<16x128xf32>
      %107 = arith.negf %106 : vector<16x128xf32>
      %108 = math.exp %107 : vector<16x128xf32>
      %cst_68 = arith.constant 1.000000e+00 : f32
      %109 = vector.broadcast %cst_68 : f32 to vector<16x128xf32>
      %110 = arith.addf %109, %108 : vector<16x128xf32>
      %111 = arith.divf %109, %110 : vector<16x128xf32>
      %112 = arith.mulf %103, %91 : vector<16x128xf32>
      %113 = arith.mulf %97, %105 : vector<16x128xf32>
      %114 = arith.addf %112, %113 : vector<16x128xf32>
      %115 = math.tanh %114 : vector<16x128xf32>
      %116 = arith.mulf %111, %115 : vector<16x128xf32>
      %117 = tpu.concatenate %90, %116 in 1 : vector<16x128xf32>, vector<16x128xf32> -> vector<16x256xf32>
      %c0_69 = arith.constant 0 : index
      %c0_70 = arith.constant 0 : index
      %118 = vector.load %arg13[%c0_69, %c0_70] : memref<16x256xf32, #tpu.memory_space<vmem>>, vector<16x256xf32>
      tpu.vector_store %arg13[%c0_69, %c0_70], %117 {strides = array<i32>} : memref<16x256xf32, #tpu.memory_space<vmem>>, vector<16x256xf32>,
      %119 = tpu.concatenate %88, %114 in 1 : vector<16x128xf32>, vector<16x128xf32> -> vector<16x256xf32>
      %c0_71 = arith.constant 0 : index
      %c0_72 = arith.constant 0 : index
      %120 = vector.load %arg14[%c0_71, %c0_72] : memref<16x256xf32, #tpu.memory_space<vmem>>, vector<16x256xf32>
      tpu.vector_store %arg14[%c0_71, %c0_72], %119 {strides = array<i32>} : memref<16x256xf32, #tpu.memory_space<vmem>>, vector<16x256xf32>,
      %c0_73 = arith.constant 0 : index
      %c0_74 = arith.constant 0 : index
      %121 = vector.load %arg15[%c0_73, %c0_74] : memref<16x256xf32, #tpu.memory_space<vmem>>, vector<16x256xf32>
      %122 = arith.addf %121, %117 : vector<16x256xf32>
      %c0_75 = arith.constant 0 : index
      %c0_76 = arith.constant 0 : index
      %123 = vector.load %arg15[%c0_75, %c0_76] : memref<16x256xf32, #tpu.memory_space<vmem>>, vector<16x256xf32>
      tpu.vector_store %arg15[%c0_75, %c0_76], %122 {strides = array<i32>} : memref<16x256xf32, #tpu.memory_space<vmem>>, vector<16x256xf32>,
    }
    %c8_i32_39 = arith.constant 8 : i32
    %c0_40 = arith.constant 0 : index
    %c0_41 = arith.constant 0 : index
    %32 = vector.load %arg15[%c0_40, %c0_41] : memref<16x256xf32, #tpu.memory_space<vmem>>, vector<16x256xf32>
    %cst_42 = arith.constant 1.250000e-01 : f32
    %33 = vector.broadcast %cst_42 : f32 to vector<16x256xf32>
    %34 = arith.mulf %32, %33 : vector<16x256xf32>
    %35 = arith.truncf %34 : vector<16x256xf32> to vector<16x256xbf16>
    %c0_43 = arith.constant 0 : index
    %c0_44 = arith.constant 0 : index
    %36 = vector.load %arg8[%c0_43, %c0_44] : memref<256x128xbf16, #tpu.memory_space<vmem>>, vector<256x128xbf16>
    %cst_45 = arith.constant dense<0.000000e+00> : vector<16x128xf32>
    %37 = tpu.matmul %35, %36, %cst_45 {dimension_numbers = #tpu.dot_dimension_numbers<[1], [0], [0], [1], [0, 0, 1, 1], [], []>} : vector<16x256xbf16>, vector<256x128xbf16>, vector<16x128xf32> -> vector<16x128xf32>
    %c0_46 = arith.constant 0 : index
    %c0_47 = arith.constant 0 : index
    %38 = vector.load %arg9[%c0_46, %c0_47] : memref<1x128xf32, #tpu.memory_space<vmem>>, vector<1x128xf32>
    %39 = vector.broadcast %38 : vector<1x128xf32> to vector<16x128xf32>
    %40 = arith.addf %37, %39 : vector<16x128xf32>
    %41 = arith.truncf %40 : vector<16x128xf32> to vector<16x128xbf16>
    %c0_48 = arith.constant 0 : index
    %c0_49 = arith.constant 0 : index
    %42 = vector.load %arg10[%c0_48, %c0_49] : memref<16x128xbf16, #tpu.memory_space<vmem>>, vector<16x128xbf16>
    tpu.vector_store %arg10[%c0_48, %c0_49], %41 {strides = array<i32>} : memref<16x128xbf16, #tpu.memory_space<vmem>>, vector<16x128xbf16>,
    return
  }
  func.func @transform_0(%arg0: i32) -> (i32, i32, i32) {
    %c0_i32 = arith.constant 0 : i32
    %c0_i32_0 = arith.constant 0 : i32
    %c0_i32_1 = arith.constant 0 : i32
    return %c0_i32, %arg0, %c0_i32_0 : i32, i32, i32
  }
  func.func @transform_1(%arg0: i32) -> (i32, i32) {
    %c0_i32 = arith.constant 0 : i32
    %c0_i32_0 = arith.constant 0 : i32
    %c0_i32_1 = arith.constant 0 : i32
    return %c0_i32, %c0_i32_0 : i32, i32
  }
  func.func @transform_2(%arg0: i32) -> (i32, i32) {
    %c0_i32 = arith.constant 0 : i32
    %c0_i32_0 = arith.constant 0 : i32
    %c0_i32_1 = arith.constant 0 : i32
    return %c0_i32, %c0_i32_0 : i32, i32
  }
  func.func @transform_3(%arg0: i32) -> (i32, i32) {
    %c0_i32 = arith.constant 0 : i32
    %c0_i32_0 = arith.constant 0 : i32
    %c0_i32_1 = arith.constant 0 : i32
    return %c0_i32, %c0_i32_0 : i32, i32
  }
  func.func @transform_4(%arg0: i32) -> (i32, i32) {
    %c0_i32 = arith.constant 0 : i32
    %c0_i32_0 = arith.constant 0 : i32
    %c0_i32_1 = arith.constant 0 : i32
    return %c0_i32, %c0_i32_0 : i32, i32
  }
  func.func @transform_5(%arg0: i32) -> (i32, i32) {
    %c0_i32 = arith.constant 0 : i32
    %c0_i32_0 = arith.constant 0 : i32
    %c0_i32_1 = arith.constant 0 : i32
    return %c0_i32, %c0_i32_0 : i32, i32
  }
  func.func @transform_6(%arg0: i32) -> (i32, i32) {
    %c0_i32 = arith.constant 0 : i32
    %c0_i32_0 = arith.constant 0 : i32
    %c0_i32_1 = arith.constant 0 : i32
    return %c0_i32, %c0_i32_0 : i32, i32
  }
  func.func @transform_7(%arg0: i32) -> (i32, i32) {
    %c0_i32 = arith.constant 0 : i32
    %c0_i32_0 = arith.constant 0 : i32
    %c0_i32_1 = arith.constant 0 : i32
    return %c0_i32, %c0_i32_0 : i32, i32
  }
  func.func @transform_8(%arg0: i32) -> (i32, i32) {
    %c0_i32 = arith.constant 0 : i32
    %c0_i32_0 = arith.constant 0 : i32
    %c0_i32_1 = arith.constant 0 : i32
    return %c0_i32, %c0_i32_0 : i32, i32
  }
  func.func @transform_9(%arg0: i32) -> (i32, i32) {
    %c0_i32 = arith.constant 0 : i32
    %c0_i32_0 = arith.constant 0 : i32
    return %arg0, %c0_i32 : i32, i32
  }
}

module attributes {stable_mosaic.version = 11 : i64} {
  func.func @_doc_lstm_fc_kernel(%arg0: i32, %arg1: memref<4x16x128xbf16, #tpu.memory_space<vmem>>, %arg2: memref<128x512xbf16, #tpu.memory_space<vmem>>, %arg3: memref<128x512xbf16, #tpu.memory_space<vmem>>, %arg4: memref<1x512xf32, #tpu.memory_space<vmem>>, %arg5: memref<128x128xbf16, #tpu.memory_space<vmem>>, %arg6: memref<1x128xf32, #tpu.memory_space<vmem>>, %arg7: memref<4x16x128xbf16, #tpu.memory_space<vmem>>, %arg8: memref<4x16x512xbf16, #tpu.memory_space<vmem>>, %arg9: memref<4x16x128xbf16, #tpu.memory_space<vmem>>, %arg10: memref<16x128xf32, #tpu.memory_space<vmem>>, %arg11: memref<16x128xf32, #tpu.memory_space<vmem>>) attributes {dimension_semantics = [#tpu.dimension_semantics<parallel>], iteration_bounds = array<i64: 1>, scalar_prefetch = 0 : i64, scratch_operands = 4 : i64, tpu.core_type = #tpu.core_type<tc>, window_params = [{transform_indices = @transform_0, window_bounds = array<i64: 4, 16, 128>}, {pipeline_mode = #tpu.pipeline_mode<synchronous>, transform_indices = @transform_1, window_bounds = array<i64: 128, 512>}, {pipeline_mode = #tpu.pipeline_mode<synchronous>, transform_indices = @transform_2, window_bounds = array<i64: 128, 512>}, {pipeline_mode = #tpu.pipeline_mode<synchronous>, transform_indices = @transform_3, window_bounds = array<i64: 1, 512>}, {pipeline_mode = #tpu.pipeline_mode<synchronous>, transform_indices = @transform_4, window_bounds = array<i64: 128, 128>}, {pipeline_mode = #tpu.pipeline_mode<synchronous>, transform_indices = @transform_5, window_bounds = array<i64: 1, 128>}, {transform_indices = @transform_6, window_bounds = array<i64: 4, 16, 128>}]} {
    %c0 = arith.constant 0 : index
    %c0_0 = arith.constant 0 : index
    %c0_1 = arith.constant 0 : index
    %0 = vector.load %arg1[%c0, %c0_0, %c0_1] : memref<4x16x128xbf16, #tpu.memory_space<vmem>>, vector<4x16x128xbf16>
    %1 = vector.shape_cast %0 : vector<4x16x128xbf16> to vector<64x128xbf16>
    %c0_2 = arith.constant 0 : index
    %c0_3 = arith.constant 0 : index
    %2 = vector.load %arg2[%c0_2, %c0_3] : memref<128x512xbf16, #tpu.memory_space<vmem>>, vector<128x512xbf16>
    %cst = arith.constant dense<0.000000e+00> : vector<64x512xf32>
    %3 = tpu.matmul %1, %2, %cst {dimension_numbers = #tpu.dot_dimension_numbers<[1], [0], [0], [1], [0, 0, 1, 1], [], []>} : vector<64x128xbf16>, vector<128x512xbf16>, vector<64x512xf32> -> vector<64x512xf32>
    %c0_4 = arith.constant 0 : index
    %c0_5 = arith.constant 0 : index
    %4 = vector.load %arg4[%c0_4, %c0_5] : memref<1x512xf32, #tpu.memory_space<vmem>>, vector<1x512xf32>
    %5 = vector.broadcast %4 : vector<1x512xf32> to vector<64x512xf32>
    %6 = arith.addf %3, %5 : vector<64x512xf32>
    %7 = vector.shape_cast %6 : vector<64x512xf32> to vector<4x16x512xf32>
    %8 = arith.truncf %7 : vector<4x16x512xf32> to vector<4x16x512xbf16>
    %c0_6 = arith.constant 0 : index
    %c0_7 = arith.constant 0 : index
    %c0_8 = arith.constant 0 : index
    %9 = vector.load %arg8[%c0_6, %c0_7, %c0_8] : memref<4x16x512xbf16, #tpu.memory_space<vmem>>, vector<4x16x512xbf16>
    tpu.vector_store %arg8[%c0_6, %c0_7, %c0_8], %8 {strides = array<i32>} : memref<4x16x512xbf16, #tpu.memory_space<vmem>>, vector<4x16x512xbf16>,
    %cst_9 = arith.constant 0.000000e+00 : f32
    %10 = vector.broadcast %cst_9 : f32 to vector<16x128xf32>
    %c0_10 = arith.constant 0 : index
    %c0_11 = arith.constant 0 : index
    %11 = vector.load %arg10[%c0_10, %c0_11] : memref<16x128xf32, #tpu.memory_space<vmem>>, vector<16x128xf32>
    tpu.vector_store %arg10[%c0_10, %c0_11], %10 {strides = array<i32>} : memref<16x128xf32, #tpu.memory_space<vmem>>, vector<16x128xf32>,
    %cst_12 = arith.constant 0.000000e+00 : f32
    %12 = vector.broadcast %cst_12 : f32 to vector<16x128xf32>
    %c0_13 = arith.constant 0 : index
    %c0_14 = arith.constant 0 : index
    %13 = vector.load %arg11[%c0_13, %c0_14] : memref<16x128xf32, #tpu.memory_space<vmem>>, vector<16x128xf32>
    tpu.vector_store %arg11[%c0_13, %c0_14], %12 {strides = array<i32>} : memref<16x128xf32, #tpu.memory_space<vmem>>, vector<16x128xf32>,
    %c0_i32 = arith.constant 0 : i32
    %c4_i32 = arith.constant 4 : i32
    %14 = arith.addi %c0_i32, %c4_i32 : i32
    %c1_i32 = arith.constant 1 : i32
    scf.for %arg12 = %c0_i32 to %14 step %c1_i32  : i32 {
      %c1_i32_27 = arith.constant 1 : i32
      %25 = arith.muli %arg12, %c1_i32_27 : i32
      %c0_i32_28 = arith.constant 0 : i32
      %26 = arith.addi %c0_i32_28, %25 : i32
      %27 = arith.index_cast %26 : i32 to index
      %c0_29 = arith.constant 0 : index
      %c0_30 = arith.constant 0 : index
      %28 = vector.load %arg8[%27, %c0_29, %c0_30] : memref<4x16x512xbf16, #tpu.memory_space<vmem>>, vector<1x16x512xbf16>
      %29 = vector.shape_cast %28 : vector<1x16x512xbf16> to vector<16x512xbf16>
      %30 = arith.extf %29 : vector<16x512xbf16> to vector<16x512xf32>
      %c0_31 = arith.constant 0 : index
      %c0_32 = arith.constant 0 : index
      %31 = vector.load %arg10[%c0_31, %c0_32] : memref<16x128xf32, #tpu.memory_space<vmem>>, vector<16x128xf32>
      %32 = arith.truncf %31 : vector<16x128xf32> to vector<16x128xbf16>
      %c0_33 = arith.constant 0 : index
      %c0_34 = arith.constant 0 : index
      %33 = vector.load %arg3[%c0_33, %c0_34] : memref<128x512xbf16, #tpu.memory_space<vmem>>, vector<128x512xbf16>
      %cst_35 = arith.constant dense<0.000000e+00> : vector<16x512xf32>
      %34 = tpu.matmul %32, %33, %cst_35 {dimension_numbers = #tpu.dot_dimension_numbers<[1], [0], [0], [1], [0, 0, 1, 1], [], []>} : vector<16x128xbf16>, vector<128x512xbf16>, vector<16x512xf32> -> vector<16x512xf32>
      %35 = arith.addf %30, %34 : vector<16x512xf32>
      %c0_36 = arith.constant 0 : index
      %c0_37 = arith.constant 0 : index
      %36 = vector.load %arg11[%c0_36, %c0_37] : memref<16x128xf32, #tpu.memory_space<vmem>>, vector<16x128xf32>
      %37 = vector.extract_strided_slice %35 {offsets = [0, 0], sizes = [16, 128], strides = [1, 1]} : vector<16x512xf32> to vector<16x128xf32>
      %38 = arith.negf %37 : vector<16x128xf32>
      %39 = math.exp %38 : vector<16x128xf32>
      %cst_38 = arith.constant 1.000000e+00 : f32
      %40 = vector.broadcast %cst_38 : f32 to vector<16x128xf32>
      %41 = arith.addf %40, %39 : vector<16x128xf32>
      %42 = arith.divf %40, %41 : vector<16x128xf32>
      %43 = vector.extract_strided_slice %35 {offsets = [0, 128], sizes = [16, 128], strides = [1, 1]} : vector<16x512xf32> to vector<16x128xf32>
      %44 = arith.negf %43 : vector<16x128xf32>
      %45 = math.exp %44 : vector<16x128xf32>
      %cst_39 = arith.constant 1.000000e+00 : f32
      %46 = vector.broadcast %cst_39 : f32 to vector<16x128xf32>
      %47 = arith.addf %46, %45 : vector<16x128xf32>
      %48 = arith.divf %46, %47 : vector<16x128xf32>
      %49 = vector.extract_strided_slice %35 {offsets = [0, 256], sizes = [16, 128], strides = [1, 1]} : vector<16x512xf32> to vector<16x128xf32>
      %50 = math.tanh %49 : vector<16x128xf32>
      %51 = vector.extract_strided_slice %35 {offsets = [0, 384], sizes = [16, 128], strides = [1, 1]} : vector<16x512xf32> to vector<16x128xf32>
      %52 = arith.negf %51 : vector<16x128xf32>
      %53 = math.exp %52 : vector<16x128xf32>
      %cst_40 = arith.constant 1.000000e+00 : f32
      %54 = vector.broadcast %cst_40 : f32 to vector<16x128xf32>
      %55 = arith.addf %54, %53 : vector<16x128xf32>
      %56 = arith.divf %54, %55 : vector<16x128xf32>
      %57 = arith.mulf %48, %36 : vector<16x128xf32>
      %58 = arith.mulf %42, %50 : vector<16x128xf32>
      %59 = arith.addf %57, %58 : vector<16x128xf32>
      %60 = math.tanh %59 : vector<16x128xf32>
      %61 = arith.mulf %56, %60 : vector<16x128xf32>
      %c0_41 = arith.constant 0 : index
      %c0_42 = arith.constant 0 : index
      %62 = vector.load %arg10[%c0_41, %c0_42] : memref<16x128xf32, #tpu.memory_space<vmem>>, vector<16x128xf32>
      tpu.vector_store %arg10[%c0_41, %c0_42], %61 {strides = array<i32>} : memref<16x128xf32, #tpu.memory_space<vmem>>, vector<16x128xf32>,
      %c0_43 = arith.constant 0 : index
      %c0_44 = arith.constant 0 : index
      %63 = vector.load %arg11[%c0_43, %c0_44] : memref<16x128xf32, #tpu.memory_space<vmem>>, vector<16x128xf32>
      tpu.vector_store %arg11[%c0_43, %c0_44], %59 {strides = array<i32>} : memref<16x128xf32, #tpu.memory_space<vmem>>, vector<16x128xf32>,
      %64 = arith.truncf %61 : vector<16x128xf32> to vector<16x128xbf16>
      %65 = arith.index_cast %26 : i32 to index
      %c0_45 = arith.constant 0 : index
      %c0_46 = arith.constant 0 : index
      %66 = vector.load %arg9[%65, %c0_45, %c0_46] : memref<4x16x128xbf16, #tpu.memory_space<vmem>>, vector<1x16x128xbf16>
      %67 = vector.shape_cast %66 : vector<1x16x128xbf16> to vector<16x128xbf16>
      %68 = vector.shape_cast %64 : vector<16x128xbf16> to vector<1x16x128xbf16>
      tpu.vector_store %arg9[%65, %c0_45, %c0_46], %68 {strides = array<i32>} : memref<4x16x128xbf16, #tpu.memory_space<vmem>>, vector<1x16x128xbf16>,
    }
    %c4_i32_15 = arith.constant 4 : i32
    %c0_16 = arith.constant 0 : index
    %c0_17 = arith.constant 0 : index
    %c0_18 = arith.constant 0 : index
    %15 = vector.load %arg9[%c0_16, %c0_17, %c0_18] : memref<4x16x128xbf16, #tpu.memory_space<vmem>>, vector<4x16x128xbf16>
    %16 = vector.shape_cast %15 : vector<4x16x128xbf16> to vector<64x128xbf16>
    %c0_19 = arith.constant 0 : index
    %c0_20 = arith.constant 0 : index
    %17 = vector.load %arg5[%c0_19, %c0_20] : memref<128x128xbf16, #tpu.memory_space<vmem>>, vector<128x128xbf16>
    %cst_21 = arith.constant dense<0.000000e+00> : vector<64x128xf32>
    %18 = tpu.matmul %16, %17, %cst_21 {dimension_numbers = #tpu.dot_dimension_numbers<[1], [0], [0], [1], [0, 0, 1, 1], [], []>} : vector<64x128xbf16>, vector<128x128xbf16>, vector<64x128xf32> -> vector<64x128xf32>
    %c0_22 = arith.constant 0 : index
    %c0_23 = arith.constant 0 : index
    %19 = vector.load %arg6[%c0_22, %c0_23] : memref<1x128xf32, #tpu.memory_space<vmem>>, vector<1x128xf32>
    %20 = vector.broadcast %19 : vector<1x128xf32> to vector<64x128xf32>
    %21 = arith.addf %18, %20 : vector<64x128xf32>
    %22 = vector.shape_cast %21 : vector<64x128xf32> to vector<4x16x128xf32>
    %23 = arith.truncf %22 : vector<4x16x128xf32> to vector<4x16x128xbf16>
    %c0_24 = arith.constant 0 : index
    %c0_25 = arith.constant 0 : index
    %c0_26 = arith.constant 0 : index
    %24 = vector.load %arg7[%c0_24, %c0_25, %c0_26] : memref<4x16x128xbf16, #tpu.memory_space<vmem>>, vector<4x16x128xbf16>
    tpu.vector_store %arg7[%c0_24, %c0_25, %c0_26], %23 {strides = array<i32>} : memref<4x16x128xbf16, #tpu.memory_space<vmem>>, vector<4x16x128xbf16>,
    return
  }
  func.func @transform_0(%arg0: i32) -> (i32, i32, i32) {
    %c0_i32 = arith.constant 0 : i32
    %c0_i32_0 = arith.constant 0 : i32
    %c0_i32_1 = arith.constant 0 : i32
    return %c0_i32, %arg0, %c0_i32_0 : i32, i32, i32
  }
  func.func @transform_1(%arg0: i32) -> (i32, i32) {
    %c0_i32 = arith.constant 0 : i32
    %c0_i32_0 = arith.constant 0 : i32
    %c0_i32_1 = arith.constant 0 : i32
    return %c0_i32, %c0_i32_0 : i32, i32
  }
  func.func @transform_2(%arg0: i32) -> (i32, i32) {
    %c0_i32 = arith.constant 0 : i32
    %c0_i32_0 = arith.constant 0 : i32
    %c0_i32_1 = arith.constant 0 : i32
    return %c0_i32, %c0_i32_0 : i32, i32
  }
  func.func @transform_3(%arg0: i32) -> (i32, i32) {
    %c0_i32 = arith.constant 0 : i32
    %c0_i32_0 = arith.constant 0 : i32
    %c0_i32_1 = arith.constant 0 : i32
    return %c0_i32, %c0_i32_0 : i32, i32
  }
  func.func @transform_4(%arg0: i32) -> (i32, i32) {
    %c0_i32 = arith.constant 0 : i32
    %c0_i32_0 = arith.constant 0 : i32
    %c0_i32_1 = arith.constant 0 : i32
    return %c0_i32, %c0_i32_0 : i32, i32
  }
  func.func @transform_5(%arg0: i32) -> (i32, i32) {
    %c0_i32 = arith.constant 0 : i32
    %c0_i32_0 = arith.constant 0 : i32
    %c0_i32_1 = arith.constant 0 : i32
    return %c0_i32, %c0_i32_0 : i32, i32
  }
  func.func @transform_6(%arg0: i32) -> (i32, i32, i32) {
    %c0_i32 = arith.constant 0 : i32
    %c0_i32_0 = arith.constant 0 : i32
    %c0_i32_1 = arith.constant 0 : i32
    return %c0_i32, %arg0, %c0_i32_0 : i32, i32, i32
  }
}

</mosaic_0001>

<bundles_post_ra>
// kernel: _lambda_.3
= control target key start
LH: loop header
LB: loop body
LE: loop exit
PB: predicated region body
PF: predicated region fallthrough
CT: control target
= control target key end

     0   :  { %11 = vsyncpa [#allocation7], 0  ;;  %s1826_s0 = inlined_call_operand.hbm [shape: bf16[4,16,128], index: 0, kind: input, shape index: {}]   ;;  %s1827_s1 = inlined_call_operand.hbm [shape: bf16[128,512], index: 1, kind: input, shape index: {}]   ;;  %s1828_s2 = inlined_call_operand.hbm [shape: bf16[128,512], index: 2, kind: input, shape index: {}]   ;;  %s1829_s3 = inlined_call_operand.hbm [shape: f32[1,512], index: 3, kind: input, shape index: {}]   ;;  %s1830_s4 = inlined_call_operand.hbm [shape: bf16[128,128], index: 4, kind: input, shape index: {}]   ;;  %s1831_s5 = inlined_call_operand.hbm [shape: f32[1,128], index: 5, kind: input, shape index: {}]   ;;  %s1832_s6 = inlined_call_operand.hbm [shape: bf16[4,16,128], index: 6, kind: output, shape index: {}]  }
   0x1   :  { %12 = vsyncpa [#allocation10], 0 }
   0x2   :  { %13 = vsyncpa [#allocation13], 0 }
   0x3   :  { %14 = vsyncpa [#allocation16], 0 }
   0x4   :  { %15 = vsyncpa [#allocation8], 0  ;;  %s1620_s21 = smov [#allocation9]   ;;  %s1448_s25 = scalar_lea.hbm %s1827_s1, 4096 }
   0x5   :  { %s33_s22 = sshll.u32 %s1620_s21, 4  ;;  %p1449_p0 = scmp.ne.s32.totalorder %s1827_s1, %s1448_s25  ;;  %s34_s22 = int_to_ptr.vmem [resolvable:$true] %s33_s22 }
   0x6   :  { %p1452_p1 = scmp.lt.u32.totalorder %s1448_s25, %s1827_s1 }
   0x8   :  { %p1454_p2 = pnand %p1452_p1, %p1449_p0 }
   0xa   :  { %1457 = shalt.err (!%p1454_p2)
}
   0xb   :  { %s1458_s30 = scalar_lea.vmem %s34_s22, 4096  ;;  %p1463_p4 = scmp.lt.s32.totalorder %s34_s22, %s34_s22 }
   0xc   :  { %p1459_p3 = scmp.ne.s32.totalorder %s34_s22, %s1458_s30  ;;  %p1464_p5 = scmp.lt.s32.totalorder %s1458_s30, %s1458_s30 }
   0xe   :  { %p1465_p6 = por %p1464_p5, %p1463_p4 }
  0x10   :  { %p1466_p7 = pnand %p1465_p6, %p1459_p3 }
  0x12   :  { %1469 = shalt.err (!%p1466_p7)
}
  0x13   :  { %s1621_s7 = smov 256   ;;  %s1622_s8 = smov 16  }
  0x14   :  { %39 = dma.hbm_to_vmem [thread:$0]  %s1827_s1, 4096, %s34_s22, [#allocation10], %s1621_s7, %s1621_s7, %s1622_s8  }
  0x15   :  { %s1623_s11 = smov [#allocation12]   ;;  %s1624_s13 = smov [#allocation6]  }
  0x16   :  { %s58_s12 = sshll.u32 %s1623_s11, 4  ;;  %s21_s14 = sshll.u32 %s1624_s13, 4  ;;  %s59_s12 = int_to_ptr.vmem [resolvable:$true] %s58_s12  ;;  %s22_s14 = int_to_ptr.vmem [resolvable:$true] %s21_s14 }
  0x17   :  { %s1470_s17 = scalar_lea.hbm %s1829_s3, 64 }
  0x18   :  { %p1471_p8 = scmp.ne.s32.totalorder %s1829_s3, %s1470_s17  ;;  %p1474_p9 = scmp.lt.u32.totalorder %s1470_s17, %s1829_s3 }
  0x1a   :  { %p1476_p10 = pnand %p1474_p9, %p1471_p8 }
  0x1c   :  { %1479 = shalt.err (!%p1476_p10)
}
  0x1d   :  { %s1480_s1 = scalar_lea.vmem %s59_s12, 64  ;;  %p1485_p12 = scmp.lt.s32.totalorder %s59_s12, %s59_s12 }
  0x1e   :  { %p1481_p11 = scmp.ne.s32.totalorder %s59_s12, %s1480_s1  ;;  %p1486_p13 = scmp.lt.s32.totalorder %s1480_s1, %s1480_s1 }
  0x20   :  { %p1487_p0 = por %p1486_p13, %p1485_p12 }
  0x22   :  { %p1488_p1 = pnand %p1487_p0, %p1481_p11 }
  0x24   :  { %1491 = shalt.err (!%p1488_p1)
}
  0x25   :  { %61 = dma.hbm_to_vmem [thread:$0]  %s1829_s3, 64, %s59_s12, [#allocation13]  }
  0x26   :  { %s1492_s26 = scalar_lea.hbm %s1826_s0, 512 }
  0x27   :  { %p1493_p2 = scmp.ne.s32.totalorder %s1826_s0, %s1492_s26  ;;  %p1496_p3 = scmp.lt.u32.totalorder %s1492_s26, %s1826_s0 }
  0x29   :  { %p1498_p4 = pnand %p1496_p3, %p1493_p2 }
  0x2b   :  { %1501 = shalt.err (!%p1498_p4)
}
  0x2c   :  { %s1502_s9 = scalar_lea.vmem %s22_s14, 512  ;;  %p1507_p6 = scmp.lt.s32.totalorder %s22_s14, %s22_s14 }
  0x2d   :  { %p1503_p5 = scmp.ne.s32.totalorder %s22_s14, %s1502_s9  ;;  %p1508_p7 = scmp.lt.s32.totalorder %s1502_s9, %s1502_s9 }
  0x2f   :  { %p1509_p8 = por %p1508_p7, %p1507_p6 }
  0x31   :  { %p1510_p9 = pnand %p1509_p8, %p1503_p5 }
  0x33   :  { %1513 = shalt.err (!%p1510_p9)
}
  0x34   :  { %s1625_s3 = smov 64   ;;  %s1626_s10 = smov 4  }
  0x35   :  { %27 = dma.hbm_to_vmem [thread:$0]  %s1826_s0, 512, %s22_s14, [#allocation7], %s1625_s3, %s1625_s3, %s1626_s10  }
  0x36   :  { %s1627_s13 = smov [#allocation11]   ;;  %s1628_s16 = smov [#allocation14]  }
  0x37   :  { %s45_s15 = sshll.u32 %s1627_s13, 4  ;;  %s67_s17 = sshll.u32 %s1628_s16, 4  ;;  %s46_s15 = int_to_ptr.vmem [resolvable:$true] %s45_s15  ;;  %s68_s17 = int_to_ptr.vmem [resolvable:$true] %s67_s17 }
  0x38   :  { %s1514_s20 = scalar_lea.hbm %s1828_s2, 4096 }
  0x39   :  { %p1515_p10 = scmp.ne.s32.totalorder %s1828_s2, %s1514_s20  ;;  %p1518_p11 = scmp.lt.u32.totalorder %s1514_s20, %s1828_s2 }
  0x3b   :  { %p1520_p12 = pnand %p1518_p11, %p1515_p10 }
  0x3d   :  { %1523 = shalt.err (!%p1520_p12)
}
  0x3e   :  { %s1524_s0 = scalar_lea.vmem %s46_s15, 4096  ;;  %p1529_p0 = scmp.lt.s32.totalorder %s46_s15, %s46_s15 }
  0x3f   :  { %p1525_p13 = scmp.ne.s32.totalorder %s46_s15, %s1524_s0  ;;  %p1530_p1 = scmp.lt.s32.totalorder %s1524_s0, %s1524_s0 }
  0x41   :  { %p1531_p2 = por %p1530_p1, %p1529_p0 }
  0x43   :  { %p1532_p3 = pnand %p1531_p2, %p1525_p13 }
  0x45   :  { %1535 = shalt.err (!%p1532_p3)
}
  0x46   :  { %51 = dma.hbm_to_vmem [thread:$0]  %s1828_s2, 4096, %s46_s15, [#allocation10], %s1621_s7, %s1621_s7, %s1622_s8  }
  0x47   :  { %s1536_s27 = scalar_lea.hbm %s1830_s4, 1024 }
  0x48   :  { %p1537_p4 = scmp.ne.s32.totalorder %s1830_s4, %s1536_s27  ;;  %p1540_p5 = scmp.lt.u32.totalorder %s1536_s27, %s1830_s4 }
  0x4a   :  { %p1542_p6 = pnand %p1540_p5, %p1537_p4 }
  0x4c   :  { %1545 = shalt.err (!%p1542_p6)
}
  0x4d   :  { %s1546_s11 = scalar_lea.vmem %s68_s17, 1024  ;;  %p1551_p8 = scmp.lt.s32.totalorder %s68_s17, %s68_s17 }
  0x4e   :  { %p1547_p7 = scmp.ne.s32.totalorder %s68_s17, %s1546_s11  ;;  %p1552_p9 = scmp.lt.s32.totalorder %s1546_s11, %s1546_s11 }
  0x50   :  { %p1553_p10 = por %p1552_p9, %p1551_p8 }
  0x52   :  { %p1554_p11 = pnand %p1553_p10, %p1547_p7 }
  0x54   :  { %1557 = shalt.err (!%p1554_p11)
}
  0x55   :  { %73 = dma.hbm_to_vmem [thread:$0]  %s1830_s4, 1024, %s68_s17, [#allocation13], %s1625_s3, %s1625_s3, %s1626_s10  }
  0x56   :  { %s1629_s8 = smov [#allocation15]   ;;  %s1558_s16 = scalar_lea.hbm %s1831_s5, 16 }
  0x57   :  { %s80_s12 = sshll.u32 %s1629_s8, 4  ;;  %p1559_p12 = scmp.ne.s32.totalorder %s1831_s5, %s1558_s16  ;;  %s81_s12 = int_to_ptr.vmem [resolvable:$true] %s80_s12 }
  0x58   :  { %p1562_p13 = scmp.lt.u32.totalorder %s1558_s16, %s1831_s5 }
  0x5a   :  { %p1564_p0 = pnand %p1562_p13, %p1559_p12 }
  0x5c   :  { %1567 = shalt.err (!%p1564_p0)
}
  0x5d   :  { %s1568_s1 = scalar_lea.vmem %s81_s12, 16  ;;  %s1572_s4 = scalar_lea.vmem %s81_s12, 32 }
  0x5e   :  { %p1569_p1 = scmp.ne.s32.totalorder %s81_s12, %s1568_s1  ;;  %p1573_p2 = scmp.lt.s32.totalorder %s81_s12, %s81_s12 }
  0x5f   :  { %p1574_p3 = scmp.lt.s32.totalorder %s1572_s4, %s1568_s1 }
  0x61   :  { %p1575_p4 = por %p1574_p3, %p1573_p2 }
  0x63   :  { %p1576_p5 = pnand %p1575_p4, %p1569_p1 }
  0x65   :  { %1579 = shalt.err (!%p1576_p5)
}
  0x66   :  { %83 = dma.hbm_to_vmem [thread:$0]  %s1831_s5, 16, %s81_s12, [#allocation16]  }
  0x67   :  { %1606 = dma.done.wait [#allocation7], 512  }
  0x68   :  { %1607 = vsyncadd [#allocation7], 4294966784 }
  0x69   :  { %1608 = dma.done.wait [#allocation10], 8192  }
  0x6a   :  { %1609 = vsyncadd [#allocation10], 4294959104 }
  0x6b   :  { %1610 = dma.done.wait [#allocation13], 1088  }
  0x6c   :  { %1611 = vsyncadd [#allocation13], 4294966208 }
  0x6d   :  { %1612 = dma.done.wait [#allocation16], 16  }
  0x6e   :  { %1613 = vsyncadd [#allocation16], 4294967280  ;;  %v1630_v0 = vmov 0.0   ;;  %v1631_v1 = vmov 0   ;;  %v1308_v2 = vld [vmem:[#allocation9 + $0x4] ss:$16 sps:$4 sm:$0xff]   ;;  %v145_v38 = vlaneseq }
  0x6f   :  { %527 = vst [vmem:[#allocation4] sm:$0xff] %v1630_v0  ;;  %528 = vst [vmem:[#allocation4 + $0x8] sm:$0xff] %v1630_v0  ;;  %381 = vmatprep.mubr.bf16.mxu0 %v1631_v1  ;;  %454 = vmatprep.mubr.bf16.mxu1 %v1631_v1  ;;  %v1310_v3 = vld [vmem:[#allocation9 + $0xc] ss:$16 sps:$4 sm:$0xff]   ;;  %v1312_v4 = vld [vmem:[#allocation9] ss:$16 sps:$4 sm:$0xff]  }
  0x70   :  { %529 = vst [vmem:[#allocation5] sm:$0xff] %v1630_v0  ;;  %530 = vst [vmem:[#allocation5 + $0x8] sm:$0xff] %v1630_v0  ;;  %349 = vmatprep.subr.bf16.mxu0 %v1308_v2  ;;  %v1313_v5 = vld [vmem:[#allocation9 + $0x8] ss:$16 sps:$4 sm:$0xff]   ;;  %422 = vmatprep.subr.bf16.mxu1 %v1310_v3  ;;  %v1314_v6 = vld [vmem:[#allocation9 + $0x24] ss:$16 sps:$4 sm:$0xff]  }
  0x71   :  { %350 = vmatpush1.bf16.msra.mxu0 %v1312_v4  ;;  %423 = vmatpush1.bf16.msra.mxu1 %v1313_v5  ;;  %v1316_v7 = vld [vmem:[#allocation9 + $0x2c] ss:$16 sps:$4 sm:$0xff]   ;;  %v1318_v8 = vld [vmem:[#allocation9 + $0x20] ss:$16 sps:$4 sm:$0xff]   ;;  %v1319_v9 = vld [vmem:[#allocation9 + $0x28] ss:$16 sps:$4 sm:$0xff]  }
  0x72   :  { %351 = vmatprep.subr.bf16.mxu0 %v1314_v6  ;;  %424 = vmatprep.subr.bf16.mxu1 %v1316_v7  ;;  %v1320_v10 = vld [vmem:[#allocation9 + $0x44] ss:$16 sps:$4 sm:$0xff]   ;;  %v1322_v11 = vld [vmem:[#allocation9 + $0x4c] ss:$16 sps:$4 sm:$0xff]   ;;  %v1324_v12 = vld [vmem:[#allocation9 + $0x40] ss:$16 sps:$4 sm:$0xff]  }
  0x73   :  { %v1325_v13 = vld [vmem:[#allocation9 + $0x48] ss:$16 sps:$4 sm:$0xff]   ;;  %v1326_v14 = vld [vmem:[#allocation9 + $0x64] ss:$16 sps:$4 sm:$0xff]   ;;  %v1328_v15 = vld [vmem:[#allocation9 + $0x6c] ss:$16 sps:$4 sm:$0xff]  }
  0x74   :  { %v1330_v16 = vld [vmem:[#allocation9 + $0x60] ss:$16 sps:$4 sm:$0xff]   ;;  %v1331_v17 = vld [vmem:[#allocation9 + $0x68] ss:$16 sps:$4 sm:$0xff]   ;;  %v1332_v18 = vld [vmem:[#allocation9 + $0x84] ss:$16 sps:$4 sm:$0xff]  }
  0x75   :  { %352 = vmatpush1.bf16.msra.mxu0 %v1318_v8  ;;  %425 = vmatpush1.bf16.msra.mxu1 %v1319_v9  ;;  %v1334_v19 = vld [vmem:[#allocation9 + $0x8c] ss:$16 sps:$4 sm:$0xff]   ;;  %v1336_v20 = vld [vmem:[#allocation9 + $0x80] ss:$16 sps:$4 sm:$0xff]   ;;  %v1337_v21 = vld [vmem:[#allocation9 + $0x88] ss:$16 sps:$4 sm:$0xff]  }
  0x76   :  { %353 = vmatprep.subr.bf16.mxu0 %v1320_v10  ;;  %426 = vmatprep.subr.bf16.mxu1 %v1322_v11  ;;  %v1338_v22 = vld [vmem:[#allocation9 + $0xa4] ss:$16 sps:$4 sm:$0xff]   ;;  %v1340_v23 = vld [vmem:[#allocation9 + $0xac] ss:$16 sps:$4 sm:$0xff]   ;;  %v1342_v24 = vld [vmem:[#allocation9 + $0xa0] ss:$16 sps:$4 sm:$0xff]  }
  0x77   :  { %v1343_v25 = vld [vmem:[#allocation9 + $0xa8] ss:$16 sps:$4 sm:$0xff]   ;;  %v1344_v26 = vld [vmem:[#allocation9 + $0xc4] ss:$16 sps:$4 sm:$0xff]   ;;  %v1346_v27 = vld [vmem:[#allocation9 + $0xcc] ss:$16 sps:$4 sm:$0xff]  }
  0x78   :  { %v1348_v28 = vld [vmem:[#allocation9 + $0xc0] ss:$16 sps:$4 sm:$0xff]   ;;  %v1349_v29 = vld [vmem:[#allocation9 + $0xc8] ss:$16 sps:$4 sm:$0xff]   ;;  %v1350_v30 = vld [vmem:[#allocation9 + $0xe4] ss:$16 sps:$4 sm:$0xff]  }
  0x79   :  { %354 = vmatpush1.bf16.msra.mxu0 %v1324_v12  ;;  %427 = vmatpush1.bf16.msra.mxu1 %v1325_v13  ;;  %v1352_v31 = vld [vmem:[#allocation9 + $0xec] ss:$16 sps:$4 sm:$0xff]   ;;  %v1354_v32 = vld [vmem:[#allocation9 + $0xe0] ss:$16 sps:$4 sm:$0xff]   ;;  %v1355_v33 = vld [vmem:[#allocation9 + $0xe8] ss:$16 sps:$4 sm:$0xff]  }
  0x7a   :  { %355 = vmatprep.subr.bf16.mxu0 %v1326_v14  ;;  %428 = vmatprep.subr.bf16.mxu1 %v1328_v15  ;;  %v1356_v34 = vld [vmem:[#allocation6] sm:$0xff]   ;;  %v1357_v35 = vld [vmem:[#allocation6 + $0x8] sm:$0xff]   ;;  %v1358_v36 = vld [vmem:[#allocation6 + $0x10] sm:$0xff]   ;;  %v146_v39 = vshrl.u32 %v145_v38, 7  ;;  %s1801_s5 = smov 0  }
  0x7b   :  { %v1359_v37 = vld [vmem:[#allocation6 + $0x18] sm:$0xff]   ;;  %v143_v42 = vld [vmem:[#allocation12] sm:$0xf] }
  0x7c   :  { %v147_v40 = vsub.s32 0, %v146_v39  ;;  %v155_v41 = vsub.s32 2, %v146_v39  ;;  %v151_v43 = vsub.s32 1, %v146_v39  ;;  %v159_v44 = vsub.s32 3, %v146_v39 }
  0x7d   :  { %356 = vmatpush1.bf16.msra.mxu0 %v1330_v16  ;;  %429 = vmatpush1.bf16.msra.mxu1 %v1331_v17 }
  0x7e   :  { %357 = vmatprep.subr.bf16.mxu0 %v1332_v18  ;;  %430 = vmatprep.subr.bf16.mxu1 %v1334_v19  ;;  %v1761_v45 = vrot.slane %v143_v42, %v147_v40  ;;  %v1763_v46 = vrot.slane %v143_v42, %v155_v41  ;;  %v1765_v49 = vrot.slane %v143_v42, %v151_v43 }
  0x7f   :  { %v1767_v50 = vrot.slane %v143_v42, %v159_v44 }
  0x81   :  { %358 = vmatpush1.bf16.msra.mxu0 %v1336_v20  ;;  %431 = vmatpush1.bf16.msra.mxu1 %v1337_v21 }
  0x82   :  { %359 = vmatprep.subr.bf16.mxu0 %v1338_v22  ;;  %432 = vmatprep.subr.bf16.mxu1 %v1340_v23 }
  0x85   :  { %360 = vmatpush1.bf16.msra.mxu0 %v1342_v24  ;;  %433 = vmatpush1.bf16.msra.mxu1 %v1343_v25 }
  0x86   :  { %361 = vmatprep.subr.bf16.mxu0 %v1344_v26  ;;  %434 = vmatprep.subr.bf16.mxu1 %v1346_v27 }
  0x89   :  { %362 = vmatpush1.bf16.msra.mxu0 %v1348_v28  ;;  %435 = vmatpush1.bf16.msra.mxu1 %v1349_v29 }
  0x8a   :  { %363 = vmatprep.subr.bf16.mxu0 %v1350_v30  ;;  %436 = vmatprep.subr.bf16.mxu1 %v1352_v31 }
  0x8d   :  { %364 = vmatpush1.bf16.msra.mxu0 %v1354_v32  ;;  %437 = vmatpush1.bf16.msra.mxu1 %v1355_v33 }
  0x90   :  { %382 = vmatmul.mubr.bf16.vlgmr.msra.gmra.mrb[0].mxu0 %v1356_v34  ;;  %455 = vmatmul.mubr.bf16.vlgmr.msra.gmra.mrb[0].mxu1 %v1356_v34 }
  0x91   :  { %391 = vmatprep.mubr.bf16.mxu0 %v1631_v1  ;;  %464 = vmatprep.mubr.bf16.mxu1 %v1631_v1 }
  0x98   :  { %392 = vmatmul.mubr.bf16.gmra.mrb[4].mxu0 %v1357_v35  ;;  %465 = vmatmul.mubr.bf16.gmra.mrb[4].mxu1 %v1357_v35 }
  0x99   :  { %401 = vmatprep.mubr.bf16.mxu0 %v1631_v1  ;;  %474 = vmatprep.mubr.bf16.mxu1 %v1631_v1 }
  0xa0   :  { %402 = vmatmul.mubr.bf16.gmra.mrb[8].mxu0 %v1358_v36  ;;  %475 = vmatmul.mubr.bf16.gmra.mrb[8].mxu1 %v1358_v36 }
  0xa1   :  { %411 = vmatprep.mubr.bf16.mxu0 %v1631_v1  ;;  %484 = vmatprep.mubr.bf16.mxu1 %v1631_v1 }
  0xa8   :  { %412 = vmatmul.mubr.bf16.gmra.mrb[12].mxu0 %v1359_v37  ;;  %485 = vmatmul.mubr.bf16.gmra.mrb[12].mxu1 %v1359_v37 }
 0x163   :  { %v383_v47 = vpop.f32.mrb[0].mxu0  ;;  %v456_v48 = vpop.f32.mrb[0].mxu1 }
 0x164   :  { %v385_v51 = vpop.f32.mrb[1].mxu0  ;;  %v458_v52 = vpop.f32.mrb[1].mxu1  ;;  %v384_v55 = vadd.f32 %v383_v47, %v1761_v45  ;;  %v457_v56 = vadd.f32 %v456_v48, %v1763_v46 }
 0x165   :  { %v387_v53 = vpop.f32.mrb[2].mxu0  ;;  %v460_v54 = vpop.f32.mrb[2].mxu1  ;;  %v386_v61 = vadd.f32 %v385_v51, %v1765_v49  ;;  %v459_v62 = vadd.f32 %v458_v52, %v1767_v50 }
 0x166   :  { %v388_v57 = vadd.f32 %v387_v53, %v1761_v45  ;;  %v461_v58 = vadd.f32 %v460_v54, %v1763_v46  ;;  %v389_v59 = vpop.f32.mrb[3].mxu0  ;;  %v462_v60 = vpop.f32.mrb[3].mxu1 }
 0x167   :  { %v390_v63 = vadd.f32 %v389_v59, %v1765_v49  ;;  %v463_v0 = vadd.f32 %v462_v60, %v1767_v50 }
 0x168   :  { %v495_v1 = vpack.c.bf16 %v388_v57, %v384_v55  ;;  %v497_v2 = vpack.c.bf16 %v461_v58, %v457_v56 }
 0x169   :  { %v496_v3 = vpack.c.bf16 %v390_v63, %v386_v61  ;;  %v498_v4 = vpack.c.bf16 %v463_v0, %v459_v62 }
 0x16a   :  { %511 = vst [vmem:[#allocation2] sm:$0xff] %v495_v1  ;;  %513 = vst [vmem:[#allocation2 + $0x10] sm:$0xff] %v497_v2 }
 0x16b   :  { %512 = vst [vmem:[#allocation2 + $0x8] sm:$0xff] %v496_v3  ;;  %514 = vst [vmem:[#allocation2 + $0x18] sm:$0xff] %v498_v4  ;;  %v393_v5 = vpop.f32.mrb[4].mxu0  ;;  %v466_v6 = vpop.f32.mrb[4].mxu1 }
 0x16c   :  { %v395_v7 = vpop.f32.mrb[5].mxu0  ;;  %v468_v8 = vpop.f32.mrb[5].mxu1  ;;  %v394_v11 = vadd.f32 %v393_v5, %v1761_v45  ;;  %v467_v12 = vadd.f32 %v466_v6, %v1763_v46 }
 0x16d   :  { %v397_v9 = vpop.f32.mrb[6].mxu0  ;;  %v470_v10 = vpop.f32.mrb[6].mxu1  ;;  %v396_v17 = vadd.f32 %v395_v7, %v1765_v49  ;;  %v469_v18 = vadd.f32 %v468_v8, %v1767_v50 }
 0x16e   :  { %v398_v13 = vadd.f32 %v397_v9, %v1761_v45  ;;  %v471_v14 = vadd.f32 %v470_v10, %v1763_v46  ;;  %v399_v15 = vpop.f32.mrb[7].mxu0  ;;  %v472_v16 = vpop.f32.mrb[7].mxu1 }
 0x16f   :  { %v400_v19 = vadd.f32 %v399_v15, %v1765_v49  ;;  %v473_v20 = vadd.f32 %v472_v16, %v1767_v50 }
 0x170   :  { %v499_v21 = vpack.c.bf16 %v398_v13, %v394_v11  ;;  %v501_v22 = vpack.c.bf16 %v471_v14, %v467_v12 }
 0x171   :  { %v500_v23 = vpack.c.bf16 %v400_v19, %v396_v17  ;;  %v502_v24 = vpack.c.bf16 %v473_v20, %v469_v18 }
 0x172   :  { %515 = vst [vmem:[#allocation2 + $0x20] sm:$0xff] %v499_v21  ;;  %517 = vst [vmem:[#allocation2 + $0x30] sm:$0xff] %v501_v22 }
 0x173   :  { %516 = vst [vmem:[#allocation2 + $0x28] sm:$0xff] %v500_v23  ;;  %518 = vst [vmem:[#allocation2 + $0x38] sm:$0xff] %v502_v24  ;;  %v403_v25 = vpop.f32.mrb[8].mxu0  ;;  %v476_v26 = vpop.f32.mrb[8].mxu1 }
 0x174   :  { %v405_v27 = vpop.f32.mrb[9].mxu0  ;;  %v478_v28 = vpop.f32.mrb[9].mxu1  ;;  %v404_v31 = vadd.f32 %v403_v25, %v1761_v45  ;;  %v477_v32 = vadd.f32 %v476_v26, %v1763_v46 }
 0x175   :  { %v407_v29 = vpop.f32.mrb[10].mxu0  ;;  %v480_v30 = vpop.f32.mrb[10].mxu1  ;;  %v406_v37 = vadd.f32 %v405_v27, %v1765_v49  ;;  %v479_v38 = vadd.f32 %v478_v28, %v1767_v50 }
 0x176   :  { %v408_v33 = vadd.f32 %v407_v29, %v1761_v45  ;;  %v481_v34 = vadd.f32 %v480_v30, %v1763_v46  ;;  %v409_v35 = vpop.f32.mrb[11].mxu0  ;;  %v482_v36 = vpop.f32.mrb[11].mxu1 }
 0x177   :  { %v410_v39 = vadd.f32 %v409_v35, %v1765_v49  ;;  %v483_v40 = vadd.f32 %v482_v36, %v1767_v50 }
 0x178   :  { %v503_v41 = vpack.c.bf16 %v408_v33, %v404_v31  ;;  %v505_v42 = vpack.c.bf16 %v481_v34, %v477_v32 }
 0x179   :  { %v504_v43 = vpack.c.bf16 %v410_v39, %v406_v37  ;;  %v506_v44 = vpack.c.bf16 %v483_v40, %v479_v38 }
 0x17a   :  { %519 = vst [vmem:[#allocation2 + $0x40] sm:$0xff] %v503_v41  ;;  %521 = vst [vmem:[#allocation2 + $0x50] sm:$0xff] %v505_v42 }
 0x17b   :  { %520 = vst [vmem:[#allocation2 + $0x48] sm:$0xff] %v504_v43  ;;  %522 = vst [vmem:[#allocation2 + $0x58] sm:$0xff] %v506_v44  ;;  %v413_v47 = vpop.f32.mrb[12].mxu0  ;;  %v486_v48 = vpop.f32.mrb[12].mxu1 }
 0x17c   :  { %v415_v51 = vpop.f32.mrb[13].mxu0  ;;  %v488_v52 = vpop.f32.mrb[13].mxu1  ;;  %v414_v55 = vadd.f32 %v413_v47, %v1761_v45  ;;  %v487_v56 = vadd.f32 %v486_v48, %v1763_v46 }
 0x17d   :  { %v417_v53 = vpop.f32.mrb[14].mxu0  ;;  %v490_v54 = vpop.f32.mrb[14].mxu1  ;;  %v416_v61 = vadd.f32 %v415_v51, %v1765_v49  ;;  %v489_v62 = vadd.f32 %v488_v52, %v1767_v50 }
 0x17e   :  { %v418_v57 = vadd.f32 %v417_v53, %v1761_v45  ;;  %v491_v58 = vadd.f32 %v490_v54, %v1763_v46  ;;  %v419_v59 = vpop.f32.mrb[15].mxu0  ;;  %v492_v60 = vpop.f32.mrb[15].mxu1 }
 0x17f   :  { %v420_v63 = vadd.f32 %v419_v59, %v1765_v49  ;;  %v493_v0 = vadd.f32 %v492_v60, %v1767_v50 }
 0x180   :  { %v507_v1 = vpack.c.bf16 %v418_v57, %v414_v55  ;;  %v509_v2 = vpack.c.bf16 %v491_v58, %v487_v56 }
 0x181   :  { %v508_v3 = vpack.c.bf16 %v420_v63, %v416_v61  ;;  %v510_v4 = vpack.c.bf16 %v493_v0, %v489_v62 }
 0x182   :  { %523 = vst [vmem:[#allocation2 + $0x60] sm:$0xff] %v507_v1  ;;  %525 = vst [vmem:[#allocation2 + $0x70] sm:$0xff] %v509_v2 }
 0x183   :  { %524 = vst [vmem:[#allocation2 + $0x68] sm:$0xff] %v508_v3  ;;  %526 = vst [vmem:[#allocation2 + $0x78] sm:$0xff] %v510_v4 }
 0x184 LB: > { %v1360_v45 = vld [vmem:[#allocation11 + $0x4] ss:$16 sps:$4 sm:$0xff]   ;;  %v1362_v46 = vld [vmem:[#allocation11] ss:$16 sps:$4 sm:$0xff]   ;;  %v1632_v49 = vmov 0   ;;  %v553_v32 = vld [vmem:[#allocation4 + $0x8] sm:$0xff]  ;;  %s1618_s5 = sphi %s1801_s5, %s536_s5  }
 0x185   : > { %779 = vmatprep.mubr.bf16.mxu0 %v1632_v49  ;;  %822 = vmatprep.mubr.bf16.mxu1 %v1632_v49  ;;  %v1363_v50 = vld [vmem:[#allocation11 + $0x24] ss:$16 sps:$4 sm:$0xff]   ;;  %v1365_v5 = vld [vmem:[#allocation11 + $0x20] ss:$16 sps:$4 sm:$0xff]   ;;  %v1371_v7 = vld [vmem:[#allocation11 + $0xc] ss:$16 sps:$4 sm:$0xff]  }
 0x186   : > { %747 = vmatprep.subr.bf16.mxu0 %v1360_v45  ;;  %v1366_v6 = vld [vmem:[#allocation11 + $0x44] ss:$16 sps:$4 sm:$0xff]   ;;  %v1374_v8 = vld [vmem:[#allocation11 + $0x8] ss:$16 sps:$4 sm:$0xff]   ;;  %v1368_v9 = vld [vmem:[#allocation11 + $0x40] ss:$16 sps:$4 sm:$0xff]   ;;  %790 = vmatprep.subr.bf16.mxu1 %v1371_v7 }
 0x187   : > { %748 = vmatpush1.bf16.msra.mxu0 %v1362_v46  ;;  %v1369_v10 = vld [vmem:[#allocation11 + $0x64] ss:$16 sps:$4 sm:$0xff]   ;;  %791 = vmatpush1.bf16.msra.mxu1 %v1374_v8  ;;  %v1377_v11 = vld [vmem:[#allocation11 + $0x2c] ss:$16 sps:$4 sm:$0xff]   ;;  %v1380_v12 = vld [vmem:[#allocation11 + $0x28] ss:$16 sps:$4 sm:$0xff]  }
 0x188   : > { %749 = vmatprep.subr.bf16.mxu0 %v1363_v50  ;;  %792 = vmatprep.subr.bf16.mxu1 %v1377_v11  ;;  %v1373_v13 = vld [vmem:[#allocation11 + $0x60] ss:$16 sps:$4 sm:$0xff]   ;;  %v1375_v14 = vld [vmem:[#allocation11 + $0x84] ss:$16 sps:$4 sm:$0xff]   ;;  %v1383_v15 = vld [vmem:[#allocation11 + $0x4c] ss:$16 sps:$4 sm:$0xff]  }
 0x189   : > { %v1386_v16 = vld [vmem:[#allocation11 + $0x48] ss:$16 sps:$4 sm:$0xff]   ;;  %v1389_v17 = vld [vmem:[#allocation11 + $0x6c] ss:$16 sps:$4 sm:$0xff]   ;;  %v1379_v18 = vld [vmem:[#allocation11 + $0x80] ss:$16 sps:$4 sm:$0xff]  }
 0x18a   : > { %v1381_v19 = vld [vmem:[#allocation11 + $0xa4] ss:$16 sps:$4 sm:$0xff]   ;;  %v1392_v20 = vld [vmem:[#allocation11 + $0x68] ss:$16 sps:$4 sm:$0xff]   ;;  %v1395_v21 = vld [vmem:[#allocation11 + $0x8c] ss:$16 sps:$4 sm:$0xff]  }
 0x18b   : > { %750 = vmatpush1.bf16.msra.mxu0 %v1365_v5  ;;  %793 = vmatpush1.bf16.msra.mxu1 %v1380_v12  ;;  %v1385_v22 = vld [vmem:[#allocation11 + $0xa0] ss:$16 sps:$4 sm:$0xff]   ;;  %v1387_v23 = vld [vmem:[#allocation11 + $0xc4] ss:$16 sps:$4 sm:$0xff]   ;;  %v1398_v24 = vld [vmem:[#allocation11 + $0x88] ss:$16 sps:$4 sm:$0xff]  }
 0x18c   : > { %751 = vmatprep.subr.bf16.mxu0 %v1366_v6  ;;  %794 = vmatprep.subr.bf16.mxu1 %v1383_v15  ;;  %v1399_v25 = vld [vmem:[#allocation11 + $0xac] ss:$16 sps:$4 sm:$0xff]   ;;  %v1391_v26 = vld [vmem:[#allocation11 + $0xc0] ss:$16 sps:$4 sm:$0xff]   ;;  %v1393_v27 = vld [vmem:[#allocation11 + $0xe4] ss:$16 sps:$4 sm:$0xff]  }
 0x18d   : > { %v1401_v28 = vld [vmem:[#allocation11 + $0xa8] ss:$16 sps:$4 sm:$0xff]   ;;  %v1402_v29 = vld [vmem:[#allocation11 + $0xcc] ss:$16 sps:$4 sm:$0xff]   ;;  %v1397_v30 = vld [vmem:[#allocation11 + $0xe0] ss:$16 sps:$4 sm:$0xff]  }
 0x18e   : > { %v552_v31 = vld [vmem:[#allocation4] sm:$0xff]  ;;  %v1404_v33 = vld [vmem:[#allocation11 + $0xc8] ss:$16 sps:$4 sm:$0xff]   ;;  %v1405_v34 = vld [vmem:[#allocation11 + $0xec] ss:$16 sps:$4 sm:$0xff]   ;;  %s1202_s23 = sshll.u32 %s1618_s5, 5 }
 0x18f   : > { %752 = vmatpush1.bf16.msra.mxu0 %v1368_v9  ;;  %795 = vmatpush1.bf16.msra.mxu1 %v1386_v16  ;;  %v554_v35 = vpack.c.bf16 %v553_v32, %v552_v31  ;;  %v1407_v36 = vld [vmem:[#allocation11 + $0xe8] ss:$16 sps:$4 sm:$0xff]   ;;  %s539_s0 = scalar_lea.vmem [#allocation2], %s1202_s23  ;;  %s1184_s14 = sshll.u32 %s1618_s5, 3 }
 0x190   : > { %753 = vmatprep.subr.bf16.mxu0 %v1369_v10  ;;  %796 = vmatprep.subr.bf16.mxu1 %v1389_v17  ;;  %v540_v37 = vld [vmem:[%s539_s0] sm:$0xff]  ;;  %v541_v38 = vld [vmem:[%s539_s0 + $0x8] sm:$0xff]  ;;  %v543_v44 = vld [vmem:[%s539_s0 + $0x18] sm:$0xff]  ;;  %s897_s24 = scalar_lea.vmem [#allocation3], %s1184_s14  ;;  %s536_s5 = sadd.s32 1, %s1618_s5  }
 0x191   : > { %v544_v39 = vunpack.c.l.bf16 %v540_v37  ;;  %v545_v40 = vunpack.c.l.bf16 %v541_v38  ;;  %v548_v41 = vunpack.c.h.bf16 %v540_v37  ;;  %v549_v43 = vunpack.c.h.bf16 %v541_v38  ;;  %v542_v56 = vld [vmem:[%s539_s0 + $0x10] sm:$0xff]  ;;  %p533_p6 = scmp.ge.s32.totalorder %s536_s5, 4  }
 0x192   : > { %v547_v57 = vunpack.c.l.bf16 %v543_v44  ;;  %v551_v62 = vunpack.c.h.bf16 %v543_v44  ;;  %v546_v0 = vunpack.c.l.bf16 %v542_v56  ;;  %v550_v4 = vunpack.c.h.bf16 %v542_v56  ;;  %s1633_s25 = smov (%p533_p6), [#allocation17]  }
 0x193   : > { %754 = vmatpush1.bf16.msra.mxu0 %v1373_v13  ;;  %797 = vmatpush1.bf16.msra.mxu1 %v1392_v20  ;;  %s1084_s26 = sshll.u32 (%p533_p6), %s1633_s25, 4  ;;  %s1085_s26 = int_to_ptr.vmem [resolvable:$true] %s1084_s26 }
 0x194   : > { %755 = vmatprep.subr.bf16.mxu0 %v1375_v14  ;;  %798 = vmatprep.subr.bf16.mxu1 %v1395_v21  ;;  %s1580_s27 = scalar_lea.vmem (%p533_p6), %s1085_s26, 512  ;;  %p1585_p8 = scmp.lt.s32.totalorder (%p533_p6), %s1085_s26, %s1085_s26 }
 0x195   :  { %p1581_p7 = scmp.ne.s32.totalorder (%p533_p6), %s1085_s26, %s1580_s27  ;;  %p1586_p9 = scmp.lt.s32.totalorder (%p533_p6), %s1580_s27, %s1580_s27 }
 0x197   : > { %756 = vmatpush1.bf16.msra.mxu0 %v1379_v18  ;;  %799 = vmatpush1.bf16.msra.mxu1 %v1398_v24  ;;  %p1587_p10 = por (%p533_p6), %p1586_p9, %p1585_p8 }
 0x198   : > { %757 = vmatprep.subr.bf16.mxu0 %v1381_v19  ;;  %800 = vmatprep.subr.bf16.mxu1 %v1399_v25  ;;  %v841_v19 = vld [vmem:[#allocation5] sm:$0xff] }
 0x199   :  { %p1588_p11 = pnand (%p533_p6), %p1587_p10, %p1581_p7 }
 0x19b   : > { %758 = vmatpush1.bf16.msra.mxu0 %v1385_v22  ;;  %801 = vmatpush1.bf16.msra.mxu1 %v1401_v28 }
 0x19c   : > { %759 = vmatprep.subr.bf16.mxu0 %v1387_v23  ;;  %802 = vmatprep.subr.bf16.mxu1 %v1402_v29  ;;  %v842_v23 = vld [vmem:[#allocation5 + $0x8] sm:$0xff] }
 0x19f   : > { %760 = vmatpush1.bf16.msra.mxu0 %v1391_v26  ;;  %803 = vmatpush1.bf16.msra.mxu1 %v1404_v33 }
 0x1a0   : > { %761 = vmatprep.subr.bf16.mxu0 %v1393_v27  ;;  %804 = vmatprep.subr.bf16.mxu1 %v1405_v34 }
 0x1a3   : > { %762 = vmatpush1.bf16.msra.mxu0 %v1397_v30  ;;  %805 = vmatpush1.bf16.msra.mxu1 %v1407_v36 }
 0x1a6   : > { %780 = vmatmul.mubr.bf16.vlgmr.msra.gmra.mrb[0].mxu0 %v554_v35  ;;  %823 = vmatmul.mubr.bf16.vlgmr.msra.gmra.mrb[0].mxu1 %v554_v35 }
 0x279   : > { %v781_v42 = vpop.f32.mrb[0].mxu0  ;;  %v824_v61 = vpop.f32.mrb[0].mxu1 }
 0x27a   : > { %v833_v47 = vadd.f32 %v781_v42, %v544_v39  ;;  %v783_v48 = vpop.f32.mrb[1].mxu0  ;;  %v826_v1 = vpop.f32.mrb[1].mxu1  ;;  %v835_v49 = vadd.f32 %v824_v61, %v546_v0  ;;  %v1442_v42 = vld [vmem:[#allocation14 + $0x10] sm:$0xff] (%p533_p6)  }
 0x27b   : > { %v834_v51 = vadd.f32 %v783_v48, %v545_v40  ;;  %v785_v52 = vpop.f32.mrb[2].mxu0  ;;  %v836_v2 = vadd.f32 %v826_v1, %v547_v57  ;;  %v828_v3 = vpop.f32.mrb[2].mxu1  ;;  %v1440_v40 = vld [vmem:[#allocation14] sm:$0xff] (%p533_p6)  }
 0x27c   : > { %v1178_v53 = vmul.f32 -1.442695, %v833_v47  ;;  %v837_v54 = vadd.f32 %v785_v52, %v548_v41  ;;  %v787_v55 = vpop.f32.mrb[3].mxu0  ;;  %v830_v45 = vpop.f32.mrb[3].mxu1  ;;  %v839_v5 = vadd.f32 %v828_v3, %v550_v4  ;;  %v1441_v41 = vld [vmem:[#allocation14 + $0x8] sm:$0xff] (%p533_p6)   ;;  %1246 = vmatprep.subr.bf16.mxu0 (%p533_p6), %v1440_v40  ;;  %1270 = vmatprep.subr.bf16.mxu1 (%p533_p6), %v1440_v40  ;;  %v1444_v48 = vld [vmem:[#allocation14 + $0x20] sm:$0xff] (%p533_p6)  }
 0x27d   : > { %v1180_v58 = vmul.f32 -1.442695, %v834_v51  ;;  %v838_v59 = vadd.f32 %v787_v55, %v549_v43  ;;  %v840_v46 = vadd.f32 %v830_v45, %v551_v62  ;;  %v1182_v50 = vmul.f32 -1.442695, %v836_v2  ;;  %1247 = vmatpush3.bf16.msra.mxu0 (%p533_p6), %v1440_v40  ;;  %1278 = vmatpush3.bf16.msra.mxu1 (%p533_p6), %v1440_v40  ;;  %v1443_v43 = vld [vmem:[#allocation14 + $0x18] sm:$0xff] (%p533_p6)   ;;  %v1445_v51 = vld [vmem:[#allocation14 + $0x28] sm:$0xff] (%p533_p6)  }
 0x27e   : > { %1408 = vpow2.f32 %v1178_v53  ;;  %v1179_v60 = vmul.f32 -1.442695, %v837_v54  ;;  %1248 = vmatprep.subr.bf16.mxu0 (%p533_p6), %v1441_v41  ;;  %1271 = vmatprep.subr.bf16.mxu1 (%p533_p6), %v1441_v41  ;;  %v1446_v52 = vld [vmem:[#allocation14 + $0x30] sm:$0xff] (%p533_p6)   ;;  %v1447_v53 = vld [vmem:[#allocation14 + $0x38] sm:$0xff] (%p533_p6)   ;;  %v1185_v57 = vld [vmem:[#allocation15] ss:$0 sm:$0xff] (%p533_p6) }
 0x27f   : > { %1410 = vpow2.f32 %v1180_v58  ;;  %v1181_v63 = vmul.f32 -1.442695, %v838_v59  ;;  %v1183_v6 = vmul.f32 -1.442695, %v840_v46 }
 0x280   : > { %1412 = vpow2.f32 %v1179_v60 }
 0x281   : > { %1414 = vpow2.f32 %v1181_v63  ;;  %1249 = vmatpush3.bf16.msra.mxu0 (%p533_p6), %v1441_v41  ;;  %1279 = vmatpush3.bf16.msra.mxu1 (%p533_p6), %v1441_v41 }
 0x282   : > { %1416 = vtanh.f32 %v835_v49  ;;  %1250 = vmatprep.subr.bf16.mxu0 (%p533_p6), %v1442_v42  ;;  %1272 = vmatprep.subr.bf16.mxu1 (%p533_p6), %v1442_v42 }
 0x283   : > { %1418 = vpow2.f32 %v1182_v50 }
 0x284   : > { %1420 = vtanh.f32 %v839_v5 }
 0x285   : > { %1422 = vpow2.f32 %v1183_v6  ;;  %1251 = vmatpush3.bf16.msra.mxu0 (%p533_p6), %v1442_v42  ;;  %1280 = vmatpush3.bf16.msra.mxu1 (%p533_p6), %v1442_v42 }
 0x286   :  { %1252 = vmatprep.subr.bf16.mxu0 (%p533_p6), %v1443_v43  ;;  %1273 = vmatprep.subr.bf16.mxu1 (%p533_p6), %v1443_v43 }
 0x288   : > { %v1409_v7 = vpop.eup %1408 }
 0x289   : > { %v1411_v8 = vpop.eup %1410  ;;  %v849_v9 = vadd.f32 1.0, %v1409_v7  ;;  %1253 = vmatpush3.bf16.msra.mxu0 (%p533_p6), %v1443_v43  ;;  %1281 = vmatpush3.bf16.msra.mxu1 (%p533_p6), %v1443_v43 }
 0x28a   : > { %v1413_v10 = vpop.eup %1412  ;;  %v861_v11 = vadd.f32 1.0, %v1411_v8  ;;  %1254 = vmatprep.subr.bf16.mxu0 (%p533_p6), %v1444_v48  ;;  %1274 = vmatprep.subr.bf16.mxu1 (%p533_p6), %v1444_v48 }
 0x28b   : > { %v1415_v12 = vpop.eup %1414  ;;  %1424 = vrcp.f32 %v849_v9  ;;  %v850_v13 = vadd.f32 1.0, %v1413_v10 }
 0x28c   : > { %1426 = vrcp.f32 %v861_v11  ;;  %v862_v14 = vadd.f32 1.0, %v1415_v12  ;;  %v1417_v15 = vpop.eup %1416 }
 0x28d   : > { %1428 = vrcp.f32 %v850_v13  ;;  %v1419_v16 = vpop.eup %1418  ;;  %1255 = vmatpush3.bf16.msra.mxu0 (%p533_p6), %v1444_v48  ;;  %1282 = vmatpush3.bf16.msra.mxu1 (%p533_p6), %v1444_v48 }
 0x28e   : > { %1430 = vrcp.f32 %v862_v14  ;;  %v1421_v17 = vpop.eup %1420  ;;  %v875_v21 = vadd.f32 1.0, %v1419_v16  ;;  %1256 = vmatprep.subr.bf16.mxu0 (%p533_p6), %v1445_v51  ;;  %1275 = vmatprep.subr.bf16.mxu1 (%p533_p6), %v1445_v51 }
 0x28f   : > { %v1423_v18 = vpop.eup %1422 }
 0x290   : > { %v876_v29 = vadd.f32 1.0, %v1423_v18  ;;  %1432 = vrcp.f32 %v875_v21 }
 0x291   :  { %1257 = vmatpush3.bf16.msra.mxu0 (%p533_p6), %v1445_v51  ;;  %1283 = vmatpush3.bf16.msra.mxu1 (%p533_p6), %v1445_v51 }
 0x292   :  { %1258 = vmatprep.subr.bf16.mxu0 (%p533_p6), %v1446_v52  ;;  %1276 = vmatprep.subr.bf16.mxu1 (%p533_p6), %v1446_v52 }
 0x295   : > { %v1425_v20 = vpop.eup %1424  ;;  %1259 = vmatpush3.bf16.msra.mxu0 (%p533_p6), %v1446_v52  ;;  %1284 = vmatpush3.bf16.msra.mxu1 (%p533_p6), %v1446_v52 }
 0x296   : > { %v1427_v22 = vpop.eup %1426  ;;  %v883_v24 = vmul.f32 %v1425_v20, %v1417_v15  ;;  %1260 = vmatprep.subr.bf16.mxu0 (%p533_p6), %v1447_v53  ;;  %1277 = vmatprep.subr.bf16.mxu1 (%p533_p6), %v1447_v53 }
 0x297   : > { %v1429_v25 = vpop.eup %1428  ;;  %v881_v26 = vmul.f32 %v1427_v22, %v841_v19 }
 0x298   : > { %v1431_v27 = vpop.eup %1430  ;;  %v884_v28 = vmul.f32 %v1429_v25, %v1421_v17 }
 0x299   : > { %v882_v30 = vmul.f32 %v1431_v27, %v842_v23  ;;  %v885_v31 = vadd.f32 %v883_v24, %v881_v26  ;;  %1261 = vmatpush3.bf16.msra.mxu0 (%p533_p6), %v1447_v53  ;;  %1285 = vmatpush3.bf16.msra.mxu1 (%p533_p6), %v1447_v53 }
 0x29a   : > { %v1433_v33 = vpop.eup %1432 }
 0x29b   : > { %1434 = vtanh.f32 %v885_v31  ;;  %893 = vst [vmem:[#allocation5] sm:$0xff] %v885_v31  ;;  %v886_v32 = vadd.f32 %v884_v28, %v882_v30 }
 0x29c   : > { %1436 = vrcp.f32 %v876_v29 }
 0x29d   : > { %1438 = vtanh.f32 %v886_v32  ;;  %894 = vst [vmem:[#allocation5 + $0x8] sm:$0xff] %v886_v32 }
 0x2a5   : > { %v1435_v34 = vpop.eup %1434 }
 0x2a6   : > { %v1437_v35 = vpop.eup %1436  ;;  %v889_v36 = vmul.f32 %v1435_v34, %v1433_v33  ;;  %535 = sbr.rel (!%p533_p6) target bundleno = 388 (0x184), region = 77 }
 0x2a7   : > { %v1439_v37 = vpop.eup %1438 }
 0x2a8   : > { %891 = vst [vmem:[#allocation4] sm:$0xff] %v889_v36  ;;  %v890_v38 = vmul.f32 %v1439_v37, %v1437_v35 }
 0x2aa   : > { %892 = vst [vmem:[#allocation4 + $0x8] sm:$0xff] %v890_v38  ;;  %v895_v39 = vpack.c.bf16 %v890_v38, %v889_v36 }
 0x2ac   : > { %898 = vst [vmem:[%s897_s24] sm:$0xff] %v895_v39 }
 0x2b3   :  { %v899_v44 = vld [vmem:[#allocation3] sm:$0xff]  ;;  %v901_v47 = vld [vmem:[#allocation3 + $0x10] sm:$0xff]  ;;  %v900_v54 = vld [vmem:[#allocation3 + $0x8] sm:$0xff] }
 0x2b4   :  { %1262 = vmatprep.mubr.bf16.mxu0 %v899_v44  ;;  %1266 = vmatprep.mubr.bf16.mxu1 %v901_v47  ;;  %v902_v55 = vld [vmem:[#allocation3 + $0x18] sm:$0xff] }
 0x2b5   :  { %1263 = vmatmul.mubr.bf16.vlgmr.msra.gmra.mrb[0].mxu0 %v900_v54  ;;  %1267 = vmatmul.mubr.bf16.vlgmr.msra.gmra.mrb[0].mxu1 %v902_v55 }
 0x388   :  { %v1264_v56 = vpop.f32.mrb[0].mxu0  ;;  %v1268_v58 = vpop.f32.mrb[0].mxu1 }
 0x389   :  { %v1008_v59 = vpop.f32.mrb[1].mxu0  ;;  %v1024_v60 = vpop.f32.mrb[1].mxu1  ;;  %v1017_v63 = vadd.f32 %v1264_v56, %v1185_v57  ;;  %v1033_v0 = vadd.f32 %v1268_v58, %v1185_v57 }
 0x38a   :  { %v1265_v61 = vpop.f32.mrb[2].mxu0  ;;  %v1269_v62 = vpop.f32.mrb[2].mxu1  ;;  %v1009_v45 = vadd.f32 %v1185_v57, %v1008_v59  ;;  %v1025_v46 = vadd.f32 %v1185_v57, %v1024_v60 }
 0x38b   :  { %v1020_v1 = vadd.f32 %v1265_v61, %v1185_v57  ;;  %v1036_v2 = vadd.f32 %v1269_v62, %v1185_v57  ;;  %v1011_v3 = vpop.f32.mrb[3].mxu0  ;;  %v1027_v4 = vpop.f32.mrb[3].mxu1 }
 0x38c   :  { %v1012_v49 = vadd.f32 %v1185_v57, %v1011_v3  ;;  %v1028_v50 = vadd.f32 %v1185_v57, %v1027_v4 }
 0x38d   :  { %v1219_v5 = vpack.c.bf16 %v1020_v1, %v1017_v63  ;;  %v1229_v6 = vpack.c.bf16 %v1036_v2, %v1033_v0 }
 0x38e   :  { %v1214_v7 = vpack.c.bf16 %v1012_v49, %v1009_v45  ;;  %v1224_v8 = vpack.c.bf16 %v1028_v50, %v1025_v46 }
 0x38f   :  { %1231 = vst [vmem:[#allocation17 + $0x8] sm:$0xff] %v1219_v5   ;;  %1233 = vst [vmem:[#allocation17 + $0x18] sm:$0xff] %v1229_v6  }
 0x390   :  { %1215 = vst [vmem:[#allocation17] sm:$0xff] %v1214_v7   ;;  %1232 = vst [vmem:[#allocation17 + $0x10] sm:$0xff] %v1224_v8  }
 0x391   :  { %1591 = shalt.err (!%p1588_p11)
}
 0x392   :  { %s1592_s30 = scalar_lea.hbm %s1832_s6, 512 }
 0x393   :  { %p1593_p12 = scmp.ne.s32.totalorder %s1832_s6, %s1592_s30  ;;  %p1596_p13 = scmp.lt.u32.totalorder %s1592_s30, %s1832_s6 }
 0x395   :  { %p1598_p0 = pnand %p1596_p13, %p1593_p12 }
 0x397   :  { %1601 = shalt.err (!%p1598_p0)
}
 0x398   :  { %1090 = dma.vmem_to_hbm [thread:$0]  %s1085_s26, 512, %s1832_s6, [#allocation8], %s1625_s3, %s1625_s3, %s1626_s10  }
 0x399   :  { %1614 = dma.done.wait [#allocation8], 512  }
 0x39a   :  { %1615 = vsyncadd [#allocation8], 4294966784 }
 0x39b   :  { %1094 = vsyncpa [#allocation7], 1 }
 0x39c   :  { %1095 = vsyncpa [#allocation10], 1 }
 0x39d   :  { %1096 = vsyncpa [#allocation13], 1 }
 0x39e   :  { %1097 = vsyncpa [#allocation16], 1 }
 0x39f   :  { %1098 = vsyncpa [#allocation8], 1 }

// kernel: _lambda_.2
= control target key start
LH: loop header
LB: loop body
LE: loop exit
PB: predicated region body
PF: predicated region fallthrough
CT: control target
= control target key end

     0   :  { %14 = vsyncpa [#allocation8], 0  ;;  %s7408_s0 = inlined_call_operand.hbm [shape: bf16[8,16,256], index: 0, kind: input, shape index: {}]   ;;  %s7409_s1 = inlined_call_operand.hbm [shape: bf16[256,1024], index: 1, kind: input, shape index: {}]   ;;  %s7410_s2 = inlined_call_operand.hbm [shape: bf16[256,1024], index: 2, kind: input, shape index: {}]   ;;  %s7411_s3 = inlined_call_operand.hbm [shape: f32[1,1024], index: 3, kind: input, shape index: {}]   ;;  %s7412_s4 = inlined_call_operand.hbm [shape: bf16[256,1024], index: 4, kind: input, shape index: {}]   ;;  %s7413_s5 = inlined_call_operand.hbm [shape: bf16[256,1024], index: 5, kind: input, shape index: {}]   ;;  %s7414_s6 = inlined_call_operand.hbm [shape: f32[1,1024], index: 6, kind: input, shape index: {}]   ;;  %s7415_s7 = inlined_call_operand.hbm [shape: bf16[256,128], index: 7, kind: input, shape index: {}]   ;;  %s7416_s8 = inlined_call_operand.hbm [shape: f32[1,128], index: 8, kind: input, shape index: {}]   ;;  %s7417_s9 = inlined_call_operand.hbm [shape: bf16[16,128], index: 9, kind: output, shape index: {}]  }
   0x1   :  { %15 = vsyncpa [#allocation11], 0 }
   0x2   :  { %16 = vsyncpa [#allocation14], 0 }
   0x3   :  { %17 = vsyncpa [#allocation17], 0 }
   0x4   :  { %18 = vsyncpa [#allocation20], 0 }
   0x5   :  { %19 = vsyncpa [#allocation9], 0  ;;  %s6604_s30 = smov [#allocation10]   ;;  %s6356_s13 = scalar_lea.hbm %s7409_s1, 16384 }
   0x6   :  { %s37_s10 = sshll.u32 %s6604_s30, 4  ;;  %p6357_p0 = scmp.ne.s32.totalorder %s7409_s1, %s6356_s13  ;;  %s38_s10 = int_to_ptr.vmem [resolvable:$true] %s37_s10 }
   0x7   :  { %p6360_p1 = scmp.lt.u32.totalorder %s6356_s13, %s7409_s1 }
   0x9   :  { %p6362_p2 = pnand %p6360_p1, %p6357_p0 }
   0xb   :  { %6365 = shalt.err (!%p6362_p2)
}
   0xc   :  { %s6366_s18 = scalar_lea.vmem %s38_s10, 16384  ;;  %p6371_p4 = scmp.lt.s32.totalorder %s38_s10, %s38_s10 }
   0xd   :  { %p6367_p3 = scmp.ne.s32.totalorder %s38_s10, %s6366_s18  ;;  %p6372_p5 = scmp.lt.s32.totalorder %s6366_s18, %s6366_s18 }
   0xf   :  { %p6373_p6 = por %p6372_p5, %p6371_p4 }
  0x11   :  { %p6374_p7 = pnand %p6373_p6, %p6367_p3 }
  0x13   :  { %6377 = shalt.err (!%p6374_p7)
}
  0x14   :  { %s6605_s19 = smov 512   ;;  %s6606_s20 = smov 32  }
  0x15   :  { %43 = dma.hbm_to_vmem [thread:$0]  %s7409_s1, 16384, %s38_s10, [#allocation11], %s6605_s19, %s6605_s19, %s6606_s20  }
  0x16   :  { %s6607_s23 = smov [#allocation13]   ;;  %s6608_s25 = smov [#allocation16]  }
  0x17   :  { %s62_s24 = sshll.u32 %s6607_s23, 4  ;;  %s83_s26 = sshll.u32 %s6608_s25, 4  ;;  %s63_s24 = int_to_ptr.vmem [resolvable:$true] %s62_s24  ;;  %s84_s26 = int_to_ptr.vmem [resolvable:$true] %s83_s26 }
  0x18   :  { %s6378_s29 = scalar_lea.hbm %s7411_s3, 128 }
  0x19   :  { %p6379_p8 = scmp.ne.s32.totalorder %s7411_s3, %s6378_s29  ;;  %p6382_p9 = scmp.lt.u32.totalorder %s6378_s29, %s7411_s3 }
  0x1b   :  { %p6384_p10 = pnand %p6382_p9, %p6379_p8 }
  0x1d   :  { %6387 = shalt.err (!%p6384_p10)
}
  0x1e   :  { %s6388_s1 = scalar_lea.vmem %s63_s24, 128  ;;  %p6393_p12 = scmp.lt.s32.totalorder %s63_s24, %s63_s24 }
  0x1f   :  { %p6389_p11 = scmp.ne.s32.totalorder %s63_s24, %s6388_s1  ;;  %p6394_p13 = scmp.lt.s32.totalorder %s6388_s1, %s6388_s1 }
  0x21   :  { %p6395_p0 = por %p6394_p13, %p6393_p12 }
  0x23   :  { %p6396_p1 = pnand %p6395_p0, %p6389_p11 }
  0x25   :  { %6399 = shalt.err (!%p6396_p1)
}
  0x26   :  { %65 = dma.hbm_to_vmem [thread:$0]  %s7411_s3, 128, %s63_s24, [#allocation14]  }
  0x27   :  { %s6400_s17 = scalar_lea.hbm %s7413_s5, 16384 }
  0x28   :  { %p6401_p2 = scmp.ne.s32.totalorder %s7413_s5, %s6400_s17  ;;  %p6404_p3 = scmp.lt.u32.totalorder %s6400_s17, %s7413_s5 }
  0x2a   :  { %p6406_p4 = pnand %p6404_p3, %p6401_p2 }
  0x2c   :  { %6409 = shalt.err (!%p6406_p4)
}
  0x2d   :  { %s6410_s25 = scalar_lea.vmem %s84_s26, 16384  ;;  %p6415_p6 = scmp.lt.s32.totalorder %s84_s26, %s84_s26 }
  0x2e   :  { %p6411_p5 = scmp.ne.s32.totalorder %s84_s26, %s6410_s25  ;;  %p6416_p7 = scmp.lt.s32.totalorder %s6410_s25, %s6410_s25 }
  0x30   :  { %p6417_p8 = por %p6416_p7, %p6415_p6 }
  0x32   :  { %p6418_p9 = pnand %p6417_p8, %p6411_p5 }
  0x34   :  { %6421 = shalt.err (!%p6418_p9)
}
  0x35   :  { %89 = dma.hbm_to_vmem [thread:$0]  %s7413_s5, 16384, %s84_s26, [#allocation17], %s6605_s19, %s6605_s19, %s6606_s20  }
  0x36   :  { %s6609_s27 = smov [#allocation19]   ;;  %s6422_s11 = scalar_lea.hbm %s7415_s7, 2048 }
  0x37   :  { %s105_s28 = sshll.u32 %s6609_s27, 4  ;;  %p6423_p10 = scmp.ne.s32.totalorder %s7415_s7, %s6422_s11  ;;  %s106_s28 = int_to_ptr.vmem [resolvable:$true] %s105_s28 }
  0x38   :  { %p6426_p11 = scmp.lt.u32.totalorder %s6422_s11, %s7415_s7 }
  0x3a   :  { %p6428_p12 = pnand %p6426_p11, %p6423_p10 }
  0x3c   :  { %6431 = shalt.err (!%p6428_p12)
}
  0x3d   :  { %s6432_s14 = scalar_lea.vmem %s106_s28, 2048  ;;  %p6437_p0 = scmp.lt.s32.totalorder %s106_s28, %s106_s28 }
  0x3e   :  { %p6433_p13 = scmp.ne.s32.totalorder %s106_s28, %s6432_s14  ;;  %p6438_p1 = scmp.lt.s32.totalorder %s6432_s14, %s6432_s14 }
  0x40   :  { %p6439_p2 = por %p6438_p1, %p6437_p0 }
  0x42   :  { %p6440_p3 = pnand %p6439_p2, %p6433_p13 }
  0x44   :  { %6443 = shalt.err (!%p6440_p3)
}
  0x45   :  { %s6610_s5 = smov 64   ;;  %s6611_s26 = smov 4  }
  0x46   :  { %111 = dma.hbm_to_vmem [thread:$0]  %s7415_s7, 2048, %s106_s28, [#allocation20], %s6610_s5, %s6610_s5, %s6611_s26  }
  0x47   :  { %s6612_s17 = smov [#allocation7]   ;;  %s6444_s23 = scalar_lea.hbm %s7408_s0, 2048 }
  0x48   :  { %s25_s18 = sshll.u32 %s6612_s17, 4  ;;  %p6445_p4 = scmp.ne.s32.totalorder %s7408_s0, %s6444_s23  ;;  %s26_s18 = int_to_ptr.vmem [resolvable:$true] %s25_s18 }
  0x49   :  { %p6448_p5 = scmp.lt.u32.totalorder %s6444_s23, %s7408_s0 }
  0x4b   :  { %p6450_p6 = pnand %p6448_p5, %p6445_p4 }
  0x4d   :  { %6453 = shalt.err (!%p6450_p6)
}
  0x4e   :  { %s6454_s29 = scalar_lea.vmem %s26_s18, 2048  ;;  %p6459_p8 = scmp.lt.s32.totalorder %s26_s18, %s26_s18 }
  0x4f   :  { %p6455_p7 = scmp.ne.s32.totalorder %s26_s18, %s6454_s29  ;;  %p6460_p9 = scmp.lt.s32.totalorder %s6454_s29, %s6454_s29 }
  0x51   :  { %p6461_p10 = por %p6460_p9, %p6459_p8 }
  0x53   :  { %p6462_p11 = pnand %p6461_p10, %p6455_p7 }
  0x55   :  { %6465 = shalt.err (!%p6462_p11)
}
  0x56   :  { %s6613_s7 = smov 128   ;;  %s6614_s28 = smov 8  }
  0x57   :  { %31 = dma.hbm_to_vmem [thread:$0]  %s7408_s0, 2048, %s26_s18, [#allocation8], %s6613_s7, %s6613_s7, %s6614_s28  }
  0x58   :  { %s6615_s12 = smov [#allocation12]   ;;  %s6616_s1 = smov [#allocation15]  }
  0x59   :  { %s49_s13 = sshll.u32 %s6615_s12, 4  ;;  %s71_s10 = sshll.u32 %s6616_s1, 4  ;;  %s50_s13 = int_to_ptr.vmem [resolvable:$true] %s49_s13  ;;  %s72_s10 = int_to_ptr.vmem [resolvable:$true] %s71_s10 }
  0x5a   :  { %s6466_s16 = scalar_lea.hbm %s7410_s2, 16384 }
  0x5b   :  { %p6467_p12 = scmp.ne.s32.totalorder %s7410_s2, %s6466_s16  ;;  %p6470_p13 = scmp.lt.u32.totalorder %s6466_s16, %s7410_s2 }
  0x5d   :  { %p6472_p0 = pnand %p6470_p13, %p6467_p12 }
  0x5f   :  { %6475 = shalt.err (!%p6472_p0)
}
  0x60   :  { %s6476_s0 = scalar_lea.vmem %s50_s13, 16384  ;;  %p6481_p2 = scmp.lt.s32.totalorder %s50_s13, %s50_s13 }
  0x61   :  { %p6477_p1 = scmp.ne.s32.totalorder %s50_s13, %s6476_s0  ;;  %p6482_p3 = scmp.lt.s32.totalorder %s6476_s0, %s6476_s0 }
  0x63   :  { %p6483_p4 = por %p6482_p3, %p6481_p2 }
  0x65   :  { %p6484_p5 = pnand %p6483_p4, %p6477_p1 }
  0x67   :  { %6487 = shalt.err (!%p6484_p5)
}
  0x68   :  { %55 = dma.hbm_to_vmem [thread:$0]  %s7410_s2, 16384, %s50_s13, [#allocation11], %s6605_s19, %s6605_s19, %s6606_s20  }
  0x69   :  { %s6488_s27 = scalar_lea.hbm %s7412_s4, 16384 }
  0x6a   :  { %p6489_p6 = scmp.ne.s32.totalorder %s7412_s4, %s6488_s27  ;;  %p6492_p7 = scmp.lt.u32.totalorder %s6488_s27, %s7412_s4 }
  0x6c   :  { %p6494_p8 = pnand %p6492_p7, %p6489_p6 }
  0x6e   :  { %6497 = shalt.err (!%p6494_p8)
}
  0x6f   :  { %s6498_s11 = scalar_lea.vmem %s72_s10, 16384  ;;  %p6503_p10 = scmp.lt.s32.totalorder %s72_s10, %s72_s10 }
  0x70   :  { %p6499_p9 = scmp.ne.s32.totalorder %s72_s10, %s6498_s11  ;;  %p6504_p11 = scmp.lt.s32.totalorder %s6498_s11, %s6498_s11 }
  0x72   :  { %p6505_p12 = por %p6504_p11, %p6503_p10 }
  0x74   :  { %p6506_p13 = pnand %p6505_p12, %p6499_p9 }
  0x76   :  { %6509 = shalt.err (!%p6506_p13)
}
  0x77   :  { %77 = dma.hbm_to_vmem [thread:$0]  %s7412_s4, 16384, %s72_s10, [#allocation14], %s6605_s19, %s6605_s19, %s6606_s20  }
  0x78   :  { %s6617_s13 = smov [#allocation18]   ;;  %s6618_s14 = smov [#allocation21]  }
  0x79   :  { %s96_s1 = sshll.u32 %s6617_s13, 4  ;;  %s118_s15 = sshll.u32 %s6618_s14, 4  ;;  %s97_s1 = int_to_ptr.vmem [resolvable:$true] %s96_s1  ;;  %s119_s15 = int_to_ptr.vmem [resolvable:$true] %s118_s15 }
  0x7a   :  { %s6510_s21 = scalar_lea.hbm %s7414_s6, 128 }
  0x7b   :  { %p6511_p0 = scmp.ne.s32.totalorder %s7414_s6, %s6510_s21  ;;  %p6514_p1 = scmp.lt.u32.totalorder %s6510_s21, %s7414_s6 }
  0x7d   :  { %p6516_p2 = pnand %p6514_p1, %p6511_p0 }
  0x7f   :  { %6519 = shalt.err (!%p6516_p2)
}
  0x80   :  { %s6520_s4 = scalar_lea.vmem %s97_s1, 128  ;;  %p6525_p4 = scmp.lt.s32.totalorder %s97_s1, %s97_s1 }
  0x81   :  { %p6521_p3 = scmp.ne.s32.totalorder %s97_s1, %s6520_s4  ;;  %p6526_p5 = scmp.lt.s32.totalorder %s6520_s4, %s6520_s4 }
  0x83   :  { %p6527_p6 = por %p6526_p5, %p6525_p4 }
  0x85   :  { %p6528_p7 = pnand %p6527_p6, %p6521_p3 }
  0x87   :  { %6531 = shalt.err (!%p6528_p7)
}
  0x88   :  { %99 = dma.hbm_to_vmem [thread:$0]  %s7414_s6, 128, %s97_s1, [#allocation17]  }
  0x89   :  { %s6532_s3 = scalar_lea.hbm %s7416_s8, 16 }
  0x8a   :  { %p6533_p8 = scmp.ne.s32.totalorder %s7416_s8, %s6532_s3  ;;  %p6536_p9 = scmp.lt.u32.totalorder %s6532_s3, %s7416_s8 }
  0x8c   :  { %p6538_p10 = pnand %p6536_p9, %p6533_p8 }
  0x8e   :  { %6541 = shalt.err (!%p6538_p10)
}
  0x8f   :  { %s6542_s28 = scalar_lea.vmem %s119_s15, 16  ;;  %s6546_s30 = scalar_lea.vmem %s119_s15, 32 }
  0x90   :  { %p6543_p11 = scmp.ne.s32.totalorder %s119_s15, %s6542_s28  ;;  %p6547_p12 = scmp.lt.s32.totalorder %s119_s15, %s119_s15 }
  0x91   :  { %p6548_p13 = scmp.lt.s32.totalorder %s6546_s30, %s6542_s28 }
  0x93   :  { %p6549_p0 = por %p6548_p13, %p6547_p12 }
  0x95   :  { %p6550_p1 = pnand %p6549_p0, %p6543_p11 }
  0x97   :  { %6553 = shalt.err (!%p6550_p1)
}
  0x98   :  { %121 = dma.hbm_to_vmem [thread:$0]  %s7416_s8, 16, %s119_s15, [#allocation20]  }
  0x99   :  { %6584 = dma.done.wait [#allocation8], 2048  }
  0x9a   :  { %6585 = vsyncadd [#allocation8], 4294965248 }
  0x9b   :  { %6586 = dma.done.wait [#allocation11], 32768  }
  0x9c   :  { %6587 = vsyncadd [#allocation11], 4294934528 }
  0x9d   :  { %6588 = dma.done.wait [#allocation14], 16512  }
  0x9e   :  { %6589 = vsyncadd [#allocation14], 4294950784 }
  0x9f   :  { %6590 = dma.done.wait [#allocation17], 16512  }
  0xa0   :  { %6591 = vsyncadd [#allocation17], 4294950784 }
  0xa1   :  { %6592 = dma.done.wait [#allocation20], 2064  }
  0xa2   :  { %6593 = vsyncadd [#allocation20], 4294965232  ;;  %v6619_v0 = vmov 0.0   ;;  %v166_v1 = vld [vmem:[#allocation10] sm:$0xff]  ;;  %v167_v3 = vld [vmem:[#allocation10 + $0x8] sm:$0xff]  ;;  %s7072_s8 = smov 0  }
  0xa3   :  { %1636 = vst [vmem:[#allocation4] sm:$0xff] %v6619_v0  ;;  %1637 = vst [vmem:[#allocation4 + $0x8] sm:$0xff] %v6619_v0  ;;  %v170_v2 = vld [vmem:[#allocation10 + $0x20] sm:$0xff]  ;;  %v171_v5 = vld [vmem:[#allocation10 + $0x28] sm:$0xff] }
  0xa4   :  { %1638 = vst [vmem:[#allocation4 + $0x10] sm:$0xff] %v6619_v0  ;;  %1639 = vst [vmem:[#allocation4 + $0x18] sm:$0xff] %v6619_v0  ;;  %v5554_v4 = vcombine.high %v166_v1, %v170_v2  ;;  %v5553_v6 = vcombine.low %v166_v1, %v170_v2  ;;  %v174_v7 = vld [vmem:[#allocation10 + $0x40] sm:$0xff]  ;;  %v5556_v9 = vcombine.high %v167_v3, %v171_v5  ;;  %v175_v12 = vld [vmem:[#allocation10 + $0x48] sm:$0xff] }
  0xa5   :  { %1640 = vst [vmem:[#allocation5] sm:$0xff] %v6619_v0  ;;  %1641 = vst [vmem:[#allocation5 + $0x8] sm:$0xff] %v6619_v0  ;;  %v178_v8 = vld [vmem:[#allocation10 + $0x60] sm:$0xff]  ;;  %v5555_v10 = vcombine.low %v167_v3, %v171_v5  ;;  %v179_v13 = vld [vmem:[#allocation10 + $0x68] sm:$0xff] }
  0xa6   :  { %1642 = vst [vmem:[#allocation5 + $0x10] sm:$0xff] %v6619_v0  ;;  %1643 = vst [vmem:[#allocation5 + $0x18] sm:$0xff] %v6619_v0  ;;  %v5562_v11 = vcombine.high %v174_v7, %v178_v8  ;;  %v182_v14 = vld [vmem:[#allocation10 + $0x80] sm:$0xff]  ;;  %1056 = vmatprep.subr.bf16.mxu0 %v5554_v4  ;;  %v5564_v15 = vcombine.high %v175_v12, %v179_v13  ;;  %v183_v17 = vld [vmem:[#allocation10 + $0x88] sm:$0xff]  ;;  %1169 = vmatprep.subr.bf16.mxu1 %v5556_v9 }
  0xa7   :  { %v186_v16 = vld [vmem:[#allocation10 + $0xa0] sm:$0xff]  ;;  %v187_v18 = vld [vmem:[#allocation10 + $0xa8] sm:$0xff]  ;;  %1057 = vmatpush1.bf16.msra.mxu0 %v5553_v6  ;;  %v5561_v19 = vcombine.low %v174_v7, %v178_v8  ;;  %1170 = vmatpush1.bf16.msra.mxu1 %v5555_v10  ;;  %v5563_v20 = vcombine.low %v175_v12, %v179_v13 }
  0xa8   :  { %1058 = vmatprep.subr.bf16.mxu0 %v5562_v11  ;;  %v5570_v21 = vcombine.high %v182_v14, %v186_v16  ;;  %1171 = vmatprep.subr.bf16.mxu1 %v5564_v15  ;;  %v5572_v22 = vcombine.high %v183_v17, %v187_v18  ;;  %v190_v23 = vld [vmem:[#allocation10 + $0xc0] sm:$0xff]  ;;  %v191_v25 = vld [vmem:[#allocation10 + $0xc8] sm:$0xff]  ;;  %v5569_v27 = vcombine.low %v182_v14, %v186_v16 }
  0xa9   :  { %v194_v24 = vld [vmem:[#allocation10 + $0xe0] sm:$0xff]  ;;  %v195_v26 = vld [vmem:[#allocation10 + $0xe8] sm:$0xff]  ;;  %v5571_v28 = vcombine.low %v183_v17, %v187_v18 }
  0xaa   :  { %v5578_v29 = vcombine.high %v190_v23, %v194_v24  ;;  %v5580_v30 = vcombine.high %v191_v25, %v195_v26  ;;  %v198_v31 = vld [vmem:[#allocation10 + $0x100] sm:$0xff]  ;;  %v199_v33 = vld [vmem:[#allocation10 + $0x108] sm:$0xff]  ;;  %v5577_v35 = vcombine.low %v190_v23, %v194_v24  ;;  %v5579_v36 = vcombine.low %v191_v25, %v195_v26 }
  0xab   :  { %1059 = vmatpush1.bf16.msra.mxu0 %v5561_v19  ;;  %1172 = vmatpush1.bf16.msra.mxu1 %v5563_v20  ;;  %v202_v32 = vld [vmem:[#allocation10 + $0x120] sm:$0xff]  ;;  %v203_v34 = vld [vmem:[#allocation10 + $0x128] sm:$0xff] }
  0xac   :  { %1060 = vmatprep.subr.bf16.mxu0 %v5570_v21  ;;  %1173 = vmatprep.subr.bf16.mxu1 %v5572_v22  ;;  %v5586_v37 = vcombine.high %v198_v31, %v202_v32  ;;  %v5588_v38 = vcombine.high %v199_v33, %v203_v34  ;;  %v206_v39 = vld [vmem:[#allocation10 + $0x140] sm:$0xff]  ;;  %v207_v41 = vld [vmem:[#allocation10 + $0x148] sm:$0xff]  ;;  %v5585_v43 = vcombine.low %v198_v31, %v202_v32 }
  0xad   :  { %v210_v40 = vld [vmem:[#allocation10 + $0x160] sm:$0xff]  ;;  %v211_v42 = vld [vmem:[#allocation10 + $0x168] sm:$0xff]  ;;  %v5587_v44 = vcombine.low %v199_v33, %v203_v34 }
  0xae   :  { %v5594_v45 = vcombine.high %v206_v39, %v210_v40  ;;  %v5596_v46 = vcombine.high %v207_v41, %v211_v42  ;;  %v214_v47 = vld [vmem:[#allocation10 + $0x180] sm:$0xff]  ;;  %v215_v49 = vld [vmem:[#allocation10 + $0x188] sm:$0xff]  ;;  %v5593_v51 = vcombine.low %v206_v39, %v210_v40  ;;  %v5595_v52 = vcombine.low %v207_v41, %v211_v42 }
  0xaf   :  { %1061 = vmatpush1.bf16.msra.mxu0 %v5569_v27  ;;  %1174 = vmatpush1.bf16.msra.mxu1 %v5571_v28  ;;  %v218_v48 = vld [vmem:[#allocation10 + $0x1a0] sm:$0xff]  ;;  %v219_v50 = vld [vmem:[#allocation10 + $0x1a8] sm:$0xff] }
  0xb0   :  { %1062 = vmatprep.subr.bf16.mxu0 %v5578_v29  ;;  %1175 = vmatprep.subr.bf16.mxu1 %v5580_v30  ;;  %v5602_v53 = vcombine.high %v214_v47, %v218_v48  ;;  %v5604_v54 = vcombine.high %v215_v49, %v219_v50  ;;  %v222_v55 = vld [vmem:[#allocation10 + $0x1c0] sm:$0xff]  ;;  %v223_v58 = vld [vmem:[#allocation10 + $0x1c8] sm:$0xff]  ;;  %v5601_v60 = vcombine.low %v214_v47, %v218_v48 }
  0xb1   :  { %v226_v56 = vld [vmem:[#allocation10 + $0x1e0] sm:$0xff]  ;;  %v227_v59 = vld [vmem:[#allocation10 + $0x1e8] sm:$0xff]  ;;  %v5603_v61 = vcombine.low %v215_v49, %v219_v50 }
  0xb2   :  { %v6802_v57 = vld [vmem:[#allocation7 + $0x4] ss:$8 sps:$4 sm:$0xff]   ;;  %v5610_v62 = vcombine.high %v222_v55, %v226_v56  ;;  %v5612_v63 = vcombine.high %v223_v58, %v227_v59  ;;  %v5609_v5 = vcombine.low %v222_v55, %v226_v56  ;;  %v5611_v6 = vcombine.low %v223_v58, %v227_v59 }
  0xb3   :  { %1063 = vmatpush1.bf16.msra.mxu0 %v5577_v35  ;;  %1176 = vmatpush1.bf16.msra.mxu1 %v5579_v36  ;;  %v230_v1 = vld [vmem:[#allocation10 + $0x200] sm:$0xff]  ;;  %v231_v3 = vld [vmem:[#allocation10 + $0x208] sm:$0xff] }
  0xb4   :  { %1064 = vmatprep.subr.bf16.mxu0 %v5586_v37  ;;  %1177 = vmatprep.subr.bf16.mxu1 %v5588_v38  ;;  %v234_v2 = vld [vmem:[#allocation10 + $0x220] sm:$0xff]  ;;  %v235_v4 = vld [vmem:[#allocation10 + $0x228] sm:$0xff] }
  0xb5   :  { %1088 = vmatprep.mubr.bf16.mxu0 %v6802_v57  ;;  %1201 = vmatprep.mubr.bf16.mxu1 %v6802_v57  ;;  %v5618_v7 = vcombine.high %v230_v1, %v234_v2  ;;  %v5620_v8 = vcombine.high %v231_v3, %v235_v4  ;;  %v238_v9 = vld [vmem:[#allocation10 + $0x240] sm:$0xff]  ;;  %v239_v11 = vld [vmem:[#allocation10 + $0x248] sm:$0xff]  ;;  %v5617_v13 = vcombine.low %v230_v1, %v234_v2 }
  0xb6   :  { %v242_v10 = vld [vmem:[#allocation10 + $0x260] sm:$0xff]  ;;  %v243_v12 = vld [vmem:[#allocation10 + $0x268] sm:$0xff]  ;;  %v5619_v14 = vcombine.low %v231_v3, %v235_v4  ;;  %v168_v3 = vld [vmem:[#allocation10 + $0x10] sm:$0xff] }
  0xb7   :  { %1065 = vmatpush1.bf16.msra.mxu0 %v5585_v43  ;;  %1178 = vmatpush1.bf16.msra.mxu1 %v5587_v44  ;;  %v5626_v15 = vcombine.high %v238_v9, %v242_v10  ;;  %v5628_v16 = vcombine.high %v239_v11, %v243_v12  ;;  %v246_v17 = vld [vmem:[#allocation10 + $0x280] sm:$0xff]  ;;  %v247_v19 = vld [vmem:[#allocation10 + $0x288] sm:$0xff]  ;;  %v5625_v21 = vcombine.low %v238_v9, %v242_v10  ;;  %v172_v4 = vld [vmem:[#allocation10 + $0x30] sm:$0xff] }
  0xb8   :  { %1066 = vmatprep.subr.bf16.mxu0 %v5594_v45  ;;  %1179 = vmatprep.subr.bf16.mxu1 %v5596_v46  ;;  %v250_v18 = vld [vmem:[#allocation10 + $0x2a0] sm:$0xff]  ;;  %v251_v20 = vld [vmem:[#allocation10 + $0x2a8] sm:$0xff]  ;;  %v5627_v22 = vcombine.low %v239_v11, %v243_v12  ;;  %v5558_v9 = vcombine.high %v168_v3, %v172_v4  ;;  %v176_v11 = vld [vmem:[#allocation10 + $0x50] sm:$0xff] }
  0xb9   :  { %v5634_v23 = vcombine.high %v246_v17, %v250_v18  ;;  %v5636_v24 = vcombine.high %v247_v19, %v251_v20  ;;  %v254_v25 = vld [vmem:[#allocation10 + $0x2c0] sm:$0xff]  ;;  %v255_v27 = vld [vmem:[#allocation10 + $0x2c8] sm:$0xff]  ;;  %v5633_v29 = vcombine.low %v246_v17, %v250_v18  ;;  %v5635_v30 = vcombine.low %v247_v19, %v251_v20  ;;  %v180_v12 = vld [vmem:[#allocation10 + $0x70] sm:$0xff] }
  0xba   :  { %v258_v26 = vld [vmem:[#allocation10 + $0x2e0] sm:$0xff]  ;;  %v259_v28 = vld [vmem:[#allocation10 + $0x2e8] sm:$0xff]  ;;  %v5566_v18 = vcombine.high %v176_v11, %v180_v12  ;;  %v6808_v20 = vld [vmem:[#allocation7 + $0x14] ss:$8 sps:$4 sm:$0xff]  }
  0xbb   :  { %1067 = vmatpush1.bf16.msra.mxu0 %v5593_v51  ;;  %1180 = vmatpush1.bf16.msra.mxu1 %v5595_v52  ;;  %v5642_v31 = vcombine.high %v254_v25, %v258_v26  ;;  %v5644_v32 = vcombine.high %v255_v27, %v259_v28  ;;  %v262_v33 = vld [vmem:[#allocation10 + $0x300] sm:$0xff]  ;;  %v263_v35 = vld [vmem:[#allocation10 + $0x308] sm:$0xff]  ;;  %v5641_v37 = vcombine.low %v254_v25, %v258_v26 }
  0xbc   :  { %1068 = vmatprep.subr.bf16.mxu0 %v5602_v53  ;;  %1181 = vmatprep.subr.bf16.mxu1 %v5604_v54  ;;  %v266_v34 = vld [vmem:[#allocation10 + $0x320] sm:$0xff]  ;;  %v267_v36 = vld [vmem:[#allocation10 + $0x328] sm:$0xff]  ;;  %v5643_v38 = vcombine.low %v255_v27, %v259_v28  ;;  %v5565_v25 = vcombine.low %v176_v11, %v180_v12 }
  0xbd   :  { %v5650_v39 = vcombine.high %v262_v33, %v266_v34  ;;  %v5652_v40 = vcombine.high %v263_v35, %v267_v36  ;;  %v270_v41 = vld [vmem:[#allocation10 + $0x340] sm:$0xff]  ;;  %v271_v43 = vld [vmem:[#allocation10 + $0x348] sm:$0xff]  ;;  %v5649_v45 = vcombine.low %v262_v33, %v266_v34  ;;  %v5651_v46 = vcombine.low %v263_v35, %v267_v36  ;;  %v197_v33 = vld [vmem:[#allocation10 + $0xf8] sm:$0xff] }
  0xbe   :  { %v274_v42 = vld [vmem:[#allocation10 + $0x360] sm:$0xff]  ;;  %v275_v44 = vld [vmem:[#allocation10 + $0x368] sm:$0xff] }
  0xbf   :  { %1069 = vmatpush1.bf16.msra.mxu0 %v5601_v60  ;;  %1182 = vmatpush1.bf16.msra.mxu1 %v5603_v61  ;;  %v5658_v47 = vcombine.high %v270_v41, %v274_v42  ;;  %v5660_v48 = vcombine.high %v271_v43, %v275_v44  ;;  %v278_v49 = vld [vmem:[#allocation10 + $0x380] sm:$0xff]  ;;  %v279_v51 = vld [vmem:[#allocation10 + $0x388] sm:$0xff]  ;;  %v5657_v53 = vcombine.low %v270_v41, %v274_v42  ;;  %v201_v41 = vld [vmem:[#allocation10 + $0x118] sm:$0xff] }
  0xc0   :  { %1070 = vmatprep.subr.bf16.mxu0 %v5610_v62  ;;  %1183 = vmatprep.subr.bf16.mxu1 %v5612_v63  ;;  %v282_v50 = vld [vmem:[#allocation10 + $0x3a0] sm:$0xff]  ;;  %v283_v52 = vld [vmem:[#allocation10 + $0x3a8] sm:$0xff]  ;;  %v5659_v54 = vcombine.low %v271_v43, %v275_v44  ;;  %v205_v42 = vld [vmem:[#allocation10 + $0x138] sm:$0xff] }
  0xc1   :  { %v5666_v55 = vcombine.high %v278_v49, %v282_v50  ;;  %v5668_v56 = vcombine.high %v279_v51, %v283_v52  ;;  %v286_v58 = vld [vmem:[#allocation10 + $0x3c0] sm:$0xff]  ;;  %v287_v60 = vld [vmem:[#allocation10 + $0x3c8] sm:$0xff]  ;;  %v5665_v62 = vcombine.low %v278_v49, %v282_v50  ;;  %v5667_v63 = vcombine.low %v279_v51, %v283_v52  ;;  %v209_v50 = vld [vmem:[#allocation10 + $0x158] sm:$0xff] }
  0xc2   :  { %v290_v59 = vld [vmem:[#allocation10 + $0x3e0] sm:$0xff]  ;;  %v291_v61 = vld [vmem:[#allocation10 + $0x3e8] sm:$0xff]  ;;  %v213_v51 = vld [vmem:[#allocation10 + $0x178] sm:$0xff] }
  0xc3   :  { %1071 = vmatpush1.bf16.msra.mxu0 %v5609_v5  ;;  %1184 = vmatpush1.bf16.msra.mxu1 %v5611_v6  ;;  %v5674_v1 = vcombine.high %v286_v58, %v290_v59  ;;  %v5676_v2 = vcombine.high %v287_v60, %v291_v61  ;;  %v169_v5 = vld [vmem:[#allocation10 + $0x18] sm:$0xff]  ;;  %v6822_v49 = vld [vmem:[#allocation7 + $0x20] ss:$8 sps:$4 sm:$0xff]   ;;  %v6832_v12 = vld [vmem:[#allocation7 + $0x44] ss:$8 sps:$4 sm:$0xff]  }
  0xc4   :  { %1072 = vmatprep.subr.bf16.mxu0 %v5618_v7  ;;  %1185 = vmatprep.subr.bf16.mxu1 %v5620_v8  ;;  %v173_v6 = vld [vmem:[#allocation10 + $0x38] sm:$0xff]  ;;  %v5673_v7 = vcombine.low %v286_v58, %v290_v59  ;;  %v5675_v8 = vcombine.low %v287_v60, %v291_v61  ;;  %v216_v58 = vld [vmem:[#allocation10 + $0x190] sm:$0xff] }
  0xc5   :  { %v5560_v10 = vcombine.high %v169_v5, %v173_v6  ;;  %v5559_v17 = vcombine.low %v169_v5, %v173_v6  ;;  %v220_v59 = vld [vmem:[#allocation10 + $0x1b0] sm:$0xff]  ;;  %v217_v60 = vld [vmem:[#allocation10 + $0x198] sm:$0xff] }
  0xc6   :  { %v221_v61 = vld [vmem:[#allocation10 + $0x1b8] sm:$0xff] }
  0xc7   :  { %1073 = vmatpush1.bf16.msra.mxu0 %v5617_v13  ;;  %1186 = vmatpush1.bf16.msra.mxu1 %v5619_v14  ;;  %v6806_v13 = vld [vmem:[#allocation7] ss:$8 sps:$4 sm:$0xff]   ;;  %v177_v14 = vld [vmem:[#allocation10 + $0x58] sm:$0xff] }
  0xc8   :  { %1074 = vmatprep.subr.bf16.mxu0 %v5626_v15  ;;  %1187 = vmatprep.subr.bf16.mxu1 %v5628_v16  ;;  %v181_v15 = vld [vmem:[#allocation10 + $0x78] sm:$0xff]  ;;  %v5557_v16 = vcombine.low %v168_v3, %v172_v4  ;;  %v224_v3 = vld [vmem:[#allocation10 + $0x1d0] sm:$0xff] }
  0xc9   :  { %v5568_v19 = vcombine.high %v177_v14, %v181_v15  ;;  %v5567_v26 = vcombine.low %v177_v14, %v181_v15  ;;  %v228_v4 = vld [vmem:[#allocation10 + $0x1f0] sm:$0xff]  ;;  %v225_v6 = vld [vmem:[#allocation10 + $0x1d8] sm:$0xff] }
  0xca   :  { %v6830_v5 = vld [vmem:[#allocation7 + $0x30] ss:$8 sps:$4 sm:$0xff]  }
  0xcb   :  { %1075 = vmatpush1.bf16.msra.mxu0 %v5625_v21  ;;  %1188 = vmatpush1.bf16.msra.mxu1 %v5627_v22  ;;  %v184_v21 = vld [vmem:[#allocation10 + $0x90] sm:$0xff] }
  0xcc   :  { %1076 = vmatprep.subr.bf16.mxu0 %v5634_v23  ;;  %1189 = vmatprep.subr.bf16.mxu1 %v5636_v24  ;;  %v188_v22 = vld [vmem:[#allocation10 + $0xb0] sm:$0xff]  ;;  %v185_v23 = vld [vmem:[#allocation10 + $0x98] sm:$0xff] }
  0xcd   :  { %v189_v24 = vld [vmem:[#allocation10 + $0xb8] sm:$0xff]  ;;  %v5574_v27 = vcombine.high %v184_v21, %v188_v22  ;;  %v5573_v34 = vcombine.low %v184_v21, %v188_v22  ;;  %v232_v14 = vld [vmem:[#allocation10 + $0x210] sm:$0xff] }
  0xce   :  { %v5576_v28 = vcombine.high %v185_v23, %v189_v24  ;;  %v5575_v35 = vcombine.low %v185_v23, %v189_v24  ;;  %v236_v15 = vld [vmem:[#allocation10 + $0x230] sm:$0xff] }
  0xcf   :  { %1077 = vmatpush1.bf16.msra.mxu0 %v5633_v29  ;;  %1190 = vmatpush1.bf16.msra.mxu1 %v5635_v30  ;;  %v192_v29 = vld [vmem:[#allocation10 + $0xd0] sm:$0xff]  ;;  %v5622_v21 = vcombine.high %v232_v14, %v236_v15 }
  0xd0   :  { %1078 = vmatprep.subr.bf16.mxu0 %v5642_v31  ;;  %1191 = vmatprep.subr.bf16.mxu1 %v5644_v32  ;;  %v196_v30 = vld [vmem:[#allocation10 + $0xf0] sm:$0xff]  ;;  %v193_v32 = vld [vmem:[#allocation10 + $0xd8] sm:$0xff] }
  0xd1   :  { %v6814_v31 = vld [vmem:[#allocation7 + $0x10] ss:$8 sps:$4 sm:$0xff]   ;;  %v5582_v36 = vcombine.high %v192_v29, %v196_v30  ;;  %v5581_v43 = vcombine.low %v192_v29, %v196_v30  ;;  %v5583_v44 = vcombine.low %v193_v32, %v197_v33 }
  0xd2   :  { %v240_v23 = vld [vmem:[#allocation10 + $0x250] sm:$0xff] }
  0xd3   :  { %1079 = vmatpush1.bf16.msra.mxu0 %v5641_v37  ;;  %1192 = vmatpush1.bf16.msra.mxu1 %v5643_v38  ;;  %v5584_v37 = vcombine.high %v193_v32, %v197_v33  ;;  %v6816_v38 = vld [vmem:[#allocation7 + $0x24] ss:$8 sps:$4 sm:$0xff]   ;;  %v244_v24 = vld [vmem:[#allocation10 + $0x270] sm:$0xff] }
  0xd4   :  { %1080 = vmatprep.subr.bf16.mxu0 %v5650_v39  ;;  %1193 = vmatprep.subr.bf16.mxu1 %v5652_v40  ;;  %v200_v39 = vld [vmem:[#allocation10 + $0x110] sm:$0xff]  ;;  %v5630_v30 = vcombine.high %v240_v23, %v244_v24 }
  0xd5   :  { %v204_v40 = vld [vmem:[#allocation10 + $0x130] sm:$0xff] }
  0xd6   :  { %v5589_v52 = vcombine.low %v200_v39, %v204_v40  ;;  %v6840_v33 = vld [vmem:[#allocation7 + $0x54] ss:$8 sps:$4 sm:$0xff]  }
  0xd7   :  { %1081 = vmatpush1.bf16.msra.mxu0 %v5649_v45  ;;  %1194 = vmatpush1.bf16.msra.mxu1 %v5651_v46  ;;  %v5590_v45 = vcombine.high %v200_v39, %v204_v40  ;;  %v5592_v46 = vcombine.high %v201_v41, %v205_v42  ;;  %v5629_v39 = vcombine.low %v240_v23, %v244_v24  ;;  %v288_v23 = vld [vmem:[#allocation10 + $0x3d0] sm:$0xff] }
  0xd8   :  { %1082 = vmatprep.subr.bf16.mxu0 %v5658_v47  ;;  %1195 = vmatprep.subr.bf16.mxu1 %v5660_v48  ;;  %v208_v47 = vld [vmem:[#allocation10 + $0x150] sm:$0xff] }
  0xd9   :  { %v212_v48 = vld [vmem:[#allocation10 + $0x170] sm:$0xff] }
  0xda   :  { %v292_v24 = vld [vmem:[#allocation10 + $0x3f0] sm:$0xff] }
  0xdb   :  { %1083 = vmatpush1.bf16.msra.mxu0 %v5657_v53  ;;  %1196 = vmatpush1.bf16.msra.mxu1 %v5659_v54  ;;  %v5591_v53 = vcombine.low %v201_v41, %v205_v42  ;;  %v5598_v54 = vcombine.high %v208_v47, %v212_v48 }
  0xdc   :  { %1084 = vmatprep.subr.bf16.mxu0 %v5666_v55  ;;  %1197 = vmatprep.subr.bf16.mxu1 %v5668_v56  ;;  %v5600_v55 = vcombine.high %v209_v50, %v213_v51  ;;  %v6824_v56 = vld [vmem:[#allocation7 + $0x34] ss:$8 sps:$4 sm:$0xff]  }
  0xdf   :  { %1085 = vmatpush1.bf16.msra.mxu0 %v5665_v62  ;;  %1198 = vmatpush1.bf16.msra.mxu1 %v5667_v63  ;;  %v5597_v62 = vcombine.low %v208_v47, %v212_v48  ;;  %v5599_v63 = vcombine.low %v209_v50, %v213_v51  ;;  %v261_v47 = vld [vmem:[#allocation10 + $0x2f8] sm:$0xff] }
  0xe0   :  { %1086 = vmatprep.subr.bf16.mxu0 %v5674_v1  ;;  %1199 = vmatprep.subr.bf16.mxu1 %v5676_v2  ;;  %v5606_v1 = vcombine.high %v216_v58, %v220_v59  ;;  %v5608_v2 = vcombine.high %v217_v60, %v221_v61 }
  0xe3   :  { %1087 = vmatpush1.bf16.msra.mxu0 %v5673_v7  ;;  %1200 = vmatpush1.bf16.msra.mxu1 %v5675_v8  ;;  %v229_v7 = vld [vmem:[#allocation10 + $0x1f8] sm:$0xff]  ;;  %v5605_v8 = vcombine.low %v216_v58, %v220_v59 }
  0xe4   :  { %1282 = vmatprep.subr.bf16.mxu0 %v5558_v9  ;;  %1395 = vmatprep.subr.bf16.mxu1 %v5560_v10  ;;  %v5607_v9 = vcombine.low %v217_v60, %v221_v61  ;;  %v5614_v10 = vcombine.high %v224_v3, %v228_v4  ;;  %v5616_v11 = vcombine.high %v225_v6, %v229_v7  ;;  %v265_v58 = vld [vmem:[#allocation10 + $0x318] sm:$0xff] }
  0xe5   :  { %v269_v59 = vld [vmem:[#allocation10 + $0x338] sm:$0xff] }
  0xe6   :  { %1089 = vmatmul.mubr.bf16.vlgmr.msra.gmra.mrb[0].mxu0 %v6806_v13  ;;  %1202 = vmatmul.mubr.bf16.vlgmr.msra.gmra.mrb[0].mxu1 %v6806_v13 }
  0xe7   :  { %1283 = vmatpush1.bf16.msra.mxu0 %v5557_v16  ;;  %1396 = vmatpush1.bf16.msra.mxu1 %v5559_v17  ;;  %v233_v16 = vld [vmem:[#allocation10 + $0x218] sm:$0xff] }
  0xe8   :  { %1284 = vmatprep.subr.bf16.mxu0 %v5566_v18  ;;  %1397 = vmatprep.subr.bf16.mxu1 %v5568_v19  ;;  %v237_v17 = vld [vmem:[#allocation10 + $0x238] sm:$0xff]  ;;  %v5613_v18 = vcombine.low %v224_v3, %v228_v4  ;;  %v5615_v19 = vcombine.low %v225_v6, %v229_v7  ;;  %v6854_v3 = vld [vmem:[#allocation7 + $0x60] ss:$8 sps:$4 sm:$0xff]  }
  0xe9   :  { %1098 = vmatprep.mubr.bf16.mxu0 %v6808_v20  ;;  %1211 = vmatprep.mubr.bf16.mxu1 %v6808_v20  ;;  %v5624_v22 = vcombine.high %v233_v16, %v237_v17  ;;  %v5623_v29 = vcombine.low %v233_v16, %v237_v17  ;;  %v273_v4 = vld [vmem:[#allocation10 + $0x358] sm:$0xff] }
  0xea   :  { %v277_v6 = vld [vmem:[#allocation10 + $0x378] sm:$0xff] }
  0xeb   :  { %1285 = vmatpush1.bf16.msra.mxu0 %v5565_v25  ;;  %1398 = vmatpush1.bf16.msra.mxu1 %v5567_v26  ;;  %v6838_v25 = vld [vmem:[#allocation7 + $0x40] ss:$8 sps:$4 sm:$0xff]   ;;  %v241_v26 = vld [vmem:[#allocation10 + $0x258] sm:$0xff] }
  0xec   :  { %1286 = vmatprep.subr.bf16.mxu0 %v5574_v27  ;;  %1399 = vmatprep.subr.bf16.mxu1 %v5576_v28  ;;  %v245_v27 = vld [vmem:[#allocation10 + $0x278] sm:$0xff]  ;;  %v5621_v28 = vcombine.low %v232_v14, %v236_v15  ;;  %v280_v14 = vld [vmem:[#allocation10 + $0x390] sm:$0xff] }
  0xed   :  { %v5632_v32 = vcombine.high %v241_v26, %v245_v27  ;;  %v5631_v40 = vcombine.low %v241_v26, %v245_v27  ;;  %v284_v15 = vld [vmem:[#allocation10 + $0x3b0] sm:$0xff]  ;;  %v281_v16 = vld [vmem:[#allocation10 + $0x398] sm:$0xff] }
  0xee   :  { %1099 = vmatmul.mubr.bf16.gmra.mrb[4].mxu0 %v6814_v31  ;;  %1212 = vmatmul.mubr.bf16.gmra.mrb[4].mxu1 %v6814_v31  ;;  %v285_v17 = vld [vmem:[#allocation10 + $0x3b8] sm:$0xff] }
  0xef   :  { %1287 = vmatpush1.bf16.msra.mxu0 %v5573_v34  ;;  %1400 = vmatpush1.bf16.msra.mxu1 %v5575_v35  ;;  %v248_v34 = vld [vmem:[#allocation10 + $0x290] sm:$0xff]  ;;  %v289_v27 = vld [vmem:[#allocation10 + $0x3d8] sm:$0xff] }
  0xf0   :  { %1288 = vmatprep.subr.bf16.mxu0 %v5582_v36  ;;  %1401 = vmatprep.subr.bf16.mxu1 %v5584_v37  ;;  %v252_v35 = vld [vmem:[#allocation10 + $0x2b0] sm:$0xff]  ;;  %v249_v36 = vld [vmem:[#allocation10 + $0x298] sm:$0xff] }
  0xf1   :  { %1108 = vmatprep.mubr.bf16.mxu0 %v6816_v38  ;;  %1221 = vmatprep.mubr.bf16.mxu1 %v6816_v38  ;;  %v253_v37 = vld [vmem:[#allocation10 + $0x2b8] sm:$0xff]  ;;  %v5638_v41 = vcombine.high %v248_v34, %v252_v35  ;;  %v5637_v48 = vcombine.low %v248_v34, %v252_v35  ;;  %v5677_v35 = vcombine.low %v288_v23, %v292_v24 }
  0xf2   :  { %v5640_v42 = vcombine.high %v249_v36, %v253_v37  ;;  %v5639_v50 = vcombine.low %v249_v36, %v253_v37  ;;  %v6211_v26 = vld [vmem:[#allocation7 + $0x70] ss:$8 sps:$4 sm:$0xff]  }
  0xf3   :  { %1289 = vmatpush1.bf16.msra.mxu0 %v5581_v43  ;;  %1402 = vmatpush1.bf16.msra.mxu1 %v5583_v44  ;;  %v256_v43 = vld [vmem:[#allocation10 + $0x2d0] sm:$0xff] }
  0xf4   :  { %1290 = vmatprep.subr.bf16.mxu0 %v5590_v45  ;;  %1403 = vmatprep.subr.bf16.mxu1 %v5592_v46  ;;  %v260_v44 = vld [vmem:[#allocation10 + $0x2f0] sm:$0xff]  ;;  %v257_v46 = vld [vmem:[#allocation10 + $0x2d8] sm:$0xff] }
  0xf5   :  { %v6846_v45 = vld [vmem:[#allocation7 + $0x50] ss:$8 sps:$4 sm:$0xff]   ;;  %v5646_v51 = vcombine.high %v256_v43, %v260_v44  ;;  %v5645_v60 = vcombine.low %v256_v43, %v260_v44  ;;  %v5647_v61 = vcombine.low %v257_v46, %v261_v47 }
  0xf6   :  { %1109 = vmatmul.mubr.bf16.gmra.mrb[8].mxu0 %v6822_v49  ;;  %1222 = vmatmul.mubr.bf16.gmra.mrb[8].mxu1 %v6822_v49 }
  0xf7   :  { %1291 = vmatpush1.bf16.msra.mxu0 %v5589_v52  ;;  %1404 = vmatpush1.bf16.msra.mxu1 %v5591_v53  ;;  %v5648_v52 = vcombine.high %v257_v46, %v261_v47  ;;  %v6848_v53 = vld [vmem:[#allocation7 + $0x64] ss:$8 sps:$4 sm:$0xff]  }
  0xf8   :  { %1292 = vmatprep.subr.bf16.mxu0 %v5598_v54  ;;  %1405 = vmatprep.subr.bf16.mxu1 %v5600_v55  ;;  %v264_v54 = vld [vmem:[#allocation10 + $0x310] sm:$0xff] }
  0xf9   :  { %1118 = vmatprep.mubr.bf16.mxu0 %v6824_v56  ;;  %1231 = vmatprep.mubr.bf16.mxu1 %v6824_v56  ;;  %v268_v55 = vld [vmem:[#allocation10 + $0x330] sm:$0xff] }
  0xfa   :  { %v5653_v7 = vcombine.low %v264_v54, %v268_v55 }
  0xfb   :  { %1293 = vmatpush1.bf16.msra.mxu0 %v5597_v62  ;;  %1406 = vmatpush1.bf16.msra.mxu1 %v5599_v63  ;;  %v5654_v62 = vcombine.high %v264_v54, %v268_v55  ;;  %v5656_v63 = vcombine.high %v265_v58, %v269_v59 }
  0xfc   :  { %1294 = vmatprep.subr.bf16.mxu0 %v5606_v1  ;;  %1407 = vmatprep.subr.bf16.mxu1 %v5608_v2  ;;  %v272_v1 = vld [vmem:[#allocation10 + $0x350] sm:$0xff] }
  0xfd   :  { %v276_v2 = vld [vmem:[#allocation10 + $0x370] sm:$0xff] }
  0xfe   :  { %1119 = vmatmul.mubr.bf16.gmra.mrb[12].mxu0 %v6830_v5  ;;  %1232 = vmatmul.mubr.bf16.gmra.mrb[12].mxu1 %v6830_v5 }
  0xff   :  { %1295 = vmatpush1.bf16.msra.mxu0 %v5605_v8  ;;  %1408 = vmatpush1.bf16.msra.mxu1 %v5607_v9  ;;  %v5655_v8 = vcombine.low %v265_v58, %v269_v59  ;;  %v5662_v9 = vcombine.high %v272_v1, %v276_v2 }
 0x100   :  { %1296 = vmatprep.subr.bf16.mxu0 %v5614_v10  ;;  %1409 = vmatprep.subr.bf16.mxu1 %v5616_v11  ;;  %v5664_v10 = vcombine.high %v273_v4, %v277_v6  ;;  %v6856_v11 = vld [vmem:[#allocation7 + $0x74] ss:$8 sps:$4 sm:$0xff]  }
 0x101   :  { %1128 = vmatprep.mubr.bf16.mxu0 %v6832_v12  ;;  %1241 = vmatprep.mubr.bf16.mxu1 %v6832_v12 }
 0x103   :  { %1297 = vmatpush1.bf16.msra.mxu0 %v5613_v18  ;;  %1410 = vmatpush1.bf16.msra.mxu1 %v5615_v19  ;;  %v5661_v18 = vcombine.low %v272_v1, %v276_v2  ;;  %v5663_v19 = vcombine.low %v273_v4, %v277_v6 }
 0x104   :  { %1298 = vmatprep.subr.bf16.mxu0 %v5622_v21  ;;  %1411 = vmatprep.subr.bf16.mxu1 %v5624_v22  ;;  %v5670_v21 = vcombine.high %v280_v14, %v284_v15  ;;  %v5672_v22 = vcombine.high %v281_v16, %v285_v17 }
 0x106   :  { %1129 = vmatmul.mubr.bf16.gmra.mrb[16].mxu0 %v6838_v25  ;;  %1242 = vmatmul.mubr.bf16.gmra.mrb[16].mxu1 %v6838_v25 }
 0x107   :  { %1299 = vmatpush1.bf16.msra.mxu0 %v5621_v28  ;;  %1412 = vmatpush1.bf16.msra.mxu1 %v5623_v29  ;;  %v293_v28 = vld [vmem:[#allocation10 + $0x3f8] sm:$0xff]  ;;  %v5669_v29 = vcombine.low %v280_v14, %v284_v15 }
 0x108   :  { %1300 = vmatprep.subr.bf16.mxu0 %v5630_v30  ;;  %1413 = vmatprep.subr.bf16.mxu1 %v5632_v32  ;;  %v5671_v30 = vcombine.low %v281_v16, %v285_v17  ;;  %v5678_v32 = vcombine.high %v288_v23, %v292_v24  ;;  %v5680_v34 = vcombine.high %v289_v27, %v293_v28 }
 0x109   :  { %1138 = vmatprep.mubr.bf16.mxu0 %v6840_v33  ;;  %1251 = vmatprep.mubr.bf16.mxu1 %v6840_v33  ;;  %v5679_v36 = vcombine.low %v289_v27, %v293_v28 }
 0x10b   :  { %1301 = vmatpush1.bf16.msra.mxu0 %v5629_v39  ;;  %1414 = vmatpush1.bf16.msra.mxu1 %v5631_v40 }
 0x10c   :  { %1302 = vmatprep.subr.bf16.mxu0 %v5638_v41  ;;  %1415 = vmatprep.subr.bf16.mxu1 %v5640_v42 }
 0x10e   :  { %1139 = vmatmul.mubr.bf16.gmra.mrb[20].mxu0 %v6846_v45  ;;  %1252 = vmatmul.mubr.bf16.gmra.mrb[20].mxu1 %v6846_v45 }
 0x10f   :  { %1303 = vmatpush1.bf16.msra.mxu0 %v5637_v48  ;;  %1416 = vmatpush1.bf16.msra.mxu1 %v5639_v50 }
 0x110   :  { %1304 = vmatprep.subr.bf16.mxu0 %v5646_v51  ;;  %1417 = vmatprep.subr.bf16.mxu1 %v5648_v52 }
 0x111   :  { %1148 = vmatprep.mubr.bf16.mxu0 %v6848_v53  ;;  %1261 = vmatprep.mubr.bf16.mxu1 %v6848_v53 }
 0x113   :  { %1305 = vmatpush1.bf16.msra.mxu0 %v5645_v60  ;;  %1418 = vmatpush1.bf16.msra.mxu1 %v5647_v61 }
 0x114   :  { %1306 = vmatprep.subr.bf16.mxu0 %v5654_v62  ;;  %1419 = vmatprep.subr.bf16.mxu1 %v5656_v63 }
 0x116   :  { %1149 = vmatmul.mubr.bf16.gmra.mrb[24].mxu0 %v6854_v3  ;;  %1262 = vmatmul.mubr.bf16.gmra.mrb[24].mxu1 %v6854_v3 }
 0x117   :  { %1307 = vmatpush1.bf16.msra.mxu0 %v5653_v7  ;;  %1420 = vmatpush1.bf16.msra.mxu1 %v5655_v8 }
 0x118   :  { %1308 = vmatprep.subr.bf16.mxu0 %v5662_v9  ;;  %1421 = vmatprep.subr.bf16.mxu1 %v5664_v10 }
 0x119   :  { %1158 = vmatprep.mubr.bf16.mxu0 %v6856_v11  ;;  %1271 = vmatprep.mubr.bf16.mxu1 %v6856_v11 }
 0x11b   :  { %1309 = vmatpush1.bf16.msra.mxu0 %v5661_v18  ;;  %1422 = vmatpush1.bf16.msra.mxu1 %v5663_v19 }
 0x11c   :  { %1310 = vmatprep.subr.bf16.mxu0 %v5670_v21  ;;  %1423 = vmatprep.subr.bf16.mxu1 %v5672_v22 }
 0x11e   :  { %1159 = vmatmul.mubr.bf16.gmra.mrb[28].mxu0 %v6211_v26  ;;  %1272 = vmatmul.mubr.bf16.gmra.mrb[28].mxu1 %v6211_v26 }
 0x11f   :  { %1311 = vmatpush1.bf16.msra.mxu0 %v5669_v29  ;;  %1424 = vmatpush1.bf16.msra.mxu1 %v5671_v30 }
 0x120   :  { %1312 = vmatprep.subr.bf16.mxu0 %v5678_v32  ;;  %1425 = vmatprep.subr.bf16.mxu1 %v5680_v34 }
 0x121   :  { %1314 = vmatprep.mubr.bf16.mxu0 %v6802_v57  ;;  %1427 = vmatprep.mubr.bf16.mxu1 %v6802_v57  ;;  %v296_v57 = vlaneseq }
 0x123   :  { %1313 = vmatpush1.bf16.msra.mxu0 %v5677_v35  ;;  %1426 = vmatpush1.bf16.msra.mxu1 %v5679_v36 }
 0x126   :  { %1315 = vmatmul.mubr.bf16.vlgmr.msra.gmra.mrb[32].mxu0 %v6806_v13  ;;  %1428 = vmatmul.mubr.bf16.vlgmr.msra.gmra.mrb[32].mxu1 %v6806_v13  ;;  %v6892_v13 = vshrl.u32 %v296_v57, 7 }
 0x127   :  { %1324 = vmatprep.mubr.bf16.mxu0 %v6808_v20  ;;  %1437 = vmatprep.mubr.bf16.mxu1 %v6808_v20 }
 0x128   :  { %v298_v20 = vsub.s32 0, %v6892_v13 }
 0x12e   :  { %1325 = vmatmul.mubr.bf16.gmra.mrb[36].mxu0 %v6814_v31  ;;  %1438 = vmatmul.mubr.bf16.gmra.mrb[36].mxu1 %v6814_v31  ;;  %v6895_v31 = vld [vmem:[#allocation13] sm:$0xff] }
 0x12f   :  { %1334 = vmatprep.mubr.bf16.mxu0 %v6816_v38  ;;  %1447 = vmatprep.mubr.bf16.mxu1 %v6816_v38  ;;  %v306_v38 = vsub.s32 2, %v6892_v13 }
 0x136   :  { %1335 = vmatmul.mubr.bf16.gmra.mrb[40].mxu0 %v6822_v49  ;;  %1448 = vmatmul.mubr.bf16.gmra.mrb[40].mxu1 %v6822_v49  ;;  %v302_v49 = vsub.s32 1, %v6892_v13 }
 0x137   :  { %1344 = vmatprep.mubr.bf16.mxu0 %v6824_v56  ;;  %1457 = vmatprep.mubr.bf16.mxu1 %v6824_v56  ;;  %v310_v56 = vsub.s32 3, %v6892_v13 }
 0x139   :  { %v6918_v40 = vrot.slane %v6895_v31, %v310_v56 }
 0x13e   :  { %1345 = vmatmul.mubr.bf16.gmra.mrb[44].mxu0 %v6830_v5  ;;  %1458 = vmatmul.mubr.bf16.gmra.mrb[44].mxu1 %v6830_v5  ;;  %v6903_v5 = vrot.slane %v6895_v31, %v298_v20 }
 0x13f   :  { %1354 = vmatprep.mubr.bf16.mxu0 %v6832_v12  ;;  %1467 = vmatprep.mubr.bf16.mxu1 %v6832_v12 }
 0x146   :  { %1355 = vmatmul.mubr.bf16.gmra.mrb[48].mxu0 %v6838_v25  ;;  %1468 = vmatmul.mubr.bf16.gmra.mrb[48].mxu1 %v6838_v25  ;;  %v6908_v25 = vrot.slane %v6895_v31, %v306_v38 }
 0x147   :  { %1364 = vmatprep.mubr.bf16.mxu0 %v6840_v33  ;;  %1477 = vmatprep.mubr.bf16.mxu1 %v6840_v33  ;;  %v6913_v33 = vrot.slane %v6895_v31, %v302_v49 }
 0x14e   :  { %1365 = vmatmul.mubr.bf16.gmra.mrb[52].mxu0 %v6846_v45  ;;  %1478 = vmatmul.mubr.bf16.gmra.mrb[52].mxu1 %v6846_v45 }
 0x14f   :  { %1374 = vmatprep.mubr.bf16.mxu0 %v6848_v53  ;;  %1487 = vmatprep.mubr.bf16.mxu1 %v6848_v53 }
 0x156   :  { %1375 = vmatmul.mubr.bf16.gmra.mrb[56].mxu0 %v6854_v3  ;;  %1488 = vmatmul.mubr.bf16.gmra.mrb[56].mxu1 %v6854_v3 }
 0x157   :  { %1384 = vmatprep.mubr.bf16.mxu0 %v6856_v11  ;;  %1497 = vmatprep.mubr.bf16.mxu1 %v6856_v11 }
 0x15e   :  { %1385 = vmatmul.mubr.bf16.gmra.mrb[60].mxu0 %v6211_v26  ;;  %1498 = vmatmul.mubr.bf16.gmra.mrb[60].mxu1 %v6211_v26 }
 0x1b9   :  { %v1090_v12 = vpop.f32.mrb[0].mxu0  ;;  %v1203_v37 = vpop.f32.mrb[0].mxu1 }
 0x1ba   :  { %v1092_v39 = vpop.f32.mrb[1].mxu0  ;;  %v1205_v41 = vpop.f32.mrb[1].mxu1  ;;  %v1091_v43 = vadd.f32 %v1090_v12, %v6903_v5  ;;  %v1204_v47 = vadd.f32 %v1203_v37, %v6908_v25 }
 0x1bb   :  { %v1094_v42 = vpop.f32.mrb[2].mxu0  ;;  %v1207_v45 = vpop.f32.mrb[2].mxu1  ;;  %v1093_v48 = vadd.f32 %v1092_v39, %v6913_v33  ;;  %v1206_v53 = vadd.f32 %v1205_v41, %v6918_v40 }
 0x1bc   :  { %v1095_v44 = vadd.f32 %v1094_v42, %v6903_v5  ;;  %v1096_v46 = vpop.f32.mrb[3].mxu0  ;;  %v1208_v50 = vadd.f32 %v1207_v45, %v6908_v25  ;;  %v1209_v52 = vpop.f32.mrb[3].mxu1 }
 0x1bd   :  { %v1097_v51 = vadd.f32 %v1096_v46, %v6913_v33  ;;  %v1210_v55 = vadd.f32 %v1209_v52, %v6918_v40 }
 0x1be   :  { %v1508_v54 = vpack.c.bf16 %v1095_v44, %v1091_v43  ;;  %v1510_v58 = vpack.c.bf16 %v1208_v50, %v1204_v47 }
 0x1bf   :  { %v1509_v59 = vpack.c.bf16 %v1097_v51, %v1093_v48  ;;  %v1511_v60 = vpack.c.bf16 %v1210_v55, %v1206_v53 }
 0x1c0   :  { %1572 = vst [vmem:[#allocation2] sm:$0xff] %v1508_v54  ;;  %1574 = vst [vmem:[#allocation2 + $0x10] sm:$0xff] %v1510_v58 }
 0x1c1   :  { %1573 = vst [vmem:[#allocation2 + $0x8] sm:$0xff] %v1509_v59  ;;  %v1100_v61 = vpop.f32.mrb[4].mxu0  ;;  %1575 = vst [vmem:[#allocation2 + $0x18] sm:$0xff] %v1511_v60  ;;  %v1213_v62 = vpop.f32.mrb[4].mxu1 }
 0x1c2   :  { %v1102_v63 = vpop.f32.mrb[5].mxu0  ;;  %v1215_v1 = vpop.f32.mrb[5].mxu1  ;;  %v1101_v3 = vadd.f32 %v1100_v61, %v6903_v5  ;;  %v1214_v8 = vadd.f32 %v1213_v62, %v6908_v25 }
 0x1c3   :  { %v1104_v2 = vpop.f32.mrb[6].mxu0  ;;  %v1217_v6 = vpop.f32.mrb[6].mxu1  ;;  %v1103_v9 = vadd.f32 %v1102_v63, %v6913_v33  ;;  %v1216_v15 = vadd.f32 %v1215_v1, %v6918_v40 }
 0x1c4   :  { %v1105_v4 = vadd.f32 %v1104_v2, %v6903_v5  ;;  %v1106_v7 = vpop.f32.mrb[7].mxu0  ;;  %v1218_v10 = vadd.f32 %v1217_v6, %v6908_v25  ;;  %v1219_v14 = vpop.f32.mrb[7].mxu1 }
 0x1c5   :  { %v1107_v11 = vadd.f32 %v1106_v7, %v6913_v33  ;;  %v1220_v17 = vadd.f32 %v1219_v14, %v6918_v40 }
 0x1c6   :  { %v1516_v16 = vpack.c.bf16 %v1105_v4, %v1101_v3  ;;  %v1518_v18 = vpack.c.bf16 %v1218_v10, %v1214_v8 }
 0x1c7   :  { %v1517_v19 = vpack.c.bf16 %v1107_v11, %v1103_v9  ;;  %v1519_v21 = vpack.c.bf16 %v1220_v17, %v1216_v15 }
 0x1c8   :  { %1580 = vst [vmem:[#allocation2 + $0x40] sm:$0xff] %v1516_v16  ;;  %1582 = vst [vmem:[#allocation2 + $0x50] sm:$0xff] %v1518_v18 }
 0x1c9   :  { %1581 = vst [vmem:[#allocation2 + $0x48] sm:$0xff] %v1517_v19  ;;  %v1110_v22 = vpop.f32.mrb[8].mxu0  ;;  %1583 = vst [vmem:[#allocation2 + $0x58] sm:$0xff] %v1519_v21  ;;  %v1223_v23 = vpop.f32.mrb[8].mxu1 }
 0x1ca   :  { %v1112_v24 = vpop.f32.mrb[9].mxu0  ;;  %v1225_v26 = vpop.f32.mrb[9].mxu1  ;;  %v1111_v28 = vadd.f32 %v1110_v22, %v6903_v5  ;;  %v1224_v34 = vadd.f32 %v1223_v23, %v6908_v25 }
 0x1cb   :  { %v1114_v27 = vpop.f32.mrb[10].mxu0  ;;  %v1227_v30 = vpop.f32.mrb[10].mxu1  ;;  %v1113_v35 = vadd.f32 %v1112_v24, %v6913_v33  ;;  %v1226_v37 = vadd.f32 %v1225_v26, %v6918_v40 }
 0x1cc   :  { %v1115_v29 = vadd.f32 %v1114_v27, %v6903_v5  ;;  %v1116_v32 = vpop.f32.mrb[11].mxu0  ;;  %v1228_v36 = vadd.f32 %v1227_v30, %v6908_v25  ;;  %v1229_v12 = vpop.f32.mrb[11].mxu1 }
 0x1cd   :  { %v1117_v57 = vadd.f32 %v1116_v32, %v6913_v33  ;;  %v1230_v41 = vadd.f32 %v1229_v12, %v6918_v40 }
 0x1ce   :  { %v1524_v39 = vpack.c.bf16 %v1115_v29, %v1111_v28  ;;  %v1526_v42 = vpack.c.bf16 %v1228_v36, %v1224_v34 }
 0x1cf   :  { %v1525_v43 = vpack.c.bf16 %v1117_v57, %v1113_v35  ;;  %v1527_v44 = vpack.c.bf16 %v1230_v41, %v1226_v37 }
 0x1d0   :  { %1588 = vst [vmem:[#allocation2 + $0x80] sm:$0xff] %v1524_v39  ;;  %1590 = vst [vmem:[#allocation2 + $0x90] sm:$0xff] %v1526_v42 }
 0x1d1   :  { %1589 = vst [vmem:[#allocation2 + $0x88] sm:$0xff] %v1525_v43  ;;  %v1120_v45 = vpop.f32.mrb[12].mxu0  ;;  %1591 = vst [vmem:[#allocation2 + $0x98] sm:$0xff] %v1527_v44  ;;  %v1233_v46 = vpop.f32.mrb[12].mxu1 }
 0x1d2   :  { %v1122_v47 = vpop.f32.mrb[13].mxu0  ;;  %v1235_v48 = vpop.f32.mrb[13].mxu1  ;;  %v1121_v51 = vadd.f32 %v1120_v45, %v6903_v5  ;;  %v1234_v55 = vadd.f32 %v1233_v46, %v6908_v25 }
 0x1d3   :  { %v1124_v50 = vpop.f32.mrb[14].mxu0  ;;  %v1237_v53 = vpop.f32.mrb[14].mxu1  ;;  %v1123_v58 = vadd.f32 %v1122_v47, %v6913_v33  ;;  %v1236_v62 = vadd.f32 %v1235_v48, %v6918_v40 }
 0x1d4   :  { %v1125_v52 = vadd.f32 %v1124_v50, %v6903_v5  ;;  %v1126_v54 = vpop.f32.mrb[15].mxu0  ;;  %v1238_v59 = vadd.f32 %v1237_v53, %v6908_v25  ;;  %v1239_v61 = vpop.f32.mrb[15].mxu1 }
 0x1d5   :  { %v1127_v60 = vadd.f32 %v1126_v54, %v6913_v33  ;;  %v1240_v1 = vadd.f32 %v1239_v61, %v6918_v40 }
 0x1d6   :  { %v1532_v63 = vpack.c.bf16 %v1125_v52, %v1121_v51  ;;  %v1534_v2 = vpack.c.bf16 %v1238_v59, %v1234_v55 }
 0x1d7   :  { %v1533_v3 = vpack.c.bf16 %v1127_v60, %v1123_v58  ;;  %v1535_v4 = vpack.c.bf16 %v1240_v1, %v1236_v62 }
 0x1d8   :  { %1596 = vst [vmem:[#allocation2 + $0xc0] sm:$0xff] %v1532_v63  ;;  %1598 = vst [vmem:[#allocation2 + $0xd0] sm:$0xff] %v1534_v2 }
 0x1d9   :  { %1597 = vst [vmem:[#allocation2 + $0xc8] sm:$0xff] %v1533_v3  ;;  %v1130_v6 = vpop.f32.mrb[16].mxu0  ;;  %1599 = vst [vmem:[#allocation2 + $0xd8] sm:$0xff] %v1535_v4  ;;  %v1243_v7 = vpop.f32.mrb[16].mxu1 }
 0x1da   :  { %v1132_v8 = vpop.f32.mrb[17].mxu0  ;;  %v1245_v9 = vpop.f32.mrb[17].mxu1  ;;  %v1131_v11 = vadd.f32 %v1130_v6, %v6903_v5  ;;  %v1244_v17 = vadd.f32 %v1243_v7, %v6908_v25 }
 0x1db   :  { %v1134_v10 = vpop.f32.mrb[18].mxu0  ;;  %v1247_v15 = vpop.f32.mrb[18].mxu1  ;;  %v1133_v18 = vadd.f32 %v1132_v8, %v6913_v33  ;;  %v1246_v23 = vadd.f32 %v1245_v9, %v6918_v40 }
 0x1dc   :  { %v1135_v14 = vadd.f32 %v1134_v10, %v6903_v5  ;;  %v1136_v16 = vpop.f32.mrb[19].mxu0  ;;  %v1248_v19 = vadd.f32 %v1247_v15, %v6908_v25  ;;  %v1249_v22 = vpop.f32.mrb[19].mxu1 }
 0x1dd   :  { %v1137_v21 = vadd.f32 %v1136_v16, %v6913_v33  ;;  %v1250_v26 = vadd.f32 %v1249_v22, %v6918_v40 }
 0x1de   :  { %v1540_v24 = vpack.c.bf16 %v1135_v14, %v1131_v11  ;;  %v1542_v27 = vpack.c.bf16 %v1248_v19, %v1244_v17 }
 0x1df   :  { %v1541_v28 = vpack.c.bf16 %v1137_v21, %v1133_v18  ;;  %v1543_v29 = vpack.c.bf16 %v1250_v26, %v1246_v23  ;;  %v314_v21 = vsub.s32 4, %v6892_v13 }
 0x1e0   :  { %1604 = vst [vmem:[#allocation2 + $0x100] sm:$0xff] %v1540_v24  ;;  %1606 = vst [vmem:[#allocation2 + $0x110] sm:$0xff] %v1542_v27  ;;  %v322_v27 = vsub.s32 6, %v6892_v13 }
 0x1e1   :  { %1605 = vst [vmem:[#allocation2 + $0x108] sm:$0xff] %v1541_v28  ;;  %v1140_v30 = vpop.f32.mrb[20].mxu0  ;;  %1607 = vst [vmem:[#allocation2 + $0x118] sm:$0xff] %v1543_v29  ;;  %v1253_v32 = vpop.f32.mrb[20].mxu1  ;;  %v318_v28 = vsub.s32 5, %v6892_v13 }
 0x1e2   :  { %v1142_v34 = vpop.f32.mrb[21].mxu0  ;;  %v1255_v35 = vpop.f32.mrb[21].mxu1  ;;  %v1141_v57 = vadd.f32 %v1140_v30, %v6903_v5  ;;  %v1254_v41 = vadd.f32 %v1253_v32, %v6908_v25 }
 0x1e3   :  { %v1144_v36 = vpop.f32.mrb[22].mxu0  ;;  %v1257_v37 = vpop.f32.mrb[22].mxu1  ;;  %v1143_v42 = vadd.f32 %v1142_v34, %v6913_v33  ;;  %v1256_v46 = vadd.f32 %v1255_v35, %v6918_v40 }
 0x1e4   :  { %v1145_v12 = vadd.f32 %v1144_v36, %v6903_v5  ;;  %v1146_v39 = vpop.f32.mrb[23].mxu0  ;;  %v1258_v43 = vadd.f32 %v1257_v37, %v6908_v25  ;;  %v1259_v45 = vpop.f32.mrb[23].mxu1 }
 0x1e5   :  { %v1147_v44 = vadd.f32 %v1146_v39, %v6913_v33  ;;  %v1260_v48 = vadd.f32 %v1259_v45, %v6918_v40 }
 0x1e6   :  { %v1548_v47 = vpack.c.bf16 %v1145_v12, %v1141_v57  ;;  %v1550_v50 = vpack.c.bf16 %v1258_v43, %v1254_v41  ;;  %v326_v12 = vsub.s32 7, %v6892_v13 }
 0x1e7   :  { %v1549_v51 = vpack.c.bf16 %v1147_v44, %v1143_v42  ;;  %v1551_v52 = vpack.c.bf16 %v1260_v48, %v1256_v46  ;;  %v6991_v42 = vrot.slane %v6895_v31, %v314_v21 }
 0x1e8   :  { %1612 = vst [vmem:[#allocation2 + $0x140] sm:$0xff] %v1548_v47  ;;  %1614 = vst [vmem:[#allocation2 + $0x150] sm:$0xff] %v1550_v50  ;;  %v7006_v45 = vrot.slane %v6895_v31, %v326_v12 }
 0x1e9   :  { %1613 = vst [vmem:[#allocation2 + $0x148] sm:$0xff] %v1549_v51  ;;  %v1150_v53 = vpop.f32.mrb[24].mxu0  ;;  %1615 = vst [vmem:[#allocation2 + $0x158] sm:$0xff] %v1551_v52  ;;  %v1263_v54 = vpop.f32.mrb[24].mxu1 }
 0x1ea   :  { %v1152_v55 = vpop.f32.mrb[25].mxu0  ;;  %v1265_v58 = vpop.f32.mrb[25].mxu1  ;;  %v1151_v60 = vadd.f32 %v1150_v53, %v6903_v5  ;;  %v1264_v1 = vadd.f32 %v1263_v54, %v6908_v25 }
 0x1eb   :  { %v1154_v59 = vpop.f32.mrb[26].mxu0  ;;  %v1267_v62 = vpop.f32.mrb[26].mxu1  ;;  %v1153_v2 = vadd.f32 %v1152_v55, %v6913_v33  ;;  %v1266_v7 = vadd.f32 %v1265_v58, %v6918_v40 }
 0x1ec   :  { %v1155_v61 = vadd.f32 %v1154_v59, %v6903_v5  ;;  %v1156_v63 = vpop.f32.mrb[27].mxu0  ;;  %v1268_v3 = vadd.f32 %v1267_v62, %v6908_v25  ;;  %v1269_v6 = vpop.f32.mrb[27].mxu1 }
 0x1ed   :  { %v1157_v4 = vadd.f32 %v1156_v63, %v6913_v33  ;;  %v1270_v9 = vadd.f32 %v1269_v6, %v6918_v40 }
 0x1ee   :  { %v1556_v8 = vpack.c.bf16 %v1155_v61, %v1151_v60  ;;  %v1558_v10 = vpack.c.bf16 %v1268_v3, %v1264_v1 }
 0x1ef   :  { %v1557_v11 = vpack.c.bf16 %v1157_v4, %v1153_v2  ;;  %v1559_v14 = vpack.c.bf16 %v1270_v9, %v1266_v7 }
 0x1f0   :  { %1620 = vst [vmem:[#allocation2 + $0x180] sm:$0xff] %v1556_v8  ;;  %1622 = vst [vmem:[#allocation2 + $0x190] sm:$0xff] %v1558_v10 }
 0x1f1   :  { %1621 = vst [vmem:[#allocation2 + $0x188] sm:$0xff] %v1557_v11  ;;  %v1160_v15 = vpop.f32.mrb[28].mxu0  ;;  %1623 = vst [vmem:[#allocation2 + $0x198] sm:$0xff] %v1559_v14  ;;  %v1273_v16 = vpop.f32.mrb[28].mxu1 }
 0x1f2   :  { %v1162_v17 = vpop.f32.mrb[29].mxu0  ;;  %v1275_v18 = vpop.f32.mrb[29].mxu1  ;;  %v1161_v22 = vadd.f32 %v1160_v15, %v6903_v5  ;;  %v1274_v29 = vadd.f32 %v1273_v16, %v6908_v25 }
 0x1f3   :  { %v1164_v19 = vpop.f32.mrb[30].mxu0  ;;  %v1277_v24 = vpop.f32.mrb[30].mxu1  ;;  %v1163_v30 = vadd.f32 %v1162_v17, %v6913_v33  ;;  %v1276_v36 = vadd.f32 %v1275_v18, %v6918_v40 }
 0x1f4   :  { %v1165_v23 = vadd.f32 %v1164_v19, %v6903_v5  ;;  %v1166_v26 = vpop.f32.mrb[31].mxu0  ;;  %v1278_v32 = vadd.f32 %v1277_v24, %v6908_v25  ;;  %v1279_v35 = vpop.f32.mrb[31].mxu1 }
 0x1f5   :  { %v1167_v34 = vadd.f32 %v1166_v26, %v6913_v33  ;;  %v1280_v5 = vadd.f32 %v1279_v35, %v6918_v40  ;;  %v6996_v33 = vrot.slane %v6895_v31, %v322_v27  ;;  %v7001_v40 = vrot.slane %v6895_v31, %v318_v28 }
 0x1f6   :  { %v1564_v57 = vpack.c.bf16 %v1165_v23, %v1161_v22  ;;  %v1566_v37 = vpack.c.bf16 %v1278_v32, %v1274_v29 }
 0x1f7   :  { %v1565_v39 = vpack.c.bf16 %v1167_v34, %v1163_v30  ;;  %v1567_v41 = vpack.c.bf16 %v1280_v5, %v1276_v36 }
 0x1f8   :  { %1628 = vst [vmem:[#allocation2 + $0x1c0] sm:$0xff] %v1564_v57  ;;  %1630 = vst [vmem:[#allocation2 + $0x1d0] sm:$0xff] %v1566_v37 }
 0x1f9   :  { %1629 = vst [vmem:[#allocation2 + $0x1c8] sm:$0xff] %v1565_v39  ;;  %v1316_v25 = vpop.f32.mrb[32].mxu0  ;;  %1631 = vst [vmem:[#allocation2 + $0x1d8] sm:$0xff] %v1567_v41  ;;  %v1429_v43 = vpop.f32.mrb[32].mxu1 }
 0x1fa   :  { %v1318_v44 = vpop.f32.mrb[33].mxu0  ;;  %v1431_v46 = vpop.f32.mrb[33].mxu1  ;;  %v1317_v48 = vadd.f32 %v1316_v25, %v6991_v42  ;;  %v1430_v53 = vadd.f32 %v1429_v43, %v6996_v33 }
 0x1fb   :  { %v1320_v47 = vpop.f32.mrb[34].mxu0  ;;  %v1433_v51 = vpop.f32.mrb[34].mxu1  ;;  %v1319_v54 = vadd.f32 %v1318_v44, %v7001_v40  ;;  %v1432_v31 = vadd.f32 %v1431_v46, %v7006_v45 }
 0x1fc   :  { %v1321_v50 = vadd.f32 %v1320_v47, %v6991_v42  ;;  %v1322_v52 = vpop.f32.mrb[35].mxu0  ;;  %v1434_v55 = vadd.f32 %v1433_v51, %v6996_v33  ;;  %v1435_v59 = vpop.f32.mrb[35].mxu1 }
 0x1fd   :  { %v1323_v58 = vadd.f32 %v1322_v52, %v7001_v40  ;;  %v1436_v61 = vadd.f32 %v1435_v59, %v7006_v45 }
 0x1fe   :  { %v1512_v60 = vpack.c.bf16 %v1321_v50, %v1317_v48  ;;  %v1514_v62 = vpack.c.bf16 %v1434_v55, %v1430_v53 }
 0x1ff   :  { %v1513_v63 = vpack.c.bf16 %v1323_v58, %v1319_v54  ;;  %v1515_v1 = vpack.c.bf16 %v1436_v61, %v1432_v31 }
 0x200   :  { %1576 = vst [vmem:[#allocation2 + $0x20] sm:$0xff] %v1512_v60  ;;  %1578 = vst [vmem:[#allocation2 + $0x30] sm:$0xff] %v1514_v62 }
 0x201   :  { %1577 = vst [vmem:[#allocation2 + $0x28] sm:$0xff] %v1513_v63  ;;  %v1326_v2 = vpop.f32.mrb[36].mxu0  ;;  %1579 = vst [vmem:[#allocation2 + $0x38] sm:$0xff] %v1515_v1  ;;  %v1439_v3 = vpop.f32.mrb[36].mxu1 }
 0x202   :  { %v1328_v4 = vpop.f32.mrb[37].mxu0  ;;  %v1441_v6 = vpop.f32.mrb[37].mxu1  ;;  %v1327_v8 = vadd.f32 %v1326_v2, %v6991_v42  ;;  %v1440_v14 = vadd.f32 %v1439_v3, %v6996_v33 }
 0x203   :  { %v1330_v7 = vpop.f32.mrb[38].mxu0  ;;  %v1443_v10 = vpop.f32.mrb[38].mxu1  ;;  %v1329_v15 = vadd.f32 %v1328_v4, %v7001_v40  ;;  %v1442_v19 = vadd.f32 %v1441_v6, %v7006_v45 }
 0x204   :  { %v1331_v9 = vadd.f32 %v1330_v7, %v6991_v42  ;;  %v1332_v11 = vpop.f32.mrb[39].mxu0  ;;  %v1444_v16 = vadd.f32 %v1443_v10, %v6996_v33  ;;  %v1445_v18 = vpop.f32.mrb[39].mxu1 }
 0x205   :  { %v1333_v17 = vadd.f32 %v1332_v11, %v7001_v40  ;;  %v1446_v23 = vadd.f32 %v1445_v18, %v7006_v45 }
 0x206   :  { %v1520_v22 = vpack.c.bf16 %v1331_v9, %v1327_v8  ;;  %v1522_v24 = vpack.c.bf16 %v1444_v16, %v1440_v14 }
 0x207   :  { %v1521_v26 = vpack.c.bf16 %v1333_v17, %v1329_v15  ;;  %v1523_v29 = vpack.c.bf16 %v1446_v23, %v1442_v19 }
 0x208   :  { %1584 = vst [vmem:[#allocation2 + $0x60] sm:$0xff] %v1520_v22  ;;  %1586 = vst [vmem:[#allocation2 + $0x70] sm:$0xff] %v1522_v24 }
 0x209   :  { %1585 = vst [vmem:[#allocation2 + $0x68] sm:$0xff] %v1521_v26  ;;  %v1336_v30 = vpop.f32.mrb[40].mxu0  ;;  %1587 = vst [vmem:[#allocation2 + $0x78] sm:$0xff] %v1523_v29  ;;  %v1449_v32 = vpop.f32.mrb[40].mxu1 }
 0x20a   :  { %v1338_v34 = vpop.f32.mrb[41].mxu0  ;;  %v1451_v35 = vpop.f32.mrb[41].mxu1  ;;  %v1337_v57 = vadd.f32 %v1336_v30, %v6991_v42  ;;  %v1450_v41 = vadd.f32 %v1449_v32, %v6996_v33 }
 0x20b   :  { %v1340_v36 = vpop.f32.mrb[42].mxu0  ;;  %v1453_v37 = vpop.f32.mrb[42].mxu1  ;;  %v1339_v25 = vadd.f32 %v1338_v34, %v7001_v40  ;;  %v1452_v47 = vadd.f32 %v1451_v35, %v7006_v45 }
 0x20c   :  { %v1341_v5 = vadd.f32 %v1340_v36, %v6991_v42  ;;  %v1342_v39 = vpop.f32.mrb[43].mxu0  ;;  %v1454_v43 = vadd.f32 %v1453_v37, %v6996_v33  ;;  %v1455_v46 = vpop.f32.mrb[43].mxu1 }
 0x20d   :  { %v1343_v44 = vadd.f32 %v1342_v39, %v7001_v40  ;;  %v1456_v50 = vadd.f32 %v1455_v46, %v7006_v45 }
 0x20e   :  { %v1528_v48 = vpack.c.bf16 %v1341_v5, %v1337_v57  ;;  %v1530_v51 = vpack.c.bf16 %v1454_v43, %v1450_v41 }
 0x20f   :  { %v1529_v52 = vpack.c.bf16 %v1343_v44, %v1339_v25  ;;  %v1531_v53 = vpack.c.bf16 %v1456_v50, %v1452_v47 }
 0x210   :  { %1592 = vst [vmem:[#allocation2 + $0xa0] sm:$0xff] %v1528_v48  ;;  %1594 = vst [vmem:[#allocation2 + $0xb0] sm:$0xff] %v1530_v51 }
 0x211   :  { %1593 = vst [vmem:[#allocation2 + $0xa8] sm:$0xff] %v1529_v52  ;;  %v1346_v54 = vpop.f32.mrb[44].mxu0  ;;  %1595 = vst [vmem:[#allocation2 + $0xb8] sm:$0xff] %v1531_v53  ;;  %v1459_v55 = vpop.f32.mrb[44].mxu1 }
 0x212   :  { %v1348_v58 = vpop.f32.mrb[45].mxu0  ;;  %v1461_v59 = vpop.f32.mrb[45].mxu1  ;;  %v1347_v60 = vadd.f32 %v1346_v54, %v6991_v42  ;;  %v1460_v1 = vadd.f32 %v1459_v55, %v6996_v33 }
 0x213   :  { %v1350_v31 = vpop.f32.mrb[46].mxu0  ;;  %v1463_v62 = vpop.f32.mrb[46].mxu1  ;;  %v1349_v2 = vadd.f32 %v1348_v58, %v7001_v40  ;;  %v1462_v7 = vadd.f32 %v1461_v59, %v7006_v45 }
 0x214   :  { %v1351_v61 = vadd.f32 %v1350_v31, %v6991_v42  ;;  %v1352_v63 = vpop.f32.mrb[47].mxu0  ;;  %v1464_v3 = vadd.f32 %v1463_v62, %v6996_v33  ;;  %v1465_v6 = vpop.f32.mrb[47].mxu1 }
 0x215   :  { %v1353_v4 = vadd.f32 %v1352_v63, %v7001_v40  ;;  %v1466_v9 = vadd.f32 %v1465_v6, %v7006_v45 }
 0x216   :  { %v1536_v8 = vpack.c.bf16 %v1351_v61, %v1347_v60  ;;  %v1538_v10 = vpack.c.bf16 %v1464_v3, %v1460_v1 }
 0x217   :  { %v1537_v11 = vpack.c.bf16 %v1353_v4, %v1349_v2  ;;  %v1539_v14 = vpack.c.bf16 %v1466_v9, %v1462_v7 }
 0x218   :  { %1600 = vst [vmem:[#allocation2 + $0xe0] sm:$0xff] %v1536_v8  ;;  %1602 = vst [vmem:[#allocation2 + $0xf0] sm:$0xff] %v1538_v10 }
 0x219   :  { %1601 = vst [vmem:[#allocation2 + $0xe8] sm:$0xff] %v1537_v11  ;;  %v1356_v15 = vpop.f32.mrb[48].mxu0  ;;  %1603 = vst [vmem:[#allocation2 + $0xf8] sm:$0xff] %v1539_v14  ;;  %v1469_v16 = vpop.f32.mrb[48].mxu1 }
 0x21a   :  { %v1358_v17 = vpop.f32.mrb[49].mxu0  ;;  %v1471_v18 = vpop.f32.mrb[49].mxu1  ;;  %v1357_v22 = vadd.f32 %v1356_v15, %v6991_v42  ;;  %v1470_v29 = vadd.f32 %v1469_v16, %v6996_v33 }
 0x21b   :  { %v1360_v19 = vpop.f32.mrb[50].mxu0  ;;  %v1473_v24 = vpop.f32.mrb[50].mxu1  ;;  %v1359_v30 = vadd.f32 %v1358_v17, %v7001_v40  ;;  %v1472_v36 = vadd.f32 %v1471_v18, %v7006_v45 }
 0x21c   :  { %v1361_v23 = vadd.f32 %v1360_v19, %v6991_v42  ;;  %v1362_v26 = vpop.f32.mrb[51].mxu0  ;;  %v1474_v32 = vadd.f32 %v1473_v24, %v6996_v33  ;;  %v1475_v35 = vpop.f32.mrb[51].mxu1 }
 0x21d   :  { %v1363_v34 = vadd.f32 %v1362_v26, %v7001_v40  ;;  %v1476_v5 = vadd.f32 %v1475_v35, %v7006_v45 }
 0x21e   :  { %v1544_v57 = vpack.c.bf16 %v1361_v23, %v1357_v22  ;;  %v1546_v37 = vpack.c.bf16 %v1474_v32, %v1470_v29 }
 0x21f   :  { %v1545_v39 = vpack.c.bf16 %v1363_v34, %v1359_v30  ;;  %v1547_v41 = vpack.c.bf16 %v1476_v5, %v1472_v36 }
 0x220   :  { %1608 = vst [vmem:[#allocation2 + $0x120] sm:$0xff] %v1544_v57  ;;  %1610 = vst [vmem:[#allocation2 + $0x130] sm:$0xff] %v1546_v37 }
 0x221   :  { %1609 = vst [vmem:[#allocation2 + $0x128] sm:$0xff] %v1545_v39  ;;  %v1366_v25 = vpop.f32.mrb[52].mxu0  ;;  %1611 = vst [vmem:[#allocation2 + $0x138] sm:$0xff] %v1547_v41  ;;  %v1479_v43 = vpop.f32.mrb[52].mxu1 }
 0x222   :  { %v1368_v44 = vpop.f32.mrb[53].mxu0  ;;  %v1481_v46 = vpop.f32.mrb[53].mxu1  ;;  %v1367_v48 = vadd.f32 %v1366_v25, %v6991_v42  ;;  %v1480_v53 = vadd.f32 %v1479_v43, %v6996_v33 }
 0x223   :  { %v1370_v47 = vpop.f32.mrb[54].mxu0  ;;  %v1483_v51 = vpop.f32.mrb[54].mxu1  ;;  %v1369_v54 = vadd.f32 %v1368_v44, %v7001_v40  ;;  %v1482_v31 = vadd.f32 %v1481_v46, %v7006_v45 }
 0x224   :  { %v1371_v50 = vadd.f32 %v1370_v47, %v6991_v42  ;;  %v1372_v52 = vpop.f32.mrb[55].mxu0  ;;  %v1484_v55 = vadd.f32 %v1483_v51, %v6996_v33  ;;  %v1485_v59 = vpop.f32.mrb[55].mxu1 }
 0x225   :  { %v1373_v58 = vadd.f32 %v1372_v52, %v7001_v40  ;;  %v1486_v61 = vadd.f32 %v1485_v59, %v7006_v45 }
 0x226   :  { %v1552_v60 = vpack.c.bf16 %v1371_v50, %v1367_v48  ;;  %v1554_v62 = vpack.c.bf16 %v1484_v55, %v1480_v53 }
 0x227   :  { %v1553_v63 = vpack.c.bf16 %v1373_v58, %v1369_v54  ;;  %v1555_v1 = vpack.c.bf16 %v1486_v61, %v1482_v31 }
 0x228   :  { %1616 = vst [vmem:[#allocation2 + $0x160] sm:$0xff] %v1552_v60  ;;  %1618 = vst [vmem:[#allocation2 + $0x170] sm:$0xff] %v1554_v62 }
 0x229   :  { %1617 = vst [vmem:[#allocation2 + $0x168] sm:$0xff] %v1553_v63  ;;  %v1376_v2 = vpop.f32.mrb[56].mxu0  ;;  %1619 = vst [vmem:[#allocation2 + $0x178] sm:$0xff] %v1555_v1  ;;  %v1489_v3 = vpop.f32.mrb[56].mxu1 }
 0x22a   :  { %v1378_v4 = vpop.f32.mrb[57].mxu0  ;;  %v1491_v6 = vpop.f32.mrb[57].mxu1  ;;  %v1377_v8 = vadd.f32 %v1376_v2, %v6991_v42  ;;  %v1490_v14 = vadd.f32 %v1489_v3, %v6996_v33 }
 0x22b   :  { %v1380_v7 = vpop.f32.mrb[58].mxu0  ;;  %v1493_v10 = vpop.f32.mrb[58].mxu1  ;;  %v1379_v15 = vadd.f32 %v1378_v4, %v7001_v40  ;;  %v1492_v19 = vadd.f32 %v1491_v6, %v7006_v45 }
 0x22c   :  { %v1381_v9 = vadd.f32 %v1380_v7, %v6991_v42  ;;  %v1382_v11 = vpop.f32.mrb[59].mxu0  ;;  %v1494_v16 = vadd.f32 %v1493_v10, %v6996_v33  ;;  %v1495_v18 = vpop.f32.mrb[59].mxu1 }
 0x22d   :  { %v1383_v17 = vadd.f32 %v1382_v11, %v7001_v40  ;;  %v1496_v23 = vadd.f32 %v1495_v18, %v7006_v45 }
 0x22e   :  { %v1560_v22 = vpack.c.bf16 %v1381_v9, %v1377_v8  ;;  %v1562_v24 = vpack.c.bf16 %v1494_v16, %v1490_v14 }
 0x22f   :  { %v1561_v26 = vpack.c.bf16 %v1383_v17, %v1379_v15  ;;  %v1563_v29 = vpack.c.bf16 %v1496_v23, %v1492_v19 }
 0x230   :  { %1624 = vst [vmem:[#allocation2 + $0x1a0] sm:$0xff] %v1560_v22  ;;  %1626 = vst [vmem:[#allocation2 + $0x1b0] sm:$0xff] %v1562_v24 }
 0x231   :  { %1625 = vst [vmem:[#allocation2 + $0x1a8] sm:$0xff] %v1561_v26  ;;  %v1386_v30 = vpop.f32.mrb[60].mxu0  ;;  %1627 = vst [vmem:[#allocation2 + $0x1b8] sm:$0xff] %v1563_v29  ;;  %v1499_v32 = vpop.f32.mrb[60].mxu1 }
 0x232   :  { %v1388_v34 = vpop.f32.mrb[61].mxu0  ;;  %v1501_v35 = vpop.f32.mrb[61].mxu1  ;;  %v1387_v57 = vadd.f32 %v1386_v30, %v6991_v42  ;;  %v1500_v41 = vadd.f32 %v1499_v32, %v6996_v33 }
 0x233   :  { %v1390_v36 = vpop.f32.mrb[62].mxu0  ;;  %v1503_v37 = vpop.f32.mrb[62].mxu1  ;;  %v1389_v25 = vadd.f32 %v1388_v34, %v7001_v40  ;;  %v1502_v47 = vadd.f32 %v1501_v35, %v7006_v45 }
 0x234   :  { %v1391_v5 = vadd.f32 %v1390_v36, %v6991_v42  ;;  %v1392_v39 = vpop.f32.mrb[63].mxu0  ;;  %v1504_v43 = vadd.f32 %v1503_v37, %v6996_v33  ;;  %v1505_v46 = vpop.f32.mrb[63].mxu1 }
 0x235   :  { %v1393_v44 = vadd.f32 %v1392_v39, %v7001_v40  ;;  %v1506_v50 = vadd.f32 %v1505_v46, %v7006_v45 }
 0x236   :  { %v1568_v48 = vpack.c.bf16 %v1391_v5, %v1387_v57  ;;  %v1570_v51 = vpack.c.bf16 %v1504_v43, %v1500_v41 }
 0x237   :  { %v1569_v52 = vpack.c.bf16 %v1393_v44, %v1389_v25  ;;  %v1571_v42 = vpack.c.bf16 %v1506_v50, %v1502_v47 }
 0x238   :  { %1632 = vst [vmem:[#allocation2 + $0x1e0] sm:$0xff] %v1568_v48  ;;  %1634 = vst [vmem:[#allocation2 + $0x1f0] sm:$0xff] %v1570_v51 }
 0x239   :  { %1633 = vst [vmem:[#allocation2 + $0x1e8] sm:$0xff] %v1569_v52  ;;  %1635 = vst [vmem:[#allocation2 + $0x1f8] sm:$0xff] %v1571_v42 }
 0x23a LB: > { %v1657_v33 = vld [vmem:[#allocation12] sm:$0xff]  ;;  %v1658_v60 = vld [vmem:[#allocation12 + $0x8] sm:$0xff]  ;;  %v1654_v47 = vld [vmem:[#allocation4 + $0x18] sm:$0xff]  ;;  %s6120_s2 = sshll.u32 %s6598_s8, 6  ;;  %s6122_s13 = sshll.u32 %s6598_s8, 4  ;;  %s6598_s8 = sphi %s7072_s8, %s1649_s8  }
 0x23b   : > { %v1661_v40 = vld [vmem:[#allocation12 + $0x20] sm:$0xff]  ;;  %v1662_v61 = vld [vmem:[#allocation12 + $0x28] sm:$0xff]  ;;  %s2599_s12 = scalar_lea.vmem [#allocation2], %s6120_s2  ;;  %s1650_s1 = ssub.s32 7, %s6598_s8 }
 0x23c   : > { %v1665_v53 = vld [vmem:[#allocation12 + $0x40] sm:$0xff]  ;;  %v5682_v54 = vcombine.high %v1657_v33, %v1661_v40  ;;  %v5681_v55 = vcombine.low %v1657_v33, %v1661_v40  ;;  %v5684_v63 = vcombine.high %v1658_v60, %v1662_v61  ;;  %v5683_v1 = vcombine.low %v1658_v60, %v1662_v61  ;;  %v1666_v2 = vld [vmem:[#allocation12 + $0x48] sm:$0xff]  ;;  %s2754_s14 = scalar_lea.vmem [#allocation3], %s6122_s13  ;;  %s6121_s15 = sshll.u32 %s1650_s1, 6 }
 0x23d   : > { %v1669_v45 = vld [vmem:[#allocation12 + $0x60] sm:$0xff]  ;;  %v1670_v3 = vld [vmem:[#allocation12 + $0x68] sm:$0xff]  ;;  %s2622_s16 = scalar_lea.vmem [#allocation2], %s6121_s15  ;;  %s6123_s17 = sshll.u32 %s1650_s1, 4 }
 0x23e   : > { %v5690_v58 = vcombine.high %v1665_v53, %v1669_v45  ;;  %v1673_v59 = vld [vmem:[#allocation12 + $0x80] sm:$0xff]  ;;  %2425 = vmatprep.subr.bf16.mxu0 %v5682_v54  ;;  %v5689_v62 = vcombine.low %v1665_v53, %v1669_v45  ;;  %v5692_v6 = vcombine.high %v1666_v2, %v1670_v3  ;;  %v1674_v7 = vld [vmem:[#allocation12 + $0x88] sm:$0xff]  ;;  %2468 = vmatprep.subr.bf16.mxu1 %v5684_v63  ;;  %s2759_s21 = scalar_lea.vmem [#allocation3], %s6123_s17  ;;  %s1649_s8 = sadd.s32 1, %s6598_s8  }
 0x23f   : > { %v1677_v31 = vld [vmem:[#allocation12 + $0xa0] sm:$0xff]  ;;  %2426 = vmatpush1.bf16.msra.mxu0 %v5681_v55  ;;  %v1678_v8 = vld [vmem:[#allocation12 + $0xa8] sm:$0xff]  ;;  %2469 = vmatpush1.bf16.msra.mxu1 %v5683_v1  ;;  %v5691_v11 = vcombine.low %v1666_v2, %v1670_v3  ;;  %p1646_p2 = scmp.ge.s32.totalorder %s1649_s8, 8  }
 0x240   : > { %2427 = vmatprep.subr.bf16.mxu0 %v5690_v58  ;;  %v5698_v4 = vcombine.high %v1673_v59, %v1677_v31  ;;  %v1681_v9 = vld [vmem:[#allocation12 + $0xc0] sm:$0xff]  ;;  %v5697_v14 = vcombine.low %v1673_v59, %v1677_v31  ;;  %2470 = vmatprep.subr.bf16.mxu1 %v5692_v6  ;;  %v5700_v15 = vcombine.high %v1674_v7, %v1678_v8  ;;  %v1682_v17 = vld [vmem:[#allocation12 + $0xc8] sm:$0xff]  ;;  %s7371_s22 = smov (%p1646_p2), 0  }
 0x241   : > { %v1685_v10 = vld [vmem:[#allocation12 + $0xe0] sm:$0xff]  ;;  %v1686_v18 = vld [vmem:[#allocation12 + $0xe8] sm:$0xff]  ;;  %v5699_v23 = vcombine.low %v1674_v7, %v1678_v8  ;;  %4167 = vst [vmem:[#allocation6] sm:$0xff] (%p1646_p2), %v6619_v0  ;;  %4168 = vst [vmem:[#allocation6 + $0x8] sm:$0xff] (%p1646_p2), %v6619_v0 }
 0x242   : > { %v5706_v16 = vcombine.high %v1681_v9, %v1685_v10  ;;  %v1689_v19 = vld [vmem:[#allocation12 + $0x100] sm:$0xff]  ;;  %v5705_v24 = vcombine.low %v1681_v9, %v1685_v10  ;;  %v5708_v26 = vcombine.high %v1682_v17, %v1686_v18  ;;  %v1690_v30 = vld [vmem:[#allocation12 + $0x108] sm:$0xff]  ;;  %v5707_v36 = vcombine.low %v1682_v17, %v1686_v18  ;;  %4169 = vst [vmem:[#allocation6 + $0x10] sm:$0xff] (%p1646_p2), %v6619_v0 }
 0x243   : > { %2428 = vmatpush1.bf16.msra.mxu0 %v5689_v62  ;;  %v1693_v22 = vld [vmem:[#allocation12 + $0x120] sm:$0xff]  ;;  %2471 = vmatpush1.bf16.msra.mxu1 %v5691_v11  ;;  %v1694_v32 = vld [vmem:[#allocation12 + $0x128] sm:$0xff]  ;;  %4170 = vst [vmem:[#allocation6 + $0x18] sm:$0xff] (%p1646_p2), %v6619_v0 }
 0x244   : > { %2429 = vmatprep.subr.bf16.mxu0 %v5698_v4  ;;  %2472 = vmatprep.subr.bf16.mxu1 %v5700_v15  ;;  %v5714_v29 = vcombine.high %v1689_v19, %v1693_v22  ;;  %v1697_v34 = vld [vmem:[#allocation12 + $0x140] sm:$0xff]  ;;  %v5713_v57 = vcombine.low %v1689_v19, %v1693_v22  ;;  %v5716_v5 = vcombine.high %v1690_v30, %v1694_v32  ;;  %v1698_v39 = vld [vmem:[#allocation12 + $0x148] sm:$0xff] }
 0x245   : > { %v1701_v35 = vld [vmem:[#allocation12 + $0x160] sm:$0xff]  ;;  %v1702_v41 = vld [vmem:[#allocation12 + $0x168] sm:$0xff]  ;;  %v5715_v44 = vcombine.low %v1690_v30, %v1694_v32 }
 0x246   : > { %v5722_v37 = vcombine.high %v1697_v34, %v1701_v35  ;;  %v1705_v25 = vld [vmem:[#allocation12 + $0x180] sm:$0xff]  ;;  %v1652_v46 = vld [vmem:[#allocation4 + $0x8] sm:$0xff]  ;;  %v5721_v48 = vcombine.low %v1697_v34, %v1701_v35  ;;  %v5724_v50 = vcombine.high %v1698_v39, %v1702_v41  ;;  %v5723_v54 = vcombine.low %v1698_v39, %v1702_v41 }
 0x247   : > { %2430 = vmatpush1.bf16.msra.mxu0 %v5697_v14  ;;  %2473 = vmatpush1.bf16.msra.mxu1 %v5699_v23  ;;  %v1709_v43 = vld [vmem:[#allocation12 + $0x1a0] sm:$0xff]  ;;  %v7077_v51 = vpack.c.bf16 %v1654_v47, %v1652_v46  ;;  %v1706_v42 = vld [vmem:[#allocation12 + $0x188] sm:$0xff] }
 0x248   : > { %2431 = vmatprep.subr.bf16.mxu0 %v5706_v16  ;;  %2474 = vmatprep.subr.bf16.mxu1 %v5708_v26  ;;  %v5730_v52 = vcombine.high %v1705_v25, %v1709_v43  ;;  %v1710_v33 = vld [vmem:[#allocation12 + $0x1a8] sm:$0xff]  ;;  %v1713_v40 = vld [vmem:[#allocation12 + $0x1c0] sm:$0xff]  ;;  %v5729_v55 = vcombine.low %v1705_v25, %v1709_v43 }
 0x249   : > { %v1717_v53 = vld [vmem:[#allocation12 + $0x1e0] sm:$0xff]  ;;  %2457 = vmatprep.mubr.bf16.mxu0 %v7077_v51  ;;  %2500 = vmatprep.mubr.bf16.mxu1 %v7077_v51  ;;  %v5732_v45 = vcombine.high %v1706_v42, %v1710_v33  ;;  %v1714_v59 = vld [vmem:[#allocation12 + $0x1c8] sm:$0xff]  ;;  %v5731_v62 = vcombine.low %v1706_v42, %v1710_v33 }
 0x24a   : > { %v5738_v58 = vcombine.high %v1713_v40, %v1717_v53  ;;  %v1718_v31 = vld [vmem:[#allocation12 + $0x1e8] sm:$0xff]  ;;  %v1721_v60 = vld [vmem:[#allocation12 + $0x200] sm:$0xff]  ;;  %v5737_v63 = vcombine.low %v1713_v40, %v1717_v53 }
 0x24b   : > { %2432 = vmatpush1.bf16.msra.mxu0 %v5705_v24  ;;  %2475 = vmatpush1.bf16.msra.mxu1 %v5707_v36  ;;  %v1725_v61 = vld [vmem:[#allocation12 + $0x220] sm:$0xff]  ;;  %v5740_v1 = vcombine.high %v1714_v59, %v1718_v31  ;;  %v1722_v3 = vld [vmem:[#allocation12 + $0x208] sm:$0xff]  ;;  %v5739_v8 = vcombine.low %v1714_v59, %v1718_v31 }
 0x24c   : > { %2433 = vmatprep.subr.bf16.mxu0 %v5714_v29  ;;  %2476 = vmatprep.subr.bf16.mxu1 %v5716_v5  ;;  %v5746_v2 = vcombine.high %v1721_v60, %v1725_v61  ;;  %v1726_v4 = vld [vmem:[#allocation12 + $0x228] sm:$0xff]  ;;  %v1729_v6 = vld [vmem:[#allocation12 + $0x240] sm:$0xff]  ;;  %v5745_v9 = vcombine.low %v1721_v60, %v1725_v61 }
 0x24d   : > { %v1733_v7 = vld [vmem:[#allocation12 + $0x260] sm:$0xff]  ;;  %v5748_v10 = vcombine.high %v1722_v3, %v1726_v4  ;;  %v1730_v14 = vld [vmem:[#allocation12 + $0x248] sm:$0xff]  ;;  %v5747_v18 = vcombine.low %v1722_v3, %v1726_v4 }
 0x24e   : > { %v5754_v11 = vcombine.high %v1729_v6, %v1733_v7  ;;  %v1734_v15 = vld [vmem:[#allocation12 + $0x268] sm:$0xff]  ;;  %v1737_v16 = vld [vmem:[#allocation12 + $0x280] sm:$0xff]  ;;  %v5753_v19 = vcombine.low %v1729_v6, %v1733_v7 }
 0x24f   : > { %2434 = vmatpush1.bf16.msra.mxu0 %v5713_v57  ;;  %2477 = vmatpush1.bf16.msra.mxu1 %v5715_v44  ;;  %v1741_v17 = vld [vmem:[#allocation12 + $0x2a0] sm:$0xff]  ;;  %v5756_v22 = vcombine.high %v1730_v14, %v1734_v15  ;;  %v1738_v24 = vld [vmem:[#allocation12 + $0x288] sm:$0xff]  ;;  %v5755_v32 = vcombine.low %v1730_v14, %v1734_v15 }
 0x250   : > { %2435 = vmatprep.subr.bf16.mxu0 %v5722_v37  ;;  %2478 = vmatprep.subr.bf16.mxu1 %v5724_v50  ;;  %v5762_v23 = vcombine.high %v1737_v16, %v1741_v17  ;;  %v1742_v26 = vld [vmem:[#allocation12 + $0x2a8] sm:$0xff]  ;;  %v1745_v29 = vld [vmem:[#allocation12 + $0x2c0] sm:$0xff]  ;;  %v5761_v34 = vcombine.low %v1737_v16, %v1741_v17  ;;  %v1653_v16 = vld [vmem:[#allocation4 + $0x10] sm:$0xff] }
 0x251   : > { %v1749_v30 = vld [vmem:[#allocation12 + $0x2e0] sm:$0xff]  ;;  %v5764_v35 = vcombine.high %v1738_v24, %v1742_v26  ;;  %v1746_v57 = vld [vmem:[#allocation12 + $0x2c8] sm:$0xff]  ;;  %v5763_v41 = vcombine.low %v1738_v24, %v1742_v26  ;;  %v1671_v24 = vld [vmem:[#allocation12 + $0x70] sm:$0xff] }
 0x252   : > { %v5770_v36 = vcombine.high %v1745_v29, %v1749_v30  ;;  %v1750_v5 = vld [vmem:[#allocation12 + $0x2e8] sm:$0xff]  ;;  %v1753_v37 = vld [vmem:[#allocation12 + $0x300] sm:$0xff]  ;;  %v5769_v25 = vcombine.low %v1745_v29, %v1749_v30 }
 0x253   : > { %2436 = vmatpush1.bf16.msra.mxu0 %v5721_v48  ;;  %2479 = vmatpush1.bf16.msra.mxu1 %v5723_v54  ;;  %v1757_v39 = vld [vmem:[#allocation12 + $0x320] sm:$0xff]  ;;  %v5772_v43 = vcombine.high %v1746_v57, %v1750_v5  ;;  %v1754_v46 = vld [vmem:[#allocation12 + $0x308] sm:$0xff] }
 0x254   : > { %2437 = vmatprep.subr.bf16.mxu0 %v5730_v52  ;;  %2480 = vmatprep.subr.bf16.mxu1 %v5732_v45  ;;  %v5778_v44 = vcombine.high %v1753_v37, %v1757_v39  ;;  %v1758_v47 = vld [vmem:[#allocation12 + $0x328] sm:$0xff]  ;;  %v1761_v48 = vld [vmem:[#allocation12 + $0x340] sm:$0xff]  ;;  %v5771_v52 = vcombine.low %v1746_v57, %v1750_v5  ;;  %v5777_v42 = vcombine.low %v1753_v37, %v1757_v39  ;;  %v1675_v57 = vld [vmem:[#allocation12 + $0x90] sm:$0xff] }
 0x255   : > { %v1765_v50 = vld [vmem:[#allocation12 + $0x360] sm:$0xff]  ;;  %v5780_v33 = vcombine.high %v1754_v46, %v1758_v47  ;;  %v1762_v53 = vld [vmem:[#allocation12 + $0x348] sm:$0xff]  ;;  %v1679_v5 = vld [vmem:[#allocation12 + $0xb0] sm:$0xff] }
 0x256   : > { %v5786_v40 = vcombine.high %v1761_v48, %v1765_v50  ;;  %v1766_v54 = vld [vmem:[#allocation12 + $0x368] sm:$0xff]  ;;  %v1773_v45 = vld [vmem:[#allocation12 + $0x3a0] sm:$0xff]  ;;  %v5785_v59 = vcombine.low %v1761_v48, %v1765_v50  ;;  %v5701_v50 = vcombine.low %v1675_v57, %v1679_v5 }
 0x257   : > { %2438 = vmatpush1.bf16.msra.mxu0 %v5729_v55  ;;  %2481 = vmatpush1.bf16.msra.mxu1 %v5731_v62  ;;  %v1769_v55 = vld [vmem:[#allocation12 + $0x380] sm:$0xff]  ;;  %v5788_v31 = vcombine.high %v1762_v53, %v1766_v54  ;;  %v1770_v61 = vld [vmem:[#allocation12 + $0x388] sm:$0xff] }
 0x258   : > { %2439 = vmatprep.subr.bf16.mxu0 %v5738_v58  ;;  %2482 = vmatprep.subr.bf16.mxu1 %v5740_v1  ;;  %v5779_v58 = vcombine.low %v1754_v46, %v1758_v47  ;;  %v5794_v60 = vcombine.high %v1769_v55, %v1773_v45  ;;  %v1774_v62 = vld [vmem:[#allocation12 + $0x3a8] sm:$0xff]  ;;  %v1781_v1 = vld [vmem:[#allocation12 + $0x3e0] sm:$0xff]  ;;  %v5793_v3 = vcombine.low %v1769_v55, %v1773_v45  ;;  %v1683_v46 = vld [vmem:[#allocation12 + $0xd0] sm:$0xff] }
 0x259   : > { %v5796_v4 = vcombine.high %v1770_v61, %v1774_v62  ;;  %v1778_v7 = vld [vmem:[#allocation12 + $0x3c8] sm:$0xff]  ;;  %v1651_v15 = vld [vmem:[#allocation4] sm:$0xff]  ;;  %v1687_v47 = vld [vmem:[#allocation12 + $0xf0] sm:$0xff] }
 0x25a   : > { %v7081_v26 = vpack.c.bf16 %v1653_v16, %v1651_v15  ;;  %v5709_v45 = vcombine.low %v1683_v46, %v1687_v47  ;;  %v1712_v15 = vld [vmem:[#allocation12 + $0x1b8] sm:$0xff]  ;;  %v1715_v16 = vld [vmem:[#allocation12 + $0x1d0] sm:$0xff] }
 0x25b   : > { %2440 = vmatpush1.bf16.msra.mxu0 %v5737_v63  ;;  %2483 = vmatpush1.bf16.msra.mxu1 %v5739_v8  ;;  %v1777_v63 = vld [vmem:[#allocation12 + $0x3c0] sm:$0xff]  ;;  %v1782_v8 = vld [vmem:[#allocation12 + $0x3e8] sm:$0xff] }
 0x25c   : > { %2441 = vmatprep.subr.bf16.mxu0 %v5746_v2  ;;  %2484 = vmatprep.subr.bf16.mxu1 %v5748_v10  ;;  %v5787_v2 = vcombine.low %v1762_v53, %v1766_v54  ;;  %v5802_v6 = vcombine.high %v1777_v63, %v1781_v1  ;;  %v1663_v10 = vld [vmem:[#allocation12 + $0x30] sm:$0xff]  ;;  %v5801_v14 = vcombine.low %v1777_v63, %v1781_v1 }
 0x25d   : > { %v5804_v17 = vcombine.high %v1778_v7, %v1782_v8  ;;  %v5803_v29 = vcombine.low %v1778_v7, %v1782_v8  ;;  %v1691_v53 = vld [vmem:[#allocation12 + $0x110] sm:$0xff] }
 0x25e   : > { %v1695_v54 = vld [vmem:[#allocation12 + $0x130] sm:$0xff] }
 0x25f   : > { %2442 = vmatpush1.bf16.msra.mxu0 %v5745_v9  ;;  %2485 = vmatpush1.bf16.msra.mxu1 %v5747_v18  ;;  %v1659_v9 = vld [vmem:[#allocation12 + $0x10] sm:$0xff]  ;;  %v5717_v63 = vcombine.low %v1691_v53, %v1695_v54 }
 0x260   : > { %2443 = vmatprep.subr.bf16.mxu0 %v5754_v11  ;;  %2486 = vmatprep.subr.bf16.mxu1 %v5756_v22  ;;  %v5795_v11 = vcombine.low %v1770_v61, %v1774_v62  ;;  %v5686_v18 = vcombine.high %v1659_v9, %v1663_v10  ;;  %v1664_v22 = vld [vmem:[#allocation12 + $0x38] sm:$0xff]  ;;  %v5685_v30 = vcombine.low %v1659_v9, %v1663_v10  ;;  %v1703_v61 = vld [vmem:[#allocation12 + $0x170] sm:$0xff] }
 0x261   : > { %v1711_v7 = vld [vmem:[#allocation12 + $0x1b0] sm:$0xff] }
 0x263   : > { %2444 = vmatpush1.bf16.msra.mxu0 %v5753_v19  ;;  %2487 = vmatpush1.bf16.msra.mxu1 %v5755_v32  ;;  %v1660_v19 = vld [vmem:[#allocation12 + $0x18] sm:$0xff] }
 0x264   : > { %2445 = vmatprep.subr.bf16.mxu0 %v5762_v23  ;;  %2488 = vmatprep.subr.bf16.mxu1 %v5764_v35  ;;  %v1667_v23 = vld [vmem:[#allocation12 + $0x50] sm:$0xff]  ;;  %v5688_v32 = vcombine.high %v1660_v19, %v1664_v22  ;;  %v1668_v35 = vld [vmem:[#allocation12 + $0x58] sm:$0xff]  ;;  %v5687_v37 = vcombine.low %v1660_v19, %v1664_v22 }
 0x265   : > { %v5693_v39 = vcombine.low %v1667_v23, %v1671_v24 }
 0x267   : > { %2446 = vmatpush1.bf16.msra.mxu0 %v5761_v34  ;;  %2489 = vmatpush1.bf16.msra.mxu1 %v5763_v41  ;;  %v5694_v34 = vcombine.high %v1667_v23, %v1671_v24  ;;  %v1716_v24 = vld [vmem:[#allocation12 + $0x1d8] sm:$0xff] }
 0x268   : > { %2447 = vmatprep.subr.bf16.mxu0 %v5770_v36  ;;  %2490 = vmatprep.subr.bf16.mxu1 %v5772_v43  ;;  %v1672_v36 = vld [vmem:[#allocation12 + $0x78] sm:$0xff] }
 0x269   : > { %v5696_v41 = vcombine.high %v1668_v35, %v1672_v36  ;;  %v1676_v43 = vld [vmem:[#allocation12 + $0x98] sm:$0xff]  ;;  %v5695_v48 = vcombine.low %v1668_v35, %v1672_v36 }
 0x26b   : > { %2448 = vmatpush1.bf16.msra.mxu0 %v5769_v25  ;;  %2491 = vmatpush1.bf16.msra.mxu1 %v5771_v52  ;;  %v5702_v25 = vcombine.high %v1675_v57, %v1679_v5  ;;  %v1724_v5 = vld [vmem:[#allocation12 + $0x218] sm:$0xff] }
 0x26c   : > { %2449 = vmatprep.subr.bf16.mxu0 %v5778_v44  ;;  %2492 = vmatprep.subr.bf16.mxu1 %v5780_v33  ;;  %v1680_v44 = vld [vmem:[#allocation12 + $0xb8] sm:$0xff] }
 0x26d   : > { %v5704_v52 = vcombine.high %v1676_v43, %v1680_v44  ;;  %v1684_v33 = vld [vmem:[#allocation12 + $0xd8] sm:$0xff]  ;;  %v5703_v55 = vcombine.low %v1676_v43, %v1680_v44 }
 0x26f   : > { %2450 = vmatpush1.bf16.msra.mxu0 %v5777_v42  ;;  %2493 = vmatpush1.bf16.msra.mxu1 %v5779_v58  ;;  %v5710_v42 = vcombine.high %v1683_v46, %v1687_v47  ;;  %v1732_v47 = vld [vmem:[#allocation12 + $0x258] sm:$0xff] }
 0x270   : > { %2451 = vmatprep.subr.bf16.mxu0 %v5786_v40  ;;  %2494 = vmatprep.subr.bf16.mxu1 %v5788_v31  ;;  %v1688_v40 = vld [vmem:[#allocation12 + $0xf8] sm:$0xff] }
 0x271   : > { %v5712_v58 = vcombine.high %v1684_v33, %v1688_v40  ;;  %v1692_v31 = vld [vmem:[#allocation12 + $0x118] sm:$0xff]  ;;  %v5711_v62 = vcombine.low %v1684_v33, %v1688_v40 }
 0x273   : > { %2452 = vmatpush1.bf16.msra.mxu0 %v5785_v59  ;;  %2495 = vmatpush1.bf16.msra.mxu1 %v5787_v2  ;;  %v5718_v59 = vcombine.high %v1691_v53, %v1695_v54  ;;  %v1740_v54 = vld [vmem:[#allocation12 + $0x298] sm:$0xff] }
 0x274   : > { %2453 = vmatprep.subr.bf16.mxu0 %v5794_v60  ;;  %2496 = vmatprep.subr.bf16.mxu1 %v5796_v4  ;;  %v1699_v60 = vld [vmem:[#allocation12 + $0x150] sm:$0xff]  ;;  %v1704_v4 = vld [vmem:[#allocation12 + $0x178] sm:$0xff] }
 0x275   : > { %v5726_v2 = vcombine.high %v1699_v60, %v1703_v61  ;;  %v5725_v9 = vcombine.low %v1699_v60, %v1703_v61  ;;  %v1748_v61 = vld [vmem:[#allocation12 + $0x2d8] sm:$0xff] }
 0x277   : > { %2454 = vmatpush1.bf16.msra.mxu0 %v5793_v3  ;;  %2497 = vmatpush1.bf16.msra.mxu1 %v5795_v11  ;;  %v1700_v3 = vld [vmem:[#allocation12 + $0x158] sm:$0xff] }
 0x278   : > { %2455 = vmatprep.subr.bf16.mxu0 %v5802_v6  ;;  %2498 = vmatprep.subr.bf16.mxu1 %v5804_v17  ;;  %v1707_v6 = vld [vmem:[#allocation12 + $0x190] sm:$0xff]  ;;  %v5728_v10 = vcombine.high %v1700_v3, %v1704_v4 }
 0x279   : > { %v5734_v11 = vcombine.high %v1707_v6, %v1711_v7  ;;  %v1719_v17 = vld [vmem:[#allocation12 + $0x1f0] sm:$0xff]  ;;  %v5733_v19 = vcombine.low %v1707_v6, %v1711_v7  ;;  %v1756_v7 = vld [vmem:[#allocation12 + $0x318] sm:$0xff] }
 0x27a   : > { %v5742_v23 = vcombine.high %v1715_v16, %v1719_v17  ;;  %v5741_v35 = vcombine.low %v1715_v16, %v1719_v17  ;;  %v1764_v17 = vld [vmem:[#allocation12 + $0x358] sm:$0xff] }
 0x27b   : > { %2456 = vmatpush1.bf16.msra.mxu0 %v5801_v14  ;;  %2499 = vmatpush1.bf16.msra.mxu1 %v5803_v29  ;;  %v1708_v14 = vld [vmem:[#allocation12 + $0x198] sm:$0xff] }
 0x27c   : > { %2511 = vmatprep.subr.bf16.mxu0 %v5686_v18  ;;  %2554 = vmatprep.subr.bf16.mxu1 %v5688_v32  ;;  %v5727_v18 = vcombine.low %v1700_v3, %v1704_v4  ;;  %v5736_v22 = vcombine.high %v1708_v14, %v1712_v15  ;;  %v1720_v29 = vld [vmem:[#allocation12 + $0x1f8] sm:$0xff]  ;;  %v1727_v32 = vld [vmem:[#allocation12 + $0x230] sm:$0xff] }
 0x27d   : > { %v5744_v36 = vcombine.high %v1716_v24, %v1720_v29 }
 0x27e   : > { %2458 = vmatmul.mubr.bf16.vlgmr.msra.gmra.mrb[0].mxu0 %v7081_v26  ;;  %2501 = vmatmul.mubr.bf16.vlgmr.msra.gmra.mrb[0].mxu1 %v7081_v26 }
 0x27f   : > { %2512 = vmatpush1.bf16.msra.mxu0 %v5685_v30  ;;  %2543 = vmatprep.mubr.bf16.mxu0 %v7077_v51  ;;  %v1723_v30 = vld [vmem:[#allocation12 + $0x210] sm:$0xff] }
 0x280   : > { %2513 = vmatprep.subr.bf16.mxu0 %v5694_v34  ;;  %2555 = vmatpush1.bf16.msra.mxu1 %v5687_v37  ;;  %v5735_v34 = vcombine.low %v1708_v14, %v1712_v15  ;;  %v5750_v57 = vcombine.high %v1723_v30, %v1727_v32  ;;  %v1728_v37 = vld [vmem:[#allocation12 + $0x238] sm:$0xff]  ;;  %v5749_v43 = vcombine.low %v1723_v30, %v1727_v32 }
 0x281   : > { %2586 = vmatprep.mubr.bf16.mxu1 %v7077_v51  ;;  %2556 = vmatprep.subr.bf16.mxu1 %v5696_v41  ;;  %v1696_v51 = vld [vmem:[#allocation12 + $0x138] sm:$0xff]  ;;  %v1735_v41 = vld [vmem:[#allocation12 + $0x270] sm:$0xff]  ;;  %v5752_v44 = vcombine.high %v1724_v5, %v1728_v37 }
 0x282   : > { %v5720_v1 = vcombine.high %v1692_v31, %v1696_v51  ;;  %v5719_v8 = vcombine.low %v1692_v31, %v1696_v51  ;;  %v1772_v32 = vld [vmem:[#allocation12 + $0x398] sm:$0xff] }
 0x283   : > { %2514 = vmatpush1.bf16.msra.mxu0 %v5693_v39  ;;  %v1731_v39 = vld [vmem:[#allocation12 + $0x250] sm:$0xff] }
 0x284   : > { %2515 = vmatprep.subr.bf16.mxu0 %v5702_v25  ;;  %2557 = vmatpush1.bf16.msra.mxu1 %v5695_v48  ;;  %v5743_v25 = vcombine.low %v1716_v24, %v1720_v29  ;;  %v5758_v46 = vcombine.high %v1731_v39, %v1735_v41  ;;  %v1736_v48 = vld [vmem:[#allocation12 + $0x278] sm:$0xff]  ;;  %v5757_v33 = vcombine.low %v1731_v39, %v1735_v41 }
 0x285   : > { %2558 = vmatprep.subr.bf16.mxu1 %v5704_v52  ;;  %v1743_v52 = vld [vmem:[#allocation12 + $0x2b0] sm:$0xff]  ;;  %v5760_v40 = vcombine.high %v1732_v47, %v1736_v48  ;;  %v1780_v41 = vld [vmem:[#allocation12 + $0x3d8] sm:$0xff] }
 0x287   : > { %2516 = vmatpush1.bf16.msra.mxu0 %v5701_v50  ;;  %v1739_v50 = vld [vmem:[#allocation12 + $0x290] sm:$0xff] }
 0x288   : > { %2517 = vmatprep.subr.bf16.mxu0 %v5710_v42  ;;  %2559 = vmatpush1.bf16.msra.mxu1 %v5703_v55  ;;  %v5751_v42 = vcombine.low %v1724_v5, %v1728_v37  ;;  %v5766_v53 = vcombine.high %v1739_v50, %v1743_v52  ;;  %v1744_v55 = vld [vmem:[#allocation12 + $0x2b8] sm:$0xff]  ;;  %v5765_v31 = vcombine.low %v1739_v50, %v1743_v52  ;;  %v2601_v50 = vld [vmem:[%s2599_s12 + $0x8] sm:$0xff] }
 0x289   : > { %2560 = vmatprep.subr.bf16.mxu1 %v5712_v58  ;;  %v1751_v58 = vld [vmem:[#allocation12 + $0x2f0] sm:$0xff]  ;;  %v5768_v51 = vcombine.high %v1740_v54, %v1744_v55 }
 0x28b   : > { %2518 = vmatpush1.bf16.msra.mxu0 %v5709_v45  ;;  %v1747_v45 = vld [vmem:[#allocation12 + $0x2d0] sm:$0xff] }
 0x28c   : > { %2519 = vmatprep.subr.bf16.mxu0 %v5718_v59  ;;  %2561 = vmatpush1.bf16.msra.mxu1 %v5711_v62  ;;  %v5759_v59 = vcombine.low %v1732_v47, %v1736_v48  ;;  %v5774_v60 = vcombine.high %v1747_v45, %v1751_v58  ;;  %v1752_v62 = vld [vmem:[#allocation12 + $0x2f8] sm:$0xff]  ;;  %v5773_v3 = vcombine.low %v1747_v45, %v1751_v58  ;;  %v2600_v48 = vld [vmem:[%s2599_s12] sm:$0xff] }
 0x28d   : > { %2562 = vmatprep.subr.bf16.mxu1 %v5720_v1  ;;  %v1759_v1 = vld [vmem:[#allocation12 + $0x330] sm:$0xff]  ;;  %v5776_v4 = vcombine.high %v1748_v61, %v1752_v62  ;;  %v2604_v52 = vunpack.c.l.bf16 %v2600_v48 }
 0x28f   : > { %2520 = vmatpush1.bf16.msra.mxu0 %v5717_v63  ;;  %v1755_v63 = vld [vmem:[#allocation12 + $0x310] sm:$0xff] }
 0x290   : > { %2521 = vmatprep.subr.bf16.mxu0 %v5726_v2  ;;  %2563 = vmatpush1.bf16.msra.mxu1 %v5719_v8  ;;  %v5767_v2 = vcombine.low %v1740_v54, %v1744_v55  ;;  %v5782_v6 = vcombine.high %v1755_v63, %v1759_v1  ;;  %v1760_v8 = vld [vmem:[#allocation12 + $0x338] sm:$0xff]  ;;  %v5781_v14 = vcombine.low %v1755_v63, %v1759_v1 }
 0x291   : > { %2564 = vmatprep.subr.bf16.mxu1 %v5728_v10  ;;  %v1767_v10 = vld [vmem:[#allocation12 + $0x370] sm:$0xff]  ;;  %v5784_v15 = vcombine.high %v1756_v7, %v1760_v8  ;;  %v2603_v54 = vld [vmem:[%s2599_s12 + $0x18] sm:$0xff] }
 0x293   : > { %2522 = vmatpush1.bf16.msra.mxu0 %v5725_v9  ;;  %v1763_v9 = vld [vmem:[#allocation12 + $0x350] sm:$0xff] }
 0x294   : > { %2523 = vmatprep.subr.bf16.mxu0 %v5734_v11  ;;  %2565 = vmatpush1.bf16.msra.mxu1 %v5727_v18  ;;  %v5775_v11 = vcombine.low %v1748_v61, %v1752_v62  ;;  %v5790_v16 = vcombine.high %v1763_v9, %v1767_v10  ;;  %v1768_v18 = vld [vmem:[#allocation12 + $0x378] sm:$0xff]  ;;  %v5789_v24 = vcombine.low %v1763_v9, %v1767_v10  ;;  %v2602_v62 = vld [vmem:[%s2599_s12 + $0x10] sm:$0xff] }
 0x295   : > { %2566 = vmatprep.subr.bf16.mxu1 %v5736_v22  ;;  %v1775_v22 = vld [vmem:[#allocation12 + $0x3b0] sm:$0xff]  ;;  %v5792_v29 = vcombine.high %v1764_v17, %v1768_v18 }
 0x297   : > { %2524 = vmatpush1.bf16.msra.mxu0 %v5733_v19  ;;  %v1771_v19 = vld [vmem:[#allocation12 + $0x390] sm:$0xff] }
 0x298   : > { %2525 = vmatprep.subr.bf16.mxu0 %v5742_v23  ;;  %2567 = vmatpush1.bf16.msra.mxu1 %v5735_v34  ;;  %v5783_v23 = vcombine.low %v1756_v7, %v1760_v8  ;;  %v5798_v30 = vcombine.high %v1771_v19, %v1775_v22  ;;  %v1776_v34 = vld [vmem:[#allocation12 + $0x3b8] sm:$0xff]  ;;  %v5797_v5 = vcombine.low %v1771_v19, %v1775_v22  ;;  %v2606_v8 = vunpack.c.l.bf16 %v2602_v62 }
 0x299   : > { %2568 = vmatprep.subr.bf16.mxu1 %v5744_v36  ;;  %v1783_v36 = vld [vmem:[#allocation12 + $0x3f0] sm:$0xff]  ;;  %v5800_v37 = vcombine.high %v1772_v32, %v1776_v34 }
 0x29b   : > { %2526 = vmatpush1.bf16.msra.mxu0 %v5741_v35  ;;  %v1779_v35 = vld [vmem:[#allocation12 + $0x3d0] sm:$0xff] }
 0x29c   : > { %2527 = vmatprep.subr.bf16.mxu0 %v5750_v57  ;;  %2569 = vmatpush1.bf16.msra.mxu1 %v5743_v25  ;;  %v5791_v57 = vcombine.low %v1764_v17, %v1768_v18  ;;  %v5806_v39 = vcombine.high %v1779_v35, %v1783_v36  ;;  %v1784_v25 = vld [vmem:[#allocation12 + $0x3f8] sm:$0xff] }
 0x29d   : > { %2570 = vmatprep.subr.bf16.mxu1 %v5752_v44  ;;  %v5805_v44 = vcombine.low %v1779_v35, %v1783_v36  ;;  %v5807_v47 = vcombine.low %v1780_v41, %v1784_v25 }
 0x29f   : > { %2528 = vmatpush1.bf16.msra.mxu0 %v5749_v43  ;;  %v5799_v43 = vcombine.low %v1772_v32, %v1776_v34 }
 0x2a0   : > { %2529 = vmatprep.subr.bf16.mxu0 %v5758_v46  ;;  %2571 = vmatpush1.bf16.msra.mxu1 %v5751_v42  ;;  %v5808_v46 = vcombine.high %v1780_v41, %v1784_v25  ;;  %v2605_v42 = vunpack.c.l.bf16 %v2601_v50 }
 0x2a1   : > { %2572 = vmatprep.subr.bf16.mxu1 %v5760_v40 }
 0x2a3   : > { %2530 = vmatpush1.bf16.msra.mxu0 %v5757_v33  ;;  %v2608_v33 = vunpack.c.h.bf16 %v2600_v48 }
 0x2a4   : > { %2531 = vmatprep.subr.bf16.mxu0 %v5766_v53  ;;  %2573 = vmatpush1.bf16.msra.mxu1 %v5759_v59  ;;  %v2609_v53 = vunpack.c.h.bf16 %v2601_v50 }
 0x2a5   : > { %2574 = vmatprep.subr.bf16.mxu1 %v5768_v51 }
 0x2a7   : > { %2532 = vmatpush1.bf16.msra.mxu0 %v5765_v31 }
 0x2a8   : > { %2533 = vmatprep.subr.bf16.mxu0 %v5774_v60  ;;  %2575 = vmatpush1.bf16.msra.mxu1 %v5767_v2 }
 0x2a9   : > { %2576 = vmatprep.subr.bf16.mxu1 %v5776_v4 }
 0x2ab   : > { %2534 = vmatpush1.bf16.msra.mxu0 %v5773_v3 }
 0x2ac   : > { %2535 = vmatprep.subr.bf16.mxu0 %v5782_v6  ;;  %2577 = vmatpush1.bf16.msra.mxu1 %v5775_v11  ;;  %v2611_v6 = vunpack.c.h.bf16 %v2603_v54  ;;  %v2610_v11 = vunpack.c.h.bf16 %v2602_v62 }
 0x2ad   : > { %2578 = vmatprep.subr.bf16.mxu1 %v5784_v15 }
 0x2af   : > { %2536 = vmatpush1.bf16.msra.mxu0 %v5781_v14 }
 0x2b0   : > { %2537 = vmatprep.subr.bf16.mxu0 %v5790_v16  ;;  %2579 = vmatpush1.bf16.msra.mxu1 %v5783_v23 }
 0x2b1   : > { %2580 = vmatprep.subr.bf16.mxu1 %v5792_v29 }
 0x2b3   : > { %2538 = vmatpush1.bf16.msra.mxu0 %v5789_v24 }
 0x2b4   : > { %2539 = vmatprep.subr.bf16.mxu0 %v5798_v30  ;;  %2581 = vmatpush1.bf16.msra.mxu1 %v5791_v57 }
 0x2b5   : > { %2582 = vmatprep.subr.bf16.mxu1 %v5800_v37  ;;  %v2643_v37 = vld [vmem:[#allocation5] sm:$0xff] }
 0x2b7   : > { %2540 = vmatpush1.bf16.msra.mxu0 %v5797_v5 }
 0x2b8   : > { %2541 = vmatprep.subr.bf16.mxu0 %v5806_v39  ;;  %2583 = vmatpush1.bf16.msra.mxu1 %v5799_v43  ;;  %v2645_v43 = vld [vmem:[#allocation5 + $0x10] sm:$0xff] }
 0x2b9   : > { %2584 = vmatprep.subr.bf16.mxu1 %v5808_v46 }
 0x2bb   : > { %2542 = vmatpush1.bf16.msra.mxu0 %v5805_v44 }
 0x2bc   : > { %2585 = vmatpush1.bf16.msra.mxu1 %v5807_v47 }
 0x2be   : > { %2544 = vmatmul.mubr.bf16.vlgmr.msra.gmra.mrb[4].mxu0 %v7081_v26 }
 0x2bf   : > { %2587 = vmatmul.mubr.bf16.vlgmr.msra.gmra.mrb[4].mxu1 %v7081_v26  ;;  %v2607_v26 = vunpack.c.l.bf16 %v2603_v54 }
 0x351   : > { %v2459_v40 = vpop.f32.mrb[0].mxu0  ;;  %v2502_v61 = vpop.f32.mrb[0].mxu1 }
 0x352   : > { %v2612_v55 = vadd.f32 %v2604_v52, %v2459_v40  ;;  %v2461_v45 = vpop.f32.mrb[1].mxu0  ;;  %v2504_v2 = vpop.f32.mrb[1].mxu1  ;;  %v2614_v15 = vadd.f32 %v2606_v8, %v2502_v61 }
 0x353   : > { %v2613_v58 = vadd.f32 %v2605_v42, %v2461_v45  ;;  %v2463_v59 = vpop.f32.mrb[2].mxu0  ;;  %v2506_v4 = vpop.f32.mrb[2].mxu1  ;;  %v2615_v10 = vadd.f32 %v2607_v26, %v2504_v2  ;;  %v2626_v2 = vld [vmem:[%s2622_s16 + $0x38] sm:$0xff] }
 0x354   : > { %v5813_v31 = vmul.f32 -1.442695, %v2612_v55  ;;  %v2616_v51 = vadd.f32 %v2608_v33, %v2463_v59  ;;  %v2465_v60 = vpop.f32.mrb[3].mxu0  ;;  %v2508_v9 = vpop.f32.mrb[3].mxu1  ;;  %v2618_v17 = vadd.f32 %v2610_v11, %v2506_v4 }
 0x355   : > { %v5815_v63 = vmul.f32 -1.442695, %v2613_v58  ;;  %v2617_v1 = vadd.f32 %v2609_v53, %v2465_v60  ;;  %v2619_v14 = vadd.f32 %v2611_v6, %v2508_v9  ;;  %v5817_v16 = vmul.f32 -1.442695, %v2615_v10  ;;  %v2624_v60 = vld [vmem:[%s2622_s16 + $0x28] sm:$0xff] }
 0x356   : > { %6212 = vpow2.f32 %v5813_v31  ;;  %v5814_v3 = vmul.f32 -1.442695, %v2616_v51  ;;  %v2623_v51 = vld [vmem:[%s2622_s16 + $0x20] sm:$0xff]  ;;  %v2628_v62 = vunpack.c.l.bf16 %v2624_v60 }
 0x357   : > { %6214 = vpow2.f32 %v5815_v63  ;;  %v5816_v7 = vmul.f32 -1.442695, %v2617_v1  ;;  %v5818_v18 = vmul.f32 -1.442695, %v2619_v14  ;;  %v2627_v61 = vunpack.c.l.bf16 %v2623_v51  ;;  %v2625_v14 = vld [vmem:[%s2622_s16 + $0x30] sm:$0xff] }
 0x358   : > { %6216 = vpow2.f32 %v5814_v3  ;;  %v2631_v26 = vunpack.c.h.bf16 %v2623_v51  ;;  %v2632_v1 = vunpack.c.h.bf16 %v2624_v60 }
 0x359   : > { %6218 = vpow2.f32 %v5816_v7 }
 0x35a   : > { %6220 = vtanh.f32 %v2614_v15  ;;  %v2630_v15 = vunpack.c.l.bf16 %v2626_v2 }
 0x35b   : > { %6222 = vpow2.f32 %v5817_v16 }
 0x35c   : > { %6224 = vtanh.f32 %v2618_v17 }
 0x35d   : > { %6226 = vpow2.f32 %v5818_v18 }
 0x360   : > { %v6213_v19 = vpop.eup %6212 }
 0x361   : > { %v6215_v22 = vpop.eup %6214  ;;  %v2653_v23 = vadd.f32 1.0, %v6213_v19 }
 0x362   : > { %v6217_v24 = vpop.eup %6216  ;;  %v2665_v29 = vadd.f32 1.0, %v6215_v22 }
 0x363   : > { %v6219_v30 = vpop.eup %6218  ;;  %6228 = vrcp.f32 %v2653_v23  ;;  %v2654_v32 = vadd.f32 1.0, %v6217_v24  ;;  %v2634_v23 = vunpack.c.h.bf16 %v2626_v2 }
 0x364   : > { %6230 = vrcp.f32 %v2665_v29  ;;  %v2666_v34 = vadd.f32 1.0, %v6219_v30  ;;  %v6221_v35 = vpop.eup %6220  ;;  %v2629_v29 = vunpack.c.l.bf16 %v2625_v14 }
 0x365   : > { %6232 = vrcp.f32 %v2654_v32  ;;  %v6223_v36 = vpop.eup %6222 }
 0x366   : > { %6234 = vrcp.f32 %v2666_v34  ;;  %v6225_v57 = vpop.eup %6224  ;;  %v2679_v41 = vadd.f32 1.0, %v6223_v36  ;;  %v2633_v34 = vunpack.c.h.bf16 %v2625_v14 }
 0x367   : > { %v6227_v5 = vpop.eup %6226 }
 0x368   : > { %v2680_v52 = vadd.f32 1.0, %v6227_v5  ;;  %6236 = vrcp.f32 %v2679_v41 }
 0x36d   : > { %v6229_v39 = vpop.eup %6228 }
 0x36e   : > { %v6231_v25 = vpop.eup %6230  ;;  %v2687_v44 = vmul.f32 %v6229_v39, %v6221_v35 }
 0x36f   : > { %v6233_v46 = vpop.eup %6232  ;;  %v2685_v47 = vmul.f32 %v6231_v25, %v2643_v37 }
 0x370   : > { %v6235_v48 = vpop.eup %6234  ;;  %v2688_v50 = vmul.f32 %v6233_v46, %v6225_v57 }
 0x371   : > { %v2686_v42 = vmul.f32 %v6235_v48, %v2645_v43  ;;  %v2689_v33 = vadd.f32 %v2687_v44, %v2685_v47 }
 0x372   : > { %v6237_v53 = vpop.eup %6236 }
 0x373   : > { %6238 = vtanh.f32 %v2689_v33  ;;  %2747 = vst [vmem:[#allocation5] sm:$0xff] %v2689_v33  ;;  %v2690_v40 = vadd.f32 %v2688_v50, %v2686_v42 }
 0x374   : > { %6240 = vrcp.f32 %v2680_v52  ;;  %4175 = vst [vmem:[#allocation5] sm:$0xff] (%p1646_p2), %v6619_v0 }
 0x375   : > { %6242 = vtanh.f32 %v2690_v40  ;;  %2749 = vst [vmem:[#allocation5 + $0x10] sm:$0xff] %v2690_v40  ;;  %v2644_v40 = vld [vmem:[#allocation5 + $0x8] sm:$0xff] }
 0x376   :  { %4177 = vst [vmem:[#allocation5 + $0x10] sm:$0xff] (%p1646_p2), %v6619_v0 }
 0x37d   : > { %v6239_v54 = vpop.eup %6238 }
 0x37e   : > { %v6241_v55 = vpop.eup %6240  ;;  %v2693_v45 = vmul.f32 %v6239_v54, %v6237_v53 }
 0x37f   : > { %v6243_v58 = vpop.eup %6242 }
 0x380   : > { %2743 = vst [vmem:[#allocation4] sm:$0xff] %v2693_v45  ;;  %v2694_v59 = vmul.f32 %v6243_v58, %v6241_v55 }
 0x381   :  { %4171 = vst [vmem:[#allocation4] sm:$0xff] (%p1646_p2), %v6619_v0 }
 0x382   : > { %2745 = vst [vmem:[#allocation4 + $0x10] sm:$0xff] %v2694_v59  ;;  %v2751_v31 = vpack.c.bf16 %v2694_v59, %v2693_v45  ;;  %v2646_v45 = vld [vmem:[#allocation5 + $0x18] sm:$0xff] }
 0x383   :  { %4173 = vst [vmem:[#allocation4 + $0x10] sm:$0xff] (%p1646_p2), %v6619_v0 }
 0x384   : > { %2755 = vst [vmem:[%s2754_s14] sm:$0xff] %v2751_v31 }
 0x391   : > { %v2545_v63 = vpop.f32.mrb[4].mxu0 }
 0x392   : > { %v2635_v3 = vadd.f32 %v2627_v61, %v2545_v63  ;;  %v2547_v4 = vpop.f32.mrb[5].mxu0  ;;  %v2588_v11 = vpop.f32.mrb[4].mxu1 }
 0x393   : > { %v2636_v6 = vadd.f32 %v2628_v62, %v2547_v4  ;;  %v2549_v7 = vpop.f32.mrb[6].mxu0  ;;  %v2590_v18 = vpop.f32.mrb[5].mxu1  ;;  %v2637_v36 = vadd.f32 %v2629_v29, %v2588_v11  ;;  %v2778_v11 = vld [vmem:[#allocation15 + $0x8] sm:$0xff] (%p1646_p2) }
 0x394   : > { %v5819_v8 = vmul.f32 -1.442695, %v2635_v3  ;;  %v2639_v9 = vadd.f32 %v2631_v26, %v2549_v7  ;;  %v2551_v10 = vpop.f32.mrb[7].mxu0  ;;  %v2592_v22 = vpop.f32.mrb[6].mxu1  ;;  %v2638_v32 = vadd.f32 %v2630_v15, %v2590_v18  ;;  %v2782_v15 = vld [vmem:[#allocation15 + $0x28] sm:$0xff] (%p1646_p2)  ;;  %v2789_v18 = vld [vmem:[#allocation15 + $0x60] sm:$0xff] (%p1646_p2) }
 0x395   : > { %v5821_v16 = vmul.f32 -1.442695, %v2636_v6  ;;  %v2640_v17 = vadd.f32 %v2632_v1, %v2551_v10  ;;  %v2594_v30 = vpop.f32.mrb[7].mxu1  ;;  %v2641_v5 = vadd.f32 %v2633_v34, %v2592_v22  ;;  %v2781_v10 = vld [vmem:[#allocation15 + $0x20] sm:$0xff] (%p1646_p2)  ;;  %v5831_v22 = vcombine.low (%p1646_p2), %v2778_v11, %v2782_v15  ;;  %v2790_v29 = vld [vmem:[#allocation15 + $0x68] sm:$0xff] (%p1646_p2) }
 0x396   : > { %6244 = vpow2.f32 %v5819_v8  ;;  %v5820_v19 = vmul.f32 -1.442695, %v2639_v9  ;;  %v2642_v35 = vadd.f32 %v2634_v23, %v2594_v30  ;;  %v5823_v57 = vmul.f32 -1.442695, %v2638_v32  ;;  %v2777_v9 = vld [vmem:[#allocation15] sm:$0xff] (%p1646_p2) }
 0x397   : > { %6246 = vpow2.f32 %v5821_v16  ;;  %v5822_v24 = vmul.f32 -1.442695, %v2640_v17  ;;  %v5830_v14 = vcombine.high (%p1646_p2), %v2777_v9, %v2781_v10  ;;  %v5829_v16 = vcombine.low (%p1646_p2), %v2777_v9, %v2781_v10  ;;  %v2785_v17 = vld [vmem:[#allocation15 + $0x40] sm:$0xff] (%p1646_p2) }
 0x398   : > { %6248 = vpow2.f32 %v5820_v19  ;;  %v5824_v37 = vmul.f32 -1.442695, %v2642_v35  ;;  %v5832_v19 = vcombine.high (%p1646_p2), %v2778_v11, %v2782_v15  ;;  %v5838_v23 = vcombine.high (%p1646_p2), %v2785_v17, %v2789_v18  ;;  %v2793_v30 = vld [vmem:[#allocation15 + $0x80] sm:$0xff] (%p1646_p2)  ;;  %v2794_v35 = vld [vmem:[#allocation15 + $0x88] sm:$0xff] (%p1646_p2) }
 0x399   : > { %6250 = vpow2.f32 %v5822_v24  ;;  %v2786_v24 = vld [vmem:[#allocation15 + $0x48] sm:$0xff] (%p1646_p2)  ;;  %3587 = vmatprep.subr.bf16.mxu0 (%p1646_p2), %v5830_v14  ;;  %v2797_v34 = vld [vmem:[#allocation15 + $0xa0] sm:$0xff] (%p1646_p2) }
 0x39a   : > { %6252 = vtanh.f32 %v2637_v36  ;;  %v5840_v32 = vcombine.high (%p1646_p2), %v2786_v24, %v2790_v29  ;;  %v2798_v36 = vld [vmem:[#allocation15 + $0xa8] sm:$0xff] (%p1646_p2)  ;;  %3700 = vmatprep.subr.bf16.mxu1 (%p1646_p2), %v5832_v19  ;;  %3588 = vmatpush1.bf16.msra.mxu0 (%p1646_p2), %v5829_v16  ;;  %v2833_v9 = vld [vmem:[#allocation15 + $0x1c0] sm:$0xff] (%p1646_p2) }
 0x39b   : > { %6254 = vpow2.f32 %v5823_v57  ;;  %v5837_v57 = vcombine.low (%p1646_p2), %v2785_v17, %v2789_v18  ;;  %3701 = vmatpush1.bf16.msra.mxu1 (%p1646_p2), %v5831_v22  ;;  %3589 = vmatprep.subr.bf16.mxu0 (%p1646_p2), %v5838_v23  ;;  %v2837_v10 = vld [vmem:[#allocation15 + $0x1e0] sm:$0xff] (%p1646_p2)  ;;  %v2834_v11 = vld [vmem:[#allocation15 + $0x1c8] sm:$0xff] (%p1646_p2) }
 0x39c   : > { %6256 = vtanh.f32 %v2641_v5  ;;  %v5846_v5 = vcombine.high (%p1646_p2), %v2793_v30, %v2797_v34  ;;  %3702 = vmatprep.subr.bf16.mxu1 (%p1646_p2), %v5840_v32  ;;  %v2838_v14 = vld [vmem:[#allocation15 + $0x1e8] sm:$0xff] (%p1646_p2)  ;;  %v5886_v17 = vcombine.high (%p1646_p2), %v2833_v9, %v2837_v10  ;;  %v2841_v19 = vld [vmem:[#allocation15 + $0x200] sm:$0xff] (%p1646_p2) }
 0x39d   : > { %6258 = vpow2.f32 %v5824_v37  ;;  %v5848_v37 = vcombine.high (%p1646_p2), %v2794_v35, %v2798_v36  ;;  %v5888_v18 = vcombine.high (%p1646_p2), %v2834_v11, %v2838_v14  ;;  %v2845_v22 = vld [vmem:[#allocation15 + $0x220] sm:$0xff] (%p1646_p2)  ;;  %v2842_v23 = vld [vmem:[#allocation15 + $0x208] sm:$0xff] (%p1646_p2) }
 0x39e   :  { %3590 = vmatpush1.bf16.msra.mxu0 (%p1646_p2), %v5837_v57  ;;  %v5894_v32 = vcombine.high (%p1646_p2), %v2841_v19, %v2845_v22  ;;  %v2850_v57 = vld [vmem:[#allocation15 + $0x248] sm:$0xff] (%p1646_p2) }
 0x39f   :  { %3591 = vmatprep.subr.bf16.mxu0 (%p1646_p2), %v5846_v5  ;;  %v5893_v5 = vcombine.low (%p1646_p2), %v2841_v19, %v2845_v22 }
 0x3a0   : > { %v6245_v39 = vpop.eup %6244 }
 0x3a1   : > { %v6247_v41 = vpop.eup %6246  ;;  %v2701_v25 = vadd.f32 1.0, %v6245_v39  ;;  %v2801_v39 = vld [vmem:[#allocation15 + $0xc0] sm:$0xff] (%p1646_p2) }
 0x3a2   : > { %v6249_v43 = vpop.eup %6248  ;;  %v2713_v44 = vadd.f32 1.0, %v6247_v41  ;;  %v2805_v41 = vld [vmem:[#allocation15 + $0xe0] sm:$0xff] (%p1646_p2) }
 0x3a3   : > { %v6251_v46 = vpop.eup %6250  ;;  %6260 = vrcp.f32 %v2701_v25  ;;  %v2702_v47 = vadd.f32 1.0, %v6249_v43  ;;  %v2802_v25 = vld [vmem:[#allocation15 + $0xc8] sm:$0xff] (%p1646_p2) }
 0x3a4   : > { %6262 = vrcp.f32 %v2713_v44  ;;  %v2714_v48 = vadd.f32 1.0, %v6251_v46  ;;  %v6253_v50 = vpop.eup %6252  ;;  %v2806_v43 = vld [vmem:[#allocation15 + $0xe8] sm:$0xff] (%p1646_p2)  ;;  %v5845_v44 = vcombine.low (%p1646_p2), %v2793_v30, %v2797_v34  ;;  %v5847_v46 = vcombine.low (%p1646_p2), %v2794_v35, %v2798_v36  ;;  %v2849_v35 = vld [vmem:[#allocation15 + $0x240] sm:$0xff] (%p1646_p2) }
 0x3a5   : > { %6264 = vrcp.f32 %v2702_v47  ;;  %v6255_v52 = vpop.eup %6254  ;;  %v5854_v47 = vcombine.high (%p1646_p2), %v2801_v39, %v2805_v41  ;;  %v5887_v30 = vcombine.low (%p1646_p2), %v2834_v11, %v2838_v14  ;;  %v2853_v36 = vld [vmem:[#allocation15 + $0x260] sm:$0xff] (%p1646_p2) }
 0x3a6   : > { %6266 = vrcp.f32 %v2714_v48  ;;  %v6257_v42 = vpop.eup %6256  ;;  %v2727_v54 = vadd.f32 1.0, %v6255_v52  ;;  %v5856_v48 = vcombine.high (%p1646_p2), %v2802_v25, %v2806_v43  ;;  %v2813_v52 = vld [vmem:[#allocation15 + $0x120] sm:$0xff] (%p1646_p2)  ;;  %3592 = vmatpush1.bf16.msra.mxu0 (%p1646_p2), %v5845_v44  ;;  %v2858_v44 = vld [vmem:[#allocation15 + $0x288] sm:$0xff] (%p1646_p2) }
 0x3a7   : > { %v6259_v33 = vpop.eup %6258  ;;  %3593 = vmatprep.subr.bf16.mxu0 (%p1646_p2), %v5854_v47  ;;  %v5901_v47 = vcombine.low (%p1646_p2), %v2849_v35, %v2853_v36  ;;  %v2889_v11 = vld [vmem:[#allocation15 + $0x380] sm:$0xff] (%p1646_p2) }
 0x3a8   : > { %v2728_v61 = vadd.f32 1.0, %v6259_v33  ;;  %6268 = vrcp.f32 %v2727_v54  ;;  %v2814_v33 = vld [vmem:[#allocation15 + $0x128] sm:$0xff] (%p1646_p2)  ;;  %v2893_v14 = vld [vmem:[#allocation15 + $0x3a0] sm:$0xff] (%p1646_p2) }
 0x3a9   :  { %v5942_v19 = vcombine.high (%p1646_p2), %v2889_v11, %v2893_v14 }
 0x3ad   : > { %v6261_v53 = vpop.eup %6260 }
 0x3ae   : > { %v6263_v55 = vpop.eup %6262  ;;  %v2735_v58 = vmul.f32 %v6261_v53, %v6253_v50  ;;  %v2809_v50 = vld [vmem:[#allocation15 + $0x100] sm:$0xff] (%p1646_p2)  ;;  %v5855_v53 = vcombine.low (%p1646_p2), %v2802_v25, %v2806_v43 }
 0x3af   : > { %v6265_v59 = vpop.eup %6264  ;;  %v2733_v31 = vmul.f32 %v6263_v55, %v2644_v40  ;;  %v5853_v40 = vcombine.low (%p1646_p2), %v2801_v39, %v2805_v41  ;;  %v5862_v54 = vcombine.high (%p1646_p2), %v2809_v50, %v2813_v52  ;;  %v5902_v39 = vcombine.high (%p1646_p2), %v2849_v35, %v2853_v36  ;;  %v2857_v25 = vld [vmem:[#allocation15 + $0x280] sm:$0xff] (%p1646_p2) }
 0x3b0   : > { %v6267_v51 = vpop.eup %6266  ;;  %v2736_v60 = vmul.f32 %v6265_v59, %v6257_v42  ;;  %v2810_v42 = vld [vmem:[#allocation15 + $0x108] sm:$0xff] (%p1646_p2)  ;;  %v2861_v43 = vld [vmem:[#allocation15 + $0x2a0] sm:$0xff] (%p1646_p2) }
 0x3b1   : > { %v2734_v62 = vmul.f32 %v6267_v51, %v2646_v45  ;;  %v2737_v26 = vadd.f32 %v2735_v58, %v2733_v31  ;;  %v5864_v55 = vcombine.high (%p1646_p2), %v2810_v42, %v2814_v33  ;;  %v2817_v45 = vld [vmem:[#allocation15 + $0x140] sm:$0xff] (%p1646_p2)  ;;  %v2818_v59 = vld [vmem:[#allocation15 + $0x148] sm:$0xff] (%p1646_p2)  ;;  %3594 = vmatpush1.bf16.msra.mxu0 (%p1646_p2), %v5853_v40  ;;  %v5861_v51 = vcombine.low (%p1646_p2), %v2809_v50, %v2813_v52 }
 0x3b2   : > { %v6269_v1 = vpop.eup %6268  ;;  %v2821_v58 = vld [vmem:[#allocation15 + $0x160] sm:$0xff] (%p1646_p2)  ;;  %v2822_v31 = vld [vmem:[#allocation15 + $0x168] sm:$0xff] (%p1646_p2)  ;;  %3595 = vmatprep.subr.bf16.mxu0 (%p1646_p2), %v5862_v54  ;;  %v5910_v50 = vcombine.high (%p1646_p2), %v2857_v25, %v2861_v43  ;;  %v5909_v54 = vcombine.low (%p1646_p2), %v2857_v25, %v2861_v43 }
 0x3b3   : > { %6270 = vtanh.f32 %v2737_v26  ;;  %2748 = vst [vmem:[#allocation5 + $0x8] sm:$0xff] %v2737_v26  ;;  %v2738_v63 = vadd.f32 %v2736_v60, %v2734_v62  ;;  %v5863_v60 = vcombine.low (%p1646_p2), %v2810_v42, %v2814_v33  ;;  %v5872_v62 = vcombine.high (%p1646_p2), %v2818_v59, %v2822_v31  ;;  %v2825_v26 = vld [vmem:[#allocation15 + $0x180] sm:$0xff] (%p1646_p2)  ;;  %v2866_v40 = vld [vmem:[#allocation15 + $0x2c8] sm:$0xff] (%p1646_p2) }
 0x3b4   : > { %6272 = vrcp.f32 %v2728_v61  ;;  %4176 = vst [vmem:[#allocation5 + $0x8] sm:$0xff] (%p1646_p2), %v6619_v0  ;;  %v5870_v61 = vcombine.high (%p1646_p2), %v2817_v45, %v2821_v58  ;;  %v2865_v42 = vld [vmem:[#allocation15 + $0x2c0] sm:$0xff] (%p1646_p2) }
 0x3b5   : > { %6274 = vtanh.f32 %v2738_v63  ;;  %2750 = vst [vmem:[#allocation5 + $0x18] sm:$0xff] %v2738_v63  ;;  %v2829_v63 = vld [vmem:[#allocation15 + $0x1a0] sm:$0xff] (%p1646_p2)  ;;  %3596 = vmatpush1.bf16.msra.mxu0 (%p1646_p2), %v5861_v51  ;;  %v2874_v51 = vld [vmem:[#allocation15 + $0x308] sm:$0xff] (%p1646_p2) }
 0x3b6   :  { %4178 = vst [vmem:[#allocation5 + $0x18] sm:$0xff] (%p1646_p2), %v6619_v0  ;;  %3597 = vmatprep.subr.bf16.mxu0 (%p1646_p2), %v5870_v61  ;;  %v5877_v15 = vcombine.low (%p1646_p2), %v2825_v26, %v2829_v63  ;;  %v2869_v33 = vld [vmem:[#allocation15 + $0x2e0] sm:$0xff] (%p1646_p2) }
 0x3b7   :  { %v5917_v61 = vcombine.low (%p1646_p2), %v2865_v42, %v2869_v33 }
 0x3bd   : > { %v6271_v2 = vpop.eup %6270 }
 0x3be   : > { %v6273_v3 = vpop.eup %6272  ;;  %v2741_v4 = vmul.f32 %v6271_v2, %v6269_v1  ;;  %1648 = sbr.rel (!%p1646_p2) target bundleno = 570 (0x23a), region = 112  ;;  %v2826_v1 = vld [vmem:[#allocation15 + $0x188] sm:$0xff] (%p1646_p2) }
 0x3bf   : > { %v6275_v6 = vpop.eup %6274  ;;  %v2830_v2 = vld [vmem:[#allocation15 + $0x1a8] sm:$0xff] (%p1646_p2) }
 0x3c0   : > { %2744 = vst [vmem:[#allocation4 + $0x8] sm:$0xff] %v2741_v4  ;;  %v2742_v7 = vmul.f32 %v6275_v6, %v6273_v3  ;;  %v5869_v3 = vcombine.low (%p1646_p2), %v2817_v45, %v2821_v58  ;;  %v5878_v6 = vcombine.high (%p1646_p2), %v2825_v26, %v2829_v63  ;;  %v5879_v16 = vcombine.low (%p1646_p2), %v2826_v1, %v2830_v2 }
 0x3c1   :  { %4172 = vst [vmem:[#allocation4 + $0x8] sm:$0xff] (%p1646_p2), %v6619_v0  ;;  %v5918_v45 = vcombine.high (%p1646_p2), %v2865_v42, %v2869_v33 }
 0x3c2   : > { %2746 = vst [vmem:[#allocation4 + $0x18] sm:$0xff] %v2742_v7  ;;  %v2756_v8 = vpack.c.bf16 %v2742_v7, %v2741_v4  ;;  %v5871_v4 = vcombine.low (%p1646_p2), %v2818_v59, %v2822_v31  ;;  %3598 = vmatpush1.bf16.msra.mxu0 (%p1646_p2), %v5869_v3  ;;  %v2873_v59 = vld [vmem:[#allocation15 + $0x300] sm:$0xff] (%p1646_p2)  ;;  %v2882_v3 = vld [vmem:[#allocation15 + $0x348] sm:$0xff] (%p1646_p2) }
 0x3c3   :  { %4174 = vst [vmem:[#allocation4 + $0x18] sm:$0xff] (%p1646_p2), %v6619_v0  ;;  %v5839_v0 = vcombine.low (%p1646_p2), %v2786_v24, %v2790_v29  ;;  %3599 = vmatprep.subr.bf16.mxu0 (%p1646_p2), %v5878_v6  ;;  %v2846_v24 = vld [vmem:[#allocation15 + $0x228] sm:$0xff] (%p1646_p2)  ;;  %v5885_v29 = vcombine.low (%p1646_p2), %v2833_v9, %v2837_v10  ;;  %v2877_v31 = vld [vmem:[#allocation15 + $0x320] sm:$0xff] (%p1646_p2) }
 0x3c4   : > { %2760 = vst [vmem:[%s2759_s21 + $0x8] sm:$0xff] %v2756_v8  ;;  %v5880_v8 = vcombine.high (%p1646_p2), %v2826_v1, %v2830_v2  ;;  %v5896_v34 = vcombine.high (%p1646_p2), %v2842_v23, %v2846_v24  ;;  %v5926_v26 = vcombine.high (%p1646_p2), %v2873_v59, %v2877_v31  ;;  %v2881_v1 = vld [vmem:[#allocation15 + $0x340] sm:$0xff] (%p1646_p2)  ;;  %v5925_v6 = vcombine.low (%p1646_p2), %v2873_v59, %v2877_v31 }
 0x3c5   :  { %3703 = vmatpush1.bf16.msra.mxu1 %v5839_v0  ;;  %v2854_v0 = vld [vmem:[#allocation15 + $0x268] sm:$0xff]  ;;  %v2885_v2 = vld [vmem:[#allocation15 + $0x360] sm:$0xff] }
 0x3c6   :  { %3704 = vmatprep.subr.bf16.mxu1 %v5848_v37  ;;  %3600 = vmatpush1.bf16.msra.mxu0 %v5877_v15  ;;  %v5895_v37 = vcombine.low %v2842_v23, %v2846_v24  ;;  %v5904_v41 = vcombine.high %v2850_v57, %v2854_v0  ;;  %v5934_v9 = vcombine.high %v2881_v1, %v2885_v2  ;;  %v2890_v15 = vld [vmem:[#allocation15 + $0x388] sm:$0xff]  ;;  %v2897_v23 = vld [vmem:[#allocation15 + $0x3c0] sm:$0xff] }
 0x3c7   :  { %3601 = vmatprep.subr.bf16.mxu0 %v5886_v17  ;;  %v5933_v17 = vcombine.low %v2881_v1, %v2885_v2  ;;  %v2901_v24 = vld [vmem:[#allocation15 + $0x3e0] sm:$0xff] }
 0x3c8   :  { %v5950_v35 = vcombine.high %v2897_v23, %v2901_v24 }
 0x3c9   :  { %3705 = vmatpush1.bf16.msra.mxu1 %v5847_v46  ;;  %v2862_v46 = vld [vmem:[#allocation15 + $0x2a8] sm:$0xff] }
 0x3ca   :  { %3706 = vmatprep.subr.bf16.mxu1 %v5856_v48  ;;  %3602 = vmatpush1.bf16.msra.mxu0 %v5885_v29  ;;  %v5903_v48 = vcombine.low %v2850_v57, %v2854_v0  ;;  %v5912_v52 = vcombine.high %v2858_v44, %v2862_v46  ;;  %v2898_v29 = vld [vmem:[#allocation15 + $0x3c8] sm:$0xff]  ;;  %v2779_v57 = vld [vmem:[#allocation15 + $0x10] sm:$0xff] }
 0x3cb   :  { %v7111_v7 = vld [vmem:[#allocation3 + $0x8] sm:$0xff]  ;;  %3603 = vmatprep.subr.bf16.mxu0 %v5894_v32  ;;  %v5941_v32 = vcombine.low %v2889_v11, %v2893_v14  ;;  %v2783_v0 = vld [vmem:[#allocation15 + $0x30] sm:$0xff]  ;;  %v7123_v1 = vld [vmem:[#allocation3 + $0x10] sm:$0xff] }
 0x3cc   :  { %3619 = vmatprep.mubr.bf16.mxu0 %v7111_v7  ;;  %3732 = vmatprep.mubr.bf16.mxu1 %v7111_v7  ;;  %v5834_v25 = vcombine.high %v2779_v57, %v2783_v0  ;;  %v2812_v11 = vld [vmem:[#allocation15 + $0x118] sm:$0xff] }
 0x3cd   :  { %3707 = vmatpush1.bf16.msra.mxu1 %v5855_v53  ;;  %v2870_v53 = vld [vmem:[#allocation15 + $0x2e8] sm:$0xff]  ;;  %v2816_v14 = vld [vmem:[#allocation15 + $0x138] sm:$0xff] }
 0x3ce   :  { %3708 = vmatprep.subr.bf16.mxu1 %v5864_v55  ;;  %3604 = vmatpush1.bf16.msra.mxu0 %v5893_v5  ;;  %v5911_v55 = vcombine.low %v2858_v44, %v2862_v46  ;;  %v5920_v58 = vcombine.high %v2866_v40, %v2870_v53  ;;  %v2780_v5 = vld [vmem:[#allocation15 + $0x18] sm:$0xff]  ;;  %v2787_v44 = vld [vmem:[#allocation15 + $0x50] sm:$0xff] }
 0x3cf   :  { %3605 = vmatprep.subr.bf16.mxu0 %v5902_v39  ;;  %v5949_v39 = vcombine.low %v2897_v23, %v2901_v24  ;;  %v2791_v46 = vld [vmem:[#allocation15 + $0x70] sm:$0xff]  ;;  %v2820_v23 = vld [vmem:[#allocation15 + $0x158] sm:$0xff] }
 0x3d0   :  { %v5842_v33 = vcombine.high %v2787_v44, %v2791_v46  ;;  %v5841_v59 = vcombine.low %v2787_v44, %v2791_v46  ;;  %v2824_v24 = vld [vmem:[#allocation15 + $0x178] sm:$0xff]  ;;  %v2835_v44 = vld [vmem:[#allocation15 + $0x1d0] sm:$0xff] }
 0x3d1   :  { %3709 = vmatpush1.bf16.msra.mxu1 %v5863_v60  ;;  %v2878_v60 = vld [vmem:[#allocation15 + $0x328] sm:$0xff]  ;;  %v2839_v46 = vld [vmem:[#allocation15 + $0x1f0] sm:$0xff] }
 0x3d2   :  { %3710 = vmatprep.subr.bf16.mxu1 %v5872_v62  ;;  %3606 = vmatpush1.bf16.msra.mxu0 %v5901_v47  ;;  %v5919_v62 = vcombine.low %v2866_v40, %v2870_v53  ;;  %v5928_v63 = vcombine.high %v2874_v51, %v2878_v60  ;;  %v2788_v47 = vld [vmem:[#allocation15 + $0x58] sm:$0xff]  ;;  %v2795_v53 = vld [vmem:[#allocation15 + $0x90] sm:$0xff] }
 0x3d3   :  { %3607 = vmatprep.subr.bf16.mxu0 %v5910_v50  ;;  %v7115_v50 = vld [vmem:[#allocation3] sm:$0xff] }
 0x3d5   :  { %3711 = vmatpush1.bf16.msra.mxu1 %v5871_v4  ;;  %v2886_v4 = vld [vmem:[#allocation15 + $0x368] sm:$0xff] }
 0x3d6   :  { %3712 = vmatprep.subr.bf16.mxu1 %v5880_v8  ;;  %3608 = vmatpush1.bf16.msra.mxu0 %v5909_v54  ;;  %v5927_v8 = vcombine.low %v2874_v51, %v2878_v60  ;;  %v5936_v10 = vcombine.high %v2882_v3, %v2886_v4  ;;  %v2799_v54 = vld [vmem:[#allocation15 + $0xb0] sm:$0xff] }
 0x3d7   :  { %3609 = vmatprep.subr.bf16.mxu0 %v5918_v45  ;;  %v2796_v45 = vld [vmem:[#allocation15 + $0x98] sm:$0xff]  ;;  %v5850_v51 = vcombine.high %v2795_v53, %v2799_v54  ;;  %v5849_v2 = vcombine.low %v2795_v53, %v2799_v54  ;;  %v2843_v54 = vld [vmem:[#allocation15 + $0x210] sm:$0xff] }
 0x3d9   :  { %3713 = vmatpush1.bf16.msra.mxu1 %v5879_v16  ;;  %v2894_v16 = vld [vmem:[#allocation15 + $0x3a8] sm:$0xff] }
 0x3da   :  { %3714 = vmatprep.subr.bf16.mxu1 %v5888_v18  ;;  %3610 = vmatpush1.bf16.msra.mxu0 %v5917_v61  ;;  %v5935_v18 = vcombine.low %v2882_v3, %v2886_v4  ;;  %v5944_v22 = vcombine.high %v2890_v15, %v2894_v16  ;;  %v2803_v61 = vld [vmem:[#allocation15 + $0xd0] sm:$0xff] }
 0x3db   :  { %3611 = vmatprep.subr.bf16.mxu0 %v5926_v26  ;;  %v2804_v26 = vld [vmem:[#allocation15 + $0xd8] sm:$0xff] }
 0x3dd   :  { %3715 = vmatpush1.bf16.msra.mxu1 %v5887_v30  ;;  %v2902_v30 = vld [vmem:[#allocation15 + $0x3e8] sm:$0xff] }
 0x3de   :  { %3716 = vmatprep.subr.bf16.mxu1 %v5896_v34  ;;  %3612 = vmatpush1.bf16.msra.mxu0 %v5925_v6  ;;  %v5943_v34 = vcombine.low %v2890_v15, %v2894_v16  ;;  %v5952_v36 = vcombine.high %v2898_v29, %v2902_v30 }
 0x3df   :  { %3613 = vmatprep.subr.bf16.mxu0 %v5934_v9  ;;  %v2815_v9 = vld [vmem:[#allocation15 + $0x130] sm:$0xff] }
 0x3e1   :  { %3717 = vmatpush1.bf16.msra.mxu1 %v5895_v37  ;;  %v2784_v37 = vld [vmem:[#allocation15 + $0x38] sm:$0xff] }
 0x3e2   :  { %3718 = vmatprep.subr.bf16.mxu1 %v5904_v41  ;;  %3614 = vmatpush1.bf16.msra.mxu0 %v5933_v17  ;;  %v5951_v41 = vcombine.low %v2898_v29, %v2902_v30  ;;  %v5836_v43 = vcombine.high %v2780_v5, %v2784_v37  ;;  %v5835_v42 = vcombine.low %v2780_v5, %v2784_v37  ;;  %v7131_v29 = vld [vmem:[#allocation3 + $0x20] sm:$0xff] }
 0x3e3   :  { %3615 = vmatprep.subr.bf16.mxu0 %v5942_v19  ;;  %v2819_v19 = vld [vmem:[#allocation15 + $0x150] sm:$0xff]  ;;  %v2828_v5 = vld [vmem:[#allocation15 + $0x198] sm:$0xff] }
 0x3e4   :  { %v2832_v37 = vld [vmem:[#allocation15 + $0x1b8] sm:$0xff] }
 0x3e5   :  { %3719 = vmatpush1.bf16.msra.mxu1 %v5903_v48  ;;  %v2792_v48 = vld [vmem:[#allocation15 + $0x78] sm:$0xff] }
 0x3e6   :  { %3720 = vmatprep.subr.bf16.mxu1 %v5912_v52  ;;  %3616 = vmatpush1.bf16.msra.mxu0 %v5941_v32  ;;  %v5833_v52 = vcombine.low %v2779_v57, %v2783_v0  ;;  %v5844_v40 = vcombine.high %v2788_v47, %v2792_v48  ;;  %v5843_v31 = vcombine.low %v2788_v47, %v2792_v48  ;;  %v2831_v57 = vld [vmem:[#allocation15 + $0x1b0] sm:$0xff]  ;;  %v2836_v47 = vld [vmem:[#allocation15 + $0x1d8] sm:$0xff] }
 0x3e7   :  { %3617 = vmatprep.subr.bf16.mxu0 %v5950_v35  ;;  %v5867_v32 = vcombine.low %v2812_v11, %v2816_v14  ;;  %v5876_v35 = vcombine.high %v2820_v23, %v2824_v24  ;;  %v7134_v0 = vld [vmem:[#allocation3 + $0x38] sm:$0xff]  ;;  %v2840_v48 = vld [vmem:[#allocation15 + $0x1f8] sm:$0xff] }
 0x3e8   :  { %v5892_v53 = vcombine.high %v2836_v47, %v2840_v48 }
 0x3e9   :  { %3721 = vmatpush1.bf16.msra.mxu1 %v5911_v55  ;;  %v7118_v55 = vld [vmem:[#allocation3 + $0x18] sm:$0xff] }
 0x3ea   :  { %3722 = vmatprep.subr.bf16.mxu1 %v5920_v58  ;;  %3618 = vmatpush1.bf16.msra.mxu0 %v5949_v39  ;;  %v2800_v58 = vld [vmem:[#allocation15 + $0xb8] sm:$0xff] }
 0x3eb   :  { %3813 = vmatprep.subr.bf16.mxu0 %v5834_v25  ;;  %v5852_v60 = vcombine.high %v2796_v45, %v2800_v58  ;;  %v5851_v3 = vcombine.low %v2796_v45, %v2800_v58  ;;  %v2847_v45 = vld [vmem:[#allocation15 + $0x230] sm:$0xff]  ;;  %v7142_v58 = vld [vmem:[#allocation3 + $0x48] sm:$0xff] }
 0x3ed   :  { %3723 = vmatpush1.bf16.msra.mxu1 %v5919_v62  ;;  %3620 = vmatmul.mubr.bf16.vlgmr.msra.gmra.mrb[0].mxu0 %v7115_v50  ;;  %v2807_v62 = vld [vmem:[#allocation15 + $0xf0] sm:$0xff] }
 0x3ee   :  { %3724 = vmatprep.subr.bf16.mxu1 %v5928_v63  ;;  %3814 = vmatpush1.bf16.msra.mxu0 %v5833_v52  ;;  %v2808_v63 = vld [vmem:[#allocation15 + $0xf8] sm:$0xff]  ;;  %v5858_v4 = vcombine.high %v2803_v61, %v2807_v62  ;;  %v5857_v15 = vcombine.low %v2803_v61, %v2807_v62  ;;  %v7139_v52 = vld [vmem:[#allocation3 + $0x30] sm:$0xff]  ;;  %v5898_v61 = vcombine.high %v2843_v54, %v2847_v45 }
 0x3ef   :  { %3815 = vmatprep.subr.bf16.mxu0 %v5842_v33  ;;  %3629 = vmatprep.mubr.bf16.mxu0 %v7118_v55  ;;  %v5860_v6 = vcombine.high %v2804_v26, %v2808_v63  ;;  %v5859_v16 = vcombine.low %v2804_v26, %v2808_v63  ;;  %v5883_v33 = vcombine.low %v2828_v5, %v2832_v37  ;;  %v2851_v26 = vld [vmem:[#allocation15 + $0x250] sm:$0xff] }
 0x3f0   :  { %v2855_v63 = vld [vmem:[#allocation15 + $0x270] sm:$0xff] }
 0x3f1   :  { %3725 = vmatpush1.bf16.msra.mxu1 %v5927_v8  ;;  %v2811_v8 = vld [vmem:[#allocation15 + $0x110] sm:$0xff] }
 0x3f2   :  { %3726 = vmatprep.subr.bf16.mxu1 %v5936_v10  ;;  %3816 = vmatpush1.bf16.msra.mxu0 %v5841_v59  ;;  %v7126_v10 = vld [vmem:[#allocation3 + $0x28] sm:$0xff]  ;;  %v5866_v17 = vcombine.high %v2811_v8, %v2815_v9  ;;  %v5865_v30 = vcombine.low %v2811_v8, %v2815_v9  ;;  %v2844_v59 = vld [vmem:[#allocation15 + $0x218] sm:$0xff]  ;;  %v5906_v9 = vcombine.high %v2851_v26, %v2855_v63 }
 0x3f3   :  { %3817 = vmatprep.subr.bf16.mxu0 %v5850_v51  ;;  %v5889_v51 = vcombine.low %v2835_v44, %v2839_v46 }
 0x3f5   :  { %3727 = vmatpush1.bf16.msra.mxu1 %v5935_v18  ;;  %3630 = vmatmul.mubr.bf16.gmra.mrb[4].mxu0 %v7123_v1  ;;  %v5868_v18 = vcombine.high %v2812_v11, %v2816_v14  ;;  %v2859_v14 = vld [vmem:[#allocation15 + $0x290] sm:$0xff] }
 0x3f6   :  { %3728 = vmatprep.subr.bf16.mxu1 %v5944_v22  ;;  %3818 = vmatpush1.bf16.msra.mxu0 %v5849_v2  ;;  %v2823_v22 = vld [vmem:[#allocation15 + $0x170] sm:$0xff]  ;;  %v2852_v2 = vld [vmem:[#allocation15 + $0x258] sm:$0xff] }
 0x3f7   :  { %3819 = vmatprep.subr.bf16.mxu0 %v5858_v4  ;;  %3639 = vmatprep.mubr.bf16.mxu0 %v7126_v10  ;;  %v5873_v39 = vcombine.low %v2819_v19, %v2823_v22  ;;  %v7147_v4 = vld [vmem:[#allocation3 + $0x40] sm:$0xff] }
 0x3f9   :  { %3729 = vmatpush1.bf16.msra.mxu1 %v5943_v34  ;;  %v5874_v34 = vcombine.high %v2819_v19, %v2823_v22  ;;  %v5905_v19 = vcombine.low %v2851_v26, %v2855_v63  ;;  %v2895_v26 = vld [vmem:[#allocation15 + $0x3b0] sm:$0xff] }
 0x3fa   :  { %3730 = vmatprep.subr.bf16.mxu1 %v5952_v36  ;;  %3820 = vmatpush1.bf16.msra.mxu0 %v5857_v15  ;;  %v2827_v36 = vld [vmem:[#allocation15 + $0x190] sm:$0xff] }
 0x3fb   :  { %3821 = vmatprep.subr.bf16.mxu0 %v5866_v17  ;;  %v5882_v25 = vcombine.high %v2827_v36, %v2831_v57  ;;  %v2863_v15 = vld [vmem:[#allocation15 + $0x2b0] sm:$0xff]  ;;  %v2860_v17 = vld [vmem:[#allocation15 + $0x298] sm:$0xff] }
 0x3fc   :  { %v7166_v63 = vld [vmem:[#allocation3 + $0x78] sm:$0xff] }
 0x3fd   :  { %3731 = vmatpush1.bf16.msra.mxu1 %v5951_v41  ;;  %3640 = vmatmul.mubr.bf16.gmra.mrb[8].mxu0 %v7131_v29  ;;  %v5875_v41 = vcombine.low %v2820_v23, %v2824_v24  ;;  %v5914_v23 = vcombine.high %v2859_v14, %v2863_v15 }
 0x3fe   :  { %3926 = vmatprep.subr.bf16.mxu1 %v5836_v43  ;;  %3822 = vmatpush1.bf16.msra.mxu0 %v5865_v30  ;;  %v5884_v43 = vcombine.high %v2828_v5, %v2832_v37  ;;  %v2867_v30 = vld [vmem:[#allocation15 + $0x2d0] sm:$0xff] }
 0x3ff   :  { %3823 = vmatprep.subr.bf16.mxu0 %v5874_v34  ;;  %3649 = vmatprep.mubr.bf16.mxu0 %v7134_v0  ;;  %v2868_v34 = vld [vmem:[#allocation15 + $0x2d8] sm:$0xff] }
 0x400   :  { %3733 = vmatmul.mubr.bf16.vlgmr.msra.gmra.mrb[0].mxu1 %v7115_v50 }
 0x401   :  { %3927 = vmatpush1.bf16.msra.mxu1 %v5835_v42  ;;  %3742 = vmatprep.mubr.bf16.mxu1 %v7118_v55  ;;  %v5881_v42 = vcombine.low %v2827_v36, %v2831_v57  ;;  %v7155_v36 = vld [vmem:[#allocation3 + $0x50] sm:$0xff]  ;;  %v5913_v57 = vcombine.low %v2859_v14, %v2863_v15  ;;  %v2899_v14 = vld [vmem:[#allocation15 + $0x3d0] sm:$0xff] }
 0x402   :  { %3928 = vmatprep.subr.bf16.mxu1 %v5844_v40  ;;  %3824 = vmatpush1.bf16.msra.mxu0 %v5873_v39  ;;  %v5890_v40 = vcombine.high %v2835_v44, %v2839_v46  ;;  %v2876_v44 = vld [vmem:[#allocation15 + $0x318] sm:$0xff]  ;;  %v2903_v15 = vld [vmem:[#allocation15 + $0x3f0] sm:$0xff] }
 0x403   :  { %3825 = vmatprep.subr.bf16.mxu0 %v5882_v25  ;;  %v2879_v25 = vld [vmem:[#allocation15 + $0x330] sm:$0xff]  ;;  %v2880_v46 = vld [vmem:[#allocation15 + $0x338] sm:$0xff] }
 0x405   :  { %3929 = vmatpush1.bf16.msra.mxu1 %v5843_v31  ;;  %3650 = vmatmul.mubr.bf16.gmra.mrb[12].mxu0 %v7139_v52  ;;  %v2848_v31 = vld [vmem:[#allocation15 + $0x238] sm:$0xff] }
 0x406   :  { %3930 = vmatprep.subr.bf16.mxu1 %v5852_v60  ;;  %3826 = vmatpush1.bf16.msra.mxu0 %v5881_v42  ;;  %v5891_v60 = vcombine.low %v2836_v47, %v2840_v48  ;;  %v5900_v62 = vcombine.high %v2844_v59, %v2848_v31  ;;  %v5899_v8 = vcombine.low %v2844_v59, %v2848_v31  ;;  %v7163_v59 = vld [vmem:[#allocation3 + $0x60] sm:$0xff] }
 0x407   :  { %3827 = vmatprep.subr.bf16.mxu0 %v5890_v40  ;;  %3659 = vmatprep.mubr.bf16.mxu0 %v7142_v58  ;;  %v2883_v40 = vld [vmem:[#allocation15 + $0x350] sm:$0xff] }
 0x408   :  { %3743 = vmatmul.mubr.bf16.gmra.mrb[4].mxu1 %v7123_v1 }
 0x409   :  { %3931 = vmatpush1.bf16.msra.mxu1 %v5851_v3  ;;  %3752 = vmatprep.mubr.bf16.mxu1 %v7126_v10  ;;  %v2856_v3 = vld [vmem:[#allocation15 + $0x278] sm:$0xff] }
 0x40a   :  { %3932 = vmatprep.subr.bf16.mxu1 %v5860_v6  ;;  %3828 = vmatpush1.bf16.msra.mxu0 %v5889_v51  ;;  %v5897_v6 = vcombine.low %v2843_v54, %v2847_v45  ;;  %v5908_v11 = vcombine.high %v2852_v2, %v2856_v3  ;;  %v5907_v22 = vcombine.low %v2852_v2, %v2856_v3  ;;  %v2884_v54 = vld [vmem:[#allocation15 + $0x358] sm:$0xff] }
 0x40b   :  { %3829 = vmatprep.subr.bf16.mxu0 %v5898_v61  ;;  %v2888_v45 = vld [vmem:[#allocation15 + $0x378] sm:$0xff]  ;;  %v5931_v51 = vcombine.low %v2876_v44, %v2880_v46 }
 0x40c   :  { %v5940_v61 = vcombine.high %v2884_v54, %v2888_v45  ;;  %v2892_v2 = vld [vmem:[#allocation15 + $0x398] sm:$0xff] }
 0x40d   :  { %3933 = vmatpush1.bf16.msra.mxu1 %v5859_v16  ;;  %3660 = vmatmul.mubr.bf16.gmra.mrb[16].mxu0 %v7147_v4  ;;  %v7150_v16 = vld [vmem:[#allocation3 + $0x58] sm:$0xff]  ;;  %v2896_v3 = vld [vmem:[#allocation15 + $0x3b8] sm:$0xff] }
 0x40e   :  { %3934 = vmatprep.subr.bf16.mxu1 %v5868_v18  ;;  %v2864_v18 = vld [vmem:[#allocation15 + $0x2b8] sm:$0xff]  ;;  %3830 = vmatpush1.bf16.msra.mxu0 %v5897_v6 }
 0x40f   :  { %3831 = vmatprep.subr.bf16.mxu0 %v5906_v9  ;;  %3669 = vmatprep.mubr.bf16.mxu0 %v7150_v16  ;;  %v5916_v24 = vcombine.high %v2860_v17, %v2864_v18  ;;  %v5915_v5 = vcombine.low %v2860_v17, %v2864_v18  ;;  %v2900_v17 = vld [vmem:[#allocation15 + $0x3d8] sm:$0xff] }
 0x410   :  { %3753 = vmatmul.mubr.bf16.gmra.mrb[8].mxu1 %v7131_v29  ;;  %v2904_v18 = vld [vmem:[#allocation15 + $0x3f8] sm:$0xff] }
 0x411   :  { %3935 = vmatpush1.bf16.msra.mxu1 %v5867_v32  ;;  %3762 = vmatprep.mubr.bf16.mxu1 %v7134_v0  ;;  %v2871_v32 = vld [vmem:[#allocation15 + $0x2f0] sm:$0xff] }
 0x412   :  { %3936 = vmatprep.subr.bf16.mxu1 %v5876_v35  ;;  %v2872_v35 = vld [vmem:[#allocation15 + $0x2f8] sm:$0xff]  ;;  %3832 = vmatpush1.bf16.msra.mxu0 %v5905_v19  ;;  %v5922_v37 = vcombine.high %v2867_v30, %v2871_v32  ;;  %v5921_v47 = vcombine.low %v2867_v30, %v2871_v32  ;;  %v2775_v19 = vld [vmem:[#allocation3 + $0x70] sm:$0xff]  ;;  %v5956_v30 = vcombine.high %v2900_v17, %v2904_v18 }
 0x413   :  { %3833 = vmatprep.subr.bf16.mxu0 %v5914_v23  ;;  %v5924_v39 = vcombine.high %v2868_v34, %v2872_v35  ;;  %v5923_v48 = vcombine.low %v2868_v34, %v2872_v35  ;;  %v5947_v23 = vcombine.low %v2892_v2, %v2896_v3  ;;  %v5953_v32 = vcombine.low %v2899_v14, %v2903_v15 }
 0x414   :  { %v5955_v34 = vcombine.low %v2900_v17, %v2904_v18 }
 0x415   :  { %3937 = vmatpush1.bf16.msra.mxu1 %v5875_v41  ;;  %v2875_v41 = vld [vmem:[#allocation15 + $0x310] sm:$0xff]  ;;  %3670 = vmatmul.mubr.bf16.gmra.mrb[20].mxu0 %v7155_v36 }
 0x416   :  { %3938 = vmatprep.subr.bf16.mxu1 %v5884_v43  ;;  %v7158_v43 = vld [vmem:[#allocation3 + $0x68] sm:$0xff]  ;;  %3834 = vmatpush1.bf16.msra.mxu0 %v5913_v57  ;;  %v5930_v42 = vcombine.high %v2875_v41, %v2879_v25  ;;  %v5929_v31 = vcombine.low %v2875_v41, %v2879_v25 }
 0x417   :  { %3835 = vmatprep.subr.bf16.mxu0 %v5922_v37  ;;  %3679 = vmatprep.mubr.bf16.mxu0 %v7158_v43 }
 0x418   :  { %3763 = vmatmul.mubr.bf16.gmra.mrb[12].mxu1 %v7139_v52 }
 0x419   :  { %3939 = vmatpush1.bf16.msra.mxu1 %v5883_v33  ;;  %3772 = vmatprep.mubr.bf16.mxu1 %v7142_v58  ;;  %v5932_v33 = vcombine.high %v2876_v44, %v2880_v46 }
 0x41a   :  { %3940 = vmatprep.subr.bf16.mxu1 %v5892_v53  ;;  %v2887_v53 = vld [vmem:[#allocation15 + $0x370] sm:$0xff]  ;;  %3836 = vmatpush1.bf16.msra.mxu0 %v5921_v47 }
 0x41b   :  { %3837 = vmatprep.subr.bf16.mxu0 %v5930_v42  ;;  %v5937_v6 = vcombine.low %v2883_v40, %v2887_v53 }
 0x41d   :  { %3941 = vmatpush1.bf16.msra.mxu1 %v5891_v60  ;;  %v5938_v60 = vcombine.high %v2883_v40, %v2887_v53  ;;  %3680 = vmatmul.mubr.bf16.gmra.mrb[24].mxu0 %v7163_v59 }
 0x41e   :  { %3942 = vmatprep.subr.bf16.mxu1 %v5900_v62  ;;  %v2891_v62 = vld [vmem:[#allocation15 + $0x390] sm:$0xff]  ;;  %3838 = vmatpush1.bf16.msra.mxu0 %v5929_v31 }
 0x41f   :  { %3839 = vmatprep.subr.bf16.mxu0 %v5938_v60  ;;  %v5946_v9 = vcombine.high %v2891_v62, %v2895_v26  ;;  %3689 = vmatprep.mubr.bf16.mxu0 %v7166_v63 }
 0x420   :  { %3773 = vmatmul.mubr.bf16.gmra.mrb[16].mxu1 %v7147_v4 }
 0x421   :  { %3943 = vmatpush1.bf16.msra.mxu1 %v5899_v8  ;;  %3782 = vmatprep.mubr.bf16.mxu1 %v7150_v16  ;;  %v5939_v8 = vcombine.low %v2884_v54, %v2888_v45 }
 0x422   :  { %3944 = vmatprep.subr.bf16.mxu1 %v5908_v11  ;;  %v5948_v11 = vcombine.high %v2892_v2, %v2896_v3  ;;  %3840 = vmatpush1.bf16.msra.mxu0 %v5937_v6 }
 0x423   :  { %3841 = vmatprep.subr.bf16.mxu0 %v5946_v9 }
 0x425   :  { %3945 = vmatpush1.bf16.msra.mxu1 %v5907_v22  ;;  %v5945_v22 = vcombine.low %v2891_v62, %v2895_v26  ;;  %3690 = vmatmul.mubr.bf16.gmra.mrb[28].mxu0 %v2775_v19 }
 0x426   :  { %3946 = vmatprep.subr.bf16.mxu1 %v5916_v24  ;;  %v5954_v24 = vcombine.high %v2899_v14, %v2903_v15  ;;  %3845 = vmatprep.mubr.bf16.mxu0 %v7111_v7 }
 0x427   :  { %3842 = vmatpush1.bf16.msra.mxu0 %v5945_v22 }
 0x428   :  { %3783 = vmatmul.mubr.bf16.gmra.mrb[20].mxu1 %v7155_v36  ;;  %3843 = vmatprep.subr.bf16.mxu0 %v5954_v24 }
 0x429   :  { %3947 = vmatpush1.bf16.msra.mxu1 %v5915_v5  ;;  %3792 = vmatprep.mubr.bf16.mxu1 %v7158_v43 }
 0x42a   :  { %3948 = vmatprep.subr.bf16.mxu1 %v5924_v39 }
 0x42b   :  { %3844 = vmatpush1.bf16.msra.mxu0 %v5953_v32 }
 0x42d   :  { %3949 = vmatpush1.bf16.msra.mxu1 %v5923_v48 }
 0x42e   :  { %3950 = vmatprep.subr.bf16.mxu1 %v5932_v33  ;;  %3846 = vmatmul.mubr.bf16.vlgmr.msra.gmra.mrb[32].mxu0 %v7115_v50 }
 0x42f   :  { %3855 = vmatprep.mubr.bf16.mxu0 %v7118_v55 }
 0x430   :  { %3793 = vmatmul.mubr.bf16.gmra.mrb[24].mxu1 %v7163_v59 }
 0x431   :  { %3951 = vmatpush1.bf16.msra.mxu1 %v5931_v51  ;;  %3802 = vmatprep.mubr.bf16.mxu1 %v7166_v63 }
 0x432   :  { %3952 = vmatprep.subr.bf16.mxu1 %v5940_v61 }
 0x435   :  { %3953 = vmatpush1.bf16.msra.mxu1 %v5939_v8 }
 0x436   :  { %3954 = vmatprep.subr.bf16.mxu1 %v5948_v11  ;;  %3856 = vmatmul.mubr.bf16.gmra.mrb[36].mxu0 %v7123_v1 }
 0x437   :  { %3865 = vmatprep.mubr.bf16.mxu0 %v7126_v10 }
 0x438   :  { %3803 = vmatmul.mubr.bf16.gmra.mrb[28].mxu1 %v2775_v19 }
 0x439   :  { %3955 = vmatpush1.bf16.msra.mxu1 %v5947_v23  ;;  %3958 = vmatprep.mubr.bf16.mxu1 %v7111_v7  ;;  %v7201_v7 = vld [vmem:[#allocation18] sm:$0xff] }
 0x43a   :  { %3956 = vmatprep.subr.bf16.mxu1 %v5956_v30 }
 0x43d   :  { %3957 = vmatpush1.bf16.msra.mxu1 %v5955_v34 }
 0x43e   :  { %3866 = vmatmul.mubr.bf16.gmra.mrb[40].mxu0 %v7131_v29 }
 0x43f   :  { %3875 = vmatprep.mubr.bf16.mxu0 %v7134_v0 }
 0x440   :  { %3959 = vmatmul.mubr.bf16.vlgmr.msra.gmra.mrb[32].mxu1 %v7115_v50  ;;  %v7206_v50 = vrot.slane %v7201_v7, %v298_v20 }
 0x441   :  { %3968 = vmatprep.mubr.bf16.mxu1 %v7118_v55 }
 0x446   :  { %3876 = vmatmul.mubr.bf16.gmra.mrb[44].mxu0 %v7139_v52 }
 0x447   :  { %3885 = vmatprep.mubr.bf16.mxu0 %v7142_v58 }
 0x448   :  { %3969 = vmatmul.mubr.bf16.gmra.mrb[36].mxu1 %v7123_v1  ;;  %v7211_v1 = vrot.slane %v7201_v7, %v306_v38 }
 0x449   :  { %3978 = vmatprep.mubr.bf16.mxu1 %v7126_v10  ;;  %v7216_v10 = vrot.slane %v7201_v7, %v302_v49 }
 0x44e   :  { %3886 = vmatmul.mubr.bf16.gmra.mrb[48].mxu0 %v7147_v4 }
 0x44f   :  { %3895 = vmatprep.mubr.bf16.mxu0 %v7150_v16 }
 0x450   :  { %3979 = vmatmul.mubr.bf16.gmra.mrb[40].mxu1 %v7131_v29 }
 0x451   :  { %3988 = vmatprep.mubr.bf16.mxu1 %v7134_v0 }
 0x456   :  { %3896 = vmatmul.mubr.bf16.gmra.mrb[52].mxu0 %v7155_v36 }
 0x457   :  { %3905 = vmatprep.mubr.bf16.mxu0 %v7158_v43 }
 0x458   :  { %3989 = vmatmul.mubr.bf16.gmra.mrb[44].mxu1 %v7139_v52  ;;  %v7221_v52 = vrot.slane %v7201_v7, %v310_v56 }
 0x459   :  { %3998 = vmatprep.mubr.bf16.mxu1 %v7142_v58 }
 0x45e   :  { %3906 = vmatmul.mubr.bf16.gmra.mrb[56].mxu0 %v7163_v59 }
 0x45f   :  { %3915 = vmatprep.mubr.bf16.mxu0 %v7166_v63 }
 0x460   :  { %3999 = vmatmul.mubr.bf16.gmra.mrb[48].mxu1 %v7147_v4 }
 0x461   :  { %4008 = vmatprep.mubr.bf16.mxu1 %v7150_v16 }
 0x466   :  { %3916 = vmatmul.mubr.bf16.gmra.mrb[60].mxu0 %v2775_v19 }
 0x468   :  { %4009 = vmatmul.mubr.bf16.gmra.mrb[52].mxu1 %v7155_v36 }
 0x469   :  { %4018 = vmatprep.mubr.bf16.mxu1 %v7158_v43 }
 0x470   :  { %4019 = vmatmul.mubr.bf16.gmra.mrb[56].mxu1 %v7163_v59 }
 0x471   :  { %4028 = vmatprep.mubr.bf16.mxu1 %v7166_v63 }
 0x478   :  { %4029 = vmatmul.mubr.bf16.gmra.mrb[60].mxu1 %v2775_v19 }
 0x4c0   :  { %v3621_v55 = vpop.f32.mrb[0].mxu0 }
 0x4c1   :  { %v3623_v0 = vpop.f32.mrb[1].mxu0  ;;  %v3622_v4 = vadd.f32 %v3621_v55, %v7206_v50 }
 0x4c2   :  { %v3625_v58 = vpop.f32.mrb[2].mxu0  ;;  %v3624_v49 = vadd.f32 %v3623_v0, %v7216_v10 }
 0x4c3   :  { %v3626_v16 = vadd.f32 %v3625_v58, %v7206_v50  ;;  %v3627_v35 = vpop.f32.mrb[3].mxu0 }
 0x4c4   :  { %v3628_v5 = vadd.f32 %v3627_v35, %v7216_v10 }
 0x4c5   :  { %v4039_v39 = vpack.c.bf16 %v3626_v16, %v3622_v4 }
 0x4c6   :  { %v4040_v43 = vpack.c.bf16 %v3628_v5, %v3624_v49 }
 0x4c7   :  { %4103 = vst [vmem:[#allocation2] sm:$0xff] %v4039_v39 }
 0x4c8   :  { %4104 = vst [vmem:[#allocation2 + $0x8] sm:$0xff] %v4040_v43  ;;  %v3631_v46 = vpop.f32.mrb[4].mxu0 }
 0x4c9   :  { %v3633_v48 = vpop.f32.mrb[5].mxu0  ;;  %v3632_v40 = vadd.f32 %v3631_v46, %v7206_v50 }
 0x4ca   :  { %v3635_v33 = vpop.f32.mrb[6].mxu0  ;;  %v3634_v31 = vadd.f32 %v3633_v48, %v7216_v10 }
 0x4cb   :  { %v3636_v53 = vadd.f32 %v3635_v33, %v7206_v50  ;;  %v3637_v45 = vpop.f32.mrb[7].mxu0 }
 0x4cc   :  { %v3638_v60 = vadd.f32 %v3637_v45, %v7216_v10 }
 0x4cd   :  { %v4047_v26 = vpack.c.bf16 %v3636_v53, %v3632_v40 }
 0x4ce   :  { %v4048_v3 = vpack.c.bf16 %v3638_v60, %v3634_v31 }
 0x4cf   :  { %4111 = vst [vmem:[#allocation2 + $0x40] sm:$0xff] %v4047_v26 }
 0x4d0   :  { %4112 = vst [vmem:[#allocation2 + $0x48] sm:$0xff] %v4048_v3  ;;  %v3641_v8 = vpop.f32.mrb[8].mxu0 }
 0x4d1   :  { %v3643_v11 = vpop.f32.mrb[9].mxu0  ;;  %v3642_v17 = vadd.f32 %v3641_v8, %v7206_v50 }
 0x4d2   :  { %v3645_v15 = vpop.f32.mrb[10].mxu0  ;;  %v3644_v24 = vadd.f32 %v3643_v11, %v7216_v10 }
 0x4d3   :  { %v3734_v29 = vpop.f32.mrb[0].mxu1  ;;  %v3646_v18 = vadd.f32 %v3645_v15, %v7206_v50  ;;  %v3647_v22 = vpop.f32.mrb[11].mxu0 }
 0x4d4   :  { %v3736_v20 = vpop.f32.mrb[1].mxu1  ;;  %v3735_v36 = vadd.f32 %v3734_v29, %v7211_v1  ;;  %v3648_v32 = vadd.f32 %v3647_v22, %v7216_v10 }
 0x4d5   :  { %v3738_v38 = vpop.f32.mrb[2].mxu1  ;;  %v3737_v56 = vadd.f32 %v3736_v20, %v7221_v52  ;;  %v4055_v29 = vpack.c.bf16 %v3646_v18, %v3642_v17 }
 0x4d6   :  { %v3739_v57 = vadd.f32 %v3738_v38, %v7211_v1  ;;  %v3740_v37 = vpop.f32.mrb[3].mxu1  ;;  %v4056_v58 = vpack.c.bf16 %v3648_v32, %v3644_v24 }
 0x4d7   :  { %v3741_v41 = vadd.f32 %v3740_v37, %v7221_v52  ;;  %4119 = vst [vmem:[#allocation2 + $0x80] sm:$0xff] %v4055_v29 }
 0x4d8   :  { %v4041_v25 = vpack.c.bf16 %v3739_v57, %v3735_v36  ;;  %4120 = vst [vmem:[#allocation2 + $0x88] sm:$0xff] %v4056_v58  ;;  %v3651_v16 = vpop.f32.mrb[12].mxu0 }
 0x4d9   :  { %v4042_v44 = vpack.c.bf16 %v3741_v41, %v3737_v56  ;;  %v3653_v35 = vpop.f32.mrb[13].mxu0  ;;  %v3652_v57 = vadd.f32 %v3651_v16, %v7206_v50 }
 0x4da   :  { %4105 = vst [vmem:[#allocation2 + $0x10] sm:$0xff] %v4041_v25  ;;  %v3655_v49 = vpop.f32.mrb[14].mxu0  ;;  %v3654_v41 = vadd.f32 %v3653_v35, %v7216_v10 }
 0x4db   :  { %4106 = vst [vmem:[#allocation2 + $0x18] sm:$0xff] %v4042_v44  ;;  %v3744_v47 = vpop.f32.mrb[4].mxu1  ;;  %v3656_v5 = vadd.f32 %v3655_v49, %v7206_v50  ;;  %v3657_v56 = vpop.f32.mrb[15].mxu0 }
 0x4dc   :  { %v3746_v42 = vpop.f32.mrb[5].mxu1  ;;  %v3745_v59 = vadd.f32 %v3744_v47, %v7211_v1  ;;  %v3658_v43 = vadd.f32 %v3657_v56, %v7216_v10 }
 0x4dd   :  { %v3748_v54 = vpop.f32.mrb[6].mxu1  ;;  %v3747_v62 = vadd.f32 %v3746_v42, %v7221_v52  ;;  %v4063_v47 = vpack.c.bf16 %v3656_v5, %v3652_v57 }
 0x4de   :  { %v3749_v51 = vadd.f32 %v3748_v54, %v7211_v1  ;;  %v3750_v61 = vpop.f32.mrb[7].mxu1  ;;  %v4064_v33 = vpack.c.bf16 %v3658_v43, %v3654_v41 }
 0x4df   :  { %v3751_v63 = vadd.f32 %v3750_v61, %v7221_v52  ;;  %4127 = vst [vmem:[#allocation2 + $0xc0] sm:$0xff] %v4063_v47 }
 0x4e0   :  { %v4049_v2 = vpack.c.bf16 %v3749_v51, %v3745_v59  ;;  %4128 = vst [vmem:[#allocation2 + $0xc8] sm:$0xff] %v4064_v33  ;;  %v3661_v53 = vpop.f32.mrb[16].mxu0 }
 0x4e1   :  { %v4050_v6 = vpack.c.bf16 %v3751_v63, %v3747_v62  ;;  %v3663_v45 = vpop.f32.mrb[17].mxu0  ;;  %v3662_v51 = vadd.f32 %v3661_v53, %v7206_v50 }
 0x4e2   :  { %4113 = vst [vmem:[#allocation2 + $0x50] sm:$0xff] %v4049_v2  ;;  %v3665_v31 = vpop.f32.mrb[18].mxu0  ;;  %v3664_v63 = vadd.f32 %v3663_v45, %v7216_v10 }
 0x4e3   :  { %4114 = vst [vmem:[#allocation2 + $0x58] sm:$0xff] %v4050_v6  ;;  %v3754_v9 = vpop.f32.mrb[8].mxu1  ;;  %v3666_v60 = vadd.f32 %v3665_v31, %v7206_v50  ;;  %v3667_v62 = vpop.f32.mrb[19].mxu0 }
 0x4e4   :  { %v3756_v14 = vpop.f32.mrb[9].mxu1  ;;  %v3755_v23 = vadd.f32 %v3754_v9, %v7211_v1  ;;  %v3668_v3 = vadd.f32 %v3667_v62, %v7216_v10 }
 0x4e5   :  { %v3758_v19 = vpop.f32.mrb[10].mxu1  ;;  %v3757_v55 = vadd.f32 %v3756_v14, %v7221_v52  ;;  %v4071_v9 = vpack.c.bf16 %v3666_v60, %v3662_v51 }
 0x4e6   :  { %v3759_v30 = vadd.f32 %v3758_v19, %v7211_v1  ;;  %v3760_v34 = vpop.f32.mrb[11].mxu1  ;;  %v4072_v15 = vpack.c.bf16 %v3668_v3, %v3664_v63 }
 0x4e7   :  { %v3761_v0 = vadd.f32 %v3760_v34, %v7221_v52  ;;  %4135 = vst [vmem:[#allocation2 + $0x100] sm:$0xff] %v4071_v9 }
 0x4e8   :  { %v4057_v20 = vpack.c.bf16 %v3759_v30, %v3755_v23  ;;  %4136 = vst [vmem:[#allocation2 + $0x108] sm:$0xff] %v4072_v15  ;;  %v3671_v18 = vpop.f32.mrb[20].mxu0 }
 0x4e9   :  { %v4058_v4 = vpack.c.bf16 %v3761_v0, %v3757_v55  ;;  %v3673_v22 = vpop.f32.mrb[21].mxu0  ;;  %v3672_v30 = vadd.f32 %v3671_v18, %v7206_v50 }
 0x4ea   :  { %4121 = vst [vmem:[#allocation2 + $0x90] sm:$0xff] %v4057_v20  ;;  %v3675_v24 = vpop.f32.mrb[22].mxu0  ;;  %v3674_v0 = vadd.f32 %v3673_v22, %v7216_v10 }
 0x4eb   :  { %4122 = vst [vmem:[#allocation2 + $0x98] sm:$0xff] %v4058_v4  ;;  %v3764_v38 = vpop.f32.mrb[12].mxu1  ;;  %v3676_v32 = vadd.f32 %v3675_v24, %v7206_v50  ;;  %v3677_v55 = vpop.f32.mrb[23].mxu0 }
 0x4ec   :  { %v3766_v36 = vpop.f32.mrb[13].mxu1  ;;  %v3765_v39 = vadd.f32 %v3764_v38, %v7211_v1  ;;  %v3678_v58 = vadd.f32 %v3677_v55, %v7216_v10 }
 0x4ed   :  { %v3768_v37 = vpop.f32.mrb[14].mxu1  ;;  %v3767_v46 = vadd.f32 %v3766_v36, %v7221_v52  ;;  %v4079_v38 = vpack.c.bf16 %v3676_v32, %v3672_v30  ;;  %v7290_v30 = vrot.slane %v7201_v7, %v314_v21  ;;  %v7305_v21 = vrot.slane %v7201_v7, %v326_v12 }
 0x4ee   :  { %v3769_v25 = vadd.f32 %v3768_v37, %v7211_v1  ;;  %v3770_v44 = vpop.f32.mrb[15].mxu1  ;;  %v4080_v49 = vpack.c.bf16 %v3678_v58, %v3674_v0 }
 0x4ef   :  { %v3771_v48 = vadd.f32 %v3770_v44, %v7221_v52  ;;  %4143 = vst [vmem:[#allocation2 + $0x140] sm:$0xff] %v4079_v38 }
 0x4f0   :  { %v4065_v42 = vpack.c.bf16 %v3769_v25, %v3765_v39  ;;  %4144 = vst [vmem:[#allocation2 + $0x148] sm:$0xff] %v4080_v49  ;;  %v3681_v5 = vpop.f32.mrb[24].mxu0 }
 0x4f1   :  { %v4066_v40 = vpack.c.bf16 %v3771_v48, %v3767_v46  ;;  %v3683_v56 = vpop.f32.mrb[25].mxu0  ;;  %v3682_v25 = vadd.f32 %v3681_v5, %v7206_v50 }
 0x4f2   :  { %4129 = vst [vmem:[#allocation2 + $0xd0] sm:$0xff] %v4065_v42  ;;  %v3685_v41 = vpop.f32.mrb[26].mxu0  ;;  %v3684_v48 = vadd.f32 %v3683_v56, %v7216_v10 }
 0x4f3   :  { %4130 = vst [vmem:[#allocation2 + $0xd8] sm:$0xff] %v4066_v40  ;;  %v3774_v54 = vpop.f32.mrb[16].mxu1  ;;  %v3686_v43 = vadd.f32 %v3685_v41, %v7206_v50  ;;  %v3687_v46 = vpop.f32.mrb[27].mxu0 }
 0x4f4   :  { %v3776_v59 = vpop.f32.mrb[17].mxu1  ;;  %v3775_v26 = vadd.f32 %v3774_v54, %v7211_v1  ;;  %v3688_v33 = vadd.f32 %v3687_v46, %v7216_v10 }
 0x4f5   :  { %v3778_v61 = vpop.f32.mrb[18].mxu1  ;;  %v3777_v8 = vadd.f32 %v3776_v59, %v7221_v52  ;;  %v4087_v54 = vpack.c.bf16 %v3686_v43, %v3682_v25 }
 0x4f6   :  { %v3779_v2 = vadd.f32 %v3778_v61, %v7211_v1  ;;  %v3780_v6 = vpop.f32.mrb[19].mxu1  ;;  %v4088_v31 = vpack.c.bf16 %v3688_v33, %v3684_v48 }
 0x4f7   :  { %v3781_v11 = vadd.f32 %v3780_v6, %v7221_v52  ;;  %4151 = vst [vmem:[#allocation2 + $0x180] sm:$0xff] %v4087_v54 }
 0x4f8   :  { %v4073_v14 = vpack.c.bf16 %v3779_v2, %v3775_v26  ;;  %4152 = vst [vmem:[#allocation2 + $0x188] sm:$0xff] %v4088_v31  ;;  %v3691_v60 = vpop.f32.mrb[28].mxu0 }
 0x4f9   :  { %v4074_v17 = vpack.c.bf16 %v3781_v11, %v3777_v8  ;;  %v3693_v62 = vpop.f32.mrb[29].mxu0  ;;  %v3692_v2 = vadd.f32 %v3691_v60, %v7206_v50 }
 0x4fa   :  { %4137 = vst [vmem:[#allocation2 + $0x110] sm:$0xff] %v4073_v14  ;;  %v3695_v63 = vpop.f32.mrb[30].mxu0  ;;  %v3694_v11 = vadd.f32 %v3693_v62, %v7216_v10 }
 0x4fb   :  { %4138 = vst [vmem:[#allocation2 + $0x118] sm:$0xff] %v4074_v17  ;;  %v3784_v19 = vpop.f32.mrb[20].mxu1  ;;  %v3696_v3 = vadd.f32 %v3695_v63, %v7206_v50  ;;  %v3697_v8 = vpop.f32.mrb[31].mxu0 }
 0x4fc   :  { %v3786_v23 = vpop.f32.mrb[21].mxu1  ;;  %v3785_v29 = vadd.f32 %v3784_v19, %v7211_v1  ;;  %v3698_v15 = vadd.f32 %v3697_v8, %v7216_v10  ;;  %v7295_v10 = vrot.slane %v7201_v7, %v322_v27 }
 0x4fd   :  { %v3788_v34 = vpop.f32.mrb[22].mxu1  ;;  %v3787_v16 = vadd.f32 %v3786_v23, %v7221_v52  ;;  %v4095_v19 = vpack.c.bf16 %v3696_v3, %v3692_v2 }
 0x4fe   :  { %v3789_v20 = vadd.f32 %v3788_v34, %v7211_v1  ;;  %v3790_v4 = vpop.f32.mrb[23].mxu1  ;;  %v4096_v24 = vpack.c.bf16 %v3698_v15, %v3694_v11 }
 0x4ff   :  { %v3791_v35 = vadd.f32 %v3790_v4, %v7221_v52  ;;  %4159 = vst [vmem:[#allocation2 + $0x1c0] sm:$0xff] %v4095_v19 }
 0x500   :  { %v4081_v36 = vpack.c.bf16 %v3789_v20, %v3785_v29  ;;  %4160 = vst [vmem:[#allocation2 + $0x1c8] sm:$0xff] %v4096_v24 }
 0x501   :  { %v4082_v57 = vpack.c.bf16 %v3791_v35, %v3787_v16 }
 0x502   :  { %4145 = vst [vmem:[#allocation2 + $0x150] sm:$0xff] %v4081_v36 }
 0x503   :  { %4146 = vst [vmem:[#allocation2 + $0x158] sm:$0xff] %v4082_v57  ;;  %v3794_v37 = vpop.f32.mrb[24].mxu1 }
 0x504   :  { %v3796_v39 = vpop.f32.mrb[25].mxu1  ;;  %v3795_v47 = vadd.f32 %v3794_v37, %v7211_v1 }
 0x505   :  { %v3798_v44 = vpop.f32.mrb[26].mxu1  ;;  %v3797_v53 = vadd.f32 %v3796_v39, %v7221_v52 }
 0x506   :  { %v3799_v42 = vadd.f32 %v3798_v44, %v7211_v1  ;;  %v3800_v40 = vpop.f32.mrb[27].mxu1 }
 0x507   :  { %v3801_v45 = vadd.f32 %v3800_v40, %v7221_v52 }
 0x508   :  { %v4089_v59 = vpack.c.bf16 %v3799_v42, %v3795_v47 }
 0x509   :  { %v4090_v51 = vpack.c.bf16 %v3801_v45, %v3797_v53 }
 0x50a   :  { %4153 = vst [vmem:[#allocation2 + $0x190] sm:$0xff] %v4089_v59 }
 0x50b   :  { %4154 = vst [vmem:[#allocation2 + $0x198] sm:$0xff] %v4090_v51  ;;  %v3804_v61 = vpop.f32.mrb[28].mxu1 }
 0x50c   :  { %v3806_v26 = vpop.f32.mrb[29].mxu1  ;;  %v3805_v9 = vadd.f32 %v3804_v61, %v7211_v1 }
 0x50d   :  { %v3808_v6 = vpop.f32.mrb[30].mxu1  ;;  %v3807_v18 = vadd.f32 %v3806_v26, %v7221_v52 }
 0x50e   :  { %v3809_v14 = vadd.f32 %v3808_v6, %v7211_v1  ;;  %v3810_v17 = vpop.f32.mrb[31].mxu1  ;;  %v3847_v1 = vpop.f32.mrb[32].mxu0 }
 0x50f   :  { %v3811_v22 = vadd.f32 %v3810_v17, %v7221_v52  ;;  %v7300_v52 = vrot.slane %v7201_v7, %v318_v28  ;;  %v3849_v34 = vpop.f32.mrb[33].mxu0  ;;  %v3848_v0 = vadd.f32 %v3847_v1, %v7290_v30 }
 0x510   :  { %v4097_v23 = vpack.c.bf16 %v3809_v14, %v3805_v9  ;;  %v3851_v29 = vpop.f32.mrb[34].mxu0 }
 0x511   :  { %v4098_v50 = vpack.c.bf16 %v3811_v22, %v3807_v18  ;;  %v3852_v27 = vadd.f32 %v3851_v29, %v7290_v30  ;;  %v3853_v58 = vpop.f32.mrb[35].mxu0  ;;  %v3850_v28 = vadd.f32 %v3849_v34, %v7300_v52 }
 0x512   :  { %4161 = vst [vmem:[#allocation2 + $0x1d0] sm:$0xff] %v4097_v23  ;;  %v3854_v38 = vadd.f32 %v3853_v58, %v7300_v52  ;;  %v3857_v5 = vpop.f32.mrb[36].mxu0 }
 0x513   :  { %4162 = vst [vmem:[#allocation2 + $0x1d8] sm:$0xff] %v4098_v50  ;;  %v3960_v32 = vpop.f32.mrb[32].mxu1  ;;  %v4043_v7 = vpack.c.bf16 %v3852_v27, %v3848_v0  ;;  %v3859_v56 = vpop.f32.mrb[37].mxu0  ;;  %v3858_v25 = vadd.f32 %v3857_v5, %v7290_v30 }
 0x514   :  { %v3962_v55 = vpop.f32.mrb[33].mxu1  ;;  %v3961_v4 = vadd.f32 %v3960_v32, %v7295_v10  ;;  %v4044_v49 = vpack.c.bf16 %v3854_v38, %v3850_v28  ;;  %v3861_v41 = vpop.f32.mrb[38].mxu0  ;;  %v3860_v48 = vadd.f32 %v3859_v56, %v7300_v52 }
 0x515   :  { %v3964_v20 = vpop.f32.mrb[34].mxu1  ;;  %v3963_v12 = vadd.f32 %v3962_v55, %v7305_v21  ;;  %4107 = vst [vmem:[#allocation2 + $0x20] sm:$0xff] %v4043_v7  ;;  %v3862_v43 = vadd.f32 %v3861_v41, %v7290_v30  ;;  %v3863_v46 = vpop.f32.mrb[39].mxu0 }
 0x516   :  { %v3965_v16 = vadd.f32 %v3964_v20, %v7295_v10  ;;  %v3966_v13 = vpop.f32.mrb[35].mxu1  ;;  %4108 = vst [vmem:[#allocation2 + $0x28] sm:$0xff] %v4044_v49  ;;  %v3864_v33 = vadd.f32 %v3863_v46, %v7300_v52  ;;  %v3867_v60 = vpop.f32.mrb[40].mxu0 }
 0x517   :  { %v3967_v35 = vadd.f32 %v3966_v13, %v7305_v21  ;;  %v4051_v54 = vpack.c.bf16 %v3862_v43, %v3858_v25  ;;  %v3869_v62 = vpop.f32.mrb[41].mxu0  ;;  %v3868_v2 = vadd.f32 %v3867_v60, %v7290_v30 }
 0x518   :  { %v4045_v36 = vpack.c.bf16 %v3965_v16, %v3961_v4  ;;  %v4052_v31 = vpack.c.bf16 %v3864_v33, %v3860_v48  ;;  %v3871_v63 = vpop.f32.mrb[42].mxu0  ;;  %v3870_v11 = vadd.f32 %v3869_v62, %v7300_v52 }
 0x519   :  { %v4046_v57 = vpack.c.bf16 %v3967_v35, %v3963_v12  ;;  %4115 = vst [vmem:[#allocation2 + $0x60] sm:$0xff] %v4051_v54  ;;  %v3872_v3 = vadd.f32 %v3871_v63, %v7290_v30  ;;  %v3873_v8 = vpop.f32.mrb[43].mxu0 }
 0x51a   :  { %4109 = vst [vmem:[#allocation2 + $0x30] sm:$0xff] %v4045_v36  ;;  %4116 = vst [vmem:[#allocation2 + $0x68] sm:$0xff] %v4052_v31  ;;  %v3874_v15 = vadd.f32 %v3873_v8, %v7300_v52  ;;  %v3877_v1 = vpop.f32.mrb[44].mxu0 }
 0x51b   :  { %4110 = vst [vmem:[#allocation2 + $0x38] sm:$0xff] %v4046_v57  ;;  %v3970_v37 = vpop.f32.mrb[36].mxu1  ;;  %v4059_v19 = vpack.c.bf16 %v3872_v3, %v3868_v2  ;;  %v3879_v34 = vpop.f32.mrb[45].mxu0  ;;  %v3878_v0 = vadd.f32 %v3877_v1, %v7290_v30 }
 0x51c   :  { %v3972_v39 = vpop.f32.mrb[37].mxu1  ;;  %v3971_v47 = vadd.f32 %v3970_v37, %v7295_v10  ;;  %v4060_v24 = vpack.c.bf16 %v3874_v15, %v3870_v11  ;;  %v3881_v29 = vpop.f32.mrb[46].mxu0  ;;  %v3880_v28 = vadd.f32 %v3879_v34, %v7300_v52 }
 0x51d   :  { %v3974_v44 = vpop.f32.mrb[38].mxu1  ;;  %v3973_v53 = vadd.f32 %v3972_v39, %v7305_v21  ;;  %4123 = vst [vmem:[#allocation2 + $0xa0] sm:$0xff] %v4059_v19  ;;  %v3882_v27 = vadd.f32 %v3881_v29, %v7290_v30  ;;  %v3883_v58 = vpop.f32.mrb[47].mxu0 }
 0x51e   :  { %v3975_v42 = vadd.f32 %v3974_v44, %v7295_v10  ;;  %v3976_v40 = vpop.f32.mrb[39].mxu1  ;;  %4124 = vst [vmem:[#allocation2 + $0xa8] sm:$0xff] %v4060_v24  ;;  %v3884_v38 = vadd.f32 %v3883_v58, %v7300_v52 }
 0x51f   :  { %v3977_v45 = vadd.f32 %v3976_v40, %v7305_v21  ;;  %v4067_v7 = vpack.c.bf16 %v3882_v27, %v3878_v0 }
 0x520   :  { %v4053_v59 = vpack.c.bf16 %v3975_v42, %v3971_v47  ;;  %v4068_v49 = vpack.c.bf16 %v3884_v38, %v3880_v28 }
 0x521   :  { %v4054_v51 = vpack.c.bf16 %v3977_v45, %v3973_v53  ;;  %4131 = vst [vmem:[#allocation2 + $0xe0] sm:$0xff] %v4067_v7  ;;  %v3887_v5 = vpop.f32.mrb[48].mxu0 }
 0x522   :  { %4117 = vst [vmem:[#allocation2 + $0x70] sm:$0xff] %v4053_v59  ;;  %4132 = vst [vmem:[#allocation2 + $0xe8] sm:$0xff] %v4068_v49  ;;  %v3889_v56 = vpop.f32.mrb[49].mxu0  ;;  %v3888_v25 = vadd.f32 %v3887_v5, %v7290_v30 }
 0x523   :  { %4118 = vst [vmem:[#allocation2 + $0x78] sm:$0xff] %v4054_v51  ;;  %v3980_v61 = vpop.f32.mrb[40].mxu1  ;;  %v3891_v41 = vpop.f32.mrb[50].mxu0  ;;  %v3890_v48 = vadd.f32 %v3889_v56, %v7300_v52 }
 0x524   :  { %v3982_v26 = vpop.f32.mrb[41].mxu1  ;;  %v3981_v9 = vadd.f32 %v3980_v61, %v7295_v10  ;;  %v3892_v43 = vadd.f32 %v3891_v41, %v7290_v30  ;;  %v3893_v46 = vpop.f32.mrb[51].mxu0 }
 0x525   :  { %v3984_v6 = vpop.f32.mrb[42].mxu1  ;;  %v3983_v18 = vadd.f32 %v3982_v26, %v7305_v21  ;;  %v3894_v33 = vadd.f32 %v3893_v46, %v7300_v52 }
 0x526   :  { %v3985_v14 = vadd.f32 %v3984_v6, %v7295_v10  ;;  %v3986_v17 = vpop.f32.mrb[43].mxu1  ;;  %v4075_v54 = vpack.c.bf16 %v3892_v43, %v3888_v25 }
 0x527   :  { %v3987_v22 = vadd.f32 %v3986_v17, %v7305_v21  ;;  %v4076_v31 = vpack.c.bf16 %v3894_v33, %v3890_v48 }
 0x528   :  { %v4061_v23 = vpack.c.bf16 %v3985_v14, %v3981_v9  ;;  %4139 = vst [vmem:[#allocation2 + $0x120] sm:$0xff] %v4075_v54 }
 0x529   :  { %v4062_v50 = vpack.c.bf16 %v3987_v22, %v3983_v18  ;;  %4140 = vst [vmem:[#allocation2 + $0x128] sm:$0xff] %v4076_v31  ;;  %v3897_v60 = vpop.f32.mrb[52].mxu0 }
 0x52a   :  { %4125 = vst [vmem:[#allocation2 + $0xb0] sm:$0xff] %v4061_v23  ;;  %v3899_v62 = vpop.f32.mrb[53].mxu0  ;;  %v3898_v2 = vadd.f32 %v3897_v60, %v7290_v30 }
 0x52b   :  { %4126 = vst [vmem:[#allocation2 + $0xb8] sm:$0xff] %v4062_v50  ;;  %v3990_v32 = vpop.f32.mrb[44].mxu1  ;;  %v3901_v63 = vpop.f32.mrb[54].mxu0  ;;  %v3900_v11 = vadd.f32 %v3899_v62, %v7300_v52 }
 0x52c   :  { %v3992_v55 = vpop.f32.mrb[45].mxu1  ;;  %v3991_v4 = vadd.f32 %v3990_v32, %v7295_v10  ;;  %v3902_v3 = vadd.f32 %v3901_v63, %v7290_v30  ;;  %v3903_v8 = vpop.f32.mrb[55].mxu0 }
 0x52d   :  { %v3994_v20 = vpop.f32.mrb[46].mxu1  ;;  %v3993_v12 = vadd.f32 %v3992_v55, %v7305_v21  ;;  %v3904_v15 = vadd.f32 %v3903_v8, %v7300_v52 }
 0x52e   :  { %v3995_v16 = vadd.f32 %v3994_v20, %v7295_v10  ;;  %v3996_v13 = vpop.f32.mrb[47].mxu1  ;;  %v4083_v19 = vpack.c.bf16 %v3902_v3, %v3898_v2 }
 0x52f   :  { %v3997_v35 = vadd.f32 %v3996_v13, %v7305_v21  ;;  %v4084_v24 = vpack.c.bf16 %v3904_v15, %v3900_v11 }
 0x530   :  { %v4069_v36 = vpack.c.bf16 %v3995_v16, %v3991_v4  ;;  %4147 = vst [vmem:[#allocation2 + $0x160] sm:$0xff] %v4083_v19 }
 0x531   :  { %v4070_v57 = vpack.c.bf16 %v3997_v35, %v3993_v12  ;;  %4148 = vst [vmem:[#allocation2 + $0x168] sm:$0xff] %v4084_v24  ;;  %v3907_v1 = vpop.f32.mrb[56].mxu0 }
 0x532   :  { %4133 = vst [vmem:[#allocation2 + $0xf0] sm:$0xff] %v4069_v36  ;;  %v3909_v34 = vpop.f32.mrb[57].mxu0  ;;  %v3908_v0 = vadd.f32 %v3907_v1, %v7290_v30 }
 0x533   :  { %4134 = vst [vmem:[#allocation2 + $0xf8] sm:$0xff] %v4070_v57  ;;  %v4000_v37 = vpop.f32.mrb[48].mxu1  ;;  %v3911_v29 = vpop.f32.mrb[58].mxu0  ;;  %v3910_v28 = vadd.f32 %v3909_v34, %v7300_v52 }
 0x534   :  { %v4002_v39 = vpop.f32.mrb[49].mxu1  ;;  %v4001_v47 = vadd.f32 %v4000_v37, %v7295_v10  ;;  %v3912_v27 = vadd.f32 %v3911_v29, %v7290_v30  ;;  %v3913_v58 = vpop.f32.mrb[59].mxu0 }
 0x535   :  { %v4004_v44 = vpop.f32.mrb[50].mxu1  ;;  %v4003_v53 = vadd.f32 %v4002_v39, %v7305_v21  ;;  %v3914_v38 = vadd.f32 %v3913_v58, %v7300_v52 }
 0x536   :  { %v4005_v42 = vadd.f32 %v4004_v44, %v7295_v10  ;;  %v4006_v40 = vpop.f32.mrb[51].mxu1  ;;  %v4091_v7 = vpack.c.bf16 %v3912_v27, %v3908_v0 }
 0x537   :  { %v4007_v45 = vadd.f32 %v4006_v40, %v7305_v21  ;;  %v4092_v49 = vpack.c.bf16 %v3914_v38, %v3910_v28 }
 0x538   :  { %v4077_v59 = vpack.c.bf16 %v4005_v42, %v4001_v47  ;;  %4155 = vst [vmem:[#allocation2 + $0x1a0] sm:$0xff] %v4091_v7 }
 0x539   :  { %v4078_v51 = vpack.c.bf16 %v4007_v45, %v4003_v53  ;;  %4156 = vst [vmem:[#allocation2 + $0x1a8] sm:$0xff] %v4092_v49  ;;  %v3917_v5 = vpop.f32.mrb[60].mxu0 }
 0x53a   :  { %4141 = vst [vmem:[#allocation2 + $0x130] sm:$0xff] %v4077_v59  ;;  %v3919_v56 = vpop.f32.mrb[61].mxu0  ;;  %v3918_v25 = vadd.f32 %v3917_v5, %v7290_v30 }
 0x53b   :  { %4142 = vst [vmem:[#allocation2 + $0x138] sm:$0xff] %v4078_v51  ;;  %v4010_v61 = vpop.f32.mrb[52].mxu1  ;;  %v3921_v41 = vpop.f32.mrb[62].mxu0  ;;  %v3920_v48 = vadd.f32 %v3919_v56, %v7300_v52 }
 0x53c   :  { %v4012_v26 = vpop.f32.mrb[53].mxu1  ;;  %v4011_v9 = vadd.f32 %v4010_v61, %v7295_v10  ;;  %v3922_v43 = vadd.f32 %v3921_v41, %v7290_v30  ;;  %v3923_v46 = vpop.f32.mrb[63].mxu0 }
 0x53d   :  { %v4014_v6 = vpop.f32.mrb[54].mxu1  ;;  %v4013_v18 = vadd.f32 %v4012_v26, %v7305_v21  ;;  %v3924_v33 = vadd.f32 %v3923_v46, %v7300_v52 }
 0x53e   :  { %v4015_v14 = vadd.f32 %v4014_v6, %v7295_v10  ;;  %v4016_v17 = vpop.f32.mrb[55].mxu1  ;;  %v4099_v54 = vpack.c.bf16 %v3922_v43, %v3918_v25 }
 0x53f   :  { %v4017_v22 = vadd.f32 %v4016_v17, %v7305_v21  ;;  %v4100_v31 = vpack.c.bf16 %v3924_v33, %v3920_v48 }
 0x540   :  { %v4085_v23 = vpack.c.bf16 %v4015_v14, %v4011_v9  ;;  %4163 = vst [vmem:[#allocation2 + $0x1e0] sm:$0xff] %v4099_v54 }
 0x541   :  { %v4086_v50 = vpack.c.bf16 %v4017_v22, %v4013_v18  ;;  %4164 = vst [vmem:[#allocation2 + $0x1e8] sm:$0xff] %v4100_v31 }
 0x542   :  { %4149 = vst [vmem:[#allocation2 + $0x170] sm:$0xff] %v4085_v23 }
 0x543   :  { %4150 = vst [vmem:[#allocation2 + $0x178] sm:$0xff] %v4086_v50  ;;  %v4020_v32 = vpop.f32.mrb[56].mxu1 }
 0x544   :  { %v4022_v55 = vpop.f32.mrb[57].mxu1  ;;  %v4021_v4 = vadd.f32 %v4020_v32, %v7295_v10 }
 0x545   :  { %v4024_v20 = vpop.f32.mrb[58].mxu1  ;;  %v4023_v12 = vadd.f32 %v4022_v55, %v7305_v21 }
 0x546   :  { %v4025_v16 = vadd.f32 %v4024_v20, %v7295_v10  ;;  %v4026_v13 = vpop.f32.mrb[59].mxu1 }
 0x547   :  { %v4027_v35 = vadd.f32 %v4026_v13, %v7305_v21 }
 0x548   :  { %v4093_v36 = vpack.c.bf16 %v4025_v16, %v4021_v4 }
 0x549   :  { %v4094_v57 = vpack.c.bf16 %v4027_v35, %v4023_v12 }
 0x54a   :  { %4157 = vst [vmem:[#allocation2 + $0x1b0] sm:$0xff] %v4093_v36 }
 0x54b   :  { %4158 = vst [vmem:[#allocation2 + $0x1b8] sm:$0xff] %v4094_v57  ;;  %v4030_v37 = vpop.f32.mrb[60].mxu1 }
 0x54c   :  { %v4032_v39 = vpop.f32.mrb[61].mxu1  ;;  %v4031_v47 = vadd.f32 %v4030_v37, %v7295_v10 }
 0x54d   :  { %v4034_v44 = vpop.f32.mrb[62].mxu1  ;;  %v4033_v53 = vadd.f32 %v4032_v39, %v7305_v21 }
 0x54e   :  { %v4035_v42 = vadd.f32 %v4034_v44, %v7295_v10  ;;  %v4036_v40 = vpop.f32.mrb[63].mxu1 }
 0x54f   :  { %v4037_v45 = vadd.f32 %v4036_v40, %v7305_v21 }
 0x550   :  { %v4101_v59 = vpack.c.bf16 %v4035_v42, %v4031_v47 }
 0x551   :  { %v4102_v30 = vpack.c.bf16 %v4037_v45, %v4033_v53 }
 0x552   :  { %4165 = vst [vmem:[#allocation2 + $0x1f0] sm:$0xff] %v4101_v59 }
 0x553   :  { %4166 = vst [vmem:[#allocation2 + $0x1f8] sm:$0xff] %v4102_v30 }
 0x554 LB: > { %v4192_v10 = vld [vmem:[#allocation16] sm:$0xff]  ;;  %v4193_v2 = vld [vmem:[#allocation16 + $0x8] sm:$0xff]  ;;  %v4189_v41 = vld [vmem:[#allocation4 + $0x18] sm:$0xff]  ;;  %s6124_s23 = sshll.u32 %s6602_s22, 6  ;;  %s4185_s18 = ssub.s32 7, %s6602_s22  ;;  %s6602_s22 = sphi %s7371_s22, %s4184_s22  }
 0x555   : > { %v4196_v52 = vld [vmem:[#allocation16 + $0x20] sm:$0xff]  ;;  %v4197_v3 = vld [vmem:[#allocation16 + $0x28] sm:$0xff]  ;;  %s5134_s0 = scalar_lea.vmem [#allocation2], %s6124_s23  ;;  %s6125_s4 = sshll.u32 %s4185_s18, 6 }
 0x556   : > { %v4200_v51 = vld [vmem:[#allocation16 + $0x40] sm:$0xff]  ;;  %v5958_v60 = vcombine.high %v4192_v10, %v4196_v52  ;;  %v5957_v61 = vcombine.low %v4192_v10, %v4196_v52  ;;  %v5960_v8 = vcombine.high %v4193_v2, %v4197_v3  ;;  %v5959_v9 = vcombine.low %v4193_v2, %v4197_v3  ;;  %v4201_v11 = vld [vmem:[#allocation16 + $0x48] sm:$0xff]  ;;  %s5157_s19 = scalar_lea.vmem [#allocation2], %s6125_s4  ;;  %s4184_s22 = sadd.s32 1, %s6602_s22  }
 0x557   : > { %v4204_v21 = vld [vmem:[#allocation16 + $0x60] sm:$0xff]  ;;  %v4205_v14 = vld [vmem:[#allocation16 + $0x68] sm:$0xff]  ;;  %p4181_p3 = scmp.ge.s32.totalorder %s4184_s22, 8  }
 0x558   : > { %v5966_v62 = vcombine.high %v4200_v51, %v4204_v21  ;;  %v4208_v26 = vld [vmem:[#allocation16 + $0x80] sm:$0xff]  ;;  %4960 = vmatprep.subr.bf16.mxu0 %v5958_v60  ;;  %v5965_v6 = vcombine.low %v4200_v51, %v4204_v21  ;;  %v5968_v17 = vcombine.high %v4201_v11, %v4205_v14  ;;  %v4209_v18 = vld [vmem:[#allocation16 + $0x88] sm:$0xff]  ;;  %5003 = vmatprep.subr.bf16.mxu1 %v5960_v8  ;;  %s6620_s20 = smov (%p4181_p3), [#allocation22]  }
 0x559   : > { %v4212_v63 = vld [vmem:[#allocation16 + $0xa0] sm:$0xff]  ;;  %4961 = vmatpush1.bf16.msra.mxu0 %v5957_v61  ;;  %v4213_v19 = vld [vmem:[#allocation16 + $0xa8] sm:$0xff]  ;;  %5004 = vmatpush1.bf16.msra.mxu1 %v5959_v9  ;;  %v5967_v24 = vcombine.low %v4201_v11, %v4205_v14  ;;  %s5499_s10 = sshll.u32 (%p4181_p3), %s6620_s20, 4  ;;  %s5500_s10 = int_to_ptr.vmem [resolvable:$true] %s5499_s10 }
 0x55a   : > { %4962 = vmatprep.subr.bf16.mxu0 %v5966_v62  ;;  %v5974_v15 = vcombine.high %v4208_v26, %v4212_v63  ;;  %v4216_v22 = vld [vmem:[#allocation16 + $0xc0] sm:$0xff]  ;;  %v5973_v50 = vcombine.low %v4208_v26, %v4212_v63  ;;  %5005 = vmatprep.subr.bf16.mxu1 %v5968_v17  ;;  %v5976_v1 = vcombine.high %v4209_v18, %v4213_v19  ;;  %v4217_v34 = vld [vmem:[#allocation16 + $0xc8] sm:$0xff]  ;;  %s6554_s25 = scalar_lea.vmem (%p4181_p3), %s5500_s10, 128  ;;  %p6559_p5 = scmp.lt.s32.totalorder (%p4181_p3), %s5500_s10, %s5500_s10 }
 0x55b   : > { %v4220_v23 = vld [vmem:[#allocation16 + $0xe0] sm:$0xff]  ;;  %v4221_v55 = vld [vmem:[#allocation16 + $0xe8] sm:$0xff]  ;;  %v5975_v27 = vcombine.low %v4209_v18, %v4213_v19  ;;  %p6555_p4 = scmp.ne.s32.totalorder (%p4181_p3), %s5500_s10, %s6554_s25  ;;  %p6560_p6 = scmp.lt.s32.totalorder (%p4181_p3), %s6554_s25, %s6554_s25 }
 0x55c   : > { %v5982_v32 = vcombine.high %v4216_v22, %v4220_v23  ;;  %v4224_v29 = vld [vmem:[#allocation16 + $0x100] sm:$0xff]  ;;  %v5981_v20 = vcombine.low %v4216_v22, %v4220_v23  ;;  %v5984_v58 = vcombine.high %v4217_v34, %v4221_v55  ;;  %v4225_v28 = vld [vmem:[#allocation16 + $0x108] sm:$0xff]  ;;  %v5983_v12 = vcombine.low %v4217_v34, %v4221_v55 }
 0x55d   : > { %4963 = vmatpush1.bf16.msra.mxu0 %v5965_v6  ;;  %v4228_v0 = vld [vmem:[#allocation16 + $0x120] sm:$0xff]  ;;  %5006 = vmatpush1.bf16.msra.mxu1 %v5967_v24  ;;  %v4229_v16 = vld [vmem:[#allocation16 + $0x128] sm:$0xff]  ;;  %p6561_p7 = por (%p4181_p3), %p6560_p6, %p6559_p5 }
 0x55e   : > { %4964 = vmatprep.subr.bf16.mxu0 %v5974_v15  ;;  %5007 = vmatprep.subr.bf16.mxu1 %v5976_v1  ;;  %v5990_v4 = vcombine.high %v4224_v29, %v4228_v0  ;;  %v4232_v38 = vld [vmem:[#allocation16 + $0x140] sm:$0xff]  ;;  %v5989_v7 = vcombine.low %v4224_v29, %v4228_v0  ;;  %v5992_v35 = vcombine.high %v4225_v28, %v4229_v16  ;;  %v4233_v49 = vld [vmem:[#allocation16 + $0x148] sm:$0xff] }
 0x55f   : > { %v4236_v13 = vld [vmem:[#allocation16 + $0x160] sm:$0xff]  ;;  %v4237_v57 = vld [vmem:[#allocation16 + $0x168] sm:$0xff]  ;;  %v5991_v56 = vcombine.low %v4225_v28, %v4229_v16  ;;  %p6562_p8 = pnand (%p4181_p3), %p6561_p7, %p6555_p4 }
 0x560   : > { %v5998_v36 = vcombine.high %v4232_v38, %v4236_v13  ;;  %v4240_v5 = vld [vmem:[#allocation16 + $0x180] sm:$0xff]  ;;  %v5997_v25 = vcombine.low %v4232_v38, %v4236_v13  ;;  %v6000_v43 = vcombine.high %v4233_v49, %v4237_v57  ;;  %v4241_v47 = vld [vmem:[#allocation16 + $0x188] sm:$0xff]  ;;  %v5999_v40 = vcombine.low %v4233_v49, %v4237_v57 }
 0x561   : > { %4965 = vmatpush1.bf16.msra.mxu0 %v5973_v50  ;;  %5008 = vmatpush1.bf16.msra.mxu1 %v5975_v27  ;;  %v4244_v37 = vld [vmem:[#allocation16 + $0x1a0] sm:$0xff]  ;;  %v4245_v48 = vld [vmem:[#allocation16 + $0x1a8] sm:$0xff] }
 0x562   : > { %4966 = vmatprep.subr.bf16.mxu0 %v5982_v32  ;;  %5009 = vmatprep.subr.bf16.mxu1 %v5984_v58  ;;  %v4187_v39 = vld [vmem:[#allocation4 + $0x8] sm:$0xff]  ;;  %v6006_v46 = vcombine.high %v4240_v5, %v4244_v37  ;;  %v6005_v53 = vcombine.low %v4240_v5, %v4244_v37  ;;  %v6008_v54 = vcombine.high %v4241_v47, %v4245_v48  ;;  %v4249_v59 = vld [vmem:[#allocation16 + $0x1c8] sm:$0xff] }
 0x563   : > { %v7376_v44 = vpack.c.bf16 %v4189_v41, %v4187_v39  ;;  %v4248_v42 = vld [vmem:[#allocation16 + $0x1c0] sm:$0xff]  ;;  %v4253_v31 = vld [vmem:[#allocation16 + $0x1e8] sm:$0xff]  ;;  %v6007_v52 = vcombine.low %v4241_v47, %v4245_v48 }
 0x564   : > { %v4252_v33 = vld [vmem:[#allocation16 + $0x1e0] sm:$0xff]  ;;  %v6016_v60 = vcombine.high %v4249_v59, %v4253_v31  ;;  %v4257_v21 = vld [vmem:[#allocation16 + $0x208] sm:$0xff]  ;;  %v6015_v2 = vcombine.low %v4249_v59, %v4253_v31 }
 0x565   : > { %4967 = vmatpush1.bf16.msra.mxu0 %v5981_v20  ;;  %5010 = vmatpush1.bf16.msra.mxu1 %v5983_v12  ;;  %v6014_v45 = vcombine.high %v4248_v42, %v4252_v33  ;;  %v4256_v30 = vld [vmem:[#allocation16 + $0x200] sm:$0xff]  ;;  %v6013_v51 = vcombine.low %v4248_v42, %v4252_v33  ;;  %v4261_v62 = vld [vmem:[#allocation16 + $0x228] sm:$0xff] }
 0x566   : > { %4968 = vmatprep.subr.bf16.mxu0 %v5990_v4  ;;  %5011 = vmatprep.subr.bf16.mxu1 %v5992_v35  ;;  %v4260_v10 = vld [vmem:[#allocation16 + $0x220] sm:$0xff]  ;;  %v6024_v6 = vcombine.high %v4257_v21, %v4261_v62  ;;  %v4265_v9 = vld [vmem:[#allocation16 + $0x248] sm:$0xff]  ;;  %v6023_v17 = vcombine.low %v4257_v21, %v4261_v62 }
 0x567   : > { %4992 = vmatprep.mubr.bf16.mxu0 %v7376_v44  ;;  %5035 = vmatprep.mubr.bf16.mxu1 %v7376_v44  ;;  %v6022_v61 = vcombine.high %v4256_v30, %v4260_v10  ;;  %v4264_v26 = vld [vmem:[#allocation16 + $0x240] sm:$0xff]  ;;  %v6021_v3 = vcombine.low %v4256_v30, %v4260_v10  ;;  %v4269_v11 = vld [vmem:[#allocation16 + $0x268] sm:$0xff]  ;;  %v4194_v10 = vld [vmem:[#allocation16 + $0x10] sm:$0xff] }
 0x568   : > { %v4268_v63 = vld [vmem:[#allocation16 + $0x260] sm:$0xff]  ;;  %v6032_v19 = vcombine.high %v4265_v9, %v4269_v11  ;;  %v4273_v23 = vld [vmem:[#allocation16 + $0x288] sm:$0xff]  ;;  %v6031_v32 = vcombine.low %v4265_v9, %v4269_v11 }
 0x569   : > { %4969 = vmatpush1.bf16.msra.mxu0 %v5989_v7  ;;  %5012 = vmatpush1.bf16.msra.mxu1 %v5991_v56  ;;  %v6030_v8 = vcombine.high %v4264_v26, %v4268_v63  ;;  %v4272_v14 = vld [vmem:[#allocation16 + $0x280] sm:$0xff]  ;;  %v6029_v18 = vcombine.low %v4264_v26, %v4268_v63  ;;  %v4277_v24 = vld [vmem:[#allocation16 + $0x2a8] sm:$0xff]  ;;  %v4195_v63 = vld [vmem:[#allocation16 + $0x18] sm:$0xff] }
 0x56a   : > { %4970 = vmatprep.subr.bf16.mxu0 %v5998_v36  ;;  %5013 = vmatprep.subr.bf16.mxu1 %v6000_v43  ;;  %v4276_v15 = vld [vmem:[#allocation16 + $0x2a0] sm:$0xff]  ;;  %v6040_v55 = vcombine.high %v4273_v23, %v4277_v24  ;;  %v4281_v0 = vld [vmem:[#allocation16 + $0x2c8] sm:$0xff]  ;;  %v6039_v4 = vcombine.low %v4273_v23, %v4277_v24 }
 0x56b   : > { %v6038_v22 = vcombine.high %v4272_v14, %v4276_v15  ;;  %v4280_v50 = vld [vmem:[#allocation16 + $0x2c0] sm:$0xff]  ;;  %v6037_v34 = vcombine.low %v4272_v14, %v4276_v15  ;;  %v4285_v27 = vld [vmem:[#allocation16 + $0x2e8] sm:$0xff] }
 0x56c   : > { %v4284_v1 = vld [vmem:[#allocation16 + $0x2e0] sm:$0xff]  ;;  %v6048_v16 = vcombine.high %v4281_v0, %v4285_v27  ;;  %v4289_v13 = vld [vmem:[#allocation16 + $0x308] sm:$0xff]  ;;  %v6047_v36 = vcombine.low %v4281_v0, %v4285_v27 }
 0x56d   : > { %4971 = vmatpush1.bf16.msra.mxu0 %v5997_v25  ;;  %5014 = vmatpush1.bf16.msra.mxu1 %v5999_v40  ;;  %v6046_v29 = vcombine.high %v4280_v50, %v4284_v1  ;;  %v4288_v20 = vld [vmem:[#allocation16 + $0x300] sm:$0xff]  ;;  %v6045_v28 = vcombine.low %v4280_v50, %v4284_v1  ;;  %v4293_v12 = vld [vmem:[#allocation16 + $0x328] sm:$0xff] }
 0x56e   : > { %4972 = vmatprep.subr.bf16.mxu0 %v6006_v46  ;;  %5015 = vmatprep.subr.bf16.mxu1 %v6008_v54  ;;  %v4292_v58 = vld [vmem:[#allocation16 + $0x320] sm:$0xff]  ;;  %v6056_v57 = vcombine.high %v4289_v13, %v4293_v12  ;;  %v4297_v37 = vld [vmem:[#allocation16 + $0x348] sm:$0xff]  ;;  %v6055_v25 = vcombine.low %v4289_v13, %v4293_v12 }
 0x56f   : > { %v6054_v38 = vcombine.high %v4288_v20, %v4292_v58  ;;  %v4296_v7 = vld [vmem:[#allocation16 + $0x340] sm:$0xff]  ;;  %v6053_v49 = vcombine.low %v4288_v20, %v4292_v58  ;;  %v4301_v56 = vld [vmem:[#allocation16 + $0x368] sm:$0xff] }
 0x570   : > { %v4300_v35 = vld [vmem:[#allocation16 + $0x360] sm:$0xff]  ;;  %v6064_v46 = vcombine.high %v4297_v37, %v4301_v56  ;;  %v4305_v48 = vld [vmem:[#allocation16 + $0x388] sm:$0xff] }
 0x571   : > { %4973 = vmatpush1.bf16.msra.mxu0 %v6005_v53  ;;  %5016 = vmatpush1.bf16.msra.mxu1 %v6007_v52  ;;  %v6062_v5 = vcombine.high %v4296_v7, %v4300_v35  ;;  %v4304_v39 = vld [vmem:[#allocation16 + $0x380] sm:$0xff]  ;;  %v6061_v43 = vcombine.low %v4296_v7, %v4300_v35  ;;  %v4309_v42 = vld [vmem:[#allocation16 + $0x3a8] sm:$0xff]  ;;  %v6063_v53 = vcombine.low %v4297_v37, %v4301_v56  ;;  %v4198_v52 = vld [vmem:[#allocation16 + $0x30] sm:$0xff] }
 0x572   : > { %4974 = vmatprep.subr.bf16.mxu0 %v6014_v45  ;;  %5017 = vmatprep.subr.bf16.mxu1 %v6016_v60  ;;  %v4308_v41 = vld [vmem:[#allocation16 + $0x3a0] sm:$0xff]  ;;  %v6072_v45 = vcombine.high %v4305_v48, %v4309_v42  ;;  %v4313_v31 = vld [vmem:[#allocation16 + $0x3c8] sm:$0xff]  ;;  %v5962_v26 = vcombine.high %v4194_v10, %v4198_v52  ;;  %v5961_v11 = vcombine.low %v4194_v10, %v4198_v52  ;;  %v4251_v52 = vld [vmem:[#allocation16 + $0x1d8] sm:$0xff] }
 0x573   : > { %v6070_v47 = vcombine.high %v4304_v39, %v4308_v41  ;;  %v4312_v33 = vld [vmem:[#allocation16 + $0x3c0] sm:$0xff]  ;;  %v6069_v54 = vcombine.low %v4304_v39, %v4308_v41  ;;  %v4317_v30 = vld [vmem:[#allocation16 + $0x3e8] sm:$0xff]  ;;  %v4235_v41 = vld [vmem:[#allocation16 + $0x158] sm:$0xff] }
 0x574   : > { %v4316_v40 = vld [vmem:[#allocation16 + $0x3e0] sm:$0xff]  ;;  %v4188_v21 = vld [vmem:[#allocation4 + $0x10] sm:$0xff]  ;;  %v6080_v62 = vcombine.high %v4313_v31, %v4317_v30  ;;  %v6079_v9 = vcombine.low %v4313_v31, %v4317_v30 }
 0x575   : > { %4975 = vmatpush1.bf16.msra.mxu0 %v6013_v51  ;;  %5018 = vmatpush1.bf16.msra.mxu1 %v6015_v2  ;;  %v6078_v59 = vcombine.high %v4312_v33, %v4316_v40  ;;  %v6071_v51 = vcombine.low %v4305_v48, %v4309_v42  ;;  %v6077_v60 = vcombine.low %v4312_v33, %v4316_v40  ;;  %v4199_v2 = vld [vmem:[#allocation16 + $0x38] sm:$0xff] }
 0x576   : > { %4976 = vmatprep.subr.bf16.mxu0 %v6022_v61  ;;  %5019 = vmatprep.subr.bf16.mxu1 %v6024_v6  ;;  %v4186_v61 = vld [vmem:[#allocation4] sm:$0xff]  ;;  %v4206_v6 = vld [vmem:[#allocation16 + $0x70] sm:$0xff]  ;;  %v5964_v14 = vcombine.high %v4195_v63, %v4199_v2  ;;  %v5963_v23 = vcombine.low %v4195_v63, %v4199_v2 }
 0x577   : > { %v4243_v40 = vld [vmem:[#allocation16 + $0x198] sm:$0xff] }
 0x578   : > { %v4259_v2 = vld [vmem:[#allocation16 + $0x218] sm:$0xff] }
 0x579   : > { %4977 = vmatpush1.bf16.msra.mxu0 %v6021_v3  ;;  %5020 = vmatpush1.bf16.msra.mxu1 %v6023_v17  ;;  %v4202_v3 = vld [vmem:[#allocation16 + $0x50] sm:$0xff]  ;;  %v4203_v17 = vld [vmem:[#allocation16 + $0x58] sm:$0xff] }
 0x57a   : > { %4978 = vmatprep.subr.bf16.mxu0 %v6030_v8  ;;  %5021 = vmatprep.subr.bf16.mxu1 %v6032_v19  ;;  %v7380_v8 = vpack.c.bf16 %v4188_v21, %v4186_v61  ;;  %v5970_v15 = vcombine.high %v4202_v3, %v4206_v6  ;;  %v4210_v19 = vld [vmem:[#allocation16 + $0x90] sm:$0xff]  ;;  %v5969_v24 = vcombine.low %v4202_v3, %v4206_v6  ;;  %v4263_v3 = vld [vmem:[#allocation16 + $0x238] sm:$0xff] }
 0x57b   : > { %v4262_v61 = vld [vmem:[#allocation16 + $0x230] sm:$0xff] }
 0x57c   : > { %v4266_v6 = vld [vmem:[#allocation16 + $0x250] sm:$0xff] }
 0x57d   : > { %4979 = vmatpush1.bf16.msra.mxu0 %v6029_v18  ;;  %5022 = vmatpush1.bf16.msra.mxu1 %v6031_v32  ;;  %v4207_v18 = vld [vmem:[#allocation16 + $0x78] sm:$0xff] }
 0x57e   : > { %4980 = vmatprep.subr.bf16.mxu0 %v6038_v22  ;;  %5023 = vmatprep.subr.bf16.mxu1 %v6040_v55  ;;  %v4214_v22 = vld [vmem:[#allocation16 + $0xb0] sm:$0xff]  ;;  %v5972_v50 = vcombine.high %v4203_v17, %v4207_v18  ;;  %v4211_v32 = vld [vmem:[#allocation16 + $0x98] sm:$0xff]  ;;  %v5971_v0 = vcombine.low %v4203_v17, %v4207_v18 }
 0x57f   : > { %v5978_v1 = vcombine.high %v4210_v19, %v4214_v22  ;;  %v4218_v55 = vld [vmem:[#allocation16 + $0xd0] sm:$0xff]  ;;  %v5977_v27 = vcombine.low %v4210_v19, %v4214_v22  ;;  %v4267_v18 = vld [vmem:[#allocation16 + $0x258] sm:$0xff] }
 0x580   : > { %v4271_v19 = vld [vmem:[#allocation16 + $0x278] sm:$0xff]  ;;  %v4274_v22 = vld [vmem:[#allocation16 + $0x290] sm:$0xff] }
 0x581   : > { %4981 = vmatpush1.bf16.msra.mxu0 %v6037_v34  ;;  %5024 = vmatpush1.bf16.msra.mxu1 %v6039_v4  ;;  %v4215_v34 = vld [vmem:[#allocation16 + $0xb8] sm:$0xff] }
 0x582   : > { %4982 = vmatprep.subr.bf16.mxu0 %v6046_v29  ;;  %5025 = vmatprep.subr.bf16.mxu1 %v6048_v16  ;;  %v4222_v29 = vld [vmem:[#allocation16 + $0xf0] sm:$0xff]  ;;  %v5980_v20 = vcombine.high %v4211_v32, %v4215_v34  ;;  %v4219_v4 = vld [vmem:[#allocation16 + $0xd8] sm:$0xff]  ;;  %v5979_v13 = vcombine.low %v4211_v32, %v4215_v34 }
 0x583   : > { %v5986_v58 = vcombine.high %v4218_v55, %v4222_v29  ;;  %v4226_v16 = vld [vmem:[#allocation16 + $0x110] sm:$0xff]  ;;  %v5985_v12 = vcombine.low %v4218_v55, %v4222_v29  ;;  %v4275_v34 = vld [vmem:[#allocation16 + $0x298] sm:$0xff] }
 0x584   : > { %v4279_v55 = vld [vmem:[#allocation16 + $0x2b8] sm:$0xff]  ;;  %v4282_v29 = vld [vmem:[#allocation16 + $0x2d0] sm:$0xff] }
 0x585   : > { %4983 = vmatpush1.bf16.msra.mxu0 %v6045_v28  ;;  %5026 = vmatpush1.bf16.msra.mxu1 %v6047_v36  ;;  %v4223_v28 = vld [vmem:[#allocation16 + $0xf8] sm:$0xff] }
 0x586   : > { %4984 = vmatprep.subr.bf16.mxu0 %v6054_v38  ;;  %5027 = vmatprep.subr.bf16.mxu1 %v6056_v57  ;;  %v4230_v38 = vld [vmem:[#allocation16 + $0x130] sm:$0xff]  ;;  %v5988_v7 = vcombine.high %v4219_v4, %v4223_v28  ;;  %v4227_v36 = vld [vmem:[#allocation16 + $0x118] sm:$0xff] }
 0x587   : > { %v5994_v35 = vcombine.high %v4226_v16, %v4230_v38  ;;  %v4238_v57 = vld [vmem:[#allocation16 + $0x170] sm:$0xff]  ;;  %v5993_v37 = vcombine.low %v4226_v16, %v4230_v38  ;;  %v4287_v16 = vld [vmem:[#allocation16 + $0x2f8] sm:$0xff] }
 0x588   : > { %v4290_v38 = vld [vmem:[#allocation16 + $0x310] sm:$0xff] }
 0x589   : > { %4985 = vmatpush1.bf16.msra.mxu0 %v6053_v49  ;;  %5028 = vmatpush1.bf16.msra.mxu1 %v6055_v25  ;;  %v4234_v49 = vld [vmem:[#allocation16 + $0x150] sm:$0xff]  ;;  %v4239_v25 = vld [vmem:[#allocation16 + $0x178] sm:$0xff] }
 0x58a   : > { %4986 = vmatprep.subr.bf16.mxu0 %v6062_v5  ;;  %5029 = vmatprep.subr.bf16.mxu1 %v6064_v46  ;;  %v5987_v5 = vcombine.low %v4219_v4, %v4223_v28  ;;  %v6002_v39 = vcombine.high %v4234_v49, %v4238_v57  ;;  %v4246_v46 = vld [vmem:[#allocation16 + $0x1b0] sm:$0xff]  ;;  %v6001_v48 = vcombine.low %v4234_v49, %v4238_v57  ;;  %v4283_v28 = vld [vmem:[#allocation16 + $0x2d8] sm:$0xff] }
 0x58b   : > { %v6004_v42 = vcombine.high %v4235_v41, %v4239_v25  ;;  %v4295_v49 = vld [vmem:[#allocation16 + $0x338] sm:$0xff]  ;;  %v4298_v57 = vld [vmem:[#allocation16 + $0x350] sm:$0xff] }
 0x58d   : > { %4987 = vmatpush1.bf16.msra.mxu0 %v6061_v43  ;;  %5030 = vmatpush1.bf16.msra.mxu1 %v6063_v53  ;;  %v4242_v43 = vld [vmem:[#allocation16 + $0x190] sm:$0xff]  ;;  %v4247_v53 = vld [vmem:[#allocation16 + $0x1b8] sm:$0xff] }
 0x58e   : > { %4988 = vmatprep.subr.bf16.mxu0 %v6070_v47  ;;  %5031 = vmatprep.subr.bf16.mxu1 %v6072_v45  ;;  %v6010_v33 = vcombine.high %v4242_v43, %v4246_v46  ;;  %v4254_v45 = vld [vmem:[#allocation16 + $0x1f0] sm:$0xff]  ;;  %v6009_v31 = vcombine.low %v4242_v43, %v4246_v46  ;;  %v6012_v30 = vcombine.high %v4243_v40, %v4247_v53  ;;  %v4303_v43 = vld [vmem:[#allocation16 + $0x378] sm:$0xff] }
 0x58f   : > { %v6011_v21 = vcombine.low %v4243_v40, %v4247_v53  ;;  %v4306_v46 = vld [vmem:[#allocation16 + $0x390] sm:$0xff]  ;;  %v4307_v53 = vld [vmem:[#allocation16 + $0x398] sm:$0xff] }
 0x591   : > { %4989 = vmatpush1.bf16.msra.mxu0 %v6069_v54  ;;  %5032 = vmatpush1.bf16.msra.mxu1 %v6071_v51  ;;  %v4250_v54 = vld [vmem:[#allocation16 + $0x1d0] sm:$0xff]  ;;  %v4255_v51 = vld [vmem:[#allocation16 + $0x1f8] sm:$0xff] }
 0x592   : > { %4990 = vmatprep.subr.bf16.mxu0 %v6078_v59  ;;  %5033 = vmatprep.subr.bf16.mxu1 %v6080_v62  ;;  %v6003_v59 = vcombine.low %v4235_v41, %v4239_v25  ;;  %v6018_v10 = vcombine.high %v4250_v54, %v4254_v45  ;;  %v6017_v62 = vcombine.low %v4250_v54, %v4254_v45  ;;  %v4299_v25 = vld [vmem:[#allocation16 + $0x358] sm:$0xff]  ;;  %v4314_v45 = vld [vmem:[#allocation16 + $0x3d0] sm:$0xff] }
 0x593   : > { %v4311_v54 = vld [vmem:[#allocation16 + $0x3b8] sm:$0xff] }
 0x595   : > { %4991 = vmatpush1.bf16.msra.mxu0 %v6077_v60  ;;  %5034 = vmatpush1.bf16.msra.mxu1 %v6079_v9  ;;  %v4258_v60 = vld [vmem:[#allocation16 + $0x210] sm:$0xff] }
 0x596   : > { %5046 = vmatprep.subr.bf16.mxu0 %v5962_v26  ;;  %5089 = vmatprep.subr.bf16.mxu1 %v5964_v14  ;;  %v6020_v26 = vcombine.high %v4251_v52, %v4255_v51  ;;  %v6026_v63 = vcombine.high %v4258_v60, %v4262_v61  ;;  %v4270_v9 = vld [vmem:[#allocation16 + $0x270] sm:$0xff]  ;;  %v6025_v14 = vcombine.low %v4258_v60, %v4262_v61  ;;  %v4319_v60 = vld [vmem:[#allocation16 + $0x3f8] sm:$0xff] }
 0x597   : > { %v6034_v17 = vcombine.high %v4266_v6, %v4270_v9  ;;  %v6075_v61 = vcombine.low %v4307_v53, %v4311_v54 }
 0x598   : > { %4993 = vmatmul.mubr.bf16.vlgmr.msra.gmra.mrb[0].mxu0 %v7380_v8  ;;  %5036 = vmatmul.mubr.bf16.vlgmr.msra.gmra.mrb[0].mxu1 %v7380_v8 }
 0x599   : > { %5047 = vmatpush1.bf16.msra.mxu0 %v5961_v11  ;;  %5078 = vmatprep.mubr.bf16.mxu0 %v7376_v44  ;;  %v6019_v11 = vcombine.low %v4251_v52, %v4255_v51  ;;  %v4315_v51 = vld [vmem:[#allocation16 + $0x3d8] sm:$0xff] }
 0x59a   : > { %5048 = vmatprep.subr.bf16.mxu0 %v5970_v15  ;;  %5090 = vmatpush1.bf16.msra.mxu1 %v5963_v23  ;;  %v6028_v15 = vcombine.high %v4259_v2, %v4263_v3  ;;  %v4278_v23 = vld [vmem:[#allocation16 + $0x2b0] sm:$0xff] }
 0x59b   : > { %5121 = vmatprep.mubr.bf16.mxu1 %v7376_v44  ;;  %5091 = vmatprep.subr.bf16.mxu1 %v5972_v50  ;;  %v4231_v44 = vld [vmem:[#allocation16 + $0x138] sm:$0xff]  ;;  %v6033_v50 = vcombine.low %v4266_v6, %v4270_v9  ;;  %v6042_v32 = vcombine.high %v4274_v22, %v4278_v23 }
 0x59c   : > { %v5996_v56 = vcombine.high %v4227_v36, %v4231_v44  ;;  %v5995_v47 = vcombine.low %v4227_v36, %v4231_v44  ;;  %v4291_v44 = vld [vmem:[#allocation16 + $0x318] sm:$0xff] }
 0x59d   : > { %5049 = vmatpush1.bf16.msra.mxu0 %v5969_v24  ;;  %v6027_v24 = vcombine.low %v4259_v2, %v4263_v3  ;;  %v5136_v2 = vld [vmem:[%s5134_s0 + $0x8] sm:$0xff] }
 0x59e   : > { %5050 = vmatprep.subr.bf16.mxu0 %v5978_v1  ;;  %5092 = vmatpush1.bf16.msra.mxu1 %v5971_v0  ;;  %v6036_v1 = vcombine.high %v4267_v18, %v4271_v19  ;;  %v4286_v0 = vld [vmem:[#allocation16 + $0x2f0] sm:$0xff]  ;;  %v5140_v6 = vunpack.c.l.bf16 %v5136_v2 }
 0x59f   : > { %5093 = vmatprep.subr.bf16.mxu1 %v5980_v20  ;;  %v6041_v20 = vcombine.low %v4274_v22, %v4278_v23  ;;  %v6050_v4 = vcombine.high %v4282_v29, %v4286_v0 }
 0x5a1   : > { %5051 = vmatpush1.bf16.msra.mxu0 %v5977_v27  ;;  %v6035_v27 = vcombine.low %v4267_v18, %v4271_v19 }
 0x5a2   : > { %5052 = vmatprep.subr.bf16.mxu0 %v5986_v58  ;;  %5094 = vmatpush1.bf16.msra.mxu1 %v5979_v13  ;;  %v6044_v58 = vcombine.high %v4275_v34, %v4279_v55  ;;  %v4294_v13 = vld [vmem:[#allocation16 + $0x330] sm:$0xff] }
 0x5a3   : > { %5095 = vmatprep.subr.bf16.mxu1 %v5988_v7  ;;  %v6049_v7 = vcombine.low %v4282_v29, %v4286_v0  ;;  %v6058_v36 = vcombine.high %v4290_v38, %v4294_v13 }
 0x5a5   : > { %5053 = vmatpush1.bf16.msra.mxu0 %v5985_v12  ;;  %v6043_v12 = vcombine.low %v4275_v34, %v4279_v55 }
 0x5a6   : > { %5054 = vmatprep.subr.bf16.mxu0 %v5994_v35  ;;  %5096 = vmatpush1.bf16.msra.mxu1 %v5987_v5  ;;  %v6052_v35 = vcombine.high %v4283_v28, %v4287_v16  ;;  %v4302_v5 = vld [vmem:[#allocation16 + $0x370] sm:$0xff] }
 0x5a7   : > { %5097 = vmatprep.subr.bf16.mxu1 %v5996_v56  ;;  %v6057_v56 = vcombine.low %v4290_v38, %v4294_v13  ;;  %v6066_v41 = vcombine.high %v4298_v57, %v4302_v5 }
 0x5a9   : > { %5055 = vmatpush1.bf16.msra.mxu0 %v5993_v37  ;;  %v6051_v37 = vcombine.low %v4283_v28, %v4287_v16 }
 0x5aa   : > { %5056 = vmatprep.subr.bf16.mxu0 %v6002_v39  ;;  %5098 = vmatpush1.bf16.msra.mxu1 %v5995_v47  ;;  %v6060_v39 = vcombine.high %v4291_v44, %v4295_v49  ;;  %v4310_v47 = vld [vmem:[#allocation16 + $0x3b0] sm:$0xff] }
 0x5ab   : > { %5099 = vmatprep.subr.bf16.mxu1 %v6004_v42  ;;  %v6065_v42 = vcombine.low %v4298_v57, %v4302_v5  ;;  %v6074_v40 = vcombine.high %v4306_v46, %v4310_v47 }
 0x5ad   : > { %5057 = vmatpush1.bf16.msra.mxu0 %v6001_v48  ;;  %v6059_v48 = vcombine.low %v4291_v44, %v4295_v49 }
 0x5ae   : > { %5058 = vmatprep.subr.bf16.mxu0 %v6010_v33  ;;  %5100 = vmatpush1.bf16.msra.mxu1 %v6003_v59  ;;  %v6068_v33 = vcombine.high %v4299_v25, %v4303_v43  ;;  %v4318_v59 = vld [vmem:[#allocation16 + $0x3f0] sm:$0xff] }
 0x5af   : > { %5101 = vmatprep.subr.bf16.mxu1 %v6012_v30  ;;  %v6073_v30 = vcombine.low %v4306_v46, %v4310_v47  ;;  %v6082_v52 = vcombine.high %v4314_v45, %v4318_v59 }
 0x5b1   : > { %5059 = vmatpush1.bf16.msra.mxu0 %v6009_v31  ;;  %v6067_v31 = vcombine.low %v4299_v25, %v4303_v43 }
 0x5b2   : > { %5060 = vmatprep.subr.bf16.mxu0 %v6018_v10  ;;  %5102 = vmatpush1.bf16.msra.mxu1 %v6011_v21  ;;  %v6076_v10 = vcombine.high %v4307_v53, %v4311_v54  ;;  %v6081_v21 = vcombine.low %v4314_v45, %v4318_v59  ;;  %v5180_v53 = vld [vmem:[#allocation5 + $0x10] sm:$0xff] }
 0x5b3   : > { %5103 = vmatprep.subr.bf16.mxu1 %v6020_v26  ;;  %v6083_v26 = vcombine.low %v4315_v51, %v4319_v60 }
 0x5b5   : > { %5061 = vmatpush1.bf16.msra.mxu0 %v6017_v62  ;;  %v6084_v62 = vcombine.high %v4315_v51, %v4319_v60 }
 0x5b6   : > { %5062 = vmatprep.subr.bf16.mxu0 %v6026_v63  ;;  %5104 = vmatpush1.bf16.msra.mxu1 %v6019_v11  ;;  %v5135_v63 = vld [vmem:[%s5134_s0] sm:$0xff] }
 0x5b7   : > { %5105 = vmatprep.subr.bf16.mxu1 %v6028_v15  ;;  %v5139_v3 = vunpack.c.l.bf16 %v5135_v63  ;;  %v5143_v9 = vunpack.c.h.bf16 %v5135_v63  ;;  %v5138_v15 = vld [vmem:[%s5134_s0 + $0x18] sm:$0xff] }
 0x5b9   : > { %5063 = vmatpush1.bf16.msra.mxu0 %v6025_v14  ;;  %v5144_v14 = vunpack.c.h.bf16 %v5136_v2 }
 0x5ba   : > { %5064 = vmatprep.subr.bf16.mxu0 %v6034_v17  ;;  %5106 = vmatpush1.bf16.msra.mxu1 %v6027_v24 }
 0x5bb   : > { %5107 = vmatprep.subr.bf16.mxu1 %v6036_v1 }
 0x5bd   : > { %5065 = vmatpush1.bf16.msra.mxu0 %v6033_v50 }
 0x5be   : > { %5066 = vmatprep.subr.bf16.mxu0 %v6042_v32  ;;  %5108 = vmatpush1.bf16.msra.mxu1 %v6035_v27  ;;  %v5137_v32 = vld [vmem:[%s5134_s0 + $0x10] sm:$0xff] }
 0x5bf   : > { %5109 = vmatprep.subr.bf16.mxu1 %v6044_v58  ;;  %v5145_v38 = vunpack.c.h.bf16 %v5137_v32 }
 0x5c1   : > { %5067 = vmatpush1.bf16.msra.mxu0 %v6041_v20  ;;  %v5146_v20 = vunpack.c.h.bf16 %v5138_v15 }
 0x5c2   : > { %5068 = vmatprep.subr.bf16.mxu0 %v6050_v4  ;;  %5110 = vmatpush1.bf16.msra.mxu1 %v6043_v12  ;;  %v5141_v4 = vunpack.c.l.bf16 %v5137_v32 }
 0x5c3   : > { %5111 = vmatprep.subr.bf16.mxu1 %v6052_v35 }
 0x5c5   : > { %5069 = vmatpush1.bf16.msra.mxu0 %v6049_v7 }
 0x5c6   : > { %5070 = vmatprep.subr.bf16.mxu0 %v6058_v36  ;;  %5112 = vmatpush1.bf16.msra.mxu1 %v6051_v37 }
 0x5c7   : > { %5113 = vmatprep.subr.bf16.mxu1 %v6060_v39 }
 0x5c9   : > { %5071 = vmatpush1.bf16.msra.mxu0 %v6057_v56 }
 0x5ca   : > { %5072 = vmatprep.subr.bf16.mxu0 %v6066_v41  ;;  %5114 = vmatpush1.bf16.msra.mxu1 %v6059_v48  ;;  %v5178_v48 = vld [vmem:[#allocation5] sm:$0xff] }
 0x5cb   : > { %5115 = vmatprep.subr.bf16.mxu1 %v6068_v33 }
 0x5cd   : > { %5073 = vmatpush1.bf16.msra.mxu0 %v6065_v42 }
 0x5ce   : > { %5074 = vmatprep.subr.bf16.mxu0 %v6074_v40  ;;  %5116 = vmatpush1.bf16.msra.mxu1 %v6067_v31 }
 0x5cf   : > { %5117 = vmatprep.subr.bf16.mxu1 %v6076_v10 }
 0x5d1   : > { %5075 = vmatpush1.bf16.msra.mxu0 %v6073_v30 }
 0x5d2   : > { %5076 = vmatprep.subr.bf16.mxu0 %v6082_v52  ;;  %5118 = vmatpush1.bf16.msra.mxu1 %v6075_v61 }
 0x5d3   : > { %5119 = vmatprep.subr.bf16.mxu1 %v6084_v62  ;;  %v5286_v62 = vld [vmem:[#allocation6] sm:$0xff] }
 0x5d5   : > { %5077 = vmatpush1.bf16.msra.mxu0 %v6081_v21 }
 0x5d6   : > { %5120 = vmatpush1.bf16.msra.mxu1 %v6083_v26 }
 0x5d8   : > { %5079 = vmatmul.mubr.bf16.vlgmr.msra.gmra.mrb[4].mxu0 %v7380_v8 }
 0x5d9   : > { %5122 = vmatmul.mubr.bf16.vlgmr.msra.gmra.mrb[4].mxu1 %v7380_v8  ;;  %v5142_v8 = vunpack.c.l.bf16 %v5138_v15  ;;  %v5159_v15 = vld [vmem:[%s5157_s19 + $0x28] sm:$0xff] }
 0x66b   : > { %v4994_v11 = vpop.f32.mrb[0].mxu0  ;;  %v5037_v1 = vpop.f32.mrb[0].mxu1 }
 0x66c   : > { %v5147_v17 = vadd.f32 %v5139_v3, %v4994_v11  ;;  %v4996_v18 = vpop.f32.mrb[1].mxu0  ;;  %v5039_v29 = vpop.f32.mrb[1].mxu1  ;;  %v5149_v12 = vadd.f32 %v5141_v4, %v5037_v1  ;;  %v5288_v3 = vld [vmem:[#allocation6 + $0x10] sm:$0xff] }
 0x66d   : > { %v5148_v19 = vadd.f32 %v5140_v6, %v4996_v18  ;;  %v4998_v22 = vpop.f32.mrb[2].mxu0  ;;  %v5041_v27 = vpop.f32.mrb[2].mxu1  ;;  %v5150_v16 = vadd.f32 %v5142_v8, %v5039_v29  ;;  %v5163_v18 = vunpack.c.l.bf16 %v5159_v15 }
 0x66e   : > { %v6089_v23 = vmul.f32 -1.442695, %v5147_v17  ;;  %v5151_v24 = vadd.f32 %v5143_v9, %v4998_v22  ;;  %v5000_v50 = vpop.f32.mrb[3].mxu0  ;;  %v5043_v28 = vpop.f32.mrb[3].mxu1  ;;  %v5153_v35 = vadd.f32 %v5145_v38, %v5041_v27  ;;  %v5160_v27 = vld [vmem:[%s5157_s19 + $0x30] sm:$0xff] }
 0x66f   : > { %v6091_v34 = vmul.f32 -1.442695, %v5148_v19  ;;  %v5152_v55 = vadd.f32 %v5144_v14, %v5000_v50  ;;  %v5154_v13 = vadd.f32 %v5146_v20, %v5043_v28  ;;  %v6093_v7 = vmul.f32 -1.442695, %v5150_v16  ;;  %v5158_v14 = vld [vmem:[%s5157_s19 + $0x20] sm:$0xff] }
 0x670   : > { %6276 = vpow2.f32 %v6089_v23  ;;  %v6090_v0 = vmul.f32 -1.442695, %v5151_v24  ;;  %v5162_v17 = vunpack.c.l.bf16 %v5158_v14  ;;  %v5166_v19 = vunpack.c.h.bf16 %v5158_v14  ;;  %v5161_v24 = vld [vmem:[%s5157_s19 + $0x38] sm:$0xff] }
 0x671   : > { %6278 = vpow2.f32 %v6091_v34  ;;  %v6092_v58 = vmul.f32 -1.442695, %v5152_v55  ;;  %v6094_v36 = vmul.f32 -1.442695, %v5154_v13  ;;  %v5167_v23 = vunpack.c.h.bf16 %v5159_v15 }
 0x672   : > { %6280 = vpow2.f32 %v6090_v0  ;;  %v5165_v20 = vunpack.c.l.bf16 %v5161_v24  ;;  %v5169_v13 = vunpack.c.h.bf16 %v5161_v24  ;;  %v6341_v24 = vld [vmem:[#allocation19] sm:$0xff] (%p4181_p3)  }
 0x673   : > { %6282 = vpow2.f32 %v6092_v58 }
 0x674   : > { %6284 = vtanh.f32 %v5149_v12 }
 0x675   : > { %6286 = vpow2.f32 %v6093_v7  ;;  %v5164_v7 = vunpack.c.l.bf16 %v5160_v27 }
 0x676   : > { %6288 = vtanh.f32 %v5153_v35 }
 0x677   : > { %6290 = vpow2.f32 %v6094_v36 }
 0x67a   : > { %v6277_v44 = vpop.eup %6276 }
 0x67b   : > { %v6279_v49 = vpop.eup %6278  ;;  %v5188_v57 = vadd.f32 1.0, %v6277_v44  ;;  %v5168_v44 = vunpack.c.h.bf16 %v5160_v27  ;;  %v6350_v27 = vld [vmem:[#allocation19 + $0x68] sm:$0xff] (%p4181_p3)  }
 0x67c   : > { %v6281_v5 = vpop.eup %6280  ;;  %v5200_v37 = vadd.f32 1.0, %v6279_v49 }
 0x67d   : > { %v6283_v56 = vpop.eup %6282  ;;  %6292 = vrcp.f32 %v5188_v57  ;;  %v5189_v39 = vadd.f32 1.0, %v6281_v5 }
 0x67e   : > { %6294 = vrcp.f32 %v5200_v37  ;;  %v5201_v41 = vadd.f32 1.0, %v6283_v56  ;;  %v6285_v25 = vpop.eup %6284 }
 0x67f   : > { %6296 = vrcp.f32 %v5189_v39  ;;  %v6287_v43 = vpop.eup %6286 }
 0x680   : > { %6298 = vrcp.f32 %v5201_v41  ;;  %v6289_v46 = vpop.eup %6288  ;;  %v5214_v33 = vadd.f32 1.0, %v6287_v43 }
 0x681   : > { %v6291_v47 = vpop.eup %6290 }
 0x682   : > { %v5215_v10 = vadd.f32 1.0, %v6291_v47  ;;  %6300 = vrcp.f32 %v5214_v33 }
 0x687   : > { %v6293_v42 = vpop.eup %6292 }
 0x688   : > { %v6295_v40 = vpop.eup %6294  ;;  %v5222_v54 = vmul.f32 %v6293_v42, %v6285_v25 }
 0x689   : > { %v6297_v45 = vpop.eup %6296  ;;  %v5220_v59 = vmul.f32 %v6295_v40, %v5178_v48 }
 0x68a   : > { %v6299_v31 = vpop.eup %6298  ;;  %v5223_v30 = vmul.f32 %v6297_v45, %v6289_v46  ;;  %v5179_v45 = vld [vmem:[#allocation5 + $0x8] sm:$0xff] }
 0x68b   : > { %v5221_v52 = vmul.f32 %v6299_v31, %v5180_v53  ;;  %v5224_v51 = vadd.f32 %v5222_v54, %v5220_v59 }
 0x68c   : > { %v6301_v61 = vpop.eup %6300 }
 0x68d   : > { %6302 = vtanh.f32 %v5224_v51  ;;  %5282 = vst [vmem:[#allocation5] sm:$0xff] %v5224_v51  ;;  %v5225_v60 = vadd.f32 %v5223_v30, %v5221_v52 }
 0x68e   : > { %6304 = vrcp.f32 %v5215_v10  ;;  %v5181_v10 = vld [vmem:[#allocation5 + $0x18] sm:$0xff] }
 0x68f   : > { %6306 = vtanh.f32 %v5225_v60  ;;  %5284 = vst [vmem:[#allocation5 + $0x10] sm:$0xff] %v5225_v60 }
 0x697   : > { %v6303_v21 = vpop.eup %6302 }
 0x698   : > { %v6305_v26 = vpop.eup %6304  ;;  %v5228_v63 = vmul.f32 %v6303_v21, %v6301_v61 }
 0x699   : > { %v6307_v2 = vpop.eup %6306 }
 0x69a   : > { %5278 = vst [vmem:[#allocation4] sm:$0xff] %v5228_v63  ;;  %v5290_v6 = vadd.f32 %v5286_v62, %v5228_v63  ;;  %v5229_v9 = vmul.f32 %v6307_v2, %v6305_v26 }
 0x69c   : > { %5294 = vst [vmem:[#allocation6] sm:$0xff] %v5290_v6  ;;  %5280 = vst [vmem:[#allocation4 + $0x10] sm:$0xff] %v5229_v9  ;;  %v5292_v11 = vadd.f32 %v5288_v3, %v5229_v9  ;;  %v5287_v9 = vld [vmem:[#allocation6 + $0x8] sm:$0xff] }
 0x69e   : > { %5296 = vst [vmem:[#allocation6 + $0x10] sm:$0xff] %v5292_v11 }
 0x6ab   : > { %v5080_v22 = vpop.f32.mrb[4].mxu0 }
 0x6ac   : > { %v5170_v50 = vadd.f32 %v5162_v17, %v5080_v22  ;;  %v5082_v1 = vpop.f32.mrb[5].mxu0  ;;  %v5123_v0 = vpop.f32.mrb[4].mxu1  ;;  %v5289_v17 = vld [vmem:[#allocation6 + $0x18] sm:$0xff] }
 0x6ad   : > { %v5171_v32 = vadd.f32 %v5163_v18, %v5082_v1  ;;  %v5084_v8 = vpop.f32.mrb[6].mxu0  ;;  %v5125_v28 = vpop.f32.mrb[5].mxu1  ;;  %v5172_v57 = vadd.f32 %v5164_v7, %v5123_v0  ;;  %v6343_v1 = vld [vmem:[#allocation19 + $0x8] sm:$0xff] (%p4181_p3)   ;;  %v6349_v0 = vld [vmem:[#allocation19 + $0x20] sm:$0xff] (%p4181_p3)   ;;  %v5298_v7 = vld [vmem:[#allocation6] sm:$0xff] (%p4181_p3) }
 0x6ae   : > { %v6095_v34 = vmul.f32 -1.442695, %v5170_v50  ;;  %v5174_v55 = vadd.f32 %v5166_v19, %v5084_v8  ;;  %v5086_v29 = vpop.f32.mrb[7].mxu0  ;;  %v5127_v38 = vpop.f32.mrb[6].mxu1  ;;  %v5173_v36 = vadd.f32 %v5165_v20, %v5125_v28  ;;  %v6342_v50 = vld [vmem:[#allocation19 + $0x48] sm:$0xff] (%p4181_p3)   ;;  %v6345_v8 = vld [vmem:[#allocation19 + $0x10] sm:$0xff] (%p4181_p3)  }
 0x6af   : > { %v6097_v58 = vmul.f32 -1.442695, %v5171_v32  ;;  %v5175_v4 = vadd.f32 %v5167_v23, %v5086_v29  ;;  %v5129_v35 = vpop.f32.mrb[7].mxu1  ;;  %v5176_v37 = vadd.f32 %v5168_v44, %v5127_v38  ;;  %v6340_v23 = vld [vmem:[#allocation19 + $0x40] sm:$0xff] (%p4181_p3)   ;;  %v6344_v32 = vld [vmem:[#allocation19 + $0x50] sm:$0xff] (%p4181_p3)   ;;  %v5302_v44 = vmul.f32 (%p4181_p3), 0.125, %v5298_v7 }
 0x6b0   : > { %6308 = vpow2.f32 %v6095_v34  ;;  %v6096_v16 = vmul.f32 -1.442695, %v5174_v55  ;;  %v5177_v49 = vadd.f32 %v5169_v13, %v5129_v35  ;;  %v6099_v5 = vmul.f32 -1.442695, %v5173_v36  ;;  %6133 = vmatprep.subr.bf16.mxu0 (%p4181_p3), %v6340_v23  ;;  %v6346_v34 = vld [vmem:[#allocation19 + $0x58] sm:$0xff] (%p4181_p3)   ;;  %v6348_v29 = vld [vmem:[#allocation19 + $0x60] sm:$0xff] (%p4181_p3)  }
 0x6b1   : > { %6310 = vpow2.f32 %v6097_v58  ;;  %v6098_v12 = vmul.f32 -1.442695, %v5175_v4  ;;  %6134 = vmatpush3.bf16.msra.mxu0 (%p4181_p3), %v6341_v24  ;;  %v6347_v55 = vld [vmem:[#allocation19 + $0x18] sm:$0xff] (%p4181_p3)   ;;  %v6352_v13 = vld [vmem:[#allocation19 + $0x70] sm:$0xff] (%p4181_p3)   ;;  %v5300_v35 = vld [vmem:[#allocation6 + $0x10] sm:$0xff] (%p4181_p3) }
 0x6b2   : > { %6312 = vpow2.f32 %v6096_v16  ;;  %v6100_v56 = vmul.f32 -1.442695, %v5177_v49  ;;  %6135 = vmatprep.subr.bf16.mxu0 (%p4181_p3), %v6342_v50  ;;  %v6351_v16 = vld [vmem:[#allocation19 + $0x28] sm:$0xff] (%p4181_p3)   ;;  %v6354_v36 = vld [vmem:[#allocation19 + $0x78] sm:$0xff] (%p4181_p3)   ;;  %v5304_v49 = vmul.f32 (%p4181_p3), 0.125, %v5300_v35 }
 0x6b3   : > { %6314 = vpow2.f32 %v6098_v12  ;;  %v6353_v12 = vld [vmem:[#allocation19 + $0x30] sm:$0xff] (%p4181_p3)  }
 0x6b4   : > { %6316 = vtanh.f32 %v5172_v57  ;;  %v6355_v57 = vld [vmem:[#allocation19 + $0x38] sm:$0xff] (%p4181_p3)  }
 0x6b5   : > { %6318 = vpow2.f32 %v6099_v5  ;;  %6136 = vmatpush3.bf16.msra.mxu0 (%p4181_p3), %v6343_v1  ;;  %v5306_v5 = vpack.c.bf16 (%p4181_p3), %v5304_v49, %v5302_v44 }
 0x6b6   : > { %6320 = vtanh.f32 %v5176_v37  ;;  %6137 = vmatprep.subr.bf16.mxu0 (%p4181_p3), %v6344_v32 }
 0x6b7   : > { %6322 = vpow2.f32 %v6100_v56 }
 0x6b9   :  { %6138 = vmatpush3.bf16.msra.mxu0 (%p4181_p3), %v6345_v8 }
 0x6ba   : > { %v6309_v39 = vpop.eup %6308  ;;  %6139 = vmatprep.subr.bf16.mxu0 (%p4181_p3), %v6346_v34 }
 0x6bb   : > { %v6311_v41 = vpop.eup %6310  ;;  %v5236_v25 = vadd.f32 1.0, %v6309_v39 }
 0x6bc   : > { %v6313_v43 = vpop.eup %6312  ;;  %v5248_v46 = vadd.f32 1.0, %v6311_v41 }
 0x6bd   : > { %v6315_v47 = vpop.eup %6314  ;;  %6324 = vrcp.f32 %v5236_v25  ;;  %v5237_v48 = vadd.f32 1.0, %v6313_v43  ;;  %6140 = vmatpush3.bf16.msra.mxu0 (%p4181_p3), %v6347_v55  ;;  %v6101_v25 = vld [vmem:[#allocation21] ss:$0 sm:$0xff] (%p4181_p3) }
 0x6be   : > { %6326 = vrcp.f32 %v5248_v46  ;;  %v5249_v42 = vadd.f32 1.0, %v6315_v47  ;;  %v6317_v33 = vpop.eup %6316  ;;  %6141 = vmatprep.subr.bf16.mxu0 (%p4181_p3), %v6348_v29 }
 0x6bf   : > { %6328 = vrcp.f32 %v5237_v48  ;;  %v6319_v40 = vpop.eup %6318 }
 0x6c0   : > { %6330 = vrcp.f32 %v5249_v42  ;;  %v6321_v53 = vpop.eup %6320  ;;  %v5262_v31 = vadd.f32 1.0, %v6319_v40 }
 0x6c1   : > { %v6323_v54 = vpop.eup %6322  ;;  %6142 = vmatpush3.bf16.msra.mxu0 (%p4181_p3), %v6349_v0 }
 0x6c2   : > { %v5263_v62 = vadd.f32 1.0, %v6323_v54  ;;  %6332 = vrcp.f32 %v5262_v31  ;;  %6143 = vmatprep.subr.bf16.mxu0 (%p4181_p3), %v6350_v27 }
 0x6c5   :  { %6144 = vmatpush3.bf16.msra.mxu0 (%p4181_p3), %v6351_v16 }
 0x6c6   :  { %6145 = vmatprep.subr.bf16.mxu0 (%p4181_p3), %v6352_v13 }
 0x6c7   : > { %v6325_v59 = vpop.eup %6324 }
 0x6c8   : > { %v6327_v30 = vpop.eup %6326  ;;  %v5270_v52 = vmul.f32 %v6325_v59, %v6317_v33 }
 0x6c9   : > { %v6329_v51 = vpop.eup %6328  ;;  %v5268_v60 = vmul.f32 %v6327_v30, %v5179_v45  ;;  %6146 = vmatpush3.bf16.msra.mxu0 (%p4181_p3), %v6353_v12 }
 0x6ca   : > { %v6331_v61 = vpop.eup %6330  ;;  %v5271_v21 = vmul.f32 %v6329_v51, %v6321_v53  ;;  %6147 = vmatprep.subr.bf16.mxu0 (%p4181_p3), %v6354_v36 }
 0x6cb   : > { %v5269_v26 = vmul.f32 %v6331_v61, %v5181_v10  ;;  %v5272_v63 = vadd.f32 %v5270_v52, %v5268_v60 }
 0x6cc   : > { %v6333_v3 = vpop.eup %6332 }
 0x6cd   : > { %6334 = vtanh.f32 %v5272_v63  ;;  %5283 = vst [vmem:[#allocation5 + $0x8] sm:$0xff] %v5272_v63  ;;  %v5273_v2 = vadd.f32 %v5271_v21, %v5269_v26  ;;  %6148 = vmatpush3.bf16.msra.mxu0 (%p4181_p3), %v6355_v57 }
 0x6ce   : > { %6336 = vrcp.f32 %v5263_v62 }
 0x6cf   : > { %6338 = vtanh.f32 %v5273_v2  ;;  %5285 = vst [vmem:[#allocation5 + $0x18] sm:$0xff] %v5273_v2 }
 0x6d7   : > { %v6335_v6 = vpop.eup %6334 }
 0x6d8   : > { %v6337_v11 = vpop.eup %6336  ;;  %v5276_v14 = vmul.f32 %v6335_v6, %v6333_v3  ;;  %4183 = sbr.rel (!%p4181_p3) target bundleno = 1364 (0x554), region = 123 }
 0x6d9   : > { %v6339_v15 = vpop.eup %6338 }
 0x6da   : > { %5279 = vst [vmem:[#allocation4 + $0x8] sm:$0xff] %v5276_v14  ;;  %v5291_v18 = vadd.f32 %v5287_v9, %v5276_v14  ;;  %v5277_v19 = vmul.f32 %v6339_v15, %v6337_v11 }
 0x6dc   : > { %5295 = vst [vmem:[#allocation6 + $0x8] sm:$0xff] %v5291_v18  ;;  %5281 = vst [vmem:[#allocation4 + $0x18] sm:$0xff] %v5277_v19  ;;  %v5293_v22 = vadd.f32 %v5289_v17, %v5277_v19 }
 0x6de   : > { %5297 = vst [vmem:[#allocation6 + $0x18] sm:$0xff] %v5293_v22 }
 0x6e3   :  { %v5299_v20 = vld [vmem:[#allocation6 + $0x8] sm:$0xff] }
 0x6e4   :  { %v5303_v4 = vmul.f32 0.125, %v5299_v20 }
 0x6e5   :  { %v5301_v58 = vld [vmem:[#allocation6 + $0x18] sm:$0xff] }
 0x6e6   :  { %v5305_v28 = vmul.f32 0.125, %v5301_v58 }
 0x6e8   :  { %v5307_v38 = vpack.c.bf16 %v5305_v28, %v5303_v4 }
 0x6ea   :  { %5475 = vmatprep.mubr.bf16.mxu0 %v5307_v38 }
 0x6eb   :  { %5476 = vmatmul.mubr.bf16.vlgmr.msra.gmra.mrb[0].mxu0 %v5306_v5 }
 0x7be   :  { %v6149_v37 = vpop.f32.mrb[0].mxu0 }
 0x7bf   :  { %v6150_v56 = vpop.f32.mrb[1].mxu0 }
 0x7c0   :  { %v6151_v39 = vadd.f32 %v6150_v56, %v6149_v37  ;;  %v6152_v41 = vpop.f32.mrb[2].mxu0 }
 0x7c1   :  { %v6153_v43 = vpop.f32.mrb[3].mxu0 }
 0x7c2   :  { %v6154_v46 = vadd.f32 %v6153_v43, %v6152_v41  ;;  %v5478_v47 = vadd.f32 %v6151_v39, %v6101_v25 }
 0x7c4   :  { %v5481_v48 = vadd.f32 %v6154_v46, %v6101_v25 }
 0x7c6   :  { %v6131_v42 = vpack.c.bf16 %v5481_v48, %v5478_v47 }
 0x7c8   :  { %6132 = vst [vmem:[#allocation22] sm:$0xff] %v6131_v42  }
 0x7c9   :  { %6565 = shalt.err (!%p6562_p8)
}
 0x7ca   :  { %s6566_s27 = scalar_lea.hbm %s7417_s9, 128 }
 0x7cb   :  { %p6567_p9 = scmp.ne.s32.totalorder %s7417_s9, %s6566_s27  ;;  %p6570_p10 = scmp.lt.u32.totalorder %s6566_s27, %s7417_s9 }
 0x7cd   :  { %p6572_p11 = pnand %p6570_p10, %p6567_p9 }
 0x7cf   :  { %6575 = shalt.err (!%p6572_p11)
}
 0x7d0   :  { %5505 = dma.vmem_to_hbm [thread:$0]  %s5500_s10, 128, %s7417_s9, [#allocation9], %s6610_s5, %s6610_s5, %s6611_s26  }
 0x7d1   :  { %6594 = dma.done.wait [#allocation9], 128  }
 0x7d2   :  { %6595 = vsyncadd [#allocation9], 4294967168 }
 0x7d3   :  { %5509 = vsyncpa [#allocation8], 1 }
 0x7d4   :  { %5510 = vsyncpa [#allocation11], 1 }
 0x7d5   :  { %5511 = vsyncpa [#allocation14], 1 }
 0x7d6   :  { %5512 = vsyncpa [#allocation17], 1 }
 0x7d7   :  { %5513 = vsyncpa [#allocation20], 1 }
 0x7d8   :  { %5514 = vsyncpa [#allocation9], 1 }

</bundles_post_ra>
